<compile_context>
chip_gen: v7x
topology: tpu7x:2x2x1
jax: 0.10.0
libtpu: 0.0.40
codegen_flags: <defaults>
</compile_context>

<pallas_src>
import functools

import jax
import jax.numpy as jnp
import numpy as np
from jax.experimental import pallas as pl
from jax.experimental.pallas import tpu as pltpu

EPS = 1e-5


def _fused_kernel(x_ref, gb1_ref, w1_ref, gb2_ref, w2_ref, masks_ref,
                  o_ref, acc_y_ref, z2p_ref, *, img_w):
    """Fused BN+ReLU+1x1conv (chunked over C1) + BN+ReLU+3x3conv (last chunk).

    x_ref:     (tk, P)      input chunk, channels on sublanes, P = H*W
    gb1_ref:   (tk, 2)      BN1 [gamma | beta] for this chunk
    w1_ref:    (C2, tk)     bf16 1x1-conv weight chunk
    gb2_ref:   (C2, 2)      BN2 [gamma | beta]
    w2_ref:    (9*C3, C2)   bf16 3x3-conv weight, rows grouped by tap t=dy*3+dx
    masks_ref: (9, 1, Ppad) per-tap validity masks (1.0 valid / 0.0 padded)
    o_ref:     (C3, Ppad)   lane-dense output (valid lanes [0, P))
    acc_y_ref: (C2, P)      f32 scratch: stage-1 (1x1 conv) accumulator
    z2p_ref:   (C2, Ppad)   bf16 scratch: lane-padded stage-2 MXU operand
    """
    k = pl.program_id(0)
    n_k = pl.num_programs(0)
    p = x_ref.shape[1]
    p_pad = z2p_ref.shape[1]
    c2 = acc_y_ref.shape[0]
    c3 = o_ref.shape[0]
    inv_p = 1.0 / p

    # ---- Stage 1 (per C1 chunk): BN1 batch stats (channel-local), ReLU,
    #      partial 1x1 conv accumulated into VMEM.
    x = x_ref[...]                                           # (tk, P) f32
    s1 = jnp.sum(x, axis=1, keepdims=True)
    q1 = jnp.sum(x * x, axis=1, keepdims=True)
    mean1 = s1 * inv_p
    var1 = q1 * inv_p - mean1 * mean1                        # biased variance
    gb1 = gb1_ref[...]                                       # (tk, 2)
    scale1 = jax.lax.rsqrt(var1 + EPS) * gb1[:, 0:1]
    shift1 = gb1[:, 1:2] - mean1 * scale1
    z1 = jnp.maximum(x * scale1 + shift1, 0.0)               # f32 VPU math
    part = jnp.dot(w1_ref[...], z1.astype(jnp.bfloat16),
                   preferred_element_type=jnp.float32)       # (C2, P) f32

    @pl.when(k == 0)
    def _():
        acc_y_ref[...] = part

    @pl.when(k > 0)
    def _():
        acc_y_ref[...] += part

    # ---- Stage 2 (last chunk only): BN2 batch stats, ReLU, 3x3 conv, store.
    @pl.when(k == n_k - 1)
    def _():
        y = acc_y_ref[...]                                   # (C2, P) f32
        s2 = jnp.sum(y, axis=1, keepdims=True)
        q2 = jnp.sum(y * y, axis=1, keepdims=True)
        mean2 = s2 * inv_p
        var2 = q2 * inv_p - mean2 * mean2
        gb2 = gb2_ref[...]                                   # (C2, 2)
        scale2 = jax.lax.rsqrt(var2 + EPS) * gb2[:, 0:1]
        shift2 = gb2[:, 1:2] - mean2 * scale2
        z2 = jnp.maximum(y * scale2 + shift2, 0.0)           # (C2, P) f32

        # Lane-pad z2 (bf16 MXU operand); zero only the real tail [p:p_pad).
        z2p_ref[:, :p] = z2.astype(jnp.bfloat16)
        if p < p_pad:
            z2p_ref[:, p:] = jnp.zeros((c2, p_pad - p), jnp.bfloat16)

        # 3x3 conv: ONE matmul for all nine taps (taps stacked on the output
        # channel axis), then cheap lane rolls (XLU) + masked accumulation.
        r_all = jnp.dot(w2_ref[...], z2p_ref[...],
                        preferred_element_type=jnp.float32)  # (9*C3, Ppad)
        acc = jnp.zeros((c3, p_pad), jnp.float32)
        for dy in range(3):
            for dx in range(3):
                t = dy * 3 + dx
                off = (dy - 1) * img_w + (dx - 1)            # flat tap offset
                r_t = r_all[t * c3:(t + 1) * c3, :]          # sublane-aligned
                if off == 0:
                    shifted = r_t
                else:
                    # want shifted[:, q] == r_t[:, q + off]  =>  roll by -off
                    shifted = pltpu.roll(r_t, shift=(-off) % p_pad, axis=1)
                acc = acc + shifted * masks_ref[t]           # (1, Ppad) bcast
        o_ref[...] = acc                                     # lane-dense store


def _tap_masks(h, w, p_pad):
    """(9, 1, p_pad) float validity masks for the 3x3 taps, t = dy*3 + dx."""
    p = h * w
    ys, xs = np.divmod(np.arange(p), w)
    masks = np.zeros((9, 1, p_pad), np.float32)
    for dy in range(3):
        for dx in range(3):
            sy, sx = ys + dy - 1, xs + dx - 1
            valid = (sy >= 0) & (sy < h) & (sx >= 0) & (sx < w)
            masks[dy * 3 + dx, 0, :p] = valid.astype(np.float32)
    return jnp.asarray(masks)


def prepare_params(params, h, w):
    """One-time parameter relayout / precast, hoisted out of the call path."""
    g1, b1 = params["bn1_gamma"], params["bn1_beta"]
    g2, b2 = params["bn2_gamma"], params["bn2_beta"]
    c1 = g1.shape[0]
    w1 = params["conv1_w"].reshape(-1, c1)                   # (C2, C1)
    c2 = w1.shape[0]
    w2 = params["conv2_w"]                                   # (C3, C2, 3, 3)
    c3 = w2.shape[0]
    # (C3,C2,3,3) -> (9*C3, C2): row (dy*3+dx)*C3 + co  <->  w2[co, ci, dy, dx]
    w2m = jnp.transpose(w2, (2, 3, 0, 1)).reshape(9 * c3, c2)
    p = h * w
    p_pad = ((p + 127) // 128) * 128
    return {
        "gb1": jnp.stack([g1, b1], axis=1).astype(jnp.float32),   # (C1, 2)
        "w1": w1.astype(jnp.bfloat16),                            # (C2, C1) bf16
        "gb2": jnp.stack([g2, b2], axis=1).astype(jnp.float32),   # (C2, 2)
        "w2m": w2m.astype(jnp.bfloat16),                          # (9*C3, C2) bf16
        "masks": _tap_masks(h, w, p_pad),                         # (9, 1, Ppad)
    }


@jax.jit
def model_forward(x_nchw, prepped):
    """Forward pass of M (training-mode BN).  Input/output are NCHW f32."""
    n, c1, h, w = x_nchw.shape
    if n != 1:
        # TODO(synk): batch > 1 needs BN stats over N*H*W with a batched layout.
        raise NotImplementedError("fused kernel assumes the module's N == 1 input")
    p = h * w
    p_pad = ((p + 127) // 128) * 128
    c2 = prepped["w1"].shape[0]
    c3 = prepped["w2m"].shape[0] // 9

    x2d = x_nchw.reshape(c1, p)                       # free reshape (N == 1)

    tk = 384 if (c1 % 384 == 0) else c1               # 4 chunks for C1 = 1536
    n_k = c1 // tk

    out2d = pl.pallas_call(
        functools.partial(_fused_kernel, img_w=w),
        out_shape=jax.ShapeDtypeStruct((c3, p_pad), jnp.float32),
        grid=(n_k,),
        in_specs=[
            pl.BlockSpec((tk, p), lambda k: (k, 0)),            # x chunk
            pl.BlockSpec((tk, 2), lambda k: (k, 0)),            # BN1 [gamma|beta]
            pl.BlockSpec((c2, tk), lambda k: (0, k)),           # 1x1 weight chunk
            pl.BlockSpec((c2, 2), lambda k: (0, 0)),            # BN2 [gamma|beta]
            pl.BlockSpec((9 * c3, c2), lambda k: (0, 0)),       # 3x3 weight (taps)
            pl.BlockSpec((9, 1, p_pad), lambda k: (0, 0, 0)),   # tap masks
        ],
        out_specs=pl.BlockSpec((c3, p_pad), lambda k: (0, 0)),
        scratch_shapes=[
            pltpu.VMEM((c2, p), jnp.float32),        # stage-1 accumulator
            pltpu.VMEM((c2, p_pad), jnp.bfloat16),   # lane-padded z2 (MXU operand)
        ],
        compiler_params=pltpu.CompilerParams(
            dimension_semantics=("arbitrary",),
            vmem_limit_bytes=32 * 1024 * 1024,
        ),
    )(x2d, prepped["gb1"], prepped["w1"], prepped["gb2"],
      prepped["w2m"], prepped["masks"])

    return out2d[:, :p].reshape(n, c3, h, w)


def reference_forward(x, params):
    """Pure-JAX reference (training-mode BN), for a numerical self-check."""
    g1 = params["bn1_gamma"].reshape(1, -1, 1, 1)
    b1 = params["bn1_beta"].reshape(1, -1, 1, 1)
    m1 = jnp.mean(x, axis=(0, 2, 3), keepdims=True)
    v1 = jnp.mean((x - m1) ** 2, axis=(0, 2, 3), keepdims=True)
    z1 = jnp.maximum((x - m1) * jax.lax.rsqrt(v1 + EPS) * g1 + b1, 0.0)
    y = jax.lax.conv_general_dilated(
        z1, params["conv1_w"], (1, 1), "VALID",
        dimension_numbers=("NCHW", "OIHW", "NCHW"),
        precision=jax.lax.Precision.HIGHEST)
    g2 = params["bn2_gamma"].reshape(1, -1, 1, 1)
    b2 = params["bn2_beta"].reshape(1, -1, 1, 1)
    m2 = jnp.mean(y, axis=(0, 2, 3), keepdims=True)
    v2 = jnp.mean((y - m2) ** 2, axis=(0, 2, 3), keepdims=True)
    z2 = jnp.maximum((y - m2) * jax.lax.rsqrt(v2 + EPS) * g2 + b2, 0.0)
    return jax.lax.conv_general_dilated(
        z2, params["conv2_w"], (1, 1), [(1, 1), (1, 1)],
        dimension_numbers=("NCHW", "OIHW", "NCHW"),
        precision=jax.lax.Precision.HIGHEST)


def init_params(key):
    c1, c2, c3 = 1536, 192, 48
    k1, k2, k3, k4, k5, k6 = jax.random.split(key, 6)
    return {
        # BatchNorm2d(1536) affine
        "bn1_gamma": 1.0 + 0.1 * jax.random.normal(k1, (c1,), jnp.float32),
        "bn1_beta": 0.1 * jax.random.normal(k2, (c1,), jnp.float32),
        # Conv2d(1536, 192, 1x1, bias=False), PyTorch OIHW layout
        "conv1_w": 0.02 * jax.random.normal(k3, (c2, c1, 1, 1), jnp.float32),
        # BatchNorm2d(192) affine
        "bn2_gamma": 1.0 + 0.1 * jax.random.normal(k4, (c2,), jnp.float32),
        "bn2_beta": 0.1 * jax.random.normal(k5, (c2,), jnp.float32),
        # Conv2d(192, 48, 3x3, pad=1, bias=False), PyTorch OIHW layout
        "conv2_w": 0.05 * jax.random.normal(k6, (c3, c2, 3, 3), jnp.float32),
    }


if __name__ == "__main__":
    key = jax.random.PRNGKey(0)
    kx, kp = jax.random.split(key)
    # Same shape as the reference module's input x309.
    x = jax.random.normal(kx, (1, 1536, 14, 14), jnp.float32)
    params = init_params(kp)

    # One-time (load-time) parameter prep: relayout + bf16 precast + tap masks.
    prepped = prepare_params(params, x.shape[2], x.shape[3])
    prepped = jax.tree_util.tree_map(jax.block_until_ready, prepped)

    out = jax.block_until_ready(model_forward(x, prepped))
    assert out.shape == (1, 48, 14, 14), out.shape
    assert out.dtype == jnp.float32

    ref = jax.block_until_ready(jax.jit(reference_forward)(x, params))
    rel_err = float(jnp.max(jnp.abs(out - ref)) / (jnp.max(jnp.abs(ref)) + 1e-12))
    assert rel_err < 2e-2, f"numerical mismatch vs reference: rel_err={rel_err}"

    print("KERNEL_OK")
</pallas_src>

<mosaic_0001>
module attributes {stable_mosaic.version = 11 : i64} {
  func.func @_fused_kernel(%arg0: i32, %arg1: memref<384x196xf32, #tpu.memory_space<vmem>>, %arg2: memref<384x2xf32, #tpu.memory_space<vmem>>, %arg3: memref<192x384xbf16, #tpu.memory_space<vmem>>, %arg4: memref<192x2xf32, #tpu.memory_space<vmem>>, %arg5: memref<432x192xbf16, #tpu.memory_space<vmem>>, %arg6: memref<9x1x256xf32, #tpu.memory_space<vmem>>, %arg7: memref<48x256xf32, #tpu.memory_space<vmem>>, %arg8: memref<192x196xf32, #tpu.memory_space<vmem>>, %arg9: memref<192x256xbf16, #tpu.memory_space<vmem>>) attributes {dimension_semantics = [#tpu.dimension_semantics<arbitrary>], iteration_bounds = array<i64: 4>, scalar_prefetch = 0 : i64, scratch_operands = 2 : i64, tpu.core_type = #tpu.core_type<tc>, window_params = [{transform_indices = @transform_0, window_bounds = array<i64: 384, 196>}, {transform_indices = @transform_1, window_bounds = array<i64: 384, 2>}, {transform_indices = @transform_2, window_bounds = array<i64: 192, 384>}, {pipeline_mode = #tpu.pipeline_mode<synchronous>, transform_indices = @transform_3, window_bounds = array<i64: 192, 2>}, {pipeline_mode = #tpu.pipeline_mode<synchronous>, transform_indices = @transform_4, window_bounds = array<i64: 432, 192>}, {pipeline_mode = #tpu.pipeline_mode<synchronous>, transform_indices = @transform_5, window_bounds = array<i64: 9, 1, 256>}, {pipeline_mode = #tpu.pipeline_mode<synchronous>, transform_indices = @transform_6, window_bounds = array<i64: 48, 256>}]} {
    %c0 = arith.constant 0 : index
    %c0_0 = arith.constant 0 : index
    %0 = vector.load %arg1[%c0, %c0_0] : memref<384x196xf32, #tpu.memory_space<vmem>>, vector<384x196xf32>
    %cst = arith.constant dense<0.000000e+00> : vector<384xf32>
    %1 = vector.multi_reduction <add>, %0, %cst [1] : vector<384x196xf32> to vector<384xf32>
    %2 = vector.shape_cast %1 : vector<384xf32> to vector<384x1xf32>
    %3 = arith.mulf %0, %0 : vector<384x196xf32>
    %cst_1 = arith.constant dense<0.000000e+00> : vector<384xf32>
    %4 = vector.multi_reduction <add>, %3, %cst_1 [1] : vector<384x196xf32> to vector<384xf32>
    %5 = vector.shape_cast %4 : vector<384xf32> to vector<384x1xf32>
    %cst_2 = arith.constant 0.00510204071 : f32
    %6 = vector.broadcast %cst_2 : f32 to vector<384x1xf32>
    %7 = arith.mulf %2, %6 : vector<384x1xf32>
    %cst_3 = arith.constant 0.00510204071 : f32
    %8 = vector.broadcast %cst_3 : f32 to vector<384x1xf32>
    %9 = arith.mulf %5, %8 : vector<384x1xf32>
    %10 = arith.mulf %7, %7 : vector<384x1xf32>
    %11 = arith.subf %9, %10 : vector<384x1xf32>
    %c0_4 = arith.constant 0 : index
    %c0_5 = arith.constant 0 : index
    %12 = vector.load %arg2[%c0_4, %c0_5] : memref<384x2xf32, #tpu.memory_space<vmem>>, vector<384x2xf32>
    %cst_6 = arith.constant 9.99999974E-6 : f32
    %13 = vector.broadcast %cst_6 : f32 to vector<384x1xf32>
    %14 = arith.addf %11, %13 : vector<384x1xf32>
    %15 = math.rsqrt %14 : vector<384x1xf32>
    %16 = vector.extract_strided_slice %12 {offsets = [0, 0], sizes = [384, 1], strides = [1, 1]} : vector<384x2xf32> to vector<384x1xf32>
    %17 = arith.mulf %15, %16 : vector<384x1xf32>
    %18 = vector.extract_strided_slice %12 {offsets = [0, 1], sizes = [384, 1], strides = [1, 1]} : vector<384x2xf32> to vector<384x1xf32>
    %19 = arith.mulf %7, %17 : vector<384x1xf32>
    %20 = arith.subf %18, %19 : vector<384x1xf32>
    %21 = vector.broadcast %17 : vector<384x1xf32> to vector<384x196xf32>
    %22 = arith.mulf %0, %21 : vector<384x196xf32>
    %23 = vector.broadcast %20 : vector<384x1xf32> to vector<384x196xf32>
    %24 = arith.addf %22, %23 : vector<384x196xf32>
    %cst_7 = arith.constant 0.000000e+00 : f32
    %25 = vector.broadcast %cst_7 : f32 to vector<384x196xf32>
    %26 = arith.maximumf %24, %25 : vector<384x196xf32>
    %c0_8 = arith.constant 0 : index
    %c0_9 = arith.constant 0 : index
    %27 = vector.load %arg3[%c0_8, %c0_9] : memref<192x384xbf16, #tpu.memory_space<vmem>>, vector<192x384xbf16>
    %28 = arith.truncf %26 : vector<384x196xf32> to vector<384x196xbf16>
    %cst_10 = arith.constant dense<0.000000e+00> : vector<192x196xf32>
    %29 = tpu.matmul %27, %28, %cst_10 {dimension_numbers = #tpu.dot_dimension_numbers<[1], [0], [0], [1], [0, 0, 1, 1], [], []>} : vector<192x384xbf16>, vector<384x196xbf16>, vector<192x196xf32> -> vector<192x196xf32>
    %c0_i32 = arith.constant 0 : i32
    %30 = arith.cmpi eq, %arg0, %c0_i32 : i32
    %31 = arith.extui %30 : i1 to i32
    %c0_i32_11 = arith.constant 0 : i32
    %32 = arith.cmpi ne, %31, %c0_i32_11 : i32
    scf.if %32 {
      %c0_15 = arith.constant 0 : index
      %c0_16 = arith.constant 0 : index
      %39 = vector.load %arg8[%c0_15, %c0_16] : memref<192x196xf32, #tpu.memory_space<vmem>>, vector<192x196xf32>
      tpu.vector_store %arg8[%c0_15, %c0_16], %29 {strides = array<i32>} : memref<192x196xf32, #tpu.memory_space<vmem>>, vector<192x196xf32>,
    } else {
    }
    %c0_i32_12 = arith.constant 0 : i32
    %33 = arith.cmpi sgt, %arg0, %c0_i32_12 : i32
    %34 = arith.extui %33 : i1 to i32
    %c0_i32_13 = arith.constant 0 : i32
    %35 = arith.cmpi ne, %34, %c0_i32_13 : i32
    scf.if %35 {
      %c0_15 = arith.constant 0 : index
      %c0_16 = arith.constant 0 : index
      %39 = vector.load %arg8[%c0_15, %c0_16] : memref<192x196xf32, #tpu.memory_space<vmem>>, vector<192x196xf32>
      %40 = arith.addf %39, %29 : vector<192x196xf32>
      %c0_17 = arith.constant 0 : index
      %c0_18 = arith.constant 0 : index
      %41 = vector.load %arg8[%c0_17, %c0_18] : memref<192x196xf32, #tpu.memory_space<vmem>>, vector<192x196xf32>
      tpu.vector_store %arg8[%c0_17, %c0_18], %40 {strides = array<i32>} : memref<192x196xf32, #tpu.memory_space<vmem>>, vector<192x196xf32>,
    } else {
    }
    %c3_i32 = arith.constant 3 : i32
    %36 = arith.cmpi eq, %arg0, %c3_i32 : i32
    %37 = arith.extui %36 : i1 to i32
    %c0_i32_14 = arith.constant 0 : i32
    %38 = arith.cmpi ne, %37, %c0_i32_14 : i32
    scf.if %38 {
      %c0_15 = arith.constant 0 : index
      %c0_16 = arith.constant 0 : index
      %39 = vector.load %arg8[%c0_15, %c0_16] : memref<192x196xf32, #tpu.memory_space<vmem>>, vector<192x196xf32>
      %cst_17 = arith.constant dense<0.000000e+00> : vector<192xf32>
      %40 = vector.multi_reduction <add>, %39, %cst_17 [1] : vector<192x196xf32> to vector<192xf32>
      %41 = vector.shape_cast %40 : vector<192xf32> to vector<192x1xf32>
      %42 = arith.mulf %39, %39 : vector<192x196xf32>
      %cst_18 = arith.constant dense<0.000000e+00> : vector<192xf32>
      %43 = vector.multi_reduction <add>, %42, %cst_18 [1] : vector<192x196xf32> to vector<192xf32>
      %44 = vector.shape_cast %43 : vector<192xf32> to vector<192x1xf32>
      %cst_19 = arith.constant 0.00510204071 : f32
      %45 = vector.broadcast %cst_19 : f32 to vector<192x1xf32>
      %46 = arith.mulf %41, %45 : vector<192x1xf32>
      %cst_20 = arith.constant 0.00510204071 : f32
      %47 = vector.broadcast %cst_20 : f32 to vector<192x1xf32>
      %48 = arith.mulf %44, %47 : vector<192x1xf32>
      %49 = arith.mulf %46, %46 : vector<192x1xf32>
      %50 = arith.subf %48, %49 : vector<192x1xf32>
      %c0_21 = arith.constant 0 : index
      %c0_22 = arith.constant 0 : index
      %51 = vector.load %arg4[%c0_21, %c0_22] : memref<192x2xf32, #tpu.memory_space<vmem>>, vector<192x2xf32>
      %cst_23 = arith.constant 9.99999974E-6 : f32
      %52 = vector.broadcast %cst_23 : f32 to vector<192x1xf32>
      %53 = arith.addf %50, %52 : vector<192x1xf32>
      %54 = math.rsqrt %53 : vector<192x1xf32>
      %55 = vector.extract_strided_slice %51 {offsets = [0, 0], sizes = [192, 1], strides = [1, 1]} : vector<192x2xf32> to vector<192x1xf32>
      %56 = arith.mulf %54, %55 : vector<192x1xf32>
      %57 = vector.extract_strided_slice %51 {offsets = [0, 1], sizes = [192, 1], strides = [1, 1]} : vector<192x2xf32> to vector<192x1xf32>
      %58 = arith.mulf %46, %56 : vector<192x1xf32>
      %59 = arith.subf %57, %58 : vector<192x1xf32>
      %60 = vector.broadcast %56 : vector<192x1xf32> to vector<192x196xf32>
      %61 = arith.mulf %39, %60 : vector<192x196xf32>
      %62 = vector.broadcast %59 : vector<192x1xf32> to vector<192x196xf32>
      %63 = arith.addf %61, %62 : vector<192x196xf32>
      %cst_24 = arith.constant 0.000000e+00 : f32
      %64 = vector.broadcast %cst_24 : f32 to vector<192x196xf32>
      %65 = arith.maximumf %63, %64 : vector<192x196xf32>
      %66 = arith.truncf %65 : vector<192x196xf32> to vector<192x196xbf16>
      %c0_25 = arith.constant 0 : index
      %c0_26 = arith.constant 0 : index
      %67 = vector.load %arg9[%c0_25, %c0_26] : memref<192x256xbf16, #tpu.memory_space<vmem>>, vector<192x196xbf16>
      tpu.vector_store %arg9[%c0_25, %c0_26], %66 {strides = array<i32>} : memref<192x256xbf16, #tpu.memory_space<vmem>>, vector<192x196xbf16>,
      %cst_27 = arith.constant 0.000000e+00 : bf16
      %68 = vector.broadcast %cst_27 : bf16 to vector<192x60xbf16>
      %c0_28 = arith.constant 0 : index
      %c196 = arith.constant 196 : index
      %69 = vector.load %arg9[%c0_28, %c196] : memref<192x256xbf16, #tpu.memory_space<vmem>>, vector<192x60xbf16>
      tpu.vector_store %arg9[%c0_28, %c196], %68 {strides = array<i32>} : memref<192x256xbf16, #tpu.memory_space<vmem>>, vector<192x60xbf16>,
      %c0_29 = arith.constant 0 : index
      %c0_30 = arith.constant 0 : index
      %70 = vector.load %arg5[%c0_29, %c0_30] : memref<432x192xbf16, #tpu.memory_space<vmem>>, vector<432x192xbf16>
      %c0_31 = arith.constant 0 : index
      %c0_32 = arith.constant 0 : index
      %71 = vector.load %arg9[%c0_31, %c0_32] : memref<192x256xbf16, #tpu.memory_space<vmem>>, vector<192x256xbf16>
      %cst_33 = arith.constant dense<0.000000e+00> : vector<432x256xf32>
      %72 = tpu.matmul %70, %71, %cst_33 {dimension_numbers = #tpu.dot_dimension_numbers<[1], [0], [0], [1], [0, 0, 1, 1], [], []>} : vector<432x192xbf16>, vector<192x256xbf16>, vector<432x256xf32> -> vector<432x256xf32>
      %cst_34 = arith.constant 0.000000e+00 : f32
      %73 = vector.broadcast %cst_34 : f32 to vector<48x256xf32>
      %74 = vector.extract_strided_slice %72 {offsets = [0, 0], sizes = [48, 256], strides = [1, 1]} : vector<432x256xf32> to vector<48x256xf32>
      %c15_i32 = arith.constant 15 : i32
      %75 = tpu.dynamic_rotate %74 by %c15_i32 dim 1 : vector<48x256xf32>, i32 -> vector<48x256xf32>
      %c0_35 = arith.constant 0 : index
      %c0_36 = arith.constant 0 : index
      %c0_37 = arith.constant 0 : index
      %76 = vector.load %arg6[%c0_35, %c0_36, %c0_37] : memref<9x1x256xf32, #tpu.memory_space<vmem>>, vector<1x1x256xf32>
      %77 = vector.shape_cast %76 : vector<1x1x256xf32> to vector<1x256xf32>
      %78 = vector.broadcast %77 : vector<1x256xf32> to vector<48x256xf32>
      %79 = arith.mulf %75, %78 : vector<48x256xf32>
      %80 = arith.addf %73, %79 : vector<48x256xf32>
      %81 = vector.extract_strided_slice %72 {offsets = [48, 0], sizes = [48, 256], strides = [1, 1]} : vector<432x256xf32> to vector<48x256xf32>
      %c14_i32 = arith.constant 14 : i32
      %82 = tpu.dynamic_rotate %81 by %c14_i32 dim 1 : vector<48x256xf32>, i32 -> vector<48x256xf32>
      %c1 = arith.constant 1 : index
      %c0_38 = arith.constant 0 : index
      %c0_39 = arith.constant 0 : index
      %83 = vector.load %arg6[%c1, %c0_38, %c0_39] : memref<9x1x256xf32, #tpu.memory_space<vmem>>, vector<1x1x256xf32>
      %84 = vector.shape_cast %83 : vector<1x1x256xf32> to vector<1x256xf32>
      %85 = vector.broadcast %84 : vector<1x256xf32> to vector<48x256xf32>
      %86 = arith.mulf %82, %85 : vector<48x256xf32>
      %87 = arith.addf %80, %86 : vector<48x256xf32>
      %88 = vector.extract_strided_slice %72 {offsets = [96, 0], sizes = [48, 256], strides = [1, 1]} : vector<432x256xf32> to vector<48x256xf32>
      %c13_i32 = arith.constant 13 : i32
      %89 = tpu.dynamic_rotate %88 by %c13_i32 dim 1 : vector<48x256xf32>, i32 -> vector<48x256xf32>
      %c2 = arith.constant 2 : index
      %c0_40 = arith.constant 0 : index
      %c0_41 = arith.constant 0 : index
      %90 = vector.load %arg6[%c2, %c0_40, %c0_41] : memref<9x1x256xf32, #tpu.memory_space<vmem>>, vector<1x1x256xf32>
      %91 = vector.shape_cast %90 : vector<1x1x256xf32> to vector<1x256xf32>
      %92 = vector.broadcast %91 : vector<1x256xf32> to vector<48x256xf32>
      %93 = arith.mulf %89, %92 : vector<48x256xf32>
      %94 = arith.addf %87, %93 : vector<48x256xf32>
      %95 = vector.extract_strided_slice %72 {offsets = [144, 0], sizes = [48, 256], strides = [1, 1]} : vector<432x256xf32> to vector<48x256xf32>
      %c1_i32 = arith.constant 1 : i32
      %96 = tpu.dynamic_rotate %95 by %c1_i32 dim 1 : vector<48x256xf32>, i32 -> vector<48x256xf32>
      %c3 = arith.constant 3 : index
      %c0_42 = arith.constant 0 : index
      %c0_43 = arith.constant 0 : index
      %97 = vector.load %arg6[%c3, %c0_42, %c0_43] : memref<9x1x256xf32, #tpu.memory_space<vmem>>, vector<1x1x256xf32>
      %98 = vector.shape_cast %97 : vector<1x1x256xf32> to vector<1x256xf32>
      %99 = vector.broadcast %98 : vector<1x256xf32> to vector<48x256xf32>
      %100 = arith.mulf %96, %99 : vector<48x256xf32>
      %101 = arith.addf %94, %100 : vector<48x256xf32>
      %102 = vector.extract_strided_slice %72 {offsets = [192, 0], sizes = [48, 256], strides = [1, 1]} : vector<432x256xf32> to vector<48x256xf32>
      %c4 = arith.constant 4 : index
      %c0_44 = arith.constant 0 : index
      %c0_45 = arith.constant 0 : index
      %103 = vector.load %arg6[%c4, %c0_44, %c0_45] : memref<9x1x256xf32, #tpu.memory_space<vmem>>, vector<1x1x256xf32>
      %104 = vector.shape_cast %103 : vector<1x1x256xf32> to vector<1x256xf32>
      %105 = vector.broadcast %104 : vector<1x256xf32> to vector<48x256xf32>
      %106 = arith.mulf %102, %105 : vector<48x256xf32>
      %107 = arith.addf %101, %106 : vector<48x256xf32>
      %108 = vector.extract_strided_slice %72 {offsets = [240, 0], sizes = [48, 256], strides = [1, 1]} : vector<432x256xf32> to vector<48x256xf32>
      %c255_i32 = arith.constant 255 : i32
      %109 = tpu.dynamic_rotate %108 by %c255_i32 dim 1 : vector<48x256xf32>, i32 -> vector<48x256xf32>
      %c5 = arith.constant 5 : index
      %c0_46 = arith.constant 0 : index
      %c0_47 = arith.constant 0 : index
      %110 = vector.load %arg6[%c5, %c0_46, %c0_47] : memref<9x1x256xf32, #tpu.memory_space<vmem>>, vector<1x1x256xf32>
      %111 = vector.shape_cast %110 : vector<1x1x256xf32> to vector<1x256xf32>
      %112 = vector.broadcast %111 : vector<1x256xf32> to vector<48x256xf32>
      %113 = arith.mulf %109, %112 : vector<48x256xf32>
      %114 = arith.addf %107, %113 : vector<48x256xf32>
      %115 = vector.extract_strided_slice %72 {offsets = [288, 0], sizes = [48, 256], strides = [1, 1]} : vector<432x256xf32> to vector<48x256xf32>
      %c243_i32 = arith.constant 243 : i32
      %116 = tpu.dynamic_rotate %115 by %c243_i32 dim 1 : vector<48x256xf32>, i32 -> vector<48x256xf32>
      %c6 = arith.constant 6 : index
      %c0_48 = arith.constant 0 : index
      %c0_49 = arith.constant 0 : index
      %117 = vector.load %arg6[%c6, %c0_48, %c0_49] : memref<9x1x256xf32, #tpu.memory_space<vmem>>, vector<1x1x256xf32>
      %118 = vector.shape_cast %117 : vector<1x1x256xf32> to vector<1x256xf32>
      %119 = vector.broadcast %118 : vector<1x256xf32> to vector<48x256xf32>
      %120 = arith.mulf %116, %119 : vector<48x256xf32>
      %121 = arith.addf %114, %120 : vector<48x256xf32>
      %122 = vector.extract_strided_slice %72 {offsets = [336, 0], sizes = [48, 256], strides = [1, 1]} : vector<432x256xf32> to vector<48x256xf32>
      %c242_i32 = arith.constant 242 : i32
      %123 = tpu.dynamic_rotate %122 by %c242_i32 dim 1 : vector<48x256xf32>, i32 -> vector<48x256xf32>
      %c7 = arith.constant 7 : index
      %c0_50 = arith.constant 0 : index
      %c0_51 = arith.constant 0 : index
      %124 = vector.load %arg6[%c7, %c0_50, %c0_51] : memref<9x1x256xf32, #tpu.memory_space<vmem>>, vector<1x1x256xf32>
      %125 = vector.shape_cast %124 : vector<1x1x256xf32> to vector<1x256xf32>
      %126 = vector.broadcast %125 : vector<1x256xf32> to vector<48x256xf32>
      %127 = arith.mulf %123, %126 : vector<48x256xf32>
      %128 = arith.addf %121, %127 : vector<48x256xf32>
      %129 = vector.extract_strided_slice %72 {offsets = [384, 0], sizes = [48, 256], strides = [1, 1]} : vector<432x256xf32> to vector<48x256xf32>
      %c241_i32 = arith.constant 241 : i32
      %130 = tpu.dynamic_rotate %129 by %c241_i32 dim 1 : vector<48x256xf32>, i32 -> vector<48x256xf32>
      %c8 = arith.constant 8 : index
      %c0_52 = arith.constant 0 : index
      %c0_53 = arith.constant 0 : index
      %131 = vector.load %arg6[%c8, %c0_52, %c0_53] : memref<9x1x256xf32, #tpu.memory_space<vmem>>, vector<1x1x256xf32>
      %132 = vector.shape_cast %131 : vector<1x1x256xf32> to vector<1x256xf32>
      %133 = vector.broadcast %132 : vector<1x256xf32> to vector<48x256xf32>
      %134 = arith.mulf %130, %133 : vector<48x256xf32>
      %135 = arith.addf %128, %134 : vector<48x256xf32>
      %c0_54 = arith.constant 0 : index
      %c0_55 = arith.constant 0 : index
      %136 = vector.load %arg7[%c0_54, %c0_55] : memref<48x256xf32, #tpu.memory_space<vmem>>, vector<48x256xf32>
      tpu.vector_store %arg7[%c0_54, %c0_55], %135 {strides = array<i32>} : memref<48x256xf32, #tpu.memory_space<vmem>>, vector<48x256xf32>,
    } else {
    }
    return
  }
  func.func @transform_0(%arg0: i32) -> (i32, i32) {
    %c0_i32 = arith.constant 0 : i32
    %c0_i32_0 = arith.constant 0 : i32
    return %arg0, %c0_i32 : i32, i32
  }
  func.func @transform_1(%arg0: i32) -> (i32, i32) {
    %c0_i32 = arith.constant 0 : i32
    %c0_i32_0 = arith.constant 0 : i32
    return %arg0, %c0_i32 : i32, i32
  }
  func.func @transform_2(%arg0: i32) -> (i32, i32) {
    %c0_i32 = arith.constant 0 : i32
    %c0_i32_0 = arith.constant 0 : i32
    return %c0_i32, %arg0 : i32, i32
  }
  func.func @transform_3(%arg0: i32) -> (i32, i32) {
    %c0_i32 = arith.constant 0 : i32
    %c0_i32_0 = arith.constant 0 : i32
    %c0_i32_1 = arith.constant 0 : i32
    return %c0_i32, %c0_i32_0 : i32, i32
  }
  func.func @transform_4(%arg0: i32) -> (i32, i32) {
    %c0_i32 = arith.constant 0 : i32
    %c0_i32_0 = arith.constant 0 : i32
    %c0_i32_1 = arith.constant 0 : i32
    return %c0_i32, %c0_i32_0 : i32, i32
  }
  func.func @transform_5(%arg0: i32) -> (i32, i32, i32) {
    %c0_i32 = arith.constant 0 : i32
    %c0_i32_0 = arith.constant 0 : i32
    %c0_i32_1 = arith.constant 0 : i32
    %c0_i32_2 = arith.constant 0 : i32
    return %c0_i32, %c0_i32_0, %c0_i32_1 : i32, i32, i32
  }
  func.func @transform_6(%arg0: i32) -> (i32, i32) {
    %c0_i32 = arith.constant 0 : i32
    %c0_i32_0 = arith.constant 0 : i32
    %c0_i32_1 = arith.constant 0 : i32
    return %c0_i32, %c0_i32_0 : i32, i32
  }
}

</mosaic_0001>

<bundles_post_ra>
// kernel: model_forward.1
= control target key start
LH: loop header
LB: loop body
LE: loop exit
PB: predicated region body
PF: predicated region fallthrough
CT: control target
= control target key end

     0   :  { %s6537_s21 = smov 0   ;;  %s6539_s22 = smov 0   ;;  %s10623_s0 = inlined_call_operand.vmem [shape: f32[1536,196], index: 0, kind: input, shape index: {}]   ;;  %s10624_s1 = inlined_call_operand.vmem [shape: f32[1536,2], index: 1, kind: input, shape index: {}]   ;;  %s10625_s2 = inlined_call_operand.vmem [shape: bf16[192,1536], index: 2, kind: input, shape index: {}]   ;;  %s10626_s3 = inlined_call_operand.vmem [shape: f32[192,2], index: 3, kind: input, shape index: {}]   ;;  %s10627_s4 = inlined_call_operand.vmem [shape: bf16[432,192], index: 4, kind: input, shape index: {}]   ;;  %s10628_s5 = inlined_call_operand.vmem [shape: f32[9,1,256], index: 5, kind: input, shape index: {}]   ;;  %s10629_s6 = inlined_call_operand.vmem [shape: f32[48,256], index: 6, kind: output, shape index: {}]  }
   0x1   :  { %s6541_s23 = smov 0  }
   0x2 LB: > { %s6553_s24 = sadd.s32 4294967295, %s6487_s23   ;;  %s6556_s25 = sadd.s32 1, %s6487_s23   ;;  %s6487_s23 = sphi %s6541_s23, %s10960_s23   ;;  %s6483_s22 = sphi %s6539_s22, %s10959_s22   ;;  %s6479_s21 = sphi %s6537_s21, %s10958_s21  }
   0x3   : > { %s72_s26 = ssub.s32 %s6487_s23, %s6556_s25  ;;  %s75_s27 = sadd.s32 1, %s6483_s22 }
   0x4   : > { %p73_p0 = scmp.eq.s32.totalorder %s72_s26, 0  ;;  %p82_p1 = scmp.ne.s32.totalorder %s6483_s22, %s6479_s21 }
   0x5   : > { %p83_p2 = scmp.eq.s32.totalorder %s6487_s23, 0  ;;  %p5705_p4 = scmp.ge.s32.totalorder %s6487_s23, 4 }
   0x6   : > { %s6565_s28 = scalar_select %p73_p0, %s6483_s22, %s75_s27  }
   0x7   : > { %p84_p3 = por %p83_p2, %p82_p1  ;;  %201 = sbr.rel (%p5705_p4) target bundleno = 47 (0x2f), region = 28 }
   0xe   : > { %223 = sbr.rel (!%p84_p3) target bundleno = 47 (0x2f), region = 40  ;;  %s225_s29 = sand.u32 (%p84_p3), 1, %s6483_s22  }
   0xf   : > { %s5889_s30 = smul.u32 (%p84_p3), 12, %s6487_s23 }
  0x10   : > { %s5963_s7 = smul.u32 (%p84_p3), 288, %s225_s29 }
  0x11   : > { %s6573_s10 = scalar_lea.vmem (%p84_p3), %s10625_s2, %s5889_s30 }
  0x12   : > { %v245_v0 = vld [vmem:[%s6573_s10] sm:$0xff] (%p84_p3)  ;;  %v247_v1 = vld [vmem:[%s6573_s10 + $0x30] sm:$0xff] (%p84_p3)  ;;  %s6578_s11 = scalar_lea.vmem (%p84_p3), [#allocation4], %s5963_s7  ;;  %v5707_v24 = vld [vmem:[%s6573_s10 + $0x8] sm:$0xf] (%p84_p3) }
  0x13   : > { %v249_v2 = vld [vmem:[%s6573_s10 + $0x60] sm:$0xff] (%p84_p3)  ;;  %246 = vst [vmem:[%s6578_s11] sm:$0xff] (%p84_p3), %v245_v0  ;;  %248 = vst [vmem:[%s6578_s11 + $0xc] sm:$0xff] (%p84_p3), %v247_v1  ;;  %v251_v3 = vld [vmem:[%s6573_s10 + $0x90] sm:$0xff] (%p84_p3) }
  0x14   : > { %250 = vst [vmem:[%s6578_s11 + $0x18] sm:$0xff] (%p84_p3), %v249_v2  ;;  %v253_v4 = vld [vmem:[%s6573_s10 + $0xc0] sm:$0xff] (%p84_p3)  ;;  %v255_v5 = vld [vmem:[%s6573_s10 + $0xf0] sm:$0xff] (%p84_p3)  ;;  %252 = vst [vmem:[%s6578_s11 + $0x24] sm:$0xff] (%p84_p3), %v251_v3 }
  0x15   : > { %254 = vst [vmem:[%s6578_s11 + $0x30] sm:$0xff] %v253_v4  ;;  %256 = vst [vmem:[%s6578_s11 + $0x3c] sm:$0xff] %v255_v5  ;;  %v257_v6 = vld [vmem:[%s6573_s10 + $0x120] sm:$0xff]  ;;  %v259_v7 = vld [vmem:[%s6573_s10 + $0x150] sm:$0xff] }
  0x16   : > { %v261_v8 = vld [vmem:[%s6573_s10 + $0x180] sm:$0xff]  ;;  %258 = vst [vmem:[%s6578_s11 + $0x48] sm:$0xff] %v257_v6  ;;  %260 = vst [vmem:[%s6578_s11 + $0x54] sm:$0xff] %v259_v7  ;;  %v263_v9 = vld [vmem:[%s6573_s10 + $0x1b0] sm:$0xff] }
  0x17   : > { %262 = vst [vmem:[%s6578_s11 + $0x60] sm:$0xff] %v261_v8  ;;  %v265_v10 = vld [vmem:[%s6573_s10 + $0x1e0] sm:$0xff]  ;;  %v267_v11 = vld [vmem:[%s6573_s10 + $0x210] sm:$0xff]  ;;  %264 = vst [vmem:[%s6578_s11 + $0x6c] sm:$0xff] %v263_v9 }
  0x18   : > { %266 = vst [vmem:[%s6578_s11 + $0x78] sm:$0xff] %v265_v10  ;;  %268 = vst [vmem:[%s6578_s11 + $0x84] sm:$0xff] %v267_v11  ;;  %v269_v12 = vld [vmem:[%s6573_s10 + $0x240] sm:$0xff]  ;;  %v271_v13 = vld [vmem:[%s6573_s10 + $0x270] sm:$0xff] }
  0x19   : > { %v273_v14 = vld [vmem:[%s6573_s10 + $0x2a0] sm:$0xff]  ;;  %270 = vst [vmem:[%s6578_s11 + $0x90] sm:$0xff] %v269_v12  ;;  %272 = vst [vmem:[%s6578_s11 + $0x9c] sm:$0xff] %v271_v13  ;;  %v275_v15 = vld [vmem:[%s6573_s10 + $0x2d0] sm:$0xff] }
  0x1a   : > { %274 = vst [vmem:[%s6578_s11 + $0xa8] sm:$0xff] %v273_v14  ;;  %v277_v16 = vld [vmem:[%s6573_s10 + $0x300] sm:$0xff]  ;;  %v279_v17 = vld [vmem:[%s6573_s10 + $0x330] sm:$0xff]  ;;  %276 = vst [vmem:[%s6578_s11 + $0xb4] sm:$0xff] %v275_v15 }
  0x1b   : > { %278 = vst [vmem:[%s6578_s11 + $0xc0] sm:$0xff] %v277_v16  ;;  %280 = vst [vmem:[%s6578_s11 + $0xcc] sm:$0xff] %v279_v17  ;;  %v281_v18 = vld [vmem:[%s6573_s10 + $0x360] sm:$0xff]  ;;  %v283_v19 = vld [vmem:[%s6573_s10 + $0x390] sm:$0xff] }
  0x1c   : > { %v285_v20 = vld [vmem:[%s6573_s10 + $0x3c0] sm:$0xff]  ;;  %282 = vst [vmem:[%s6578_s11 + $0xd8] sm:$0xff] %v281_v18  ;;  %284 = vst [vmem:[%s6578_s11 + $0xe4] sm:$0xff] %v283_v19  ;;  %v287_v21 = vld [vmem:[%s6573_s10 + $0x3f0] sm:$0xff] }
  0x1d   : > { %286 = vst [vmem:[%s6578_s11 + $0xf0] sm:$0xff] %v285_v20  ;;  %v289_v22 = vld [vmem:[%s6573_s10 + $0x420] sm:$0xff]  ;;  %v291_v23 = vld [vmem:[%s6573_s10 + $0x450] sm:$0xff]  ;;  %288 = vst [vmem:[%s6578_s11 + $0xfc] sm:$0xff] %v287_v21 }
  0x1e   : > { %290 = vst [vmem:[%s6578_s11 + $0x108] sm:$0xff] %v289_v22  ;;  %292 = vst [vmem:[%s6578_s11 + $0x114] sm:$0xff] %v291_v23  ;;  %v5709_v25 = vld [vmem:[%s6573_s10 + $0x38] sm:$0xf]  ;;  %v5711_v26 = vld [vmem:[%s6573_s10 + $0x68] sm:$0xf] }
  0x1f   : > { %5708 = vst [vmem:[%s6578_s11 + $0x8] sm:$0xf] %v5707_v24  ;;  %5710 = vst [vmem:[%s6578_s11 + $0x14] sm:$0xf] %v5709_v25  ;;  %v5713_v27 = vld [vmem:[%s6573_s10 + $0x98] sm:$0xf] }
  0x20   : > { %5712 = vst [vmem:[%s6578_s11 + $0x20] sm:$0xf] %v5711_v26  ;;  %v5715_v28 = vld [vmem:[%s6573_s10 + $0xc8] sm:$0xf]  ;;  %v5717_v29 = vld [vmem:[%s6573_s10 + $0xf8] sm:$0xf] }
  0x21   : > { %5714 = vst [vmem:[%s6578_s11 + $0x2c] sm:$0xf] %v5713_v27  ;;  %5716 = vst [vmem:[%s6578_s11 + $0x38] sm:$0xf] %v5715_v28  ;;  %v5719_v30 = vld [vmem:[%s6573_s10 + $0x128] sm:$0xf] }
  0x22   : > { %5718 = vst [vmem:[%s6578_s11 + $0x44] sm:$0xf] %v5717_v29  ;;  %v5721_v31 = vld [vmem:[%s6573_s10 + $0x158] sm:$0xf]  ;;  %v5723_v32 = vld [vmem:[%s6573_s10 + $0x188] sm:$0xf] }
  0x23   : > { %5720 = vst [vmem:[%s6578_s11 + $0x50] sm:$0xf] %v5719_v30  ;;  %5722 = vst [vmem:[%s6578_s11 + $0x5c] sm:$0xf] %v5721_v31  ;;  %v5725_v33 = vld [vmem:[%s6573_s10 + $0x1b8] sm:$0xf] }
  0x24   : > { %5724 = vst [vmem:[%s6578_s11 + $0x68] sm:$0xf] %v5723_v32  ;;  %v5727_v34 = vld [vmem:[%s6573_s10 + $0x1e8] sm:$0xf]  ;;  %v5729_v35 = vld [vmem:[%s6573_s10 + $0x218] sm:$0xf] }
  0x25   : > { %5726 = vst [vmem:[%s6578_s11 + $0x74] sm:$0xf] %v5725_v33  ;;  %5728 = vst [vmem:[%s6578_s11 + $0x80] sm:$0xf] %v5727_v34  ;;  %v5731_v36 = vld [vmem:[%s6573_s10 + $0x248] sm:$0xf] }
  0x26   : > { %5730 = vst [vmem:[%s6578_s11 + $0x8c] sm:$0xf] %v5729_v35  ;;  %v5733_v37 = vld [vmem:[%s6573_s10 + $0x278] sm:$0xf]  ;;  %v5735_v38 = vld [vmem:[%s6573_s10 + $0x2a8] sm:$0xf] }
  0x27   : > { %5732 = vst [vmem:[%s6578_s11 + $0x98] sm:$0xf] %v5731_v36  ;;  %5734 = vst [vmem:[%s6578_s11 + $0xa4] sm:$0xf] %v5733_v37  ;;  %v5737_v39 = vld [vmem:[%s6573_s10 + $0x2d8] sm:$0xf] }
  0x28   : > { %5736 = vst [vmem:[%s6578_s11 + $0xb0] sm:$0xf] %v5735_v38  ;;  %v5739_v40 = vld [vmem:[%s6573_s10 + $0x308] sm:$0xf]  ;;  %v5741_v41 = vld [vmem:[%s6573_s10 + $0x338] sm:$0xf] }
  0x29   : > { %5738 = vst [vmem:[%s6578_s11 + $0xbc] sm:$0xf] %v5737_v39  ;;  %5740 = vst [vmem:[%s6578_s11 + $0xc8] sm:$0xf] %v5739_v40  ;;  %v5743_v42 = vld [vmem:[%s6573_s10 + $0x368] sm:$0xf] }
  0x2a   : > { %5742 = vst [vmem:[%s6578_s11 + $0xd4] sm:$0xf] %v5741_v41  ;;  %v5745_v43 = vld [vmem:[%s6573_s10 + $0x398] sm:$0xf]  ;;  %v5747_v44 = vld [vmem:[%s6573_s10 + $0x3c8] sm:$0xf] }
  0x2b   : > { %5744 = vst [vmem:[%s6578_s11 + $0xe0] sm:$0xf] %v5743_v42  ;;  %5746 = vst [vmem:[%s6578_s11 + $0xec] sm:$0xf] %v5745_v43  ;;  %v5749_v45 = vld [vmem:[%s6573_s10 + $0x3f8] sm:$0xf] }
  0x2c   : > { %5748 = vst [vmem:[%s6578_s11 + $0xf8] sm:$0xf] %v5747_v44  ;;  %v5751_v46 = vld [vmem:[%s6573_s10 + $0x428] sm:$0xf]  ;;  %v5753_v47 = vld [vmem:[%s6573_s10 + $0x458] sm:$0xf] }
  0x2d   : > { %5750 = vst [vmem:[%s6578_s11 + $0x104] sm:$0xf] %v5749_v45  ;;  %5752 = vst [vmem:[%s6578_s11 + $0x110] sm:$0xf] %v5751_v46 }
  0x2e   : > { %5754 = vst [vmem:[%s6578_s11 + $0x11c] sm:$0xf] %v5753_v47 }
  0x2f PF: > { %p5755_p5 = scmp.ge.s32.totalorder %s6487_s23, 1  ;;  %p352_p6 = scmp.lt.s32.totalorder %s6487_s23, 5 }
  0x31   : > { %p353_p7 = pnand %p5755_p5, %p352_p6 }
  0x33   : > { %356 = sbr.rel (%p353_p7) target bundleno = 2228 (0x8b4), region = 66 }
  0x3a   : > { %s394_s12 = smul.u32 48, %s6553_s24  ;;  %vm505_vm0 = vcmask 556032   ;;  %s6490_s23 = smov 1  }
  0x3b   : > { %s359_s26 = sand.u32 1, %s6479_s21   ;;  %p5795_p9 = scmp.ne.s32.totalorder %s6553_s24, 0 }
  0x3c   : > { %p395_p8 = scmp.lt.s32.totalorder %s394_s12, 191  ;;  %s5964_s27 = smul.u32 288, %s359_s26 }
  0x3e   : > { %s10962_s12 = smov (!%p395_p8, %s394_s12), 191  ;;  %s8491_s29 = scalar_lea.vmem [#allocation4], %s5964_s27 }
  0x3f   : > { %s5890_s13 = sshll.u32 %s10962_s12, 4  ;;  %s5758_s17 = sshll.u32 %s10962_s12, 3 }
  0x40   : > { %s6682_s16 = scalar_lea.vmem %s10623_s0, %s5890_s13  ;;  %s7457_s20 = scalar_lea.vmem %s10624_s1, %s5758_s17 }
  0x41   : > { %v6685_v48 = vld [vmem:[%s6682_s16 + $0x20] sm:$0xff]  ;;  %v6688_v49 = vld [vmem:[%s6682_s16 + $0x28] sm:$0xff]  ;;  %v6699_v53 = vld [vmem:[%s6682_s16 + $0x30] sm:$0xff] }
  0x42   : > { %v6691_v50 = vld [vmem:[%s6682_s16] sm:$0xff]  ;;  %v514_v51 = vsel %vm505_vm0, %v6688_v49, 0.0  ;;  %v6696_v52 = vld [vmem:[%s6682_s16 + $0x8] sm:$0xff]  ;;  %v6702_v54 = vld [vmem:[%s6682_s16 + $0x38] sm:$0xff] }
  0x43   : > { %v515_v55 = vadd.f32 %v514_v51, %v6685_v48  ;;  %v506_v56 = vsel %vm505_vm0, %v6696_v52, 0.0  ;;  %v518_v57 = vsel %vm505_vm0, %v6702_v54, 0.0  ;;  %v6710_v58 = vld [vmem:[%s6682_s16 + $0x10] sm:$0xff]  ;;  %v6713_v59 = vld [vmem:[%s6682_s16 + $0x18] sm:$0xff]  ;;  %v6722_v63 = vld [vmem:[%s6682_s16 + $0x48] sm:$0xff] }
  0x44   : > { %v507_v60 = vadd.f32 %v506_v56, %v6691_v50  ;;  %v510_v61 = vsel %vm505_vm0, %v6713_v59, 0.0  ;;  %v6719_v62 = vld [vmem:[%s6682_s16 + $0x58] sm:$0xff]  ;;  %v519_v0 = vadd.f32 %v518_v57, %v6699_v53  ;;  %v6727_v2 = vld [vmem:[%s6682_s16 + $0x50] sm:$0xff]  ;;  %v6732_v4 = vld [vmem:[%s6682_s16 + $0x40] sm:$0xff]  ;;  %v522_v5 = vsel %vm505_vm0, %v6722_v63, 0.0 }
  0x45   : > { %516 = vadd.xlane.f32.xlu1 %v515_v55  ;;  %v511_v1 = vadd.f32 %v510_v61, %v6710_v58  ;;  %v526_v3 = vsel %vm505_vm0, %v6719_v62, 0.0  ;;  %v6737_v6 = vld [vmem:[%s6682_s16 + $0x78] sm:$0xff]  ;;  %v6740_v7 = vld [vmem:[%s6682_s16 + $0x68] sm:$0xff]  ;;  %v523_v9 = vadd.f32 %v522_v5, %v6732_v4  ;;  %v6745_v10 = vld [vmem:[%s6682_s16 + $0x70] sm:$0xff] }
  0x46   : > { %508 = vadd.xlane.f32.xlu0 %v507_v60  ;;  %v527_v8 = vadd.f32 %v526_v3, %v6727_v2  ;;  %v534_v11 = vsel %vm505_vm0, %v6737_v6, 0.0  ;;  %v6750_v12 = vld [vmem:[%s6682_s16 + $0x60] sm:$0xff]  ;;  %v530_v13 = vsel %vm505_vm0, %v6740_v7, 0.0  ;;  %v6755_v14 = vld [vmem:[%s6682_s16 + $0x98] sm:$0xff]  ;;  %v6758_v15 = vld [vmem:[%s6682_s16 + $0x88] sm:$0xff] }
  0x47   : > { %v535_v16 = vadd.f32 %v534_v11, %v6745_v10  ;;  %v531_v17 = vadd.f32 %v530_v13, %v6750_v12  ;;  %v6763_v18 = vld [vmem:[%s6682_s16 + $0x90] sm:$0xff]  ;;  %v542_v19 = vsel %vm505_vm0, %v6755_v14, 0.0  ;;  %v6768_v20 = vld [vmem:[%s6682_s16 + $0x80] sm:$0xff]  ;;  %v538_v21 = vsel %vm505_vm0, %v6758_v15, 0.0  ;;  %v6773_v22 = vld [vmem:[%s6682_s16 + $0xb8] sm:$0xff] }
  0x48   : > { %v6776_v23 = vld [vmem:[%s6682_s16 + $0xa8] sm:$0xff]  ;;  %v543_v24 = vadd.f32 %v542_v19, %v6763_v18  ;;  %v539_v25 = vadd.f32 %v538_v21, %v6768_v20  ;;  %v6781_v26 = vld [vmem:[%s6682_s16 + $0xb0] sm:$0xff]  ;;  %v550_v27 = vsel %vm505_vm0, %v6773_v22, 0.0  ;;  %v6786_v28 = vld [vmem:[%s6682_s16 + $0xa0] sm:$0xff] }
  0x49   : > { %520 = vadd.xlane.f32.xlu1 %v519_v0  ;;  %v546_v29 = vsel %vm505_vm0, %v6776_v23, 0.0  ;;  %v6791_v30 = vld [vmem:[%s6682_s16 + $0xd8] sm:$0xff]  ;;  %v6794_v31 = vld [vmem:[%s6682_s16 + $0xc8] sm:$0xff]  ;;  %v551_v32 = vadd.f32 %v550_v27, %v6781_v26  ;;  %v6799_v34 = vld [vmem:[%s6682_s16 + $0xd0] sm:$0xff] }
  0x4a   : > { %512 = vadd.xlane.f32.xlu0 %v511_v1  ;;  %v547_v33 = vadd.f32 %v546_v29, %v6786_v28  ;;  %v558_v35 = vsel %vm505_vm0, %v6791_v30, 0.0  ;;  %v6804_v36 = vld [vmem:[%s6682_s16 + $0xc0] sm:$0xff]  ;;  %v554_v37 = vsel %vm505_vm0, %v6794_v31, 0.0  ;;  %v6809_v38 = vld [vmem:[%s6682_s16 + $0xf8] sm:$0xff]  ;;  %v6812_v39 = vld [vmem:[%s6682_s16 + $0xe8] sm:$0xff] }
  0x4b   : > { %v559_v40 = vadd.f32 %v558_v35, %v6799_v34  ;;  %v555_v41 = vadd.f32 %v554_v37, %v6804_v36  ;;  %v6817_v42 = vld [vmem:[%s6682_s16 + $0xf0] sm:$0xff]  ;;  %v566_v43 = vsel %vm505_vm0, %v6809_v38, 0.0  ;;  %v6822_v44 = vld [vmem:[%s6682_s16 + $0xe0] sm:$0xff]  ;;  %v562_v45 = vsel %vm505_vm0, %v6812_v39, 0.0  ;;  %v6827_v46 = vld [vmem:[%s6682_s16 + $0x118] sm:$0xff] }
  0x4c   : > { %v6830_v47 = vld [vmem:[%s6682_s16 + $0x108] sm:$0xff]  ;;  %v567_v51 = vadd.f32 %v566_v43, %v6817_v42  ;;  %v563_v55 = vadd.f32 %v562_v45, %v6822_v44  ;;  %v6835_v56 = vld [vmem:[%s6682_s16 + $0x110] sm:$0xff]  ;;  %v574_v57 = vsel %vm505_vm0, %v6827_v46, 0.0  ;;  %v6840_v60 = vld [vmem:[%s6682_s16 + $0x100] sm:$0xff] }
  0x4d   : > { %528 = vadd.xlane.f32.xlu1 %v527_v8  ;;  %v570_v61 = vsel %vm505_vm0, %v6830_v47, 0.0  ;;  %v6845_v0 = vld [vmem:[%s6682_s16 + $0x138] sm:$0xff]  ;;  %v6848_v1 = vld [vmem:[%s6682_s16 + $0x128] sm:$0xff]  ;;  %v575_v3 = vadd.f32 %v574_v57, %v6835_v56  ;;  %v6853_v8 = vld [vmem:[%s6682_s16 + $0x130] sm:$0xff] }
  0x4e   : > { %524 = vadd.xlane.f32.xlu0 %v523_v9  ;;  %v571_v5 = vadd.f32 %v570_v61, %v6840_v60  ;;  %v582_v9 = vsel %vm505_vm0, %v6845_v0, 0.0  ;;  %v6858_v11 = vld [vmem:[%s6682_s16 + $0x120] sm:$0xff]  ;;  %v578_v13 = vsel %vm505_vm0, %v6848_v1, 0.0 }
  0x4f   : > { %v583_v19 = vadd.f32 %v582_v9, %v6853_v8  ;;  %v579_v21 = vadd.f32 %v578_v13, %v6858_v11  ;;  %v6876_v27 = vld [vmem:[%s6682_s16 + $0x140] sm:$0xff] }
  0x50   : > { %v6894_v43 = vld [vmem:[%s6682_s16 + $0x160] sm:$0xff] }
  0x51   : > { %536 = vadd.xlane.f32.xlu1 %v535_v16  ;;  %v6863_v16 = vld [vmem:[%s6682_s16 + $0x158] sm:$0xff]  ;;  %10731 = vst [vmem:[#allocation10_spill] sm:$0xff] %v6894_v43  ;;  %v6912_v9 = vld [vmem:[%s6682_s16 + $0x180] sm:$0xff] }
  0x52   : > { %532 = vadd.xlane.f32.xlu0 %v531_v17  ;;  %10726 = vst [vmem:[#allocation5_spill] sm:$0xff] %v6863_v16  ;;  %v6866_v17 = vld [vmem:[%s6682_s16 + $0x148] sm:$0xff]  ;;  %10735 = vst [vmem:[#allocation14_spill] sm:$0xff] %v6912_v9 }
  0x53   : > { %v586_v29 = vsel %vm505_vm0, %v6866_v17, 0.0 }
  0x54   : > { %v587_v37 = vadd.f32 %v586_v29, %v6876_v27 }
  0x55   : > { %544 = vadd.xlane.f32.xlu1 %v543_v24  ;;  %v6871_v24 = vld [vmem:[%s6682_s16 + $0x150] sm:$0xff] }
  0x56   : > { %540 = vadd.xlane.f32.xlu0 %v539_v25  ;;  %10727 = vst [vmem:[#allocation6_spill] sm:$0xff] %v6871_v24  ;;  %v590_v25 = vsel %vm505_vm0, %v6863_v16, 0.0  ;;  %v7038_v16 = vld [vmem:[%s6682_s16 + $0x260] sm:$0xff] }
  0x57   : > { %v591_v35 = vadd.f32 %v590_v25, %v6871_v24  ;;  %v7025_v24 = vld [vmem:[%s6682_s16 + $0x278] sm:$0xff]  ;;  %10756 = vst [vmem:[#allocation35_spill] sm:$0xff] %v7038_v16 }
  0x58   : > { %10753 = vst [vmem:[#allocation32_spill] sm:$0xff] %v7025_v24 }
  0x59   : > { %552 = vadd.xlane.f32.xlu1 %v551_v32  ;;  %v6881_v32 = vld [vmem:[%s6682_s16 + $0x178] sm:$0xff] }
  0x5a   : > { %548 = vadd.xlane.f32.xlu0 %v547_v33  ;;  %10728 = vst [vmem:[#allocation7_spill] sm:$0xff] %v6881_v32  ;;  %v6884_v33 = vld [vmem:[%s6682_s16 + $0x168] sm:$0xff] }
  0x5b   : > { %10729 = vst [vmem:[#allocation8_spill] sm:$0xff] %v6884_v33  ;;  %v594_v45 = vsel %vm505_vm0, %v6884_v33, 0.0 }
  0x5c   : > { %v595_v61 = vadd.f32 %v594_v45, %v6894_v43  ;;  %v7020_v43 = vld [vmem:[%s6682_s16 + $0x240] sm:$0xff] }
  0x5d   : > { %560 = vadd.xlane.f32.xlu1 %v559_v40  ;;  %v6889_v40 = vld [vmem:[%s6682_s16 + $0x170] sm:$0xff]  ;;  %10752 = vst [vmem:[#allocation31_spill] sm:$0xff] %v7020_v43 }
  0x5e   : > { %556 = vadd.xlane.f32.xlu0 %v555_v41  ;;  %10730 = vst [vmem:[#allocation9_spill] sm:$0xff] %v6889_v40  ;;  %v598_v41 = vsel %vm505_vm0, %v6881_v32, 0.0 }
  0x5f   : > { %v599_v57 = vadd.f32 %v598_v41, %v6889_v40  ;;  %v6930_v41 = vld [vmem:[%s6682_s16 + $0x1a0] sm:$0xff]  ;;  %v7007_v40 = vld [vmem:[%s6682_s16 + $0x258] sm:$0xff] }
  0x60   : > { %10739 = vst [vmem:[#allocation18_spill] sm:$0xff] %v6930_v41  ;;  %10749 = vst [vmem:[#allocation28_spill] sm:$0xff] %v7007_v40  ;;  %v654_v32 = vsel %vm505_vm0, %v7007_v40, 0.0  ;;  %v662_v40 = vsel %vm505_vm0, %v7025_v24, 0.0 }
  0x61   : > { %568 = vadd.xlane.f32.xlu1 %v567_v51  ;;  %v6899_v51 = vld [vmem:[%s6682_s16 + $0x198] sm:$0xff] }
  0x62   : > { %564 = vadd.xlane.f32.xlu0 %v563_v55  ;;  %10732 = vst [vmem:[#allocation11_spill] sm:$0xff] %v6899_v51  ;;  %v6902_v55 = vld [vmem:[%s6682_s16 + $0x188] sm:$0xff] }
  0x63   : > { %10733 = vst [vmem:[#allocation12_spill] sm:$0xff] %v6902_v55  ;;  %v602_v13 = vsel %vm505_vm0, %v6902_v55, 0.0 }
  0x64   : > { %v603_v29 = vadd.f32 %v602_v13, %v6912_v9  ;;  %v6943_v13 = vld [vmem:[%s6682_s16 + $0x1d0] sm:$0xff]  ;;  %v6953_v9 = vld [vmem:[%s6682_s16 + $0x1f8] sm:$0xff] }
  0x65   : > { %576 = vadd.xlane.f32.xlu1 %v575_v3  ;;  %v6907_v3 = vld [vmem:[%s6682_s16 + $0x190] sm:$0xff]  ;;  %10742 = vst [vmem:[#allocation21_spill] sm:$0xff] %v6943_v13  ;;  %10744 = vst [vmem:[#allocation23_spill] sm:$0xff] %v6953_v9 }
  0x66   : > { %572 = vadd.xlane.f32.xlu0 %v571_v5  ;;  %10734 = vst [vmem:[#allocation13_spill] sm:$0xff] %v6907_v3  ;;  %v606_v5 = vsel %vm505_vm0, %v6899_v51, 0.0  ;;  %v6935_v51 = vld [vmem:[%s6682_s16 + $0x1d8] sm:$0xff] }
  0x67   : > { %v607_v25 = vadd.f32 %v606_v5, %v6907_v3  ;;  %10740 = vst [vmem:[#allocation19_spill] sm:$0xff] %v6935_v51 }
  0x69   : > { %584 = vadd.xlane.f32.xlu1 %v583_v19  ;;  %v6917_v19 = vld [vmem:[%s6682_s16 + $0x1b8] sm:$0xff] }
  0x6a   : > { %580 = vadd.xlane.f32.xlu0 %v579_v21  ;;  %10736 = vst [vmem:[#allocation15_spill] sm:$0xff] %v6917_v19  ;;  %v6920_v21 = vld [vmem:[%s6682_s16 + $0x1a8] sm:$0xff] }
  0x6b   : > { %10737 = vst [vmem:[#allocation16_spill] sm:$0xff] %v6920_v21  ;;  %v610_v45 = vsel %vm505_vm0, %v6920_v21, 0.0  ;;  %v6948_v21 = vld [vmem:[%s6682_s16 + $0x1c0] sm:$0xff] }
  0x6c   : > { %v611_v5 = vadd.f32 %v610_v45, %v6930_v41  ;;  %10743 = vst [vmem:[#allocation22_spill] sm:$0xff] %v6948_v21  ;;  %v6961_v45 = vld [vmem:[%s6682_s16 + $0x1f0] sm:$0xff]  ;;  %v6971_v41 = vld [vmem:[%s6682_s16 + $0x218] sm:$0xff] }
  0x6d   : > { %592 = vadd.xlane.f32.xlu1 %v591_v35  ;;  %v6925_v35 = vld [vmem:[%s6682_s16 + $0x1b0] sm:$0xff]  ;;  %10746 = vst [vmem:[#allocation25_spill] sm:$0xff] %v6961_v45 }
  0x6e   : > { %588 = vadd.xlane.f32.xlu0 %v587_v37  ;;  %10738 = vst [vmem:[#allocation17_spill] sm:$0xff] %v6925_v35  ;;  %v614_v37 = vsel %vm505_vm0, %v6917_v19, 0.0  ;;  %v622_v19 = vsel %vm505_vm0, %v6935_v51, 0.0  ;;  %v630_v51 = vsel %vm505_vm0, %v6953_v9, 0.0  ;;  %v638_v9 = vsel %vm505_vm0, %v6971_v41, 0.0 }
  0x71   : > { %600 = vadd.xlane.f32.xlu1 %v599_v57  ;;  %v6938_v57 = vld [vmem:[%s6682_s16 + $0x1c8] sm:$0xff] }
  0x72   : > { %596 = vadd.xlane.f32.xlu0 %v595_v61  ;;  %10741 = vst [vmem:[#allocation20_spill] sm:$0xff] %v6938_v57  ;;  %v615_v61 = vadd.f32 %v614_v37, %v6925_v35  ;;  %v618_v3 = vsel %vm505_vm0, %v6938_v57, 0.0  ;;  %v6966_v57 = vld [vmem:[%s6682_s16 + $0x1e0] sm:$0xff] }
  0x73   : > { %v619_v37 = vadd.f32 %v618_v3, %v6948_v21  ;;  %10747 = vst [vmem:[#allocation26_spill] sm:$0xff] %v6966_v57  ;;  %v631_v3 = vadd.f32 %v630_v51, %v6961_v45  ;;  %v7002_v45 = vld [vmem:[%s6682_s16 + $0x220] sm:$0xff] }
  0x75   : > { %608 = vadd.xlane.f32.xlu1 %v607_v25  ;;  %v6956_v25 = vld [vmem:[%s6682_s16 + $0x1e8] sm:$0xff] }
  0x76   : > { %604 = vadd.xlane.f32.xlu0 %v603_v29  ;;  %10745 = vst [vmem:[#allocation24_spill] sm:$0xff] %v6956_v25  ;;  %v623_v29 = vadd.f32 %v622_v19, %v6943_v13  ;;  %v626_v35 = vsel %vm505_vm0, %v6956_v25, 0.0  ;;  %v6984_v25 = vld [vmem:[%s6682_s16 + $0x200] sm:$0xff]  ;;  %v6989_v13 = vld [vmem:[%s6682_s16 + $0x238] sm:$0xff] }
  0x77   : > { %v627_v19 = vadd.f32 %v626_v35, %v6966_v57  ;;  %v646_v57 = vsel %vm505_vm0, %v6989_v13, 0.0 }
  0x79   : > { %616 = vadd.xlane.f32.xlu1 %v615_v61  ;;  %v6974_v61 = vld [vmem:[%s6682_s16 + $0x208] sm:$0xff] }
  0x7a   : > { %612 = vadd.xlane.f32.xlu0 %v611_v5  ;;  %v6979_v5 = vld [vmem:[%s6682_s16 + $0x210] sm:$0xff]  ;;  %v634_v21 = vsel %vm505_vm0, %v6974_v61, 0.0 }
  0x7b   : > { %v639_v51 = vadd.f32 %v638_v9, %v6979_v5  ;;  %v635_v35 = vadd.f32 %v634_v21, %v6984_v25 }
  0x7d   : > { %624 = vadd.xlane.f32.xlu1 %v623_v29  ;;  %v6992_v29 = vld [vmem:[%s6682_s16 + $0x228] sm:$0xff] }
  0x7e   : > { %620 = vadd.xlane.f32.xlu0 %v619_v37  ;;  %v6997_v37 = vld [vmem:[%s6682_s16 + $0x230] sm:$0xff]  ;;  %v642_v55 = vsel %vm505_vm0, %v6992_v29, 0.0 }
  0x7f   : > { %10748 = vst [vmem:[#allocation27_spill] sm:$0xff] %v6997_v37  ;;  %v647_v9 = vadd.f32 %v646_v57, %v6997_v37  ;;  %v643_v21 = vadd.f32 %v642_v55, %v7002_v45  ;;  %v7043_v37 = vld [vmem:[%s6682_s16 + $0x298] sm:$0xff] }
  0x80   : > { %10757 = vst [vmem:[#allocation36_spill] sm:$0xff] %v7043_v37  ;;  %v670_v24 = vsel %vm505_vm0, %v7043_v37, 0.0 }
  0x81   : > { %632 = vadd.xlane.f32.xlu1 %v631_v3  ;;  %v7010_v3 = vld [vmem:[%s6682_s16 + $0x248] sm:$0xff] }
  0x82   : > { %628 = vadd.xlane.f32.xlu0 %v627_v19  ;;  %10750 = vst [vmem:[#allocation29_spill] sm:$0xff] %v7010_v3  ;;  %v7015_v19 = vld [vmem:[%s6682_s16 + $0x250] sm:$0xff]  ;;  %v650_v33 = vsel %vm505_vm0, %v7010_v3, 0.0 }
  0x83   : > { %10751 = vst [vmem:[#allocation30_spill] sm:$0xff] %v7015_v19  ;;  %v655_v55 = vadd.f32 %v654_v32, %v7015_v19  ;;  %v651_v57 = vadd.f32 %v650_v33, %v7020_v43  ;;  %v7056_v19 = vld [vmem:[%s6682_s16 + $0x280] sm:$0xff]  ;;  %v7061_v43 = vld [vmem:[%s6682_s16 + $0x2b8] sm:$0xff] }
  0x84   : > { %10760 = vst [vmem:[#allocation39_spill] sm:$0xff] %v7061_v43  ;;  %v678_v37 = vsel %vm505_vm0, %v7061_v43, 0.0 }
  0x85   : > { %640 = vadd.xlane.f32.xlu1 %v639_v51  ;;  %v7028_v51 = vld [vmem:[%s6682_s16 + $0x268] sm:$0xff] }
  0x86   : > { %636 = vadd.xlane.f32.xlu0 %v635_v35  ;;  %10754 = vst [vmem:[#allocation33_spill] sm:$0xff] %v7028_v51  ;;  %v7033_v35 = vld [vmem:[%s6682_s16 + $0x270] sm:$0xff]  ;;  %v658_v3 = vsel %vm505_vm0, %v7028_v51, 0.0 }
  0x87   : > { %10755 = vst [vmem:[#allocation34_spill] sm:$0xff] %v7033_v35  ;;  %v663_v32 = vadd.f32 %v662_v40, %v7033_v35  ;;  %v659_v33 = vadd.f32 %v658_v3, %v7038_v16  ;;  %v699_v35 = vmul.f32 %v6696_v52, %v6696_v52  ;;  %v703_v52 = vmul.f32 %v6688_v49, %v6688_v49 }
  0x88   : > { %v700_v49 = vmul.f32 %v6710_v58, %v6710_v58  ;;  %v704_v58 = vmul.f32 %v6699_v53, %v6699_v53  ;;  %v708_v53 = vmul.f32 %v6727_v2, %v6727_v2  ;;  %v712_v2 = vmul.f32 %v6745_v10, %v6745_v10 }
  0x89   : > { %648 = vadd.xlane.f32.xlu1 %v647_v9  ;;  %v7046_v9 = vld [vmem:[%s6682_s16 + $0x288] sm:$0xff]  ;;  %v794_v43 = vsel %vm505_vm0, %v699_v35, 0.0  ;;  %v802_v35 = vsel %vm505_vm0, %v703_v52, 0.0  ;;  %v716_v10 = vmul.f32 %v6763_v18, %v6763_v18  ;;  %v720_v18 = vmul.f32 %v6781_v26, %v6781_v26 }
  0x8a   : > { %644 = vadd.xlane.f32.xlu0 %v643_v21  ;;  %10758 = vst [vmem:[#allocation37_spill] sm:$0xff] %v7046_v9  ;;  %v7051_v21 = vld [vmem:[%s6682_s16 + $0x290] sm:$0xff]  ;;  %v666_v51 = vsel %vm505_vm0, %v7046_v9, 0.0  ;;  %v7076_v9 = vld [vmem:[%s6682_s16 + $0x2a0] sm:$0xff]  ;;  %v724_v26 = vmul.f32 %v6799_v34, %v6799_v34  ;;  %v728_v34 = vmul.f32 %v6817_v42, %v6817_v42  ;;  %v732_v42 = vmul.f32 %v6835_v56, %v6835_v56 }
  0x8b   : > { %10759 = vst [vmem:[#allocation38_spill] sm:$0xff] %v7051_v21  ;;  %v671_v40 = vadd.f32 %v670_v24, %v7051_v21  ;;  %v667_v3 = vadd.f32 %v666_v51, %v7056_v19  ;;  %v698_v51 = vmul.f32 %v6691_v50, %v6691_v50  ;;  %v7091_v21 = vld [vmem:[%s6682_s16 + $0x2c0] sm:$0xff]  ;;  %v702_v50 = vmul.f32 %v6685_v48, %v6685_v48 }
  0x8c   : > { %v706_v48 = vmul.f32 %v6732_v4, %v6732_v4  ;;  %v710_v4 = vmul.f32 %v6750_v12, %v6750_v12  ;;  %v714_v12 = vmul.f32 %v6768_v20, %v6768_v20  ;;  %v718_v20 = vmul.f32 %v6786_v28, %v6786_v28 }
  0x8d   : > { %656 = vadd.xlane.f32.xlu1 %v655_v55  ;;  %v7064_v55 = vld [vmem:[%s6682_s16 + $0x2a8] sm:$0xff]  ;;  %v722_v28 = vmul.f32 %v6804_v36, %v6804_v36  ;;  %v726_v36 = vmul.f32 %v6822_v44, %v6822_v44  ;;  %v730_v44 = vmul.f32 %v6840_v60, %v6840_v60  ;;  %v762_v60 = vmul.f32 %v6984_v25, %v6984_v25 }
  0x8e   : > { %652 = vadd.xlane.f32.xlu0 %v651_v57  ;;  %10761 = vst [vmem:[#allocation40_spill] sm:$0xff] %v7064_v55  ;;  %v7069_v57 = vld [vmem:[%s6682_s16 + $0x2b0] sm:$0xff]  ;;  %v674_v16 = vsel %vm505_vm0, %v7064_v55, 0.0  ;;  %v734_v25 = vmul.f32 %v6858_v11, %v6858_v11  ;;  %v764_v56 = vmul.f32 %v6979_v5, %v6979_v5  ;;  %v766_v11 = vmul.f32 %v7002_v45, %v7002_v45 }
  0x8f   : > { %v679_v24 = vadd.f32 %v678_v37, %v7069_v57  ;;  %v795_v37 = vadd.f32 %v794_v43, %v698_v51  ;;  %v803_v43 = vadd.f32 %v802_v35, %v702_v50  ;;  %v736_v5 = vmul.f32 %v6853_v8, %v6853_v8 }
  0x90   : > { %v738_v45 = vmul.f32 %v6876_v27, %v6876_v27 }
  0x91   : > { %664 = vadd.xlane.f32.xlu1 %v663_v32  ;;  %v7081_v32 = vld [vmem:[%s6682_s16 + $0x2c8] sm:$0xff] }
  0x92   : > { %660 = vadd.xlane.f32.xlu0 %v659_v33  ;;  %10762 = vst [vmem:[#allocation41_spill] sm:$0xff] %v7081_v32  ;;  %v675_v33 = vadd.f32 %v674_v16, %v7076_v9  ;;  %v682_v55 = vsel %vm505_vm0, %v7081_v32, 0.0 }
  0x93   : > { %v683_v16 = vadd.f32 %v682_v55, %v7091_v21 }
  0x95   : > { %672 = vadd.xlane.f32.xlu1 %v671_v40  ;;  %v701_v40 = vmul.f32 %v6713_v59, %v6713_v59  ;;  %v705_v59 = vmul.f32 %v6702_v54, %v6702_v54  ;;  %v709_v54 = vmul.f32 %v6719_v62, %v6719_v62  ;;  %v713_v62 = vmul.f32 %v6737_v6, %v6737_v6 }
  0x96   : > { %668 = vadd.xlane.f32.xlu0 %v667_v3  ;;  %v707_v3 = vmul.f32 %v6722_v63, %v6722_v63  ;;  %v711_v63 = vmul.f32 %v6740_v7, %v6740_v7  ;;  %v715_v7 = vmul.f32 %v6758_v15, %v6758_v15  ;;  %v719_v15 = vmul.f32 %v6776_v23, %v6776_v23 }
  0x97   : > { %v798_v32 = vsel %vm505_vm0, %v701_v40, 0.0  ;;  %v806_v51 = vsel %vm505_vm0, %v705_v59, 0.0  ;;  %v814_v40 = vsel %vm505_vm0, %v709_v54, 0.0  ;;  %v822_v35 = vsel %vm505_vm0, %v713_v62, 0.0 }
  0x98   : > { %v799_v55 = vadd.f32 %v798_v32, %v700_v49  ;;  %v807_v32 = vadd.f32 %v806_v51, %v704_v58  ;;  %v818_v52 = vsel %vm505_vm0, %v711_v63, 0.0  ;;  %v815_v50 = vadd.f32 %v814_v40, %v708_v53 }
  0x99   : > { %680 = vadd.xlane.f32.xlu1 %v679_v24  ;;  %v810_v24 = vsel %vm505_vm0, %v707_v3, 0.0  ;;  %v717_v6 = vmul.f32 %v6755_v14, %v6755_v14  ;;  %v823_v3 = vadd.f32 %v822_v35, %v712_v2  ;;  %v834_v59 = vsel %vm505_vm0, %v719_v15, 0.0 }
  0x9a   : > { %676 = vadd.xlane.f32.xlu0 %v675_v33  ;;  %v811_v33 = vadd.f32 %v810_v24, %v706_v48  ;;  %v723_v23 = vmul.f32 %v6794_v31, %v6794_v31  ;;  %v721_v14 = vmul.f32 %v6773_v22, %v6773_v22  ;;  %v835_v48 = vadd.f32 %v834_v59, %v718_v20 }
  0x9b   : > { %v727_v31 = vmul.f32 %v6812_v39, %v6812_v39  ;;  %v725_v22 = vmul.f32 %v6791_v30, %v6791_v30  ;;  %v731_v39 = vmul.f32 %v6830_v47, %v6830_v47  ;;  %v729_v30 = vmul.f32 %v6809_v38, %v6809_v38 }
  0x9c   : > { %v842_v24 = vsel %vm505_vm0, %v723_v23, 0.0  ;;  %v838_v58 = vsel %vm505_vm0, %v721_v14, 0.0  ;;  %v763_v47 = vmul.f32 %v6974_v61, %v6974_v61  ;;  %v733_v38 = vmul.f32 %v6827_v46, %v6827_v46  ;;  %v10764_v23 = vld [vmem:[#allocation29_spill] sm:$0xff] }
  0x9d   : > { %796 = vadd.xlane.f32.xlu1 %v795_v37  ;;  %v819_v37 = vadd.f32 %v818_v52, %v710_v4  ;;  %v843_v63 = vadd.f32 %v842_v24, %v722_v28  ;;  %v839_v51 = vadd.f32 %v838_v58, %v720_v18  ;;  %v850_v54 = vsel %vm505_vm0, %v727_v31, 0.0  ;;  %v10765_v14 = vld [vmem:[#allocation5_spill] sm:$0xff]  ;;  %v10766_v28 = vld [vmem:[#allocation31_spill] sm:$0xff]  ;;  %v10767_v18 = vld [vmem:[#allocation6_spill] sm:$0xff] }
  0x9e   : > { %684 = vadd.xlane.f32.xlu0 %v683_v16  ;;  %v826_v16 = vsel %vm505_vm0, %v715_v7, 0.0  ;;  %v851_v4 = vadd.f32 %v850_v54, %v726_v36  ;;  %v858_v52 = vsel %vm505_vm0, %v731_v39, 0.0  ;;  %v854_v53 = vsel %vm505_vm0, %v729_v30, 0.0  ;;  %v10768_v58 = vld [vmem:[#allocation8_spill] sm:$0xff] }
  0x9f   : > { %v827_v49 = vadd.f32 %v826_v16, %v714_v12  ;;  %v859_v7 = vadd.f32 %v858_v52, %v730_v44  ;;  %v855_v40 = vadd.f32 %v854_v53, %v728_v34  ;;  %v922_v62 = vsel %vm505_vm0, %v763_v47, 0.0  ;;  %v10769_v36 = vld [vmem:[#allocation28_spill] sm:$0xff]  ;;  %v10773_v47 = vld [vmem:[#allocation7_spill] sm:$0xff] }
  0xa0   : > { %v735_v61 = vmul.f32 %v6848_v1, %v6848_v1  ;;  %v765_v46 = vmul.f32 %v6971_v41, %v6971_v41  ;;  %v923_v12 = vadd.f32 %v922_v62, %v762_v60  ;;  %v767_v1 = vmul.f32 %v6992_v29, %v6992_v29 }
  0xa1   : > { %804 = vadd.xlane.f32.xlu1 %v803_v43  ;;  %v830_v43 = vsel %vm505_vm0, %v717_v6, 0.0  ;;  %v737_v41 = vmul.f32 %v6845_v0, %v6845_v0  ;;  %v739_v29 = vmul.f32 %v6866_v17, %v6866_v17  ;;  %v769_v0 = vmul.f32 %v6989_v13, %v6989_v13 }
  0xa2   : > { %800 = vadd.xlane.f32.xlu0 %v799_v55  ;;  %v831_v55 = vadd.f32 %v830_v43, %v716_v10  ;;  %v866_v16 = vsel %vm505_vm0, %v735_v61, 0.0  ;;  %v926_v2 = vsel %vm505_vm0, %v765_v46, 0.0  ;;  %v930_v6 = vsel %vm505_vm0, %v767_v1, 0.0  ;;  %v10763_v10 = vld [vmem:[#allocation27_spill] sm:$0xff]  ;;  %v10775_v61 = vld [vmem:[#allocation9_spill] sm:$0xff]  ;;  %v10776_v46 = vld [vmem:[#allocation12_spill] sm:$0xff] }
  0xa3   : > { %v867_v15 = vadd.f32 %v866_v16, %v734_v25  ;;  %v927_v35 = vadd.f32 %v926_v2, %v764_v56  ;;  %v931_v20 = vadd.f32 %v930_v6, %v766_v11  ;;  %v874_v59 = vsel %vm505_vm0, %v739_v29, 0.0  ;;  %v10777_v16 = vld [vmem:[#allocation32_spill] sm:$0xff]  ;;  %v10778_v2 = vld [vmem:[#allocation14_spill] sm:$0xff]  ;;  %v10780_v29 = vld [vmem:[#allocation37_spill] sm:$0xff] }
  0xa4   : > { %v768_v8 = vmul.f32 %v10763_v10, %v10763_v10  ;;  %v771_v17 = vmul.f32 %v10764_v23, %v10764_v23  ;;  %v934_v43 = vsel %vm505_vm0, %v769_v0, 0.0  ;;  %v741_v13 = vmul.f32 %v10765_v14, %v10765_v14  ;;  %v10779_v6 = vld [vmem:[#allocation34_spill] sm:$0xff] }
  0xa5   : > { %812 = vadd.xlane.f32.xlu1 %v811_v33  ;;  %v846_v33 = vsel %vm505_vm0, %v725_v22, 0.0  ;;  %v770_v27 = vmul.f32 %v10766_v28, %v10766_v28  ;;  %v740_v31 = vmul.f32 %v10767_v18, %v10767_v18  ;;  %v743_v22 = vmul.f32 %v10768_v58, %v10768_v58  ;;  %v10785_v18 = vld [vmem:[#allocation18_spill] sm:$0xff] }
  0xa6   : > { %808 = vadd.xlane.f32.xlu0 %v807_v32  ;;  %v847_v32 = vadd.f32 %v846_v33, %v724_v26  ;;  %v938_v24 = vsel %vm505_vm0, %v771_v17, 0.0  ;;  %v10770_v26 = vld [vmem:[#allocation10_spill] sm:$0xff]  ;;  %v745_v53 = vmul.f32 %v10773_v47, %v10773_v47  ;;  %v777_v56 = vmul.f32 %v10777_v16, %v10777_v16 }
  0xa7   : > { %v939_v54 = vadd.f32 %v938_v24, %v770_v27  ;;  %v742_v39 = vmul.f32 %v10770_v26, %v10770_v26  ;;  %v882_v30 = vsel %vm505_vm0, %v743_v22, 0.0  ;;  %v778_v10 = vmul.f32 %v7056_v19, %v7056_v19 }
  0xa8   : > { %v784_v16 = vmul.f32 %v7069_v57, %v7069_v57 }
  0xa9   : > { %820 = vadd.xlane.f32.xlu1 %v819_v37  ;;  %v862_v37 = vsel %vm505_vm0, %v733_v38, 0.0  ;;  %v883_v38 = vadd.f32 %v882_v30, %v742_v39  ;;  %v10788_v30 = vld [vmem:[#allocation15_spill] sm:$0xff] }
  0xaa   : > { %816 = vadd.xlane.f32.xlu0 %v815_v50  ;;  %v863_v50 = vadd.f32 %v862_v37, %v732_v42  ;;  %v744_v37 = vmul.f32 %v10775_v61, %v10775_v61 }
  0xad   : > { %828 = vadd.xlane.f32.xlu1 %v827_v49  ;;  %v870_v49 = vsel %vm505_vm0, %v737_v41, 0.0  ;;  %v746_v41 = vmul.f32 %v10778_v2, %v10778_v2 }
  0xae   : > { %824 = vadd.xlane.f32.xlu0 %v823_v3  ;;  %v871_v3 = vadd.f32 %v870_v49, %v736_v5  ;;  %v776_v5 = vmul.f32 %v10779_v6, %v10779_v6  ;;  %v779_v49 = vmul.f32 %v10780_v29, %v10780_v29 }
  0xb0   : > { %v954_v17 = vsel %vm505_vm0, %v779_v49, 0.0 }
  0xb1   : > { %836 = vadd.xlane.f32.xlu1 %v835_v48  ;;  %v875_v48 = vadd.f32 %v874_v59, %v738_v45  ;;  %v10781_v45 = vld [vmem:[#allocation11_spill] sm:$0xff]  ;;  %v955_v19 = vadd.f32 %v954_v17, %v778_v10  ;;  %v10795_v17 = vld [vmem:[#allocation41_spill] sm:$0xff] }
  0xb2   : > { %832 = vadd.xlane.f32.xlu0 %v831_v55  ;;  %v935_v55 = vadd.f32 %v934_v43, %v768_v8  ;;  %v10782_v43 = vld [vmem:[#allocation13_spill] sm:$0xff] }
  0xb3   : > { %v748_v14 = vmul.f32 %v10782_v43, %v10782_v43  ;;  %v787_v43 = vmul.f32 %v10795_v17, %v10795_v17 }
  0xb5   : > { %844 = vadd.xlane.f32.xlu1 %v843_v63  ;;  %v878_v63 = vsel %vm505_vm0, %v741_v13, 0.0  ;;  %v10783_v13 = vld [vmem:[#allocation16_spill] sm:$0xff] }
  0xb6   : > { %840 = vadd.xlane.f32.xlu0 %v839_v51  ;;  %v773_v51 = vmul.f32 %v10769_v36, %v10769_v36  ;;  %v879_v33 = vadd.f32 %v878_v63, %v740_v31  ;;  %v750_v31 = vmul.f32 %v10785_v18, %v10785_v18  ;;  %v10786_v36 = vld [vmem:[#allocation38_spill] sm:$0xff]  ;;  %v970_v18 = vsel %vm505_vm0, %v787_v43, 0.0 }
  0xb8   : > { %v942_v34 = vsel %vm505_vm0, %v773_v51, 0.0  ;;  %v780_v51 = vmul.f32 %v10786_v36, %v10786_v36 }
  0xb9   : > { %852 = vadd.xlane.f32.xlu1 %v851_v4  ;;  %v10771_v4 = vld [vmem:[#allocation30_spill] sm:$0xff] }
  0xba   : > { %848 = vadd.xlane.f32.xlu0 %v847_v32  ;;  %v772_v44 = vmul.f32 %v10771_v4, %v10771_v4  ;;  %v10772_v32 = vld [vmem:[#allocation33_spill] sm:$0xff]  ;;  %v753_v4 = vmul.f32 %v10788_v30, %v10788_v30 }
  0xbb   : > { %v775_v52 = vmul.f32 %v10772_v32, %v10772_v32  ;;  %v782_v32 = vmul.f32 %v7076_v9, %v7076_v9 }
  0xbc   : > { %v943_v62 = vadd.f32 %v942_v34, %v772_v44 }
  0xbd   : > { %860 = vadd.xlane.f32.xlu1 %v859_v7  ;;  %v10774_v7 = vld [vmem:[#allocation35_spill] sm:$0xff]  ;;  %v946_v42 = vsel %vm505_vm0, %v775_v52, 0.0 }
  0xbe   : > { %856 = vadd.xlane.f32.xlu0 %v855_v40  ;;  %v774_v60 = vmul.f32 %v10774_v7, %v10774_v7 }
  0xc0   : > { %v947_v1 = vadd.f32 %v946_v42, %v774_v60  ;;  %v902_v60 = vsel %vm505_vm0, %v753_v4, 0.0  ;;  %v10790_v42 = vld [vmem:[#allocation39_spill] sm:$0xff] }
  0xc1   : > { %924 = vadd.xlane.f32.xlu1 %v923_v12  ;;  %v747_v12 = vmul.f32 %v10776_v46, %v10776_v46  ;;  %v785_v61 = vmul.f32 %v10790_v42, %v10790_v42 }
  0xc2   : > { %864 = vadd.xlane.f32.xlu0 %v863_v50  ;;  %v886_v50 = vsel %vm505_vm0, %v745_v53, 0.0  ;;  %v10789_v53 = vld [vmem:[#allocation17_spill] sm:$0xff] }
  0xc3   : > { %v887_v11 = vadd.f32 %v886_v50, %v744_v37 }
  0xc5   : > { %868 = vadd.xlane.f32.xlu1 %v867_v15 }
  0xc6   : > { %928 = vadd.xlane.f32.xlu0 %v927_v35  ;;  %v890_v35 = vsel %vm505_vm0, %v747_v12, 0.0  ;;  %v499_v12 = vld [vmem:[%s6682_s16 + $0x2d0] sm:$0xff] }
  0xc7   : > { %v891_v59 = vadd.f32 %v890_v35, %v746_v41  ;;  %v966_v41 = vsel %vm505_vm0, %v785_v61, 0.0  ;;  %v10799_v61 = vld [vmem:[#allocation26_spill] sm:$0xff] }
  0xc9   : > { %932 = vadd.xlane.f32.xlu1 %v931_v20  ;;  %v950_v20 = vsel %vm505_vm0, %v777_v56, 0.0  ;;  %v10791_v56 = vld [vmem:[#allocation19_spill] sm:$0xff] }
  0xca   : > { %872 = vadd.xlane.f32.xlu0 %v871_v3  ;;  %v749_v3 = vmul.f32 %v10781_v45, %v10781_v45  ;;  %v951_v23 = vadd.f32 %v950_v20, %v776_v5  ;;  %v10793_v5 = vld [vmem:[#allocation21_spill] sm:$0xff]  ;;  %v967_v20 = vadd.f32 %v966_v41, %v784_v16  ;;  %v10794_v45 = vld [vmem:[#allocation22_spill] sm:$0xff] }
  0xcb   : > { %v756_v29 = vmul.f32 %v10793_v5, %v10793_v5 }
  0xcc   : > { %v894_v27 = vsel %vm505_vm0, %v749_v3, 0.0  ;;  %v754_v3 = vmul.f32 %v10794_v45, %v10794_v45 }
  0xcd   : > { %876 = vadd.xlane.f32.xlu1 %v875_v48  ;;  %v751_v48 = vmul.f32 %v10783_v13, %v10783_v13  ;;  %v895_v22 = vadd.f32 %v894_v27, %v748_v14  ;;  %v788_v13 = vmul.f32 %v499_v12, %v499_v12 }
  0xce   : > { %936 = vadd.xlane.f32.xlu0 %v935_v55  ;;  %v10784_v55 = vld [vmem:[#allocation36_spill] sm:$0xff] }
  0xcf   : > { %v781_v24 = vmul.f32 %v10784_v55, %v10784_v55  ;;  %v898_v63 = vsel %vm505_vm0, %v751_v48, 0.0 }
  0xd0   : > { %v899_v44 = vadd.f32 %v898_v63, %v750_v31  ;;  %v504_v31 = vld [vmem:[%s6682_s16 + $0x2f8] sm:$0xff] }
  0xd1   : > { %940 = vadd.xlane.f32.xlu1 %v939_v54  ;;  %v10787_v54 = vld [vmem:[#allocation40_spill] sm:$0xff] }
  0xd2   : > { %880 = vadd.xlane.f32.xlu0 %v879_v33  ;;  %v7240_v40 = vpop.xlane.xlu1 %516  ;;  %v783_v26 = vmul.f32 %v10787_v54, %v10787_v54  ;;  %v958_v33 = vsel %vm505_vm0, %v781_v24, 0.0  ;;  %v786_v24 = vmul.f32 %v7091_v21, %v7091_v21  ;;  %v503_v54 = vld [vmem:[%s6682_s16 + $0x2f0] sm:$0xff]  ;;  %v501_v21 = vld [vmem:[%s6682_s16 + $0x2e0] sm:$0xff] }
  0xd3   : > { %v7247_v25 = vpop.xlane.xlu0 %508  ;;  %v959_v34 = vadd.f32 %v958_v33, %v780_v51  ;;  %v10796_v33 = vld [vmem:[#allocation23_spill] sm:$0xff] }
  0xd4   : > { %v962_v47 = vsel %vm505_vm0, %v783_v26, 0.0  ;;  %v971_v51 = vadd.f32 %v970_v18, %v786_v24  ;;  %v694_v26 = vsel %vm505_vm0, %v504_v31, 0.0  ;;  %v761_v30 = vmul.f32 %v10796_v33, %v10796_v33 }
  0xd5   : > { %884 = vadd.xlane.f32.xlu1 %v883_v38  ;;  %v752_v38 = vmul.f32 %v10789_v53, %v10789_v53  ;;  %v963_v37 = vadd.f32 %v962_v47, %v782_v32  ;;  %v10797_v32 = vld [vmem:[#allocation24_spill] sm:$0xff]  ;;  %v695_v47 = vadd.f32 %v694_v26, %v503_v54  ;;  %v10798_v53 = vld [vmem:[#allocation25_spill] sm:$0xff] }
  0xd6   : > { %944 = vadd.xlane.f32.xlu0 %v943_v62  ;;  %v7254_v15 = vpop.xlane.xlu1 %520  ;;  %v500_v62 = vld [vmem:[%s6682_s16 + $0x2d8] sm:$0xff]  ;;  %v918_v42 = vsel %vm505_vm0, %v761_v30, 0.0 }
  0xd7   : > { %v7261_v0 = vpop.xlane.xlu0 %512  ;;  %v903_v46 = vadd.f32 %v902_v60, %v752_v38  ;;  %v686_v50 = vsel %vm505_vm0, %v500_v62, 0.0  ;;  %v760_v38 = vmul.f32 %v10798_v53, %v10798_v53  ;;  %v7421_v53 = vmul.f32 0.0051020407, %v7240_v40 }
  0xd8   : > { %v687_v6 = vadd.f32 %v686_v50, %v499_v12 }
  0xd9   : > { %948 = vadd.xlane.f32.xlu1 %v947_v1  ;;  %v757_v1 = vmul.f32 %v10791_v56, %v10791_v56  ;;  %v919_v56 = vadd.f32 %v918_v42, %v760_v38 }
  0xda   : > { %888 = vadd.xlane.f32.xlu0 %v887_v11  ;;  %v7268_v8 = vpop.xlane.xlu1 %528  ;;  %v10792_v11 = vld [vmem:[#allocation20_spill] sm:$0xff] }
  0xdb   : > { %v7275_v28 = vpop.xlane.xlu0 %524  ;;  %v755_v35 = vmul.f32 %v10792_v11, %v10792_v11  ;;  %v910_v57 = vsel %vm505_vm0, %v757_v1, 0.0  ;;  %v792_v1 = vmul.f32 %v503_v54, %v503_v54 }
  0xdc   : > { %v911_v14 = vadd.f32 %v910_v57, %v756_v29 }
  0xdd   : > { %892 = vadd.xlane.f32.xlu1 %v891_v59  ;;  %v789_v59 = vmul.f32 %v500_v62, %v500_v62 }
  0xde   : > { %952 = vadd.xlane.f32.xlu0 %v951_v23  ;;  %v7282_v58 = vpop.xlane.xlu1 %536  ;;  %v906_v23 = vsel %vm505_vm0, %v755_v35, 0.0 }
  0xdf   : > { %v7289_v39 = vpop.xlane.xlu0 %532  ;;  %v907_v27 = vadd.f32 %v906_v23, %v754_v3  ;;  %v974_v55 = vsel %vm505_vm0, %v789_v59, 0.0 }
  0xe0   : > { %v975_v63 = vadd.f32 %v974_v55, %v788_v13 }
  0xe1   : > { %956 = vadd.xlane.f32.xlu1 %v955_v19 }
  0xe2   : > { %896 = vadd.xlane.f32.xlu0 %v895_v22  ;;  %v7296_v52 = vpop.xlane.xlu1 %544  ;;  %v502_v22 = vld [vmem:[%s6682_s16 + $0x2e8] sm:$0xff] }
  0xe3   : > { %v7301_v7 = vpop.xlane.xlu0 %540  ;;  %v791_v16 = vmul.f32 %v502_v22, %v502_v22 }
  0xe5   : > { %900 = vadd.xlane.f32.xlu1 %v899_v44  ;;  %v690_v44 = vsel %vm505_vm0, %v502_v22, 0.0  ;;  %v978_v29 = vsel %vm505_vm0, %v791_v16, 0.0 }
  0xe6   : > { %960 = vadd.xlane.f32.xlu0 %v959_v34  ;;  %v7307_v9 = vpop.xlane.xlu1 %552  ;;  %v759_v34 = vmul.f32 %v10797_v32, %v10797_v32  ;;  %v691_v62 = vadd.f32 %v690_v44, %v501_v21  ;;  %v7416_v32 = vmul.f32 0.0051020407, %v7247_v25  ;;  %v1084_v25 = vmul.f32 %v7421_v53, %v7421_v53 }
  0xe7   : > { %v7315_v2 = vpop.xlane.xlu0 %548 }
  0xe8   : > { %v914_v50 = vsel %vm505_vm0, %v759_v34, 0.0  ;;  %v1082_v38 = vmul.f32 %v7416_v32, %v7416_v32 }
  0xe9   : > { %964 = vadd.xlane.f32.xlu1 %v963_v37  ;;  %v758_v37 = vmul.f32 %v10799_v61, %v10799_v61  ;;  %v7428_v61 = vmul.f32 0.0051020407, %v7261_v0 }
  0xea   : > { %904 = vadd.xlane.f32.xlu0 %v903_v46  ;;  %v7322_v49 = vpop.xlane.xlu1 %560  ;;  %v793_v46 = vmul.f32 %v504_v31, %v504_v31 }
  0xeb   : > { %v7327_v10 = vpop.xlane.xlu0 %556  ;;  %v915_v11 = vadd.f32 %v914_v50, %v758_v37  ;;  %v7433_v50 = vmul.f32 0.0051020407, %v7275_v28  ;;  %v7444_v28 = vmul.f32 0.0051020407, %v7289_v39 }
  0xec   : > { %v982_v35 = vsel %vm505_vm0, %v793_v46, 0.0 }
  0xed   : > { %688 = vadd.xlane.f32.xlu1 %v687_v6  ;;  %v790_v6 = vmul.f32 %v501_v21, %v501_v21 }
  0xee   : > { %968 = vadd.xlane.f32.xlu0 %v967_v20  ;;  %v7332_v48 = vpop.xlane.xlu1 %568  ;;  %v983_v20 = vadd.f32 %v982_v35, %v792_v1  ;;  %v7436_v1 = vmul.f32 0.0051020407, %v7254_v15 }
  0xef   : > { %v7337_v19 = vpop.xlane.xlu0 %564  ;;  %v979_v45 = vadd.f32 %v978_v29, %v790_v6 }
  0xf0   : > { %v1085_v15 = vmul.f32 %v7436_v1, %v7436_v1 }
  0xf1   : > { %912 = vadd.xlane.f32.xlu1 %v911_v14 }
  0xf2   : > { %908 = vadd.xlane.f32.xlu0 %v907_v27  ;;  %v7342_v36 = vpop.xlane.xlu1 %576 }
  0xf3   : > { %v7348_v4 = vpop.xlane.xlu0 %572 }
  0xf5   : > { %976 = vadd.xlane.f32.xlu1 %v975_v63 }
  0xf6   : > { %972 = vadd.xlane.f32.xlu0 %v971_v51  ;;  %v7356_v60 = vpop.xlane.xlu1 %584  ;;  %v10667_v51 = vmov 0  }
  0xf7   : > { %v7361_v12 = vpop.xlane.xlu0 %580  ;;  %6002 = vset.pattern.permute.xlu0 %v10667_v51  ;;  %6003 = vset.pattern.permute.xlu1 %v10667_v51 }
  0xf8   : > { %2899 = vmatprep.mubr.bf16.mxu0 %v10667_v51 }
  0xf9   : > { %696 = vadd.xlane.f32.xlu1 %v695_v47 }
  0xfa   : > { %692 = vadd.xlane.f32.xlu0 %v691_v62  ;;  %v7364_v41 = vpop.xlane.xlu1 %592 }
  0xfb   : > { %v7367_v5 = vpop.xlane.xlu0 %588 }
  0xfd   : > { %920 = vadd.xlane.f32.xlu1 %v919_v56 }
  0xfe   : > { %916 = vadd.xlane.f32.xlu0 %v915_v11  ;;  %v7370_v57 = vpop.xlane.xlu1 %600  ;;  %v1083_v11 = vmul.f32 %v7428_v61, %v7428_v61 }
  0xff   : > { %v7372_v3 = vpop.xlane.xlu0 %596 }
 0x101   : > { %984 = vadd.xlane.f32.xlu1 %v983_v20  ;;  %v1086_v20 = vmul.f32 %v7433_v50, %v7433_v50 }
 0x102   : > { %980 = vadd.xlane.f32.xlu0 %v979_v45  ;;  %v7374_v59 = vpop.xlane.xlu1 %608 }
 0x103   : > { %v7376_v23 = vpop.xlane.xlu0 %604 }
 0x106   : > { %v7378_v17 = vpop.xlane.xlu1 %616 }
 0x107   : > { %v7380_v43 = vpop.xlane.xlu0 %612 }
 0x10a   : > { %v7382_v14 = vpop.xlane.xlu1 %624 }
 0x10b   : > { %v7384_v13 = vpop.xlane.xlu0 %620 }
 0x10e   : > { %v7386_v27 = vpop.xlane.xlu1 %632 }
 0x10f   : > { %10800 = vst [vmem:[#allocation27_spill] sm:$0xff] %v7386_v27  ;;  %v7388_v55 = vpop.xlane.xlu0 %628 }
 0x110   : > { %10801 = vst [vmem:[#allocation29_spill] sm:$0xff] %v7388_v55 }
 0x112   : > { %v7390_v24 = vpop.xlane.xlu1 %640 }
 0x113   : > { %v7392_v18 = vpop.xlane.xlu0 %636 }
 0x116   : > { %v7394_v31 = vpop.xlane.xlu1 %648 }
 0x117   : > { %v7396_v22 = vpop.xlane.xlu0 %644 }
 0x11a   : > { %v7398_v63 = vpop.xlane.xlu1 %656 }
 0x11b   : > { %v7402_v54 = vpop.xlane.xlu0 %652 }
 0x11e   : > { %v7405_v26 = vpop.xlane.xlu1 %664 }
 0x11f   : > { %v7407_v33 = vpop.xlane.xlu0 %660 }
 0x122   : > { %v7409_v30 = vpop.xlane.xlu1 %672 }
 0x123   : > { %v7411_v21 = vpop.xlane.xlu0 %668 }
 0x126   : > { %v7413_v44 = vpop.xlane.xlu1 %680 }
 0x127   : > { %v7418_v34 = vpop.xlane.xlu0 %676 }
 0x12a   : > { %v797_v47 = vpop.xlane.xlu1 %796 }
 0x12b   : > { %v1034_v62 = vmul.f32 0.0051020407, %v797_v47  ;;  %v7425_v42 = vpop.xlane.xlu0 %684 }
 0x12d   : > { %v1130_v37 = vsub.f32 %v1034_v62, %v1082_v38  ;;  %v7449_v62 = vmul.f32 0.0051020407, %v7268_v8  ;;  %v1088_v8 = vmul.f32 %v7444_v28, %v7444_v28 }
 0x12e   : > { %v805_v46 = vpop.xlane.xlu1 %804 }
 0x12f   : > { %v1226_v40 = vadd.f32 1e-05, %v1130_v37  ;;  %v1036_v16 = vmul.f32 0.0051020407, %v805_v46  ;;  %v801_v56 = vpop.xlane.xlu0 %800 }
 0x130   : > { %v1035_v35 = vmul.f32 0.0051020407, %v801_v56  ;;  %v7462_v56 = vmul.f32 0.0051020407, %v7301_v7 }
 0x131   : > { %6084 = vrsqrt.f32 %v1226_v40  ;;  %v1132_v0 = vsub.f32 %v1036_v16, %v1084_v25  ;;  %v7452_v40 = vmul.f32 0.0051020407, %v7282_v58  ;;  %v1087_v58 = vmul.f32 %v7449_v62, %v7449_v62 }
 0x132   : > { %v1131_v6 = vsub.f32 %v1035_v35, %v1083_v11  ;;  %v813_v29 = vpop.xlane.xlu1 %812  ;;  %v1090_v7 = vmul.f32 %v7462_v56, %v7462_v56 }
 0x133   : > { %v1228_v45 = vadd.f32 1e-05, %v1132_v0  ;;  %v1038_v47 = vmul.f32 0.0051020407, %v813_v29  ;;  %v809_v38 = vpop.xlane.xlu0 %808 }
 0x134   : > { %v1227_v37 = vadd.f32 1e-05, %v1131_v6  ;;  %v1037_v46 = vmul.f32 0.0051020407, %v809_v38 }
 0x135   : > { %6086 = vrsqrt.f32 %v1228_v45  ;;  %v1134_v25 = vsub.f32 %v1038_v47, %v1086_v20  ;;  %v1178_v45 = vld [vmem:[%s7457_s20] sm:$0xff]  ;;  %v1089_v47 = vmul.f32 %v7452_v40, %v7452_v40 }
 0x136   : > { %6088 = vrsqrt.f32 %v1227_v37  ;;  %v1133_v16 = vsub.f32 %v1037_v46, %v1085_v15  ;;  %v821_v39 = vpop.xlane.xlu1 %820  ;;  %v7472_v46 = vmul.f32 0.0051020407, %v7315_v2 }
 0x137   : > { %v1230_v11 = vadd.f32 1e-05, %v1134_v25  ;;  %v1040_v35 = vmul.f32 0.0051020407, %v821_v39  ;;  %v817_v0 = vpop.xlane.xlu0 %816 }
 0x138   : > { %v1229_v6 = vadd.f32 1e-05, %v1133_v16  ;;  %v1039_v29 = vmul.f32 0.0051020407, %v817_v0 }
 0x139   : > { %6090 = vrsqrt.f32 %v1230_v11  ;;  %v1136_v20 = vsub.f32 %v1040_v35, %v1088_v8  ;;  %v7475_v8 = vmul.f32 0.0051020407, %v7296_v52  ;;  %v1092_v52 = vmul.f32 %v7472_v46, %v7472_v46 }
 0x13a   : > { %6092 = vrsqrt.f32 %v1229_v6  ;;  %v1135_v38 = vsub.f32 %v1039_v29, %v1087_v58  ;;  %v829_v15 = vpop.xlane.xlu1 %828  ;;  %v7480_v6 = vmul.f32 0.0051020407, %v7327_v10 }
 0x13b   : > { %v6085_v37 = vpop.eup %6084  ;;  %v1232_v25 = vadd.f32 1e-05, %v1136_v20  ;;  %v1042_v16 = vmul.f32 0.0051020407, %v829_v15  ;;  %v825_v39 = vpop.xlane.xlu0 %824  ;;  %v1179_v15 = vld [vmem:[%s7457_s20 + $0x8] sm:$0xff]  ;;  %v1091_v10 = vmul.f32 %v7475_v8, %v7475_v8 }
 0x13c   : > { %v1231_v11 = vadd.f32 1e-05, %v1135_v38  ;;  %v1041_v35 = vmul.f32 0.0051020407, %v825_v39  ;;  %v7477_v0 = vmul.f32 %v6085_v37, %v1178_v45 }
 0x13d   : > { %6094 = vrsqrt.f32 %v1232_v25  ;;  %v1138_v58 = vsub.f32 %v1042_v16, %v1090_v7  ;;  %v1180_v25 = vld [vmem:[%s7457_s20 + $0x10] sm:$0xff] }
 0x13e   : > { %10802 = vst [vmem:[#allocation5_spill] sm:$0xff] %v7477_v0  ;;  %6096 = vrsqrt.f32 %v1231_v11  ;;  %v1137_v29 = vsub.f32 %v1041_v35, %v1089_v47  ;;  %v837_v2 = vpop.xlane.xlu1 %836  ;;  %v1370_v20 = vmul.f32 %v7477_v0, %v7416_v32  ;;  %v7491_v47 = vmul.f32 0.0051020407, %v7307_v9 }
 0x13f   : > { %v6087_v51 = vpop.eup %6086  ;;  %v1234_v38 = vadd.f32 1e-05, %v1138_v58  ;;  %v1044_v45 = vmul.f32 0.0051020407, %v837_v2  ;;  %v833_v37 = vpop.xlane.xlu0 %832  ;;  %v7495_v32 = vmul.f32 0.0051020407, %v7322_v49  ;;  %v1094_v2 = vmul.f32 %v7480_v6, %v7480_v6 }
 0x140   : > { %v6089_v7 = vpop.eup %6088  ;;  %v1233_v16 = vadd.f32 1e-05, %v1137_v29  ;;  %v1043_v39 = vmul.f32 0.0051020407, %v833_v37  ;;  %1466 = vrot.lane.b32.xlu0 %v1370_v20, %s6490_s23  ;;  %v1182_v58 = vld [vmem:[%s7457_s20 + $0x20] sm:$0xff] }
 0x141   : > { %6098 = vrsqrt.f32 %v1234_v38  ;;  %v1140_v11 = vsub.f32 %v1044_v45, %v1092_v52  ;;  %v7497_v35 = vmul.f32 %v6089_v7, %v1179_v15  ;;  %v7503_v9 = vmul.f32 0.0051020407, %v7337_v19 }
 0x142   : > { %6100 = vrsqrt.f32 %v1233_v16  ;;  %v1139_v29 = vsub.f32 %v1043_v39, %v1091_v10  ;;  %v845_v37 = vpop.xlane.xlu1 %844  ;;  %v7507_v52 = vmul.f32 %v6087_v51, %v1180_v25  ;;  %v1093_v45 = vmul.f32 %v7491_v47, %v7491_v47  ;;  %v7514_v10 = vld [vmem:[%s7457_s20 + $0x18] sm:$0xff] }
 0x143   : > { %v6091_v0 = vpop.eup %6090  ;;  %v1236_v20 = vadd.f32 1e-05, %v1140_v11  ;;  %v1046_v49 = vmul.f32 0.0051020407, %v845_v37  ;;  %v841_v55 = vpop.xlane.xlu0 %840  ;;  %v1371_v15 = vmul.f32 %v7497_v35, %v7428_v61  ;;  %v1095_v16 = vmul.f32 %v7495_v32, %v7495_v32  ;;  %v1184_v61 = vld [vmem:[%s7457_s20 + $0x30] sm:$0xff] }
 0x144   : > { %v6093_v38 = vpop.eup %6092  ;;  %v1235_v7 = vadd.f32 1e-05, %v1139_v29  ;;  %v1045_v19 = vmul.f32 0.0051020407, %v841_v55  ;;  %v7511_v27 = vmul.f32 %v6091_v0, %v1182_v58  ;;  %v7519_v39 = vmul.f32 0.0051020407, %v7348_v4 }
 0x145   : > { %6102 = vrsqrt.f32 %v1236_v20  ;;  %v1142_v51 = vsub.f32 %v1046_v49, %v1094_v2  ;;  %1468 = vrot.lane.b32.xlu1 %v1371_v15, %s6490_s23  ;;  %v1096_v25 = vmul.f32 %v7503_v9, %v7503_v9  ;;  %v1372_v2 = vmul.f32 %v7507_v52, %v7421_v53  ;;  %v1183_v49 = vld [vmem:[%s7457_s20 + $0x28] sm:$0xff] }
 0x146   : > { %6104 = vrsqrt.f32 %v1235_v7  ;;  %v1141_v55 = vsub.f32 %v1045_v19, %v1093_v45  ;;  %v853_v0 = vpop.xlane.xlu1 %852  ;;  %v1374_v11 = vmul.f32 %v7511_v27, %v7433_v50  ;;  %v7530_v20 = vmul.f32 %v6093_v38, %v7514_v10 }
 0x147   : > { %v6095_v58 = vpop.eup %6094  ;;  %v1238_v29 = vadd.f32 1e-05, %v1142_v51  ;;  %v1048_v37 = vmul.f32 0.0051020407, %v853_v0  ;;  %v849_v4 = vpop.xlane.xlu0 %848  ;;  %v7534_v7 = vmul.f32 0.0051020407, %v7332_v48  ;;  %v1098_v53 = vmul.f32 %v7519_v39, %v7519_v39 }
 0x148   : > { %v6097_v15 = vpop.eup %6096  ;;  %v1237_v45 = vadd.f32 1e-05, %v1141_v55  ;;  %v1047_v19 = vmul.f32 0.0051020407, %v849_v4  ;;  %1474 = vrot.lane.b32.xlu0 %v1374_v11, %s6490_s23  ;;  %v7537_v50 = vmul.f32 %v6095_v58, %v1184_v61  ;;  %v7540_v51 = vmul.f32 0.0051020407, %v7342_v36 }
 0x149   : > { %6106 = vrsqrt.f32 %v1238_v29  ;;  %v1144_v38 = vsub.f32 %v1048_v37, %v1096_v25  ;;  %1470 = vrot.lane.b32.xlu1 %v1372_v2, %s6490_s23  ;;  %v7546_v0 = vld [vmem:[%s7457_s20 + $0x40] sm:$0xff]  ;;  %v7549_v48 = vmul.f32 0.0051020407, %v7392_v18  ;;  %v1373_v25 = vmul.f32 %v7530_v20, %v7436_v1 }
 0x14a   : > { %10803 = vst [vmem:[#allocation31_spill] sm:$0xff] %v7537_v50  ;;  %10804 = vst [vmem:[#allocation6_spill] sm:$0xff] %v7546_v0  ;;  %6108 = vrsqrt.f32 %v1237_v45  ;;  %v1143_v55 = vsub.f32 %v1047_v19, %v1095_v16  ;;  %v861_v61 = vpop.xlane.xlu1 %860  ;;  %v1376_v36 = vmul.f32 %v7537_v50, %v7444_v28  ;;  %v7555_v37 = vmul.f32 %v6097_v15, %v1183_v49  ;;  %v7564_v19 = vld [vmem:[%s7457_s20 + $0x38] sm:$0xff]  ;;  %v1188_v15 = vld [vmem:[%s7457_s20 + $0x50] sm:$0xff] }
 0x14b   : > { %v6099_v11 = vpop.eup %6098  ;;  %v1240_v58 = vadd.f32 1e-05, %v1144_v38  ;;  %v1050_v4 = vmul.f32 0.0051020407, %v861_v61  ;;  %v857_v29 = vpop.xlane.xlu0 %856  ;;  %v1097_v18 = vmul.f32 %v7534_v7, %v7534_v7  ;;  %v1099_v38 = vmul.f32 %v7540_v51, %v7540_v51 }
 0x14c   : > { %v6101_v2 = vpop.eup %6100  ;;  %v1239_v45 = vadd.f32 1e-05, %v1143_v55  ;;  %v1049_v16 = vmul.f32 0.0051020407, %v857_v29  ;;  %1478 = vrot.lane.b32.xlu0 %v1376_v36, %s6490_s23  ;;  %v7561_v28 = vmul.f32 %v6099_v11, %v7546_v0  ;;  %v7569_v1 = vmul.f32 0.0051020407, %v7361_v12 }
 0x14d   : > { %6110 = vrsqrt.f32 %v1240_v58  ;;  %v1146_v49 = vsub.f32 %v1050_v4, %v1098_v53  ;;  %1472 = vrot.lane.b32.xlu1 %v1373_v25, %s6490_s23  ;;  %v1114_v55 = vmul.f32 %v7549_v48, %v7549_v48  ;;  %v1375_v53 = vmul.f32 %v7555_v37, %v7449_v62  ;;  %v1187_v4 = vld [vmem:[%s7457_s20 + $0x48] sm:$0xff] }
 0x14e   : > { %6112 = vrsqrt.f32 %v1239_v45  ;;  %v1145_v61 = vsub.f32 %v1049_v16, %v1097_v18  ;;  %v925_v36 = vpop.xlane.xlu1 %924  ;;  %v1378_v11 = vmul.f32 %v7561_v28, %v7462_v56  ;;  %v7580_v58 = vmul.f32 %v6101_v2, %v7564_v19 }
 0x14f   : > { %v6103_v29 = vpop.eup %6102  ;;  %v1242_v0 = vadd.f32 1e-05, %v1146_v49  ;;  %v1066_v50 = vmul.f32 0.0051020407, %v925_v36  ;;  %v865_v12 = vpop.xlane.xlu0 %864  ;;  %v7584_v45 = vmul.f32 0.0051020407, %v7390_v24  ;;  %v1100_v62 = vmul.f32 %v7569_v1, %v7569_v1 }
 0x150   : > { %v6105_v25 = vpop.eup %6104  ;;  %v1241_v18 = vadd.f32 1e-05, %v1145_v61  ;;  %v1051_v16 = vmul.f32 0.0051020407, %v865_v12  ;;  %1482 = vrot.lane.b32.xlu0 %v1378_v11, %s6490_s23  ;;  %v7587_v56 = vmul.f32 %v6103_v29, %v1188_v15  ;;  %v7590_v49 = vmul.f32 0.0051020407, %v7356_v60 }
 0x151   : > { %6114 = vrsqrt.f32 %v1242_v0  ;;  %v1162_v2 = vsub.f32 %v1066_v50, %v1114_v55  ;;  %1476 = vrot.lane.b32.xlu1 %v1375_v53, %s6490_s23  ;;  %v7596_v36 = vld [vmem:[%s7457_s20 + $0x60] sm:$0xff]  ;;  %v7599_v24 = vmul.f32 0.0051020407, %v7396_v22  ;;  %v1377_v50 = vmul.f32 %v7580_v58, %v7452_v40 }
 0x152   : > { %10805 = vst [vmem:[#allocation8_spill] sm:$0xff] %v7587_v56  ;;  %10806 = vst [vmem:[#allocation28_spill] sm:$0xff] %v7596_v36  ;;  %6116 = vrsqrt.f32 %v1241_v18  ;;  %v1147_v61 = vsub.f32 %v1051_v16, %v1099_v38  ;;  %v869_v15 = vpop.xlane.xlu1 %868  ;;  %v1380_v60 = vmul.f32 %v7587_v56, %v7472_v46  ;;  %v7605_v55 = vmul.f32 %v6105_v25, %v1187_v4  ;;  %v7614_v16 = vld [vmem:[%s7457_s20 + $0x58] sm:$0xff]  ;;  %v7623_v25 = vld [vmem:[%s7457_s20 + $0x70] sm:$0xff] }
 0x153   : > { %v6107_v11 = vpop.eup %6106  ;;  %v1258_v29 = vadd.f32 1e-05, %v1162_v2  ;;  %v1052_v12 = vmul.f32 0.0051020407, %v869_v15  ;;  %v929_v0 = vpop.xlane.xlu0 %928  ;;  %v1115_v22 = vmul.f32 %v7584_v45, %v7584_v45  ;;  %v1101_v2 = vmul.f32 %v7590_v49, %v7590_v49  ;;  %10807 = vst [vmem:[#allocation10_spill] sm:$0xff] %v7623_v25 }
 0x154   : > { %v6109_v53 = vpop.eup %6108  ;;  %v1243_v18 = vadd.f32 1e-05, %v1147_v61  ;;  %v1067_v38 = vmul.f32 0.0051020407, %v929_v0  ;;  %1486 = vrot.lane.b32.xlu0 %v1380_v60, %s6490_s23  ;;  %v7611_v46 = vmul.f32 %v6107_v11, %v7596_v36  ;;  %v7619_v40 = vmul.f32 0.0051020407, %v7367_v5 }
 0x155   : > { %6118 = vrsqrt.f32 %v1258_v29  ;;  %v1148_v4 = vsub.f32 %v1052_v12, %v1100_v62  ;;  %1480 = vrot.lane.b32.xlu1 %v1377_v50, %s6490_s23  ;;  %v1116_v61 = vmul.f32 %v7599_v24, %v7599_v24  ;;  %v1379_v62 = vmul.f32 %v7605_v55, %v7475_v8  ;;  %v7635_v12 = vld [vmem:[%s7457_s20 + $0x68] sm:$0xff] }
 0x156   : > { %6120 = vrsqrt.f32 %v1243_v18  ;;  %v1163_v15 = vsub.f32 %v1067_v38, %v1115_v22  ;;  %v933_v60 = vpop.xlane.xlu1 %932  ;;  %v1382_v11 = vmul.f32 %v7611_v46, %v7480_v6  ;;  %v7632_v29 = vmul.f32 %v6109_v53, %v7614_v16  ;;  %10808 = vst [vmem:[#allocation30_spill] sm:$0xff] %v7635_v12 }
 0x157   : > { %v6111_v0 = vpop.eup %6110  ;;  %v1244_v36 = vadd.f32 1e-05, %v1148_v4  ;;  %v1068_v5 = vmul.f32 0.0051020407, %v933_v60  ;;  %v873_v56 = vpop.xlane.xlu0 %872  ;;  %v7638_v22 = vmul.f32 0.0051020407, %v7394_v31  ;;  %v1102_v8 = vmul.f32 %v7619_v40, %v7619_v40 }
 0x158   : > { %v6113_v50 = vpop.eup %6112  ;;  %v1259_v18 = vadd.f32 1e-05, %v1163_v15  ;;  %v1053_v38 = vmul.f32 0.0051020407, %v873_v56  ;;  %1490 = vrot.lane.b32.xlu0 %v1382_v11, %s6490_s23  ;;  %v7642_v6 = vmul.f32 %v6111_v0, %v7623_v25  ;;  %v7645_v4 = vmul.f32 0.0051020407, %v7364_v41 }
 0x159   : > { %6122 = vrsqrt.f32 %v1244_v36  ;;  %v1164_v53 = vsub.f32 %v1068_v5, %v1116_v61  ;;  %1484 = vrot.lane.b32.xlu1 %v1379_v62, %s6490_s23  ;;  %v7651_v60 = vld [vmem:[%s7457_s20 + $0x80] sm:$0xff]  ;;  %v7654_v31 = vmul.f32 0.0051020407, %v7402_v54  ;;  %v1381_v61 = vmul.f32 %v7632_v29, %v7491_v47 }
 0x15a   : > { %10809 = vst [vmem:[#allocation33_spill] sm:$0xff] %v7642_v6  ;;  %10810 = vst [vmem:[#allocation7_spill] sm:$0xff] %v7651_v60  ;;  %6124 = vrsqrt.f32 %v1259_v18  ;;  %v1149_v56 = vsub.f32 %v1053_v38, %v1101_v2  ;;  %v877_v15 = vpop.xlane.xlu1 %876  ;;  %v1384_v41 = vmul.f32 %v7642_v6, %v7503_v9  ;;  %v7661_v5 = vmul.f32 %v6113_v50, %v7635_v12  ;;  %v7670_v38 = vld [vmem:[%s7457_s20 + $0x78] sm:$0xff] }
 0x15b   : > { %v6115_v11 = vpop.eup %6114  ;;  %v1260_v0 = vadd.f32 1e-05, %v1164_v53  ;;  %v1054_v25 = vmul.f32 0.0051020407, %v877_v15  ;;  %v937_v36 = vpop.xlane.xlu0 %936  ;;  %v1117_v62 = vmul.f32 %v7638_v22, %v7638_v22  ;;  %v1103_v53 = vmul.f32 %v7645_v4, %v7645_v4 }
 0x15c   : > { %v6117_v54 = vpop.eup %6116  ;;  %v1245_v2 = vadd.f32 1e-05, %v1149_v56  ;;  %v1069_v18 = vmul.f32 0.0051020407, %v937_v36  ;;  %1494 = vrot.lane.b32.xlu0 %v1384_v41, %s6490_s23  ;;  %v7667_v9 = vmul.f32 %v6115_v11, %v7651_v60  ;;  %v7675_v47 = vmul.f32 0.0051020407, %v7372_v3 }
 0x15d   : > { %6126 = vrsqrt.f32 %v1260_v0  ;;  %v1150_v50 = vsub.f32 %v1054_v25, %v1102_v8  ;;  %1488 = vrot.lane.b32.xlu1 %v1381_v61, %s6490_s23  ;;  %v7679_v56 = vld [vmem:[%s7457_s20 + $0x100] sm:$0xff]  ;;  %v1118_v15 = vmul.f32 %v7654_v31, %v7654_v31  ;;  %v1383_v25 = vmul.f32 %v7661_v5, %v7495_v32  ;;  %v7691_v0 = vld [vmem:[%s7457_s20 + $0x88] sm:$0xff] }
 0x15e   : > { %10811 = vst [vmem:[#allocation35_spill] sm:$0xff] %v7679_v56  ;;  %6128 = vrsqrt.f32 %v1245_v2  ;;  %v1165_v41 = vsub.f32 %v1069_v18, %v1117_v62  ;;  %v941_v11 = vpop.xlane.xlu1 %940  ;;  %v1386_v36 = vmul.f32 %v7667_v9, %v7519_v39  ;;  %v7688_v8 = vmul.f32 %v6117_v54, %v7670_v38  ;;  %10812 = vst [vmem:[#allocation9_spill] sm:$0xff] %v7691_v0 }
 0x15f   : > { %v6119_v60 = vpop.eup %6118  ;;  %v1246_v12 = vadd.f32 1e-05, %v1150_v50  ;;  %v1070_v3 = vmul.f32 0.0051020407, %v941_v11  ;;  %v881_v6 = vpop.xlane.xlu0 %880  ;;  %v7694_v62 = vmul.f32 0.0051020407, %v7398_v63  ;;  %v1104_v32 = vmul.f32 %v7675_v47, %v7675_v47 }
 0x160   : > { %v6121_v61 = vpop.eup %6120  ;;  %v1261_v2 = vadd.f32 1e-05, %v1165_v41  ;;  %v1055_v18 = vmul.f32 0.0051020407, %v881_v6  ;;  %1498 = vrot.lane.b32.xlu0 %v1386_v36, %s6490_s23  ;;  %v7698_v39 = vmul.f32 %v6119_v60, %v7679_v56  ;;  %v7701_v50 = vmul.f32 0.0051020407, %v7370_v57 }
 0x161   : > { %6130 = vrsqrt.f32 %v1246_v12  ;;  %v1166_v54 = vsub.f32 %v1070_v3, %v1118_v15  ;;  %1492 = vrot.lane.b32.xlu1 %v1383_v25, %s6490_s23  ;;  %v7707_v11 = vld [vmem:[%s7457_s20 + $0x90] sm:$0xff]  ;;  %v7710_v63 = vmul.f32 0.0051020407, %v7407_v33  ;;  %v1385_v15 = vmul.f32 %v7688_v8, %v7534_v7 }
 0x162   : > { %10813 = vst [vmem:[#allocation12_spill] sm:$0xff] %v7698_v39  ;;  %10814 = vst [vmem:[#allocation32_spill] sm:$0xff] %v7707_v11  ;;  %6132 = vrsqrt.f32 %v1261_v2  ;;  %v1151_v6 = vsub.f32 %v1055_v18, %v1103_v53  ;;  %v885_v60 = vpop.xlane.xlu1 %884  ;;  %v1402_v57 = vmul.f32 %v7698_v39, %v7549_v48  ;;  %v7717_v3 = vmul.f32 %v6121_v61, %v7691_v0  ;;  %v7726_v18 = vld [vmem:[%s7457_s20 + $0x108] sm:$0xff] }
 0x163   : > { %v6123_v41 = vpop.eup %6122  ;;  %v1262_v36 = vadd.f32 1e-05, %v1166_v54  ;;  %v1056_v56 = vmul.f32 0.0051020407, %v885_v60  ;;  %v945_v12 = vpop.xlane.xlu0 %944  ;;  %v1119_v25 = vmul.f32 %v7694_v62, %v7694_v62  ;;  %10815 = vst [vmem:[#allocation14_spill] sm:$0xff] %v7726_v18  ;;  %v1105_v54 = vmul.f32 %v7701_v50, %v7701_v50 }
 0x164   : > { %v6125_v33 = vpop.eup %6124  ;;  %v1247_v53 = vadd.f32 1e-05, %v1151_v6  ;;  %v1071_v2 = vmul.f32 0.0051020407, %v945_v12  ;;  %1530 = vrot.lane.b32.xlu0 %v1402_v57, %s6490_s23  ;;  %v7723_v48 = vmul.f32 %v6123_v41, %v7707_v11  ;;  %v7731_v7 = vmul.f32 0.0051020407, %v7376_v23 }
 0x165   : > { %6134 = vrsqrt.f32 %v1262_v36  ;;  %v1152_v61 = vsub.f32 %v1056_v56, %v1104_v32  ;;  %1496 = vrot.lane.b32.xlu1 %v1385_v15, %s6490_s23  ;;  %v7735_v6 = vld [vmem:[%s7457_s20 + $0x110] sm:$0xff]  ;;  %v1120_v60 = vmul.f32 %v7710_v63, %v7710_v63  ;;  %v1387_v56 = vmul.f32 %v7717_v3, %v7540_v51  ;;  %v7747_v36 = vld [vmem:[%s7457_s20 + $0x98] sm:$0xff] }
 0x166   : > { %10816 = vst [vmem:[#allocation34_spill] sm:$0xff] %v7735_v6  ;;  %6136 = vrsqrt.f32 %v1247_v53  ;;  %v1167_v57 = vsub.f32 %v1071_v2, %v1119_v25  ;;  %v949_v41 = vpop.xlane.xlu1 %948  ;;  %v1388_v12 = vmul.f32 %v7723_v48, %v7569_v1  ;;  %v7744_v32 = vmul.f32 %v6125_v33, %v7726_v18 }
 0x167   : > { %v6127_v11 = vpop.eup %6126  ;;  %v1248_v39 = vadd.f32 1e-05, %v1152_v61  ;;  %v1072_v23 = vmul.f32 0.0051020407, %v949_v41  ;;  %v889_v0 = vpop.xlane.xlu0 %888  ;;  %v7750_v25 = vmul.f32 0.0051020407, %v7405_v26  ;;  %v1106_v51 = vmul.f32 %v7731_v7, %v7731_v7 }
 0x168   : > { %v6129_v15 = vpop.eup %6128  ;;  %v1263_v53 = vadd.f32 1e-05, %v1167_v57  ;;  %v1057_v2 = vmul.f32 0.0051020407, %v889_v0  ;;  %1502 = vrot.lane.b32.xlu0 %v1388_v12, %s6490_s23  ;;  %v7754_v1 = vmul.f32 %v6127_v11, %v7735_v6  ;;  %v7757_v61 = vmul.f32 0.0051020407, %v7374_v59 }
 0x169   : > { %6138 = vrsqrt.f32 %v1248_v39  ;;  %v1168_v33 = vsub.f32 %v1072_v23, %v1120_v60  ;;  %1500 = vrot.lane.b32.xlu1 %v1387_v56, %s6490_s23  ;;  %v7763_v41 = vld [vmem:[%s7457_s20 + $0xa0] sm:$0xff]  ;;  %v7766_v26 = vmul.f32 0.0051020407, %v7411_v21  ;;  %v1403_v60 = vmul.f32 %v7744_v32, %v7584_v45 }
 0x16a   : > { %10817 = vst [vmem:[#allocation37_spill] sm:$0xff] %v7754_v1  ;;  %10818 = vst [vmem:[#allocation11_spill] sm:$0xff] %v7763_v41  ;;  %6140 = vrsqrt.f32 %v1263_v53  ;;  %v1153_v0 = vsub.f32 %v1057_v2, %v1105_v54  ;;  %v893_v11 = vpop.xlane.xlu1 %892  ;;  %v1404_v59 = vmul.f32 %v7754_v1, %v7599_v24  ;;  %v7773_v23 = vmul.f32 %v6129_v15, %v7747_v36  ;;  %v7782_v2 = vld [vmem:[%s7457_s20 + $0x118] sm:$0xff] }
 0x16b   : > { %v6131_v57 = vpop.eup %6130  ;;  %v1264_v12 = vadd.f32 1e-05, %v1168_v33  ;;  %v1058_v6 = vmul.f32 0.0051020407, %v893_v11  ;;  %v953_v39 = vpop.xlane.xlu0 %952  ;;  %v1121_v56 = vmul.f32 %v7750_v25, %v7750_v25  ;;  %10819 = vst [vmem:[#allocation13_spill] sm:$0xff] %v7782_v2  ;;  %v1107_v33 = vmul.f32 %v7757_v61, %v7757_v61 }
 0x16c   : > { %v6133_v21 = vpop.eup %6132  ;;  %v1249_v54 = vadd.f32 1e-05, %v1153_v0  ;;  %v1073_v53 = vmul.f32 0.0051020407, %v953_v39  ;;  %1534 = vrot.lane.b32.xlu0 %v1404_v59, %s6490_s23  ;;  %v7779_v24 = vmul.f32 %v6131_v57, %v7763_v41  ;;  %v7787_v45 = vmul.f32 0.0051020407, %v7380_v43 }
 0x16d   : > { %6142 = vrsqrt.f32 %v1264_v12  ;;  %v1154_v15 = vsub.f32 %v1058_v6, %v1106_v51  ;;  %1532 = vrot.lane.b32.xlu1 %v1403_v60, %s6490_s23  ;;  %v7791_v0 = vld [vmem:[%s7457_s20 + $0x120] sm:$0xff]  ;;  %v1122_v11 = vmul.f32 %v7766_v26, %v7766_v26  ;;  %v1389_v6 = vmul.f32 %v7773_v23, %v7590_v49  ;;  %v7803_v12 = vld [vmem:[%s7457_s20 + $0xa8] sm:$0xff] }
 0x16e   : > { %10820 = vst [vmem:[#allocation16_spill] sm:$0xff] %v7791_v0  ;;  %6144 = vrsqrt.f32 %v1249_v54  ;;  %v1169_v59 = vsub.f32 %v1073_v53, %v1121_v56  ;;  %v957_v57 = vpop.xlane.xlu1 %956  ;;  %v1390_v39 = vmul.f32 %v7779_v24, %v7619_v40  ;;  %v7800_v51 = vmul.f32 %v6133_v21, %v7782_v2 }
 0x16f   : > { %v6135_v41 = vpop.eup %6134  ;;  %v1250_v1 = vadd.f32 1e-05, %v1154_v15  ;;  %v1074_v43 = vmul.f32 0.0051020407, %v957_v57  ;;  %v897_v18 = vpop.xlane.xlu0 %896  ;;  %v7806_v56 = vmul.f32 0.0051020407, %v7409_v30  ;;  %v1108_v49 = vmul.f32 %v7787_v45, %v7787_v45 }
 0x170   : > { %v6137_v60 = vpop.eup %6136  ;;  %v1265_v54 = vadd.f32 1e-05, %v1169_v59  ;;  %v1059_v53 = vmul.f32 0.0051020407, %v897_v18  ;;  %1506 = vrot.lane.b32.xlu0 %v1390_v39, %s6490_s23  ;;  %v7810_v40 = vmul.f32 %v6135_v41, %v7791_v0  ;;  %v7813_v15 = vmul.f32 0.0051020407, %v7378_v17 }
 0x171   : > { %6146 = vrsqrt.f32 %v1250_v1  ;;  %v1170_v21 = vsub.f32 %v1074_v43, %v1122_v11  ;;  %1504 = vrot.lane.b32.xlu1 %v1389_v6, %s6490_s23  ;;  %v7819_v57 = vld [vmem:[%s7457_s20 + $0xb0] sm:$0xff]  ;;  %v7822_v30 = vmul.f32 0.0051020407, %v7418_v34  ;;  %v1405_v11 = vmul.f32 %v7800_v51, %v7638_v22 }
 0x172   : > { %10821 = vst [vmem:[#allocation36_spill] sm:$0xff] %v7810_v40  ;;  %10822 = vst [vmem:[#allocation18_spill] sm:$0xff] %v7819_v57  ;;  %6148 = vrsqrt.f32 %v1265_v54  ;;  %v1155_v18 = vsub.f32 %v1059_v53, %v1107_v33  ;;  %v901_v41 = vpop.xlane.xlu1 %900  ;;  %v1406_v17 = vmul.f32 %v7810_v40, %v7654_v31  ;;  %v7829_v43 = vmul.f32 %v6137_v60, %v7803_v12  ;;  %v7838_v53 = vld [vmem:[%s7457_s20 + $0x128] sm:$0xff]  ;;  %v7844_v60 = vld [vmem:[%s7457_s20 + $0x130] sm:$0xff] }
 0x173   : > { %v6139_v59 = vpop.eup %6138  ;;  %v1266_v39 = vadd.f32 1e-05, %v1170_v21  ;;  %v1060_v0 = vmul.f32 0.0051020407, %v901_v41  ;;  %v961_v1 = vpop.xlane.xlu0 %960  ;;  %v1123_v6 = vmul.f32 %v7806_v56, %v7806_v56  ;;  %10824 = vst [vmem:[#allocation40_spill] sm:$0xff] %v7838_v53  ;;  %v1109_v21 = vmul.f32 %v7813_v15, %v7813_v15  ;;  %10825 = vst [vmem:[#allocation15_spill] sm:$0xff] %v7844_v60 }
 0x174   : > { %10823 = vst [vmem:[#allocation38_spill] sm:$0xff] %v7829_v43  ;;  %v6141_v34 = vpop.eup %6140  ;;  %v1251_v33 = vadd.f32 1e-05, %v1155_v18  ;;  %v1075_v54 = vmul.f32 0.0051020407, %v961_v1  ;;  %1538 = vrot.lane.b32.xlu0 %v1406_v17, %s6490_s23  ;;  %v7835_v31 = vmul.f32 %v6139_v59, %v7819_v57  ;;  %v1124_v18 = vmul.f32 %v7822_v30, %v7822_v30 }
 0x175   : > { %6150 = vrsqrt.f32 %v1266_v39  ;;  %v1156_v22 = vsub.f32 %v1060_v0, %v1108_v49  ;;  %1536 = vrot.lane.b32.xlu1 %v1405_v11, %s6490_s23  ;;  %v1391_v0 = vmul.f32 %v7829_v43, %v7645_v4  ;;  %v7853_v49 = vmul.f32 %v6141_v34, %v7838_v53  ;;  %v7856_v39 = vld [vmem:[%s7457_s20 + $0xb8] sm:$0xff]  ;;  %v7867_v4 = vld [vmem:[%s7457_s20 + $0xc0] sm:$0xff] }
 0x176   : > { %6152 = vrsqrt.f32 %v1251_v33  ;;  %v1171_v41 = vsub.f32 %v1075_v54, %v1123_v6  ;;  %v965_v17 = vpop.xlane.xlu1 %964  ;;  %v1392_v59 = vmul.f32 %v7835_v31, %v7675_v47  ;;  %v7859_v6 = vmul.f32 0.0051020407, %v7413_v44  ;;  %10827 = vst [vmem:[#allocation39_spill] sm:$0xff] %v7867_v4 }
 0x177   : > { %v6143_v1 = vpop.eup %6142  ;;  %v1252_v57 = vadd.f32 1e-05, %v1156_v22  ;;  %v1076_v40 = vmul.f32 0.0051020407, %v965_v17  ;;  %v905_v2 = vpop.xlane.xlu0 %904  ;;  %v7870_v34 = vmul.f32 0.0051020407, %v7382_v14 }
 0x178   : > { %v6145_v11 = vpop.eup %6144  ;;  %v1267_v33 = vadd.f32 1e-05, %v1171_v41  ;;  %v1061_v54 = vmul.f32 0.0051020407, %v905_v2  ;;  %1510 = vrot.lane.b32.xlu0 %v1392_v59, %s6490_s23  ;;  %v7863_v47 = vmul.f32 %v6143_v1, %v7844_v60  ;;  %v7875_v59 = vmul.f32 0.0051020407, %v7384_v13 }
 0x179   : > { %6154 = vrsqrt.f32 %v1252_v57  ;;  %v1172_v22 = vsub.f32 %v1076_v40, %v1124_v18  ;;  %1508 = vrot.lane.b32.xlu1 %v1391_v0, %s6490_s23  ;;  %v1407_v18 = vmul.f32 %v7853_v49, %v7694_v62  ;;  %v7880_v14 = vmul.f32 %v6145_v11, %v7856_v39  ;;  %v7889_v13 = vld [vmem:[%s7457_s20 + $0x138] sm:$0xff]  ;;  %v7895_v62 = vld [vmem:[%s7457_s20 + $0x140] sm:$0xff]  ;;  %v7909_v60 = vld [vmem:[%s7457_s20 + $0xc8] sm:$0xff] }
 0x17a   : > { %10826 = vst [vmem:[#allocation17_spill] sm:$0xff] %v7863_v47  ;;  %6156 = vrsqrt.f32 %v1267_v33  ;;  %v1157_v44 = vsub.f32 %v1061_v54, %v1109_v21  ;;  %v689_v17 = vpop.xlane.xlu1 %688  ;;  %v1408_v2 = vmul.f32 %v7863_v47, %v7710_v63  ;;  %v1125_v21 = vmul.f32 %v7859_v6, %v7859_v6  ;;  %10829 = vst [vmem:[#allocation20_spill] sm:$0xff] %v7889_v13 }
 0x17b   : > { %v6147_v41 = vpop.eup %6146  ;;  %v1268_v40 = vadd.f32 1e-05, %v1172_v22  ;;  %v969_v57 = vpop.xlane.xlu0 %968  ;;  %10828 = vst [vmem:[#allocation19_spill] sm:$0xff] %v7880_v14  ;;  %v7891_v54 = vmul.f32 0.0051020407, %v689_v17  ;;  %10830 = vst [vmem:[#allocation21_spill] sm:$0xff] %v7895_v62  ;;  %v1111_v11 = vmul.f32 %v7870_v34, %v7870_v34 }
 0x17c   : > { %v6149_v1 = vpop.eup %6148  ;;  %v1253_v0 = vadd.f32 1e-05, %v1157_v44  ;;  %v1077_v33 = vmul.f32 0.0051020407, %v969_v57  ;;  %1542 = vrot.lane.b32.xlu0 %v1408_v2, %s6490_s23  ;;  %v7886_v63 = vmul.f32 %v6147_v41, %v7867_v4 }
 0x17d   : > { %6158 = vrsqrt.f32 %v1268_v40  ;;  %1540 = vrot.lane.b32.xlu1 %v1407_v18, %s6490_s23  ;;  %v1110_v40 = vmul.f32 %v7875_v59, %v7875_v59  ;;  %v1393_v18 = vmul.f32 %v7880_v14, %v7701_v50  ;;  %v7906_v4 = vmul.f32 %v6149_v1, %v7889_v13  ;;  %v7922_v1 = vld [vmem:[%s7457_s20 + $0xd0] sm:$0xff] }
 0x17e   : > { %6160 = vrsqrt.f32 %v1253_v0  ;;  %v1173_v22 = vsub.f32 %v1077_v33, %v1125_v21  ;;  %v913_v44 = vpop.xlane.xlu1 %912  ;;  %v1394_v2 = vmul.f32 %v7886_v63, %v7731_v7  ;;  %v7912_v0 = vmul.f32 0.0051020407, %v7425_v42  ;;  %10832 = vst [vmem:[#allocation41_spill] sm:$0xff] %v7922_v1 }
 0x17f   : > { %v6151_v41 = vpop.eup %6150  ;;  %v1063_v17 = vmul.f32 0.0051020407, %v913_v44  ;;  %v909_v57 = vpop.xlane.xlu0 %908  ;;  %v1127_v44 = vmul.f32 %v7891_v54, %v7891_v54  ;;  %v1409_v14 = vmul.f32 %v7906_v4, %v7750_v25  ;;  %v7942_v25 = vld [vmem:[%s7457_s20 + $0x150] sm:$0xff] }
 0x180   : > { %v6153_v21 = vpop.eup %6152  ;;  %v1269_v7 = vadd.f32 1e-05, %v1173_v22  ;;  %v1062_v33 = vmul.f32 0.0051020407, %v909_v57  ;;  %1514 = vrot.lane.b32.xlu0 %v1394_v2, %s6490_s23  ;;  %v7916_v47 = vmul.f32 %v6151_v41, %v7895_v62  ;;  %10835 = vst [vmem:[#allocation25_spill] sm:$0xff] %v7942_v25 }
 0x181   : > { %v1159_v50 = vsub.f32 %v1063_v17, %v1111_v11  ;;  %1512 = vrot.lane.b32.xlu1 %v1393_v18, %s6490_s23  ;;  %v7929_v11 = vmul.f32 %v6153_v21, %v7909_v60  ;;  %v1126_v18 = vmul.f32 %v7912_v0, %v7912_v0 }
 0x182   : > { %10831 = vst [vmem:[#allocation22_spill] sm:$0xff] %v7916_v47  ;;  %6162 = vrsqrt.f32 %v1269_v7  ;;  %v1158_v13 = vsub.f32 %v1062_v33, %v1110_v40  ;;  %v977_v42 = vpop.xlane.xlu1 %976  ;;  %v1410_v22 = vmul.f32 %v7916_v47, %v7766_v26  ;;  %v7938_v33 = vld [vmem:[%s7457_s20 + $0x148] sm:$0xff] }
 0x183   : > { %v6155_v57 = vpop.eup %6154  ;;  %v1255_v2 = vadd.f32 1e-05, %v1159_v50  ;;  %v1079_v41 = vmul.f32 0.0051020407, %v977_v42  ;;  %v973_v62 = vpop.xlane.xlu0 %972  ;;  %10833 = vst [vmem:[#allocation23_spill] sm:$0xff] %v7929_v11  ;;  %10834 = vst [vmem:[#allocation24_spill] sm:$0xff] %v7938_v33 }
 0x184   : > { %v6157_v17 = vpop.eup %6156  ;;  %v1254_v40 = vadd.f32 1e-05, %v1158_v13  ;;  %v1078_v7 = vmul.f32 0.0051020407, %v973_v62  ;;  %1546 = vrot.lane.b32.xlu0 %v1410_v22, %s6490_s23  ;;  %v7935_v26 = vmul.f32 %v6155_v57, %v7922_v1  ;;  %v10836_v22 = vld [vmem:[#allocation27_spill] sm:$0xff] }
 0x185   : > { %6164 = vrsqrt.f32 %v1255_v2  ;;  %v1175_v50 = vsub.f32 %v1079_v41, %v1127_v44  ;;  %1544 = vrot.lane.b32.xlu1 %v1409_v14, %s6490_s23  ;;  %v7947_v47 = vmul.f32 0.0051020407, %v10836_v22  ;;  %v1395_v44 = vmul.f32 %v7929_v11, %v7757_v61  ;;  %v10837_v41 = vld [vmem:[#allocation29_spill] sm:$0xff] }
 0x186   : > { %6166 = vrsqrt.f32 %v1254_v40  ;;  %v1174_v21 = vsub.f32 %v1078_v7, %v1126_v18  ;;  %v697_v42 = vpop.xlane.xlu1 %696  ;;  %v1396_v13 = vmul.f32 %v7935_v26, %v7787_v45  ;;  %v7952_v14 = vmul.f32 %v6157_v17, %v7938_v33  ;;  %v7962_v7 = vld [vmem:[%s7457_s20 + $0xd8] sm:$0xff] }
 0x187   : > { %v6159_v62 = vpop.eup %6158  ;;  %v1271_v57 = vadd.f32 1e-05, %v1175_v50  ;;  %v693_v1 = vpop.xlane.xlu0 %692  ;;  %v7955_v40 = vmul.f32 0.0051020407, %v10837_v41  ;;  %10839 = vst [vmem:[#allocation27_spill] sm:$0xff] %v7962_v7 }
 0x188   : > { %v6161_v2 = vpop.eup %6160  ;;  %v1270_v18 = vadd.f32 1e-05, %v1174_v21  ;;  %1518 = vrot.lane.b32.xlu0 %v1396_v13, %s6490_s23  ;;  %v7959_v45 = vmul.f32 %v6159_v62, %v7942_v25  ;;  %v7964_v50 = vmul.f32 0.0051020407, %v697_v42  ;;  %v7967_v61 = vmul.f32 0.0051020407, %v693_v1 }
 0x189   : > { %6168 = vrsqrt.f32 %v1271_v57  ;;  %1516 = vrot.lane.b32.xlu1 %v1395_v44, %s6490_s23  ;;  %v1113_v13 = vmul.f32 %v7947_v47, %v7947_v47  ;;  %v1411_v57 = vmul.f32 %v7952_v14, %v7806_v56  ;;  %v7976_v42 = vmul.f32 %v6161_v2, %v7962_v7  ;;  %v7998_v7 = vld [vmem:[%s7457_s20 + $0xe8] sm:$0xff] }
 0x18a   : > { %10838 = vst [vmem:[#allocation26_spill] sm:$0xff] %v7959_v45  ;;  %6170 = vrsqrt.f32 %v1270_v18  ;;  %v921_v17 = vpop.xlane.xlu1 %920  ;;  %v1412_v21 = vmul.f32 %v7959_v45, %v7822_v30  ;;  %v1112_v1 = vmul.f32 %v7955_v40, %v7955_v40  ;;  %v7982_v30 = vld [vmem:[%s7457_s20 + $0x158] sm:$0xff]  ;;  %v1129_v18 = vmul.f32 %v7964_v50, %v7964_v50  ;;  %v7990_v45 = vld [vmem:[%s7457_s20 + $0xe0] sm:$0xff] }
 0x18b   : > { %v1065_v62 = vmul.f32 0.0051020407, %v921_v17  ;;  %v917_v22 = vpop.xlane.xlu0 %916  ;;  %v1128_v56 = vmul.f32 %v7967_v61, %v7967_v61  ;;  %v1397_v53 = vmul.f32 %v7976_v42, %v7813_v15 }
 0x18c   : > { %v6163_v44 = vpop.eup %6162  ;;  %v1064_v41 = vmul.f32 0.0051020407, %v917_v22  ;;  %1550 = vrot.lane.b32.xlu0 %v1412_v21, %s6490_s23 }
 0x18d   : > { %v1161_v17 = vsub.f32 %v1065_v62, %v1113_v13  ;;  %1548 = vrot.lane.b32.xlu1 %v1411_v57, %s6490_s23  ;;  %v7995_v43 = vmul.f32 %v6163_v44, %v7982_v30 }
 0x18e   : > { %v1160_v2 = vsub.f32 %v1064_v41, %v1112_v1  ;;  %v985_v25 = vpop.xlane.xlu1 %984 }
 0x18f   : > { %v6165_v33 = vpop.eup %6164  ;;  %v1257_v22 = vadd.f32 1e-05, %v1161_v17  ;;  %v1081_v21 = vmul.f32 0.0051020407, %v985_v25  ;;  %v981_v11 = vpop.xlane.xlu0 %980  ;;  %v8005_v17 = vld [vmem:[%s7457_s20 + $0x160] sm:$0xff] }
 0x190   : > { %v6167_v13 = vpop.eup %6166  ;;  %v1256_v62 = vadd.f32 1e-05, %v1160_v2  ;;  %v1080_v57 = vmul.f32 0.0051020407, %v981_v11  ;;  %v1413_v2 = vmul.f32 %v7995_v43, %v7859_v6 }
 0x191   : > { %6172 = vrsqrt.f32 %v1257_v22  ;;  %v1177_v1 = vsub.f32 %v1081_v21, %v1129_v18  ;;  %1520 = vrot.lane.b32.xlu1 %v1397_v53, %s6490_s23  ;;  %v8002_v41 = vmul.f32 %v6167_v13, %v7990_v45  ;;  %v8012_v18 = vmul.f32 %v6165_v33, %v7998_v7  ;;  %v8015_v21 = vld [vmem:[%s7457_s20 + $0x168] sm:$0xff]  ;;  %v8032_v13 = vld [vmem:[%s7457_s20 + $0xf8] sm:$0xff] }
 0x192   : > { %6174 = vrsqrt.f32 %v1256_v62  ;;  %v1176_v25 = vsub.f32 %v1080_v57, %v1128_v56 }
 0x193   : > { %v6169_v15 = vpop.eup %6168  ;;  %v1273_v44 = vadd.f32 1e-05, %v1177_v1  ;;  %v1398_v11 = vmul.f32 %v8002_v41, %v7875_v59  ;;  %v1399_v59 = vmul.f32 %v8012_v18, %v7870_v34 }
 0x194   : > { %v6171_v53 = vpop.eup %6170  ;;  %v1272_v22 = vadd.f32 1e-05, %v1176_v25  ;;  %v8027_v56 = vmul.f32 %v6169_v15, %v8015_v21  ;;  %v8040_v25 = vld [vmem:[%s7457_s20 + $0xf0] sm:$0xff]  ;;  %v8045_v15 = vld [vmem:[%s7457_s20 + $0x178] sm:$0xff] }
 0x195   : > { %6176 = vrsqrt.f32 %v1273_v44  ;;  %1552 = vrot.lane.b32.xlu1 %v1413_v2, %s6490_s23  ;;  %1522 = vrot.lane.b32.xlu0 %v1398_v11, %s6490_s23  ;;  %v8020_v6 = vmul.f32 %v6171_v53, %v8005_v17  ;;  %10841 = vst [vmem:[#allocation29_spill] sm:$0xff] %v8045_v15 }
 0x196   : > { %6178 = vrsqrt.f32 %v1272_v22  ;;  %v1415_v57 = vmul.f32 %v8027_v56, %v7891_v54  ;;  %v8056_v22 = vld [vmem:[%s7457_s20 + $0x170] sm:$0xff] }
 0x197   : > { %v1414_v33 = vmul.f32 %v8020_v6, %v7912_v0  ;;  %v10840_v0 = vld [vmem:[#allocation5_spill] sm:$0xff] }
 0x199   : > { %1524 = vrot.lane.b32.xlu1 %v1399_v59, %s6490_s23  ;;  %1554 = vrot.lane.b32.xlu0 %v1414_v33, %s6490_s23 }
 0x19b   : > { %v6173_v62 = vpop.eup %6172 }
 0x19c   : > { %v6175_v1 = vpop.eup %6174  ;;  %v8037_v34 = vmul.f32 %v6173_v62, %v8032_v13  ;;  %v10711_v62 = vmov 1  }
 0x19d   : > { %1556 = vrot.lane.b32.xlu1 %v1415_v57, %s6490_s23  ;;  %1660 = vperm.xlu0 %6002, %v10840_v0   ;;  %v8050_v11 = vmul.f32 %v6175_v1, %v8040_v25  ;;  %v10842_v0 = vmov 0  }
 0x19e   : > { %v1401_v44 = vmul.f32 %v8037_v34, %v7947_v47 }
 0x19f   : > { %v6177_v2 = vpop.eup %6176  ;;  %v1400_v47 = vmul.f32 %v8050_v11, %v7955_v40 }
 0x1a0   : > { %v6179_v54 = vpop.eup %6178  ;;  %v8053_v53 = vmul.f32 %v6177_v2, %v8045_v15  ;;  %v6198_v15 = vld [vmem:[%s6682_s16 + $0x50] sm:$0xff] }
 0x1a1   : > { %1665 = vperm.xlu1 %6003, %v7497_v35   ;;  %1528 = vrot.lane.b32.xlu0 %v1401_v44, %s6490_s23  ;;  %v8065_v33 = vmul.f32 %v6179_v54, %v8056_v22 }
 0x1a2   : > { %v1417_v59 = vmul.f32 %v8053_v53, %v7964_v50  ;;  %v6180_v50 = vld [vmem:[%s7457_s20] sm:$0xff] }
 0x1a3   : > { %v1416_v35 = vmul.f32 %v8065_v33, %v7967_v61 }
 0x1a5   : > { %1560 = vrot.lane.b32.xlu0 %v1417_v59, %s6490_s23  ;;  %1526 = vrot.lane.b32.xlu1 %v1400_v47, %s6490_s23 }
 0x1a6   : > { %6004 = vset.pattern.permute.xlu1 %v10711_v62 }
 0x1a9   : > { %1680 = vperm.xlu0 %6002, %v7511_v27   ;;  %1558 = vrot.lane.b32.xlu1 %v1416_v35, %s6490_s23 }
 0x1ad   : > { %1700 = vperm.xlu0 %6002, %v7561_v28  }
 0x1b1   : > { %1720 = vperm.xlu0 %6002, %v7611_v46  }
 0x1b2   : > { %v1467_v40 = vpop.permute.xlu0 %1466 }
 0x1b3   : > { %v1610_v57 = vsub.f32 %v6180_v50, %v1467_v40 }
 0x1b5   : > { %1740 = vperm.xlu0 %6002, %v7667_v9   ;;  %1996 = vperm.xlu1 %6004, %v1610_v57  }
 0x1b7   : > { %v8078_v1 = vpop.permute.xlu1 %1468 }
 0x1b9   : > { %1825 = vperm.xlu0 %6002, %v7744_v32   ;;  %6005 = vset.pattern.permute.xlu1 %v10842_v0 }
 0x1ba   : > { %1670 = vperm.xlu1 %6005, %v7507_v52   ;;  %v1475_v27 = vpop.permute.xlu0 %1474 }
 0x1bb   : > { %v8083_v61 = vpop.permute.xlu1 %1470 }
 0x1bd   : > { %1750 = vperm.xlu0 %6002, %v7723_v48  }
 0x1be   : > { %1675 = vperm.xlu1 %6005, %v7530_v20   ;;  %v8087_v28 = vpop.permute.xlu0 %1478  ;;  %v6181_v20 = vld [vmem:[%s7457_s20 + $0x20] sm:$0xff] }
 0x1bf   : > { %v1473_v46 = vpop.permute.xlu1 %1472 }
 0x1c0   : > { %v1613_v9 = vsub.f32 %v7514_v10, %v1473_v46 }
 0x1c1   : > { %1835 = vperm.xlu0 %6002, %v7800_v51   ;;  %v1614_v51 = vsub.f32 %v6181_v20, %v1475_v27  ;;  %v6184_v20 = vld [vmem:[%s7457_s20 + $0x28] sm:$0xff] }
 0x1c2   : > { %6006 = vset.pattern.permute.xlu1 %v10711_v62  ;;  %v1483_v32 = vpop.permute.xlu0 %1482 }
 0x1c3   : > { %v8092_v44 = vpop.permute.xlu1 %1476  ;;  %2011 = vperm.xlu1 %6006, %v1613_v9  }
 0x1c5   : > { %1760 = vperm.xlu0 %6002, %v7779_v24  }
 0x1c6   : > { %v8095_v52 = vpop.permute.xlu0 %1486 }
 0x1c7   : > { %v1481_v48 = vpop.permute.xlu1 %1480  ;;  %6007 = vset.pattern.permute.xlu1 %v10842_v0 }
 0x1c8   : > { %1685 = vperm.xlu1 %6007, %v7555_v37   ;;  %v10843_v37 = vld [vmem:[#allocation31_spill] sm:$0xff]  ;;  %v1617_v35 = vsub.f32 %v7564_v19, %v1481_v48  ;;  %v10844_v19 = vld [vmem:[#allocation6_spill] sm:$0xff] }
 0x1c9   : > { %1845 = vperm.xlu0 %6002, %v7853_v49  }
 0x1ca   : > { %v8100_v10 = vpop.permute.xlu0 %1490 }
 0x1cb   : > { %v8103_v2 = vpop.permute.xlu1 %1484 }
 0x1cc   : > { %6008 = vset.pattern.permute.xlu1 %v10711_v62 }
 0x1cd   : > { %1770 = vperm.xlu0 %6002, %v7835_v31   ;;  %2016 = vperm.xlu1 %6008, %v1614_v51   ;;  %v1615_v51 = vsub.f32 %v6184_v20, %v8092_v44  ;;  %v6186_v44 = vld [vmem:[%s7457_s20 + $0x48] sm:$0xff] }
 0x1ce   : > { %v8107_v24 = vpop.permute.xlu0 %1494 }
 0x1cf   : > { %v1489_v54 = vpop.permute.xlu1 %1488 }
 0x1d0   : > { %v1621_v9 = vsub.f32 %v7614_v16, %v1489_v54  ;;  %v6183_v16 = vld [vmem:[%s7457_s20 + $0x10] sm:$0xff] }
 0x1d1   : > { %1855 = vperm.xlu0 %6002, %v7906_v4   ;;  %6009 = vset.pattern.permute.xlu1 %v10842_v0  ;;  %v1612_v48 = vsub.f32 %v6183_v16, %v8083_v61  ;;  %v6185_v61 = vld [vmem:[%s7457_s20 + $0x30] sm:$0xff]  ;;  %v10848_v16 = vld [vmem:[#allocation30_spill] sm:$0xff] }
 0x1d2   : > { %1690 = vperm.xlu1 %6009, %v10843_v37   ;;  %v8112_v49 = vpop.permute.xlu0 %1498 }
 0x1d3   : > { %v8114_v59 = vpop.permute.xlu1 %1492 }
 0x1d5   : > { %1780 = vperm.xlu0 %6002, %v7886_v63  }
 0x1d6   : > { %1695 = vperm.xlu1 %6009, %v7580_v58   ;;  %v8118_v47 = vpop.permute.xlu0 %1530 }
 0x1d7   : > { %v8120_v31 = vpop.permute.xlu1 %1496 }
 0x1d9   : > { %1865 = vperm.xlu0 %6002, %v7952_v14   ;;  %v1618_v14 = vsub.f32 %v10844_v19, %v1483_v32  ;;  %v10847_v19 = vld [vmem:[#allocation33_spill] sm:$0xff] }
 0x1da   : > { %6010 = vset.pattern.permute.xlu1 %v10711_v62  ;;  %v8125_v4 = vpop.permute.xlu0 %1502 }
 0x1db   : > { %v8127_v40 = vpop.permute.xlu1 %1500  ;;  %2031 = vperm.xlu1 %6010, %v1617_v35  }
 0x1dd   : > { %1790 = vperm.xlu0 %6002, %v7935_v26  }
 0x1de   : > { %v8130_v63 = vpop.permute.xlu0 %1534 }
 0x1df   : > { %v8132_v58 = vpop.permute.xlu1 %1532  ;;  %6011 = vset.pattern.permute.xlu1 %v10842_v0 }
 0x1e0   : > { %1705 = vperm.xlu1 %6011, %v7605_v55  }
 0x1e1   : > { %1875 = vperm.xlu0 %6002, %v7995_v43   ;;  %v10845_v43 = vld [vmem:[#allocation8_spill] sm:$0xff] }
 0x1e2   : > { %v8140_v57 = vpop.permute.xlu0 %1506 }
 0x1e3   : > { %v8138_v50 = vpop.permute.xlu1 %1504 }
 0x1e4   : > { %6012 = vset.pattern.permute.xlu1 %v10711_v62 }
 0x1e5   : > { %1800 = vperm.xlu0 %6002, %v8002_v41   ;;  %2036 = vperm.xlu1 %6012, %v1618_v14   ;;  %v1619_v14 = vsub.f32 %v6186_v44, %v8103_v2  ;;  %v1623_v2 = vsub.f32 %v10848_v16, %v8114_v59  ;;  %v10851_v59 = vld [vmem:[#allocation12_spill] sm:$0xff] }
 0x1e6   : > { %v8148_v55 = vpop.permute.xlu0 %1538 }
 0x1e7   : > { %v8144_v26 = vpop.permute.xlu1 %1536 }
 0x1e9   : > { %1885 = vperm.xlu0 %6002, %v8027_v56   ;;  %6013 = vset.pattern.permute.xlu1 %v10842_v0  ;;  %v6182_v56 = vld [vmem:[%s7457_s20 + $0x8] sm:$0xff] }
 0x1ea   : > { %1710 = vperm.xlu1 %6013, %v10845_v43   ;;  %v8155_v41 = vpop.permute.xlu0 %1510  ;;  %v1611_v32 = vsub.f32 %v6182_v56, %v8078_v1  ;;  %v6187_v43 = vld [vmem:[%s7457_s20 + $0x50] sm:$0xff] }
 0x1eb   : > { %v8151_v27 = vpop.permute.xlu1 %1508 }
 0x1ec   : > { %v1631_v44 = vsub.f32 %v7803_v12, %v8151_v27 }
 0x1ed   : > { %1810 = vperm.xlu0 %6002, %v8050_v11  }
 0x1ee   : > { %1715 = vperm.xlu1 %6013, %v7632_v29   ;;  %v8165_v11 = vpop.permute.xlu0 %1542 }
 0x1ef   : > { %v8157_v46 = vpop.permute.xlu1 %1540 }
 0x1f1   : > { %1895 = vperm.xlu0 %6002, %v8053_v53   ;;  %v10846_v53 = vld [vmem:[#allocation28_spill] sm:$0xff] }
 0x1f2   : > { %6014 = vset.pattern.permute.xlu1 %v10711_v62  ;;  %v1622_v1 = vsub.f32 %v10846_v53, %v8100_v10  ;;  %v8177_v54 = vpop.permute.xlu0 %1514 }
 0x1f3   : > { %2051 = vperm.xlu1 %6014, %v1621_v9   ;;  %v8167_v29 = vpop.permute.xlu1 %1512  ;;  %v1620_v9 = vsub.f32 %v6187_v43, %v8095_v52  ;;  %v10849_v52 = vld [vmem:[#allocation10_spill] sm:$0xff] }
 0x1f4   : > { %v1624_v53 = vsub.f32 %v10849_v52, %v8107_v24 }
 0x1f5   : > { %6034 = vset.pattern.permute.xlu0 %v10711_v62 }
 0x1f6   : > { %2001 = vperm.xlu0 %6034, %v1611_v32   ;;  %v8185_v35 = vpop.permute.xlu0 %1546  ;;  %v1625_v32 = vsub.f32 %v7670_v38, %v8120_v31  ;;  %v10850_v38 = vld [vmem:[#allocation9_spill] sm:$0xff] }
 0x1f7   : > { %6015 = vset.pattern.permute.xlu1 %v10842_v0  ;;  %v8179_v37 = vpop.permute.xlu1 %1544  ;;  %v1627_v31 = vsub.f32 %v10850_v38, %v8127_v40  ;;  %v10853_v40 = vld [vmem:[#allocation35_spill] sm:$0xff]  ;;  %v10858_v38 = vld [vmem:[#allocation34_spill] sm:$0xff] }
 0x1f8   : > { %1725 = vperm.xlu1 %6015, %v7661_v5   ;;  %v1616_v5 = vsub.f32 %v6185_v61, %v8087_v28 }
 0x1fa   : > { %2006 = vperm.xlu0 %6034, %v1612_v48   ;;  %v8193_v56 = vpop.permute.xlu0 %1518 }
 0x1fb   : > { %v1517_v10 = vpop.permute.xlu1 %1516 }
 0x1fc   : > { %6016 = vset.pattern.permute.xlu1 %v10711_v62 }
 0x1fd   : > { %2056 = vperm.xlu1 %6016, %v1622_v1  }
 0x1fe   : > { %2021 = vperm.xlu0 %6034, %v1615_v51   ;;  %v8202_v48 = vpop.permute.xlu0 %1550  ;;  %v10852_v51 = vld [vmem:[#allocation7_spill] sm:$0xff] }
 0x1ff   : > { %v8195_v28 = vpop.permute.xlu1 %1548  ;;  %v1626_v61 = vsub.f32 %v10852_v51, %v8112_v49  ;;  %v10854_v49 = vld [vmem:[#allocation14_spill] sm:$0xff] }
 0x201   : > { %6017 = vset.pattern.permute.xlu1 %v10842_v0 }
 0x202   : > { %2026 = vperm.xlu0 %6034, %v1616_v5   ;;  %1730 = vperm.xlu1 %6017, %v10847_v19   ;;  %v1629_v5 = vsub.f32 %v7747_v36, %v8138_v50  ;;  %v1642_v19 = vsub.f32 %v10853_v40, %v8118_v47  ;;  %v1643_v36 = vsub.f32 %v10854_v49, %v8132_v58  ;;  %v10855_v58 = vld [vmem:[#allocation27_spill] sm:$0xff] }
 0x203   : > { %v1633_v50 = vsub.f32 %v7856_v39, %v8167_v29  ;;  %v1635_v47 = vsub.f32 %v7909_v60, %v1517_v10  ;;  %v10856_v29 = vld [vmem:[#allocation37_spill] sm:$0xff] }
 0x206   : > { %2041 = vperm.xlu0 %6034, %v1619_v14   ;;  %1735 = vperm.xlu1 %6017, %v7688_v8   ;;  %v1521_v8 = vpop.permute.xlu1 %1520 }
 0x207   : > { %v8208_v1 = vpop.permute.xlu0 %1522  ;;  %v1637_v27 = vsub.f32 %v10855_v58, %v1521_v8 }
 0x20a   : > { %2046 = vperm.xlu0 %6034, %v1620_v9   ;;  %6018 = vset.pattern.permute.xlu1 %v10711_v62  ;;  %v8212_v20 = vpop.permute.xlu1 %1552 }
 0x20b   : > { %2071 = vperm.xlu1 %6018, %v1625_v32   ;;  %v8219_v24 = vpop.permute.xlu0 %1554 }
 0x20e   : > { %2061 = vperm.xlu0 %6034, %v1623_v2   ;;  %v10857_v2 = vld [vmem:[#allocation32_spill] sm:$0xff] }
 0x20f   : > { %6019 = vset.pattern.permute.xlu1 %v10842_v0  ;;  %v1628_v52 = vsub.f32 %v10857_v2, %v8125_v4  ;;  %v10859_v4 = vld [vmem:[#allocation13_spill] sm:$0xff] }
 0x210   : > { %1745 = vperm.xlu1 %6019, %v7717_v3   ;;  %v1525_v3 = vpop.permute.xlu1 %1524  ;;  %v1645_v51 = vsub.f32 %v10859_v4, %v8144_v26  ;;  %v10862_v26 = vld [vmem:[#allocation11_spill] sm:$0xff]  ;;  %v10873_v4 = vld [vmem:[#allocation18_spill] sm:$0xff] }
 0x211   : > { %v1639_v60 = vsub.f32 %v7998_v7, %v1525_v3  ;;  %v10860_v3 = vld [vmem:[#allocation38_spill] sm:$0xff]  ;;  %v1630_v49 = vsub.f32 %v10862_v26, %v8140_v57  ;;  %v10875_v26 = vld [vmem:[#allocation15_spill] sm:$0xff] }
 0x212   : > { %2066 = vperm.xlu0 %6034, %v1624_v53  }
 0x214   : > { %1820 = vperm.xlu1 %6019, %v10851_v59   ;;  %v8232_v43 = vpop.permute.xlu1 %1556 }
 0x216   : > { %2081 = vperm.xlu0 %6034, %v1627_v31   ;;  %v1644_v31 = vsub.f32 %v10858_v38, %v8130_v63 }
 0x218   : > { %6020 = vset.pattern.permute.xlu1 %v10711_v62 }
 0x219   : > { %2076 = vperm.xlu1 %6020, %v1626_v61  }
 0x21a   : > { %2091 = vperm.xlu0 %6034, %v1629_v5  }
 0x21c   : > { %v8226_v14 = vpop.permute.xlu0 %1660 }
 0x21d   : > { %2156 = vperm.xlu1 %6020, %v1642_v19   ;;  %v10861_v19 = vld [vmem:[#allocation36_spill] sm:$0xff] }
 0x21e   : > { %2101 = vperm.xlu0 %6034, %v1631_v44  }
 0x220   : > { %v1529_v9 = vpop.permute.xlu0 %1528  ;;  %v8235_v32 = vpop.permute.xlu1 %1665 }
 0x221   : > { %2161 = vperm.xlu1 %6020, %v1643_v36  }
 0x222   : > { %2111 = vperm.xlu0 %6034, %v1633_v50   ;;  %v10864_v50 = vld [vmem:[#allocation16_spill] sm:$0xff] }
 0x224   : > { %v8237_v12 = vpop.permute.xlu0 %1560  ;;  %v8244_v39 = vpop.permute.xlu1 %1526 }
 0x225   : > { %6021 = vset.pattern.permute.xlu1 %v10842_v0 }
 0x226   : > { %2121 = vperm.xlu0 %6034, %v1635_v47   ;;  %1755 = vperm.xlu1 %6021, %v7773_v23   ;;  %v1641_v23 = vsub.f32 %v8032_v13, %v1529_v9  ;;  %v1646_v9 = vsub.f32 %v10864_v50, %v8148_v55  ;;  %v10869_v55 = vld [vmem:[#allocation19_spill] sm:$0xff] }
 0x228   : > { %v8242_v16 = vpop.permute.xlu0 %1680  ;;  %v8254_v8 = vpop.permute.xlu1 %1558 }
 0x22a   : > { %2131 = vperm.xlu0 %6034, %v1637_v27   ;;  %1830 = vperm.xlu1 %6021, %v10856_v29   ;;  %v10866_v27 = vld [vmem:[#allocation40_spill] sm:$0xff] }
 0x22b   : > { %v1647_v29 = vsub.f32 %v10866_v27, %v8157_v46  ;;  %v10877_v27 = vld [vmem:[#allocation20_spill] sm:$0xff] }
 0x22c   : > { %v8248_v10 = vpop.permute.xlu0 %1700 }
 0x22e   : > { %2141 = vperm.xlu0 %6034, %v1639_v60   ;;  %6022 = vset.pattern.permute.xlu1 %v10711_v62 }
 0x22f   : > { %2086 = vperm.xlu1 %6022, %v1628_v52  }
 0x230   : > { %v8256_v53 = vpop.permute.xlu0 %1720 }
 0x232   : > { %2151 = vperm.xlu0 %6034, %v1641_v23  }
 0x233   : > { %2166 = vperm.xlu1 %6022, %v1644_v31   ;;  %v10871_v31 = vld [vmem:[#allocation17_spill] sm:$0xff] }
 0x234   : > { %v8260_v7 = vpop.permute.xlu0 %1740  ;;  %v8262_v59 = vpop.permute.xlu1 %1996 }
 0x237   : > { %2171 = vperm.xlu1 %6022, %v1645_v51   ;;  %v1632_v51 = vsub.f32 %v10873_v4, %v8155_v41 }
 0x238   : > { %v8266_v61 = vpop.permute.xlu0 %1825 }
 0x239   : > { %v8268_v13 = vpop.permute.xlu1 %1670 }
 0x23b   : > { %6023 = vset.pattern.permute.xlu1 %v10842_v0 }
 0x23c   : > { %v8271_v5 = vpop.permute.xlu0 %1750  ;;  %1765 = vperm.xlu1 %6023, %v10860_v3  }
 0x23d   : > { %v8274_v63 = vpop.permute.xlu1 %1675 }
 0x240   : > { %v8276_v40 = vpop.permute.xlu0 %1835  ;;  %1840 = vperm.xlu1 %6023, %v10861_v19  }
 0x242   : > { %v8279_v44 = vpop.permute.xlu1 %2011 }
 0x244   : > { %v8283_v36 = vpop.permute.xlu0 %1760  ;;  %6024 = vset.pattern.permute.xlu1 %v10711_v62 }
 0x245   : > { %10863 = vst [vmem:[#allocation5_spill] sm:$0xff] %v8283_v36  ;;  %2096 = vperm.xlu1 %6024, %v1630_v49   ;;  %v1648_v49 = vsub.f32 %v10875_v26, %v8165_v11  ;;  %v10880_v11 = vld [vmem:[#allocation23_spill] sm:$0xff]  ;;  %v10882_v26 = vld [vmem:[#allocation22_spill] sm:$0xff] }
 0x247   : > { %v8288_v47 = vpop.permute.xlu1 %1685 }
 0x248   : > { %v8290_v58 = vpop.permute.xlu0 %1845 }
 0x249   : > { %10865 = vst [vmem:[#allocation31_spill] sm:$0xff] %v8290_v58  ;;  %2176 = vperm.xlu1 %6024, %v1646_v9  }
 0x24c   : > { %v8294_v60 = vpop.permute.xlu0 %1770  ;;  %v8296_v2 = vpop.permute.xlu1 %2016 }
 0x24d   : > { %10867 = vst [vmem:[#allocation6_spill] sm:$0xff] %v8294_v60  ;;  %2181 = vperm.xlu1 %6024, %v1647_v29   ;;  %v1649_v29 = vsub.f32 %v10877_v27, %v8179_v37  ;;  %v6194_v60 = vld [vmem:[%s6682_s16 + $0x20] sm:$0xff] }
 0x250   : > { %v8298_v57 = vpop.permute.xlu0 %1855 }
 0x251   : > { %10868 = vst [vmem:[#allocation8_spill] sm:$0xff] %v8298_v57  ;;  %v8300_v52 = vpop.permute.xlu1 %1690  ;;  %6025 = vset.pattern.permute.xlu1 %v10842_v0 }
 0x252   : > { %1775 = vperm.xlu1 %6025, %v10869_v55  }
 0x254   : > { %v8304_v23 = vpop.permute.xlu0 %1780 }
 0x255   : > { %10870 = vst [vmem:[#allocation28_spill] sm:$0xff] %v8304_v23  ;;  %v8306_v38 = vpop.permute.xlu1 %1695  ;;  %v6192_v23 = vld [vmem:[%s6682_s16 + $0x30] sm:$0xff] }
 0x256   : > { %1850 = vperm.xlu1 %6025, %v10871_v31  }
 0x258   : > { %v8309_v46 = vpop.permute.xlu0 %1865 }
 0x259   : > { %10872 = vst [vmem:[#allocation33_spill] sm:$0xff] %v8309_v46  ;;  %v6191_v46 = vld [vmem:[%s6682_s16 + $0x18] sm:$0xff] }
 0x25a   : > { %v8313_v3 = vpop.permute.xlu1 %2031  ;;  %6026 = vset.pattern.permute.xlu1 %v10711_v62 }
 0x25b   : > { %2106 = vperm.xlu1 %6026, %v1632_v51  }
 0x25c   : > { %v8316_v19 = vpop.permute.xlu0 %1790 }
 0x25d   : > { %10874 = vst [vmem:[#allocation30_spill] sm:$0xff] %v8316_v19 }
 0x25f   : > { %v8320_v50 = vpop.permute.xlu1 %1705  ;;  %2186 = vperm.xlu1 %6026, %v1648_v49   ;;  %v10883_v49 = vld [vmem:[#allocation39_spill] sm:$0xff] }
 0x260   : > { %v8322_v9 = vpop.permute.xlu0 %1875  ;;  %v1634_v27 = vsub.f32 %v10883_v49, %v8177_v54 }
 0x261   : > { %10876 = vst [vmem:[#allocation10_spill] sm:$0xff] %v8322_v9  ;;  %v10885_v9 = vld [vmem:[#allocation21_spill] sm:$0xff] }
 0x262   : > { %v1650_v19 = vsub.f32 %v10885_v9, %v8185_v35  ;;  %v10886_v35 = vld [vmem:[#allocation24_spill] sm:$0xff] }
 0x263   : > { %2191 = vperm.xlu1 %6026, %v1649_v29   ;;  %v1651_v9 = vsub.f32 %v10886_v35, %v8195_v28  ;;  %v6196_v35 = vld [vmem:[%s6682_s16 + $0x40] sm:$0xff] }
 0x264   : > { %v8326_v41 = vpop.permute.xlu0 %1800  ;;  %v8328_v55 = vpop.permute.xlu1 %2036 }
 0x265   : > { %10878 = vst [vmem:[#allocation9_spill] sm:$0xff] %v8326_v41  ;;  %v6189_v41 = vld [vmem:[%s6682_s16 + $0x8] sm:$0xff] }
 0x267   : > { %6027 = vset.pattern.permute.xlu1 %v10842_v0 }
 0x268   : > { %v8331_v31 = vpop.permute.xlu0 %1885  ;;  %1785 = vperm.xlu1 %6027, %v10880_v11   ;;  %v6188_v11 = vld [vmem:[%s6682_s16] sm:$0xff] }
 0x269   : > { %10879 = vst [vmem:[#allocation12_spill] sm:$0xff] %v8331_v31  ;;  %v8334_v4 = vpop.permute.xlu1 %1710  ;;  %v1898_v31 = vmul.f32 %v6188_v11, %v8226_v14  ;;  %v1901_v11 = vmul.f32 %v6191_v46, %v8235_v32 }
 0x26b   : > { %v2234_v54 = vadd.f32 %v8262_v59, %v1898_v31 }
 0x26c   : > { %v8336_v51 = vpop.permute.xlu0 %1810  ;;  %1860 = vperm.xlu1 %6027, %v10882_v26  }
 0x26d   : > { %10881 = vst [vmem:[#allocation7_spill] sm:$0xff] %v8336_v51  ;;  %v8339_v37 = vpop.permute.xlu1 %1715  ;;  %v1899_v51 = vmul.f32 %v6189_v41, %v8226_v14  ;;  %v1904_v14 = vmul.f32 %v6192_v23, %v8274_v63  ;;  %v6193_v41 = vld [vmem:[%s6682_s16 + $0x38] sm:$0xff]  ;;  %v2330_v23 = vmax.f32 %v2234_v54, 0.0  ;;  %v6197_v54 = vld [vmem:[%s6682_s16 + $0x48] sm:$0xff] }
 0x26e   : > { %v1907_v58 = vmul.f32 %v6197_v54, %v8242_v16 }
 0x26f   : > { %v2235_v49 = vadd.f32 %v8262_v59, %v1899_v51  ;;  %v2240_v51 = vadd.f32 %v8279_v44, %v1904_v14 }
 0x270   : > { %v8343_v29 = vpop.permute.xlu0 %1895  ;;  %6028 = vset.pattern.permute.xlu1 %v10711_v62 }
 0x271   : > { %10884 = vst [vmem:[#allocation35_spill] sm:$0xff] %v8343_v29  ;;  %2116 = vperm.xlu1 %6028, %v1634_v27   ;;  %v6190_v29 = vld [vmem:[%s6682_s16 + $0x10] sm:$0xff]  ;;  %v1905_v27 = vmul.f32 %v6193_v41, %v8274_v63  ;;  %v2331_v46 = vmax.f32 %v2235_v49, 0.0  ;;  %v1902_v63 = vmul.f32 %v6194_v60, %v8268_v13  ;;  %v6195_v41 = vld [vmem:[%s6682_s16 + $0x28] sm:$0xff]  ;;  %v1906_v49 = vmul.f32 %v6196_v35, %v8242_v16 }
 0x272   : > { %v8350_v26 = vpop.permute.xlu1 %2051  ;;  %v1900_v62 = vmul.f32 %v6190_v29, %v8235_v32  ;;  %v2336_v60 = vmax.f32 %v2240_v51, 0.0  ;;  %v2243_v16 = vadd.f32 %v8296_v2, %v1907_v58  ;;  %v6205_v35 = vld [vmem:[%s6682_s16 + $0x68] sm:$0xff] }
 0x273   : > { %v2241_v29 = vadd.f32 %v8279_v44, %v1905_v27 }
 0x275   : > { %v2002_v57 = vpop.permute.xlu0 %2001  ;;  %2196 = vperm.xlu1 %6028, %v1650_v19   ;;  %v1903_v19 = vmul.f32 %v6195_v41, %v8268_v13  ;;  %v2337_v36 = vmax.f32 %v2241_v29, 0.0  ;;  %v1908_v13 = vmul.f32 %v6198_v15, %v8288_v47 }
 0x276   : > { %v2236_v59 = vadd.f32 %v2002_v57, %v1900_v62  ;;  %v2237_v31 = vadd.f32 %v2002_v57, %v1901_v11 }
 0x277   : > { %v8368_v32 = vpop.permute.xlu1 %1725 }
 0x278   : > { %v2332_v28 = vmax.f32 %v2236_v59, 0.0  ;;  %v2333_v62 = vmax.f32 %v2237_v31, 0.0  ;;  %v6199_v59 = vld [vmem:[%s6682_s16 + $0x58] sm:$0xff] }
 0x279   : > { %v2007_v57 = vpop.permute.xlu0 %2006  ;;  %2201 = vperm.xlu1 %6028, %v1651_v9   ;;  %v1909_v31 = vmul.f32 %v6199_v59, %v8288_v47 }
 0x27a   : > { %v2238_v11 = vadd.f32 %v2007_v57, %v1902_v63  ;;  %v2239_v44 = vadd.f32 %v2007_v57, %v1903_v19  ;;  %v2475_v14 = vpack.c.bf16 %v2333_v62, %v2331_v46  ;;  %v2474_v27 = vpack.c.bf16 %v2332_v28, %v2330_v23  ;;  %v6200_v19 = vld [vmem:[%s6682_s16 + $0x80] sm:$0xff]  ;;  %v6201_v62 = vld [vmem:[%s6682_s16 + $0x88] sm:$0xff] }
 0x27b   : > { %v2242_v23 = vadd.f32 %v8296_v2, %v1906_v49  ;;  %v1914_v28 = vmul.f32 %v6200_v19, %v8248_v10  ;;  %v1915_v57 = vmul.f32 %v6201_v62, %v8248_v10  ;;  %v6203_v2 = vld [vmem:[%s6682_s16 + $0x78] sm:$0xff] }
 0x27c   : > { %v2334_v9 = vmax.f32 %v2238_v11, 0.0  ;;  %v2335_v63 = vmax.f32 %v2239_v44, 0.0  ;;  %2714 = vmatprep.subr.bf16.mxu1 %v2475_v14  ;;  %v8382_v46 = vpop.permute.xlu1 %2056  ;;  %v6202_v11 = vld [vmem:[%s6682_s16 + $0x70] sm:$0xff]  ;;  %v1913_v44 = vmul.f32 %v6203_v2, %v8306_v38  ;;  %v6204_v14 = vld [vmem:[%s6682_s16 + $0x60] sm:$0xff]  ;;  %v6209_v2 = vld [vmem:[%s6682_s16 + $0xb8] sm:$0xff] }
 0x27d   : > { %2715 = vmatpush1.bf16.msra.mxu1 %v2474_v27  ;;  %v2022_v51 = vpop.permute.xlu0 %2021  ;;  %6029 = vset.pattern.permute.xlu1 %v10842_v0  ;;  %v1912_v58 = vmul.f32 %v6202_v11, %v8306_v38  ;;  %v1910_v27 = vmul.f32 %v6204_v14, %v8300_v52  ;;  %v2338_v54 = vmax.f32 %v2242_v23, 0.0  ;;  %v10888_v23 = vld [vmem:[#allocation41_spill] sm:$0xff] }
 0x27e   : > { %v2244_v15 = vadd.f32 %v2022_v51, %v1908_v13  ;;  %v2245_v47 = vadd.f32 %v2022_v51, %v1909_v31  ;;  %1795 = vperm.xlu1 %6029, %v7976_v42   ;;  %v2477_v29 = vpack.c.bf16 %v2337_v36, %v2335_v63  ;;  %v2476_v41 = vpack.c.bf16 %v2336_v60, %v2334_v9  ;;  %v10887_v51 = vld [vmem:[#allocation26_spill] sm:$0xff] }
 0x27f   : > { %v1911_v42 = vmul.f32 %v6205_v35, %v8300_v52  ;;  %v2339_v60 = vmax.f32 %v2243_v16, 0.0  ;;  %v2248_v10 = vadd.f32 %v8313_v3, %v1912_v58  ;;  %v2249_v13 = vadd.f32 %v8313_v3, %v1913_v44  ;;  %v6206_v3 = vld [vmem:[%s6682_s16 + $0x90] sm:$0xff] }
 0x280   : > { %v2340_v36 = vmax.f32 %v2244_v15, 0.0  ;;  %v2341_v49 = vmax.f32 %v2245_v47, 0.0  ;;  %2716 = vmatprep.subr.bf16.mxu1 %v2477_v29  ;;  %v2250_v31 = vadd.f32 %v8328_v55, %v1914_v28  ;;  %v2251_v52 = vadd.f32 %v8328_v55, %v1915_v57  ;;  %v6208_v57 = vld [vmem:[%s6682_s16 + $0xb0] sm:$0xff] }
 0x281   : > { %2717 = vmatpush1.bf16.msra.mxu1 %v2476_v41  ;;  %v2027_v59 = vpop.permute.xlu0 %2026  ;;  %v8402_v38 = vpop.permute.xlu1 %1730  ;;  %v1636_v16 = vsub.f32 %v10888_v23, %v8193_v56  ;;  %v1916_v29 = vmul.f32 %v6206_v3, %v8320_v50  ;;  %v6207_v41 = vld [vmem:[%s6682_s16 + $0x98] sm:$0xff]  ;;  %v2344_v11 = vmax.f32 %v2248_v10, 0.0  ;;  %v2345_v55 = vmax.f32 %v2249_v13, 0.0  ;;  %v6212_v23 = vld [vmem:[%s6682_s16 + $0xc0] sm:$0xff] }
 0x282   : > { %v2246_v9 = vadd.f32 %v2027_v59, %v1910_v27  ;;  %v2247_v63 = vadd.f32 %v2027_v59, %v1911_v42  ;;  %1870 = vperm.xlu1 %6029, %v10887_v51   ;;  %v2479_v15 = vpack.c.bf16 %v2341_v49, %v2339_v60  ;;  %v2478_v47 = vpack.c.bf16 %v2340_v36, %v2338_v54  ;;  %v6211_v59 = vld [vmem:[%s6682_s16 + $0xa8] sm:$0xff] }
 0x283   : > { %v1917_v19 = vmul.f32 %v6207_v41, %v8320_v50  ;;  %v1920_v58 = vmul.f32 %v6208_v57, %v8339_v37  ;;  %v1921_v44 = vmul.f32 %v6209_v2, %v8339_v37  ;;  %v2346_v27 = vmax.f32 %v2250_v31, 0.0  ;;  %v6210_v37 = vld [vmem:[%s6682_s16 + $0xa0] sm:$0xff] }
 0x284   : > { %v2342_v28 = vmax.f32 %v2246_v9, 0.0  ;;  %v2343_v62 = vmax.f32 %v2247_v63, 0.0  ;;  %2718 = vmatprep.subr.bf16.mxu1 %v2479_v15  ;;  %v2347_v35 = vmax.f32 %v2251_v52, 0.0  ;;  %v10889_v54 = vmov 1   ;;  %v10890_v63 = vld [vmem:[#allocation25_spill] sm:$0xff]  ;;  %v6213_v15 = vld [vmem:[%s6682_s16 + $0xc8] sm:$0xff] }
 0x285   : > { %v2042_v56 = vpop.permute.xlu0 %2041  ;;  %v1736_v14 = vpop.permute.xlu1 %1735  ;;  %2719 = vmatpush1.bf16.msra.mxu1 %v2478_v47  ;;  %v2256_v36 = vadd.f32 %v8350_v26, %v1920_v58  ;;  %v2257_v49 = vadd.f32 %v8350_v26, %v1921_v44  ;;  %v1918_v13 = vmul.f32 %v6210_v37, %v8334_v4  ;;  %v1919_v31 = vmul.f32 %v6211_v59, %v8334_v4 }
 0x286   : > { %v2252_v50 = vadd.f32 %v2042_v56, %v1916_v29  ;;  %v2253_v42 = vadd.f32 %v2042_v56, %v1917_v19  ;;  %6030 = vset.pattern.permute.xlu1 %v10889_v54  ;;  %v2481_v60 = vpack.c.bf16 %v2345_v55, %v2343_v62  ;;  %v2480_v10 = vpack.c.bf16 %v2344_v11, %v2342_v28  ;;  %v6214_v55 = vld [vmem:[%s6682_s16 + $0xd0] sm:$0xff] }
 0x287   : > { %2126 = vperm.xlu1 %6030, %v1636_v16   ;;  %v1652_v51 = vsub.f32 %v10890_v63, %v8202_v48  ;;  %v1922_v26 = vmul.f32 %v6212_v23, %v8256_v53  ;;  %v1923_v47 = vmul.f32 %v6213_v15, %v8256_v53  ;;  %v2352_v28 = vmax.f32 %v2256_v36, 0.0  ;;  %v6215_v53 = vld [vmem:[%s6682_s16 + $0xd8] sm:$0xff] }
 0x288   : > { %v2348_v52 = vmax.f32 %v2252_v50, 0.0  ;;  %v2349_v9 = vmax.f32 %v2253_v42, 0.0  ;;  %2720 = vmatprep.subr.bf16.mxu1 %v2481_v60  ;;  %v2353_v48 = vmax.f32 %v2257_v49, 0.0  ;;  %v1924_v57 = vmul.f32 %v6214_v55, %v8368_v32  ;;  %v6217_v50 = vld [vmem:[%s6682_s16 + $0xf8] sm:$0xff] }
 0x289   : > { %v2047_v3 = vpop.permute.xlu0 %2046  ;;  %2721 = vmatpush1.bf16.msra.mxu1 %v2480_v10  ;;  %v2258_v62 = vadd.f32 %v8382_v46, %v1922_v26  ;;  %v2259_v11 = vadd.f32 %v8382_v46, %v1923_v47  ;;  %v1925_v58 = vmul.f32 %v6215_v53, %v8368_v32  ;;  %v1653_v56 = vsub.f32 %v7982_v30, %v8212_v20 }
 0x28a   : > { %v2254_v29 = vadd.f32 %v2047_v3, %v1918_v13  ;;  %v2255_v41 = vadd.f32 %v2047_v3, %v1919_v31  ;;  %v2072_v4 = vpop.permute.xlu1 %2071  ;;  %v2483_v19 = vpack.c.bf16 %v2349_v9, %v2347_v35  ;;  %v2482_v16 = vpack.c.bf16 %v2348_v52, %v2346_v27  ;;  %v6216_v27 = vld [vmem:[%s6682_s16 + $0xf0] sm:$0xff]  ;;  %v6218_v13 = vld [vmem:[%s6682_s16 + $0xe0] sm:$0xff]  ;;  %v6219_v31 = vld [vmem:[%s6682_s16 + $0xe8] sm:$0xff] }
 0x28b   : > { %2206 = vperm.xlu1 %6030, %v1652_v51   ;;  %v1928_v35 = vmul.f32 %v6216_v27, %v1736_v14  ;;  %v1929_v42 = vmul.f32 %v6217_v50, %v1736_v14  ;;  %v2354_v32 = vmax.f32 %v2258_v62, 0.0  ;;  %v2355_v37 = vmax.f32 %v2259_v11, 0.0 }
 0x28c   : > { %v2350_v2 = vmax.f32 %v2254_v29, 0.0  ;;  %v2351_v44 = vmax.f32 %v2255_v41, 0.0  ;;  %2722 = vmatprep.subr.bf16.mxu1 %v2483_v19  ;;  %v1926_v59 = vmul.f32 %v6218_v13, %v8402_v38  ;;  %v1927_v52 = vmul.f32 %v6219_v31, %v8402_v38 }
 0x28d   : > { %v2062_v46 = vpop.permute.xlu0 %2061  ;;  %2723 = vmatpush1.bf16.msra.mxu1 %v2482_v16  ;;  %v2264_v30 = vadd.f32 %v2072_v4, %v1928_v35  ;;  %v2265_v20 = vadd.f32 %v2072_v4, %v1929_v42  ;;  %v6220_v4 = vld [vmem:[%s6682_s16 + $0x110] sm:$0xff] }
 0x28e   : > { %v2260_v36 = vadd.f32 %v2062_v46, %v1924_v57  ;;  %v2261_v49 = vadd.f32 %v2062_v46, %v1925_v58  ;;  %v2485_v60 = vpack.c.bf16 %v2353_v48, %v2351_v44  ;;  %v2484_v10 = vpack.c.bf16 %v2352_v28, %v2350_v2  ;;  %v6221_v28 = vld [vmem:[%s6682_s16 + $0x118] sm:$0xff]  ;;  %v6222_v57 = vld [vmem:[%s6682_s16 + $0x100] sm:$0xff]  ;;  %v6223_v58 = vld [vmem:[%s6682_s16 + $0x108] sm:$0xff] }
 0x28f   : > { %v1746_v9 = vpop.permute.xlu1 %1745  ;;  %2211 = vperm.xlu1 %6030, %v1653_v56   ;;  %v2360_v29 = vmax.f32 %v2264_v30, 0.0  ;;  %v2361_v41 = vmax.f32 %v2265_v20, 0.0  ;;  %v1930_v53 = vmul.f32 %v6222_v57, %v8260_v7  ;;  %v1931_v2 = vmul.f32 %v6223_v58, %v8260_v7 }
 0x290   : > { %v2356_v63 = vmax.f32 %v2260_v36, 0.0  ;;  %v2357_v51 = vmax.f32 %v2261_v49, 0.0  ;;  %2724 = vmatprep.subr.bf16.mxu1 %v2485_v60  ;;  %v1932_v16 = vmul.f32 %v6220_v4, %v1746_v9  ;;  %v1933_v48 = vmul.f32 %v6221_v28, %v1746_v9  ;;  %v6224_v60 = vld [vmem:[%s6682_s16 + $0x200] sm:$0xff] }
 0x291   : > { %v2067_v14 = vpop.permute.xlu0 %2066  ;;  %2725 = vmatpush1.bf16.msra.mxu1 %v2484_v10  ;;  %v1638_v49 = vsub.f32 %v7990_v45, %v8208_v1  ;;  %v1654_v45 = vsub.f32 %v8005_v17, %v8219_v24  ;;  %v6228_v17 = vld [vmem:[%s6682_s16 + $0x130] sm:$0xff] }
 0x292   : > { %v2262_v23 = vadd.f32 %v2067_v14, %v1926_v59  ;;  %v2263_v26 = vadd.f32 %v2067_v14, %v1927_v52  ;;  %v2487_v15 = vpack.c.bf16 %v2357_v51, %v2355_v37  ;;  %v2486_v47 = vpack.c.bf16 %v2356_v63, %v2354_v32  ;;  %v6225_v32 = vld [vmem:[%s6682_s16 + $0x208] sm:$0xff]  ;;  %v6227_v52 = vld [vmem:[%s6682_s16 + $0x218] sm:$0xff] }
 0x293   : > { %v1821_v3 = vpop.permute.xlu1 %1820  ;;  %6031 = vset.pattern.permute.xlu1 %v10842_v0  ;;  %v1965_v9 = vmul.f32 %v6227_v52, %v8266_v61 }
 0x294   : > { %v2358_v38 = vmax.f32 %v2262_v23, 0.0  ;;  %v2359_v19 = vmax.f32 %v2263_v26, 0.0  ;;  %2726 = vmatprep.subr.bf16.mxu1 %v2487_v15  ;;  %1805 = vperm.xlu1 %6031, %v8012_v18   ;;  %v1962_v10 = vmul.f32 %v6224_v60, %v1821_v3  ;;  %v1963_v37 = vmul.f32 %v6225_v32, %v1821_v3 }
 0x295   : > { %v2082_v62 = vpop.permute.xlu0 %2081  ;;  %2727 = vmatpush1.bf16.msra.mxu1 %v2486_v47 }
 0x296   : > { %v2489_v11 = vpack.c.bf16 %v2361_v41, %v2359_v19  ;;  %v2488_v55 = vpack.c.bf16 %v2360_v29, %v2358_v38  ;;  %v2268_v44 = vadd.f32 %v2082_v62, %v1932_v16  ;;  %v2269_v56 = vadd.f32 %v2082_v62, %v1933_v48  ;;  %v6229_v41 = vld [vmem:[%s6682_s16 + $0x138] sm:$0xff]  ;;  %v6230_v16 = vld [vmem:[%s6682_s16 + $0x120] sm:$0xff] }
 0x298   : > { %2728 = vmatprep.subr.bf16.mxu1 %v2489_v11  ;;  %v2077_v27 = vpop.permute.xlu1 %2076  ;;  %1880 = vperm.xlu1 %6031, %v8020_v6   ;;  %v2364_v18 = vmax.f32 %v2268_v44, 0.0  ;;  %v2365_v42 = vmax.f32 %v2269_v56, 0.0  ;;  %v6226_v6 = vld [vmem:[%s6682_s16 + $0x210] sm:$0xff]  ;;  %v1640_v44 = vsub.f32 %v8040_v25, %v8244_v39  ;;  %v1656_v25 = vsub.f32 %v8056_v22, %v8254_v8 }
 0x299   : > { %v2266_v35 = vadd.f32 %v2077_v27, %v1930_v53  ;;  %v2267_v50 = vadd.f32 %v2077_v27, %v1931_v2  ;;  %2729 = vmatpush1.bf16.msra.mxu1 %v2488_v55  ;;  %v1964_v31 = vmul.f32 %v6226_v6, %v8266_v61  ;;  %v1655_v61 = vsub.f32 %v8015_v21, %v8232_v43  ;;  %v2092_v4 = vpop.permute.xlu0 %2091  ;;  %v6231_v43 = vld [vmem:[%s6682_s16 + $0x128] sm:$0xff]  ;;  %v6232_v27 = vld [vmem:[%s6682_s16 + $0x220] sm:$0xff]  ;;  %v6236_v22 = vld [vmem:[%s6682_s16 + $0x150] sm:$0xff] }
 0x29a   : > { %v1934_v21 = vmul.f32 %v6230_v16, %v8271_v5  ;;  %v1935_v28 = vmul.f32 %v6231_v43, %v8271_v5  ;;  %v6233_v5 = vld [vmem:[%s6682_s16 + $0x228] sm:$0xff] }
 0x29b   : > { %v2362_v46 = vmax.f32 %v2266_v35, 0.0  ;;  %v2363_v36 = vmax.f32 %v2267_v50, 0.0 }
 0x29c   : > { %v2157_v7 = vpop.permute.xlu1 %2156  ;;  %6032 = vset.pattern.permute.xlu1 %v10889_v54 }
 0x29d   : > { %v2491_v13 = vpack.c.bf16 %v2365_v42, %v2363_v36  ;;  %v2490_v59 = vpack.c.bf16 %v2364_v18, %v2362_v46  ;;  %2136 = vperm.xlu1 %6032, %v1638_v49   ;;  %v2298_v30 = vadd.f32 %v2157_v7, %v1962_v10  ;;  %v2299_v20 = vadd.f32 %v2157_v7, %v1963_v37  ;;  %v6234_v46 = vld [vmem:[%s6682_s16 + $0x230] sm:$0xff]  ;;  %v6235_v36 = vld [vmem:[%s6682_s16 + $0x238] sm:$0xff] }
 0x29e   : > { %v1969_v49 = vmul.f32 %v6235_v36, %v8276_v40 }
 0x29f   : > { %2730 = vmatprep.subr.bf16.mxu1 %v2491_v13  ;;  %v2394_v14 = vmax.f32 %v2298_v30, 0.0  ;;  %v2395_v26 = vmax.f32 %v2299_v20, 0.0  ;;  %v6237_v30 = vld [vmem:[%s6682_s16 + $0x158] sm:$0xff] }
 0x2a0   : > { %v2162_v1 = vpop.permute.xlu1 %2161  ;;  %2731 = vmatpush1.bf16.msra.mxu1 %v2490_v59 }
 0x2a1   : > { %v2300_v63 = vadd.f32 %v2162_v1, %v1964_v31  ;;  %v2301_v51 = vadd.f32 %v2162_v1, %v1965_v9  ;;  %2216 = vperm.xlu1 %6032, %v1654_v45   ;;  %v2102_v1 = vpop.permute.xlu0 %2101 }
 0x2a3   : > { %v2396_v23 = vmax.f32 %v2300_v63, 0.0  ;;  %v2397_v15 = vmax.f32 %v2301_v51, 0.0  ;;  %v6238_v63 = vld [vmem:[%s6682_s16 + $0x140] sm:$0xff] }
 0x2a4   : > { %v10892_v51 = vld [vmem:[#allocation5_spill] sm:$0xff] }
 0x2a5   : > { %v1756_v47 = vpop.permute.xlu1 %1755  ;;  %v2507_v3 = vpack.c.bf16 %v2397_v15, %v2395_v26  ;;  %v2506_v29 = vpack.c.bf16 %v2396_v23, %v2394_v14  ;;  %2221 = vperm.xlu1 %6032, %v1655_v61   ;;  %v1938_v14 = vmul.f32 %v6238_v63, %v10892_v51  ;;  %v6239_v23 = vld [vmem:[%s6682_s16 + $0x148] sm:$0xff] }
 0x2a6   : > { %v1936_v24 = vmul.f32 %v6228_v17, %v1756_v47  ;;  %v1937_v38 = vmul.f32 %v6229_v41, %v1756_v47  ;;  %v1939_v26 = vmul.f32 %v6239_v23, %v10892_v51  ;;  %v10895_v23 = vld [vmem:[#allocation8_spill] sm:$0xff] }
 0x2a7   : > { %2867 = vmatprep.subr.bf16.mxu0 %v2507_v3 }
 0x2a8   : > { %2868 = vmatpush1.bf16.msra.mxu0 %v2506_v29  ;;  %v2272_v48 = vadd.f32 %v2092_v4, %v1936_v24  ;;  %v2273_v62 = vadd.f32 %v2092_v4, %v1937_v38  ;;  %v6240_v4 = vld [vmem:[%s6682_s16 + $0x240] sm:$0xff] }
 0x2a9   : > { %v1831_v19 = vpop.permute.xlu1 %1830  ;;  %6033 = vset.pattern.permute.xlu1 %v10842_v0 }
 0x2aa   : > { %1815 = vperm.xlu1 %6033, %v8037_v34   ;;  %v2368_v53 = vmax.f32 %v2272_v48, 0.0  ;;  %v2369_v34 = vmax.f32 %v2273_v62, 0.0  ;;  %v1966_v35 = vmul.f32 %v6232_v27, %v1831_v19  ;;  %v1967_v50 = vmul.f32 %v6233_v5, %v1831_v19  ;;  %v6242_v62 = vld [vmem:[%s6682_s16 + $0x250] sm:$0xff] }
 0x2ae   : > { %v2087_v11 = vpop.permute.xlu1 %2086  ;;  %1890 = vperm.xlu1 %6033, %v8065_v33   ;;  %v1968_v33 = vmul.f32 %v6234_v46, %v8276_v40  ;;  %v10891_v40 = vld [vmem:[#allocation29_spill] sm:$0xff] }
 0x2af   : > { %v2270_v55 = vadd.f32 %v2087_v11, %v1934_v21  ;;  %v2271_v57 = vadd.f32 %v2087_v11, %v1935_v28  ;;  %v1657_v6 = vsub.f32 %v10891_v40, %v8237_v12  ;;  %v6038_v12 = vld [vmem:[%s8491_s29 + $0x4] ss:$12 sps:$4 sm:$0xff]   ;;  %v6241_v21 = vld [vmem:[%s6682_s16 + $0x248] sm:$0xff] }
 0x2b0   : > { %2746 = vmatprep.mubr.bf16.mxu1 %v6038_v12  ;;  %v10893_v11 = vld [vmem:[#allocation31_spill] sm:$0xff] }
 0x2b1   : > { %v2366_v58 = vmax.f32 %v2270_v55, 0.0  ;;  %v2367_v2 = vmax.f32 %v2271_v57, 0.0  ;;  %v1972_v55 = vmul.f32 %v6242_v62, %v10893_v11  ;;  %v6243_v57 = vld [vmem:[%s6682_s16 + $0x258] sm:$0xff] }
 0x2b2   : > { %v2167_v56 = vpop.permute.xlu1 %2166  ;;  %6035 = vset.pattern.permute.xlu1 %v10889_v54  ;;  %v6253_v62 = vld [vmem:[%s6682_s16 + $0x198] sm:$0xff] }
 0x2b3   : > { %v2493_v18 = vpack.c.bf16 %v2369_v34, %v2367_v2  ;;  %v2492_v42 = vpack.c.bf16 %v2368_v53, %v2366_v58  ;;  %2146 = vperm.xlu1 %6035, %v1640_v44   ;;  %v2302_v7 = vadd.f32 %v2167_v56, %v1966_v35  ;;  %v2303_v60 = vadd.f32 %v2167_v56, %v1967_v50 }
 0x2b4   : > { %v1973_v53 = vmul.f32 %v6243_v57, %v10893_v11 }
 0x2b5   : > { %2732 = vmatprep.subr.bf16.mxu1 %v2493_v18  ;;  %v2398_v32 = vmax.f32 %v2302_v7, 0.0  ;;  %v2399_v37 = vmax.f32 %v2303_v60, 0.0 }
 0x2b6   : > { %v2172_v39 = vpop.permute.xlu1 %2171  ;;  %2733 = vmatpush1.bf16.msra.mxu1 %v2492_v42 }
 0x2b7   : > { %v2304_v10 = vadd.f32 %v2172_v39, %v1968_v33  ;;  %v2305_v54 = vadd.f32 %v2172_v39, %v1969_v49  ;;  %2226 = vperm.xlu1 %6035, %v1656_v25   ;;  %v6244_v33 = vld [vmem:[%s6682_s16 + $0x170] sm:$0xff]  ;;  %v6245_v49 = vld [vmem:[%s6682_s16 + $0x178] sm:$0xff]  ;;  %v2112_v25 = vpop.permute.xlu0 %2111  ;;  %v6246_v39 = vld [vmem:[%s6682_s16 + $0x160] sm:$0xff] }
 0x2b9   : > { %v2400_v13 = vmax.f32 %v2304_v10, 0.0  ;;  %v2401_v59 = vmax.f32 %v2305_v54, 0.0  ;;  %v10894_v10 = vld [vmem:[#allocation6_spill] sm:$0xff] }
 0x2ba   : > { %v1942_v54 = vmul.f32 %v6246_v39, %v10894_v10 }
 0x2bb   : > { %v1766_v31 = vpop.permute.xlu1 %1765  ;;  %v2509_v52 = vpack.c.bf16 %v2401_v59, %v2399_v37  ;;  %v2508_v9 = vpack.c.bf16 %v2400_v13, %v2398_v32  ;;  %2231 = vperm.xlu1 %6035, %v1657_v6   ;;  %v6247_v32 = vld [vmem:[%s6682_s16 + $0x168] sm:$0xff]  ;;  %v2122_v57 = vpop.permute.xlu0 %2121 }
 0x2bc   : > { %v1940_v8 = vmul.f32 %v6236_v22, %v1766_v31  ;;  %v1941_v20 = vmul.f32 %v6237_v30, %v1766_v31  ;;  %v1943_v37 = vmul.f32 %v6247_v32, %v10894_v10  ;;  %v10897_v32 = vld [vmem:[#allocation33_spill] sm:$0xff] }
 0x2bd   : > { %2869 = vmatprep.subr.bf16.mxu0 %v2509_v52 }
 0x2be   : > { %2870 = vmatpush1.bf16.msra.mxu0 %v2508_v9  ;;  %v2276_v15 = vadd.f32 %v2102_v1, %v1940_v8  ;;  %v2277_v61 = vadd.f32 %v2102_v1, %v1941_v20  ;;  %v6248_v20 = vld [vmem:[%s6682_s16 + $0x260] sm:$0xff]  ;;  %v6249_v1 = vld [vmem:[%s6682_s16 + $0x268] sm:$0xff] }
 0x2bf   : > { %v1841_v45 = vpop.permute.xlu1 %1840 }
 0x2c0   : > { %v2372_v17 = vmax.f32 %v2276_v15, 0.0  ;;  %v2373_v24 = vmax.f32 %v2277_v61, 0.0  ;;  %v1970_v16 = vmul.f32 %v6240_v4, %v1841_v45  ;;  %v1971_v43 = vmul.f32 %v6241_v21, %v1841_v45  ;;  %v6251_v15 = vld [vmem:[%s6682_s16 + $0x278] sm:$0xff] }
 0x2c1   : > { %v1977_v61 = vmul.f32 %v6251_v15, %v10895_v23  ;;  %v2132_v15 = vpop.permute.xlu0 %2131 }
 0x2c4   : > { %v2097_v47 = vpop.permute.xlu1 %2096 }
 0x2c5   : > { %v2274_v3 = vadd.f32 %v2097_v47, %v1938_v14  ;;  %v2275_v29 = vadd.f32 %v2097_v47, %v1939_v26  ;;  %v6250_v14 = vld [vmem:[%s6682_s16 + $0x270] sm:$0xff] }
 0x2c6   : > { %v1976_v26 = vmul.f32 %v6250_v14, %v10895_v23  ;;  %v6261_v23 = vld [vmem:[%s6682_s16 + $0x1b8] sm:$0xff] }
 0x2c7   : > { %v2370_v41 = vmax.f32 %v2274_v3, 0.0  ;;  %v2371_v38 = vmax.f32 %v2275_v29, 0.0 }
 0x2c8   : > { %v2177_v19 = vpop.permute.xlu1 %2176 }
 0x2c9   : > { %v2495_v28 = vpack.c.bf16 %v2373_v24, %v2371_v38  ;;  %v2494_v48 = vpack.c.bf16 %v2372_v17, %v2370_v41  ;;  %v2306_v34 = vadd.f32 %v2177_v19, %v1970_v16  ;;  %v2307_v58 = vadd.f32 %v2177_v19, %v1971_v43 }
 0x2cb   : > { %2734 = vmatprep.subr.bf16.mxu1 %v2495_v28  ;;  %v2402_v27 = vmax.f32 %v2306_v34, 0.0  ;;  %v2403_v35 = vmax.f32 %v2307_v58, 0.0  ;;  %v6252_v28 = vld [vmem:[%s6682_s16 + $0x190] sm:$0xff]  ;;  %v10896_v34 = vld [vmem:[#allocation28_spill] sm:$0xff] }
 0x2cc   : > { %v2182_v2 = vpop.permute.xlu1 %2181  ;;  %2735 = vmatpush1.bf16.msra.mxu1 %v2494_v48 }
 0x2cd   : > { %v2308_v44 = vadd.f32 %v2182_v2, %v1972_v55  ;;  %v2309_v56 = vadd.f32 %v2182_v2, %v1973_v53  ;;  %v6254_v53 = vld [vmem:[%s6682_s16 + $0x180] sm:$0xff]  ;;  %v6255_v2 = vld [vmem:[%s6682_s16 + $0x188] sm:$0xff] }
 0x2ce   : > { %v1946_v58 = vmul.f32 %v6254_v53, %v10896_v34 }
 0x2cf   : > { %v2404_v5 = vmax.f32 %v2308_v44, 0.0  ;;  %v2405_v50 = vmax.f32 %v2309_v56, 0.0  ;;  %v1947_v44 = vmul.f32 %v6255_v2, %v10896_v34  ;;  %v10899_v2 = vld [vmem:[#allocation10_spill] sm:$0xff] }
 0x2d1   : > { %v1776_v18 = vpop.permute.xlu1 %1775  ;;  %v2511_v42 = vpack.c.bf16 %v2405_v50, %v2403_v35  ;;  %v2510_v46 = vpack.c.bf16 %v2404_v5, %v2402_v27 }
 0x2d2   : > { %v1944_v36 = vmul.f32 %v6244_v33, %v1776_v18  ;;  %v1945_v7 = vmul.f32 %v6245_v49, %v1776_v18  ;;  %v6256_v49 = vld [vmem:[%s6682_s16 + $0x280] sm:$0xff] }
 0x2d3   : > { %2871 = vmatprep.subr.bf16.mxu0 %v2511_v42 }
 0x2d4   : > { %2872 = vmatpush1.bf16.msra.mxu0 %v2510_v46  ;;  %v2280_v13 = vadd.f32 %v2112_v25, %v1944_v36  ;;  %v2281_v59 = vadd.f32 %v2112_v25, %v1945_v7 }
 0x2d5   : > { %v1851_v60 = vpop.permute.xlu1 %1850 }
 0x2d6   : > { %v2376_v52 = vmax.f32 %v2280_v13, 0.0  ;;  %v2377_v9 = vmax.f32 %v2281_v59, 0.0  ;;  %v1974_v45 = vmul.f32 %v6248_v20, %v1851_v60  ;;  %v1975_v12 = vmul.f32 %v6249_v1, %v1851_v60  ;;  %v6257_v60 = vld [vmem:[%s6682_s16 + $0x288] sm:$0xff]  ;;  %v6259_v13 = vld [vmem:[%s6682_s16 + $0x298] sm:$0xff] }
 0x2d7   : > { %v1981_v59 = vmul.f32 %v6259_v13, %v10897_v32  ;;  %v2142_v13 = vpop.permute.xlu0 %2141 }
 0x2da   : > { %v2107_v40 = vpop.permute.xlu1 %2106 }
 0x2db   : > { %v2278_v6 = vadd.f32 %v2107_v40, %v1942_v54  ;;  %v2279_v31 = vadd.f32 %v2107_v40, %v1943_v37  ;;  %v6258_v54 = vld [vmem:[%s6682_s16 + $0x290] sm:$0xff] }
 0x2dc   : > { %v1980_v37 = vmul.f32 %v6258_v54, %v10897_v32  ;;  %v6269_v54 = vld [vmem:[%s6682_s16 + $0x1d8] sm:$0xff] }
 0x2dd   : > { %v2374_v22 = vmax.f32 %v2278_v6, 0.0  ;;  %v2375_v8 = vmax.f32 %v2279_v31, 0.0 }
 0x2de   : > { %v2187_v30 = vpop.permute.xlu1 %2186 }
 0x2df   : > { %v2497_v63 = vpack.c.bf16 %v2377_v9, %v2375_v8  ;;  %v2496_v51 = vpack.c.bf16 %v2376_v52, %v2374_v22  ;;  %v2310_v47 = vadd.f32 %v2187_v30, %v1974_v45  ;;  %v2311_v3 = vadd.f32 %v2187_v30, %v1975_v12 }
 0x2e1   : > { %2736 = vmatprep.subr.bf16.mxu1 %v2497_v63  ;;  %v2406_v41 = vmax.f32 %v2310_v47, 0.0  ;;  %v2407_v38 = vmax.f32 %v2311_v3, 0.0  ;;  %v10898_v47 = vld [vmem:[#allocation30_spill] sm:$0xff] }
 0x2e2   : > { %v2192_v29 = vpop.permute.xlu1 %2191  ;;  %2737 = vmatpush1.bf16.msra.mxu1 %v2496_v51  ;;  %v6260_v51 = vld [vmem:[%s6682_s16 + $0x1b0] sm:$0xff] }
 0x2e3   : > { %v2312_v17 = vadd.f32 %v2192_v29, %v1976_v26  ;;  %v2313_v24 = vadd.f32 %v2192_v29, %v1977_v61  ;;  %v6262_v61 = vld [vmem:[%s6682_s16 + $0x1a0] sm:$0xff]  ;;  %v6263_v29 = vld [vmem:[%s6682_s16 + $0x1a8] sm:$0xff] }
 0x2e4   : > { %v1950_v3 = vmul.f32 %v6262_v61, %v10898_v47 }
 0x2e5   : > { %v2408_v19 = vmax.f32 %v2312_v17, 0.0  ;;  %v2409_v4 = vmax.f32 %v2313_v24, 0.0  ;;  %v1951_v17 = vmul.f32 %v6263_v29, %v10898_v47  ;;  %v10901_v29 = vld [vmem:[#allocation12_spill] sm:$0xff] }
 0x2e7   : > { %v1786_v16 = vpop.permute.xlu1 %1785  ;;  %v2513_v21 = vpack.c.bf16 %v2409_v4, %v2407_v38  ;;  %v2512_v43 = vpack.c.bf16 %v2408_v19, %v2406_v41 }
 0x2e8   : > { %v1948_v48 = vmul.f32 %v6252_v28, %v1786_v16  ;;  %v1949_v11 = vmul.f32 %v6253_v62, %v1786_v16  ;;  %v6264_v62 = vld [vmem:[%s6682_s16 + $0x2a0] sm:$0xff] }
 0x2e9   : > { %2873 = vmatprep.subr.bf16.mxu0 %v2513_v21 }
 0x2ea   : > { %2874 = vmatpush1.bf16.msra.mxu0 %v2512_v43  ;;  %v2284_v56 = vadd.f32 %v2122_v57, %v1948_v48  ;;  %v2285_v27 = vadd.f32 %v2122_v57, %v1949_v11 }
 0x2eb   : > { %v1861_v55 = vpop.permute.xlu1 %1860 }
 0x2ec   : > { %v2380_v18 = vmax.f32 %v2284_v56, 0.0  ;;  %v2381_v42 = vmax.f32 %v2285_v27, 0.0  ;;  %v1978_v7 = vmul.f32 %v6256_v49, %v1861_v55  ;;  %v1979_v25 = vmul.f32 %v6257_v60, %v1861_v55  ;;  %v6265_v55 = vld [vmem:[%s6682_s16 + $0x2a8] sm:$0xff]  ;;  %v6267_v56 = vld [vmem:[%s6682_s16 + $0x2b8] sm:$0xff] }
 0x2ed   : > { %v1985_v27 = vmul.f32 %v6267_v56, %v10899_v2  ;;  %v2152_v56 = vpop.permute.xlu0 %2151 }
 0x2f0   : > { %v2117_v35 = vpop.permute.xlu1 %2116 }
 0x2f1   : > { %v2282_v5 = vadd.f32 %v2117_v35, %v1946_v58  ;;  %v2283_v50 = vadd.f32 %v2117_v35, %v1947_v44  ;;  %v6266_v58 = vld [vmem:[%s6682_s16 + $0x2b0] sm:$0xff] }
 0x2f2   : > { %v1984_v44 = vmul.f32 %v6266_v58, %v10899_v2  ;;  %v6277_v58 = vld [vmem:[%s6682_s16 + $0x1f8] sm:$0xff] }
 0x2f3   : > { %v2378_v46 = vmax.f32 %v2282_v5, 0.0  ;;  %v2379_v33 = vmax.f32 %v2283_v50, 0.0 }
 0x2f4   : > { %v2197_v36 = vpop.permute.xlu1 %2196 }
 0x2f5   : > { %v2499_v39 = vpack.c.bf16 %v2381_v42, %v2379_v33  ;;  %v2498_v10 = vpack.c.bf16 %v2380_v18, %v2378_v46  ;;  %v2314_v40 = vadd.f32 %v2197_v36, %v1978_v7  ;;  %v2315_v6 = vadd.f32 %v2197_v36, %v1979_v25 }
 0x2f7   : > { %2738 = vmatprep.subr.bf16.mxu1 %v2499_v39  ;;  %v2410_v22 = vmax.f32 %v2314_v40, 0.0  ;;  %v2411_v8 = vmax.f32 %v2315_v6, 0.0  ;;  %v6268_v39 = vld [vmem:[%s6682_s16 + $0x1d0] sm:$0xff]  ;;  %v10900_v40 = vld [vmem:[#allocation9_spill] sm:$0xff] }
 0x2f8   : > { %v2202_v31 = vpop.permute.xlu1 %2201  ;;  %2739 = vmatpush1.bf16.msra.mxu1 %v2498_v10 }
 0x2f9   : > { %v2316_v52 = vadd.f32 %v2202_v31, %v1980_v37  ;;  %v2317_v9 = vadd.f32 %v2202_v31, %v1981_v59  ;;  %v6270_v59 = vld [vmem:[%s6682_s16 + $0x1c0] sm:$0xff]  ;;  %v6271_v31 = vld [vmem:[%s6682_s16 + $0x1c8] sm:$0xff] }
 0x2fa   : > { %v1954_v6 = vmul.f32 %v6270_v59, %v10900_v40 }
 0x2fb   : > { %v2412_v30 = vmax.f32 %v2316_v52, 0.0  ;;  %v2413_v20 = vmax.f32 %v2317_v9, 0.0  ;;  %v1955_v52 = vmul.f32 %v6271_v31, %v10900_v40  ;;  %v10903_v31 = vld [vmem:[#allocation35_spill] sm:$0xff] }
 0x2fd   : > { %v1796_v45 = vpop.permute.xlu1 %1795  ;;  %v2515_v1 = vpack.c.bf16 %v2413_v20, %v2411_v8  ;;  %v2514_v12 = vpack.c.bf16 %v2412_v30, %v2410_v22 }
 0x2fe   : > { %v1952_v14 = vmul.f32 %v6260_v51, %v1796_v45  ;;  %v1953_v26 = vmul.f32 %v6261_v23, %v1796_v45 }
 0x2ff   : > { %2875 = vmatprep.subr.bf16.mxu0 %v2515_v1 }
 0x300   : > { %2876 = vmatpush1.bf16.msra.mxu0 %v2514_v12  ;;  %v2288_v24 = vadd.f32 %v2132_v15, %v1952_v14  ;;  %v2289_v41 = vadd.f32 %v2132_v15, %v1953_v26  ;;  %v6272_v14 = vld [vmem:[%s6682_s16 + $0x2c0] sm:$0xff]  ;;  %v6273_v26 = vld [vmem:[%s6682_s16 + $0x2c8] sm:$0xff] }
 0x301   : > { %v1871_v63 = vpop.permute.xlu1 %1870 }
 0x302   : > { %v2384_v16 = vmax.f32 %v2288_v24, 0.0  ;;  %v2385_v21 = vmax.f32 %v2289_v41, 0.0  ;;  %v1982_v11 = vmul.f32 %v6264_v62, %v1871_v63  ;;  %v1983_v57 = vmul.f32 %v6265_v55, %v1871_v63  ;;  %v6275_v24 = vld [vmem:[%s6682_s16 + $0x2d8] sm:$0xff] }
 0x303   : > { %v1989_v41 = vmul.f32 %v6275_v24, %v10901_v29  ;;  %v6046_v24 = vld [vmem:[%s8491_s29 + $0x30] ss:$12 sps:$4 sm:$0xff]  }
 0x306   : > { %v2127_v38 = vpop.permute.xlu1 %2126 }
 0x307   : > { %v2286_v19 = vadd.f32 %v2127_v38, %v1950_v3  ;;  %v2287_v4 = vadd.f32 %v2127_v38, %v1951_v17  ;;  %v6274_v3 = vld [vmem:[%s6682_s16 + $0x2d0] sm:$0xff] }
 0x308   : > { %v1988_v17 = vmul.f32 %v6274_v3, %v10901_v29  ;;  %v6042_v3 = vld [vmem:[%s8491_s29 + $0x18] ss:$12 sps:$4 sm:$0xff]   ;;  %v6044_v29 = vld [vmem:[%s8491_s29 + $0x34] ss:$12 sps:$4 sm:$0xff]  }
 0x309   : > { %v2382_v43 = vmax.f32 %v2286_v19, 0.0  ;;  %v2383_v28 = vmax.f32 %v2287_v4, 0.0 }
 0x30a   : > { %v2207_v48 = vpop.permute.xlu1 %2206 }
 0x30b   : > { %v2501_v53 = vpack.c.bf16 %v2385_v21, %v2383_v28  ;;  %v2500_v34 = vpack.c.bf16 %v2384_v16, %v2382_v43  ;;  %v2318_v35 = vadd.f32 %v2207_v48, %v1982_v11  ;;  %v2319_v5 = vadd.f32 %v2207_v48, %v1983_v57 }
 0x30d   : > { %2740 = vmatprep.subr.bf16.mxu1 %v2501_v53  ;;  %v2414_v46 = vmax.f32 %v2318_v35, 0.0  ;;  %v2415_v33 = vmax.f32 %v2319_v5, 0.0  ;;  %v6276_v53 = vld [vmem:[%s6682_s16 + $0x1f0] sm:$0xff] }
 0x30e   : > { %v2212_v50 = vpop.permute.xlu1 %2211  ;;  %2741 = vmatpush1.bf16.msra.mxu1 %v2500_v34  ;;  %v10902_v35 = vld [vmem:[#allocation7_spill] sm:$0xff] }
 0x30f   : > { %v2320_v18 = vadd.f32 %v2212_v50, %v1984_v44  ;;  %v2321_v42 = vadd.f32 %v2212_v50, %v1985_v27  ;;  %v6278_v27 = vld [vmem:[%s6682_s16 + $0x1e0] sm:$0xff]  ;;  %v6279_v50 = vld [vmem:[%s6682_s16 + $0x1e8] sm:$0xff] }
 0x310   : > { %v1958_v5 = vmul.f32 %v6278_v27, %v10902_v35  ;;  %v6071_v27 = vld [vmem:[%s8491_s29 + $0xc8] ss:$12 sps:$4 sm:$0xff]  }
 0x311   : > { %v2416_v36 = vmax.f32 %v2320_v18, 0.0  ;;  %v2417_v49 = vmax.f32 %v2321_v42, 0.0  ;;  %v1959_v18 = vmul.f32 %v6279_v50, %v10902_v35  ;;  %v6074_v35 = vld [vmem:[%s8491_s29 + $0xd8] ss:$12 sps:$4 sm:$0xff]   ;;  %v6075_v50 = vld [vmem:[%s8491_s29 + $0xe0] ss:$12 sps:$4 sm:$0xff]  }
 0x313   : > { %v1806_v7 = vpop.permute.xlu1 %1805  ;;  %v2517_v60 = vpack.c.bf16 %v2417_v49, %v2415_v33  ;;  %v2516_v25 = vpack.c.bf16 %v2416_v36, %v2414_v46 }
 0x314   : > { %v1956_v10 = vmul.f32 %v6268_v39, %v1806_v7  ;;  %v1957_v32 = vmul.f32 %v6269_v54, %v1806_v7  ;;  %v6280_v54 = vld [vmem:[%s6682_s16 + $0x2e0] sm:$0xff] }
 0x315   : > { %2877 = vmatprep.subr.bf16.mxu0 %v2517_v60 }
 0x316   : > { %2878 = vmatpush1.bf16.msra.mxu0 %v2516_v25  ;;  %v2292_v9 = vadd.f32 %v2142_v13, %v1956_v10  ;;  %v2293_v22 = vadd.f32 %v2142_v13, %v1957_v32 }
 0x317   : > { %v1881_v37 = vpop.permute.xlu1 %1880 }
 0x318   : > { %v2388_v45 = vmax.f32 %v2292_v9, 0.0  ;;  %v2389_v1 = vmax.f32 %v2293_v22, 0.0  ;;  %v1986_v23 = vmul.f32 %v6272_v14, %v1881_v37  ;;  %v1987_v15 = vmul.f32 %v6273_v26, %v1881_v37  ;;  %v6281_v37 = vld [vmem:[%s6682_s16 + $0x2e8] sm:$0xff]  ;;  %v6283_v9 = vld [vmem:[%s6682_s16 + $0x2f8] sm:$0xff] }
 0x319   : > { %v1993_v22 = vmul.f32 %v6283_v9, %v10903_v31 }
 0x31c   : > { %v2137_v8 = vpop.permute.xlu1 %2136 }
 0x31d   : > { %v2290_v30 = vadd.f32 %v2137_v8, %v1954_v6  ;;  %v2291_v20 = vadd.f32 %v2137_v8, %v1955_v52  ;;  %v6282_v6 = vld [vmem:[%s6682_s16 + $0x2f0] sm:$0xff] }
 0x31e   : > { %v1992_v52 = vmul.f32 %v6282_v6, %v10903_v31 }
 0x31f   : > { %v2386_v12 = vmax.f32 %v2290_v30, 0.0  ;;  %v2387_v63 = vmax.f32 %v2291_v20, 0.0  ;;  %v6036_v20 = vld [vmem:[%s8491_s29] ss:$12 sps:$4 sm:$0xff]  }
 0x320   : > { %v2217_v51 = vpop.permute.xlu1 %2216 }
 0x321   : > { %v2503_v61 = vpack.c.bf16 %v2389_v1, %v2387_v63  ;;  %v2502_v47 = vpack.c.bf16 %v2388_v45, %v2386_v12  ;;  %v2322_v38 = vadd.f32 %v2217_v51, %v1986_v23  ;;  %v2323_v19 = vadd.f32 %v2217_v51, %v1987_v15  ;;  %v6040_v1 = vld [vmem:[%s8491_s29 + $0x1c] ss:$12 sps:$4 sm:$0xff]  }
 0x323   : > { %2742 = vmatprep.subr.bf16.mxu1 %v2503_v61  ;;  %v2418_v43 = vmax.f32 %v2322_v38, 0.0  ;;  %v2419_v28 = vmax.f32 %v2323_v19, 0.0  ;;  %v6047_v38 = vld [vmem:[%s8491_s29 + $0x38] ss:$12 sps:$4 sm:$0xff]   ;;  %v6050_v19 = vld [vmem:[%s8491_s29 + $0x48] ss:$12 sps:$4 sm:$0xff]  }
 0x324   : > { %v2222_v4 = vpop.permute.xlu1 %2221  ;;  %2743 = vmatpush1.bf16.msra.mxu1 %v2502_v47  ;;  %v6039_v47 = vld [vmem:[%s8491_s29 + $0x8] ss:$12 sps:$4 sm:$0xff]  }
 0x325   : > { %v2324_v16 = vadd.f32 %v2222_v4, %v1988_v17  ;;  %v2325_v21 = vadd.f32 %v2222_v4, %v1989_v41  ;;  %v6043_v17 = vld [vmem:[%s8491_s29 + $0x20] ss:$12 sps:$4 sm:$0xff]   ;;  %v6052_v4 = vld [vmem:[%s8491_s29 + $0x64] ss:$12 sps:$4 sm:$0xff]  }
 0x326   : > { %v6048_v41 = vld [vmem:[%s8491_s29 + $0x4c] ss:$12 sps:$4 sm:$0xff]  }
 0x327   : > { %v2420_v48 = vmax.f32 %v2324_v16, 0.0  ;;  %v2421_v62 = vmax.f32 %v2325_v21, 0.0  ;;  %v6051_v16 = vld [vmem:[%s8491_s29 + $0x50] ss:$12 sps:$4 sm:$0xff]   ;;  %v6054_v21 = vld [vmem:[%s8491_s29 + $0x60] ss:$12 sps:$4 sm:$0xff]  }
 0x329   : > { %v1816_v11 = vpop.permute.xlu1 %1815  ;;  %v2519_v55 = vpack.c.bf16 %v2421_v62, %v2419_v28  ;;  %v2518_v57 = vpack.c.bf16 %v2420_v48, %v2418_v43  ;;  %v6056_v43 = vld [vmem:[%s8491_s29 + $0x7c] ss:$12 sps:$4 sm:$0xff]   ;;  %v6058_v48 = vld [vmem:[%s8491_s29 + $0x78] ss:$12 sps:$4 sm:$0xff]   ;;  %v6060_v62 = vld [vmem:[%s8491_s29 + $0x94] ss:$12 sps:$4 sm:$0xff]  }
 0x32a   : > { %v1960_v34 = vmul.f32 %v6276_v53, %v1816_v11  ;;  %v1961_v2 = vmul.f32 %v6277_v58, %v1816_v11  ;;  %v6055_v28 = vld [vmem:[%s8491_s29 + $0x68] ss:$12 sps:$4 sm:$0xff]   ;;  %v6059_v11 = vld [vmem:[%s8491_s29 + $0x80] ss:$12 sps:$4 sm:$0xff]   ;;  %v6063_v53 = vld [vmem:[%s8491_s29 + $0x98] ss:$12 sps:$4 sm:$0xff]  }
 0x32b   : > { %2879 = vmatprep.subr.bf16.mxu0 %v2519_v55  ;;  %v6062_v55 = vld [vmem:[%s8491_s29 + $0x90] ss:$12 sps:$4 sm:$0xff]  }
 0x32c   : > { %2880 = vmatpush1.bf16.msra.mxu0 %v2518_v57  ;;  %v2296_v42 = vadd.f32 %v2152_v56, %v1960_v34  ;;  %v2297_v46 = vadd.f32 %v2152_v56, %v1961_v2  ;;  %v6064_v57 = vld [vmem:[%s8491_s29 + $0xac] ss:$12 sps:$4 sm:$0xff]   ;;  %v6066_v34 = vld [vmem:[%s8491_s29 + $0xa8] ss:$12 sps:$4 sm:$0xff]   ;;  %v6068_v58 = vld [vmem:[%s8491_s29 + $0xc4] ss:$12 sps:$4 sm:$0xff]  }
 0x32d   : > { %v1891_v44 = vpop.permute.xlu1 %1890  ;;  %v6067_v2 = vld [vmem:[%s8491_s29 + $0xb0] ss:$12 sps:$4 sm:$0xff]  }
 0x32e   : > { %v2392_v7 = vmax.f32 %v2296_v42, 0.0  ;;  %v2393_v60 = vmax.f32 %v2297_v46, 0.0  ;;  %v1990_v32 = vmul.f32 %v6280_v54, %v1891_v44  ;;  %v1991_v13 = vmul.f32 %v6281_v37, %v1891_v44  ;;  %v6070_v44 = vld [vmem:[%s8491_s29 + $0xc0] ss:$12 sps:$4 sm:$0xff]   ;;  %v6072_v56 = vld [vmem:[%s8491_s29 + $0xdc] ss:$12 sps:$4 sm:$0xff]  }
 0x32f   : > { %v6080_v42 = vld [vmem:[%s8491_s29 + $0x10c] ss:$12 sps:$4 sm:$0xff]  }
 0x330   : > { %v6079_v46 = vld [vmem:[%s8491_s29 + $0xf8] ss:$12 sps:$4 sm:$0xff]  }
 0x332   : > { %v2147_v33 = vpop.permute.xlu1 %2146 }
 0x333   : > { %v2294_v36 = vadd.f32 %v2147_v33, %v1958_v5  ;;  %v2295_v49 = vadd.f32 %v2147_v33, %v1959_v18  ;;  %v6076_v5 = vld [vmem:[%s8491_s29 + $0xf4] ss:$12 sps:$4 sm:$0xff]   ;;  %v6078_v18 = vld [vmem:[%s8491_s29 + $0xf0] ss:$12 sps:$4 sm:$0xff]  }
 0x334   : > { %v6082_v33 = vld [vmem:[%s8491_s29 + $0x108] ss:$12 sps:$4 sm:$0xff]  }
 0x335   : > { %v2390_v25 = vmax.f32 %v2294_v36, 0.0  ;;  %v2391_v39 = vmax.f32 %v2295_v49, 0.0  ;;  %v6083_v36 = vld [vmem:[%s8491_s29 + $0x110] ss:$12 sps:$4 sm:$0xff]  }
 0x336   : > { %v2227_v10 = vpop.permute.xlu1 %2226 }
 0x337   : > { %v2505_v59 = vpack.c.bf16 %v2393_v60, %v2391_v39  ;;  %v2504_v40 = vpack.c.bf16 %v2392_v7, %v2390_v25  ;;  %v2326_v8 = vadd.f32 %v2227_v10, %v1990_v32  ;;  %v2327_v30 = vadd.f32 %v2227_v10, %v1991_v13 }
 0x339   : > { %2744 = vmatprep.subr.bf16.mxu1 %v2505_v59  ;;  %v2422_v51 = vmax.f32 %v2326_v8, 0.0  ;;  %v2423_v14 = vmax.f32 %v2327_v30, 0.0 }
 0x33a   : > { %v2232_v45 = vpop.permute.xlu1 %2231  ;;  %2745 = vmatpush1.bf16.msra.mxu1 %v2504_v40 }
 0x33b   : > { %v2328_v12 = vadd.f32 %v2232_v45, %v1992_v52  ;;  %v2329_v63 = vadd.f32 %v2232_v45, %v1993_v22 }
 0x33d   : > { %v2424_v23 = vmax.f32 %v2328_v12, 0.0  ;;  %v2425_v26 = vmax.f32 %v2329_v63, 0.0  ;;  %2747 = vmatmul.mubr.bf16.vlgmr.msra.gmra.mrb[0].mxu1 %v6036_v20 }
 0x33e   : > { %2756 = vmatprep.mubr.bf16.mxu1 %v6040_v1 }
 0x33f   : > { %v2520_v15 = vpack.c.bf16 %v2424_v23, %v2422_v51  ;;  %v2521_v61 = vpack.c.bf16 %v2425_v26, %v2423_v14 }
 0x341   : > { %2881 = vmatprep.subr.bf16.mxu0 %v2521_v61 }
 0x342   : > { %2882 = vmatpush1.bf16.msra.mxu0 %v2520_v15 }
 0x345   : > { %2900 = vmatmul.mubr.bf16.vlgmr.msra.gmra.mrb[0].mxu0 %v6039_v47  ;;  %2757 = vmatmul.mubr.bf16.gmra.mrb[4].mxu1 %v6042_v3 }
 0x346   : > { %2909 = vmatprep.mubr.bf16.mxu0 %v10842_v0  ;;  %2766 = vmatprep.mubr.bf16.mxu1 %v6044_v29 }
 0x34d   : > { %2910 = vmatmul.mubr.bf16.gmra.mrb[4].mxu0 %v6043_v17  ;;  %2767 = vmatmul.mubr.bf16.gmra.mrb[8].mxu1 %v6046_v24 }
 0x34e   : > { %2919 = vmatprep.mubr.bf16.mxu0 %v10842_v0  ;;  %2776 = vmatprep.mubr.bf16.mxu1 %v6048_v41 }
 0x355   : > { %2920 = vmatmul.mubr.bf16.gmra.mrb[8].mxu0 %v6047_v38  ;;  %2777 = vmatmul.mubr.bf16.gmra.mrb[12].mxu1 %v6050_v19 }
 0x356   : > { %2929 = vmatprep.mubr.bf16.mxu0 %v10842_v0  ;;  %2786 = vmatprep.mubr.bf16.mxu1 %v6052_v4 }
 0x35d   : > { %2930 = vmatmul.mubr.bf16.gmra.mrb[12].mxu0 %v6051_v16  ;;  %2787 = vmatmul.mubr.bf16.gmra.mrb[16].mxu1 %v6054_v21 }
 0x35e   : > { %2939 = vmatprep.mubr.bf16.mxu0 %v10842_v0  ;;  %2796 = vmatprep.mubr.bf16.mxu1 %v6056_v43 }
 0x365   : > { %2940 = vmatmul.mubr.bf16.gmra.mrb[16].mxu0 %v6055_v28  ;;  %2797 = vmatmul.mubr.bf16.gmra.mrb[20].mxu1 %v6058_v48 }
 0x366   : > { %2949 = vmatprep.mubr.bf16.mxu0 %v10842_v0  ;;  %2806 = vmatprep.mubr.bf16.mxu1 %v6060_v62 }
 0x36d   : > { %2950 = vmatmul.mubr.bf16.gmra.mrb[20].mxu0 %v6059_v11  ;;  %2807 = vmatmul.mubr.bf16.gmra.mrb[24].mxu1 %v6062_v55 }
 0x36e   : > { %2959 = vmatprep.mubr.bf16.mxu0 %v10842_v0  ;;  %2816 = vmatprep.mubr.bf16.mxu1 %v6064_v57 }
 0x375   : > { %2960 = vmatmul.mubr.bf16.gmra.mrb[24].mxu0 %v6063_v53  ;;  %2817 = vmatmul.mubr.bf16.gmra.mrb[28].mxu1 %v6066_v34 }
 0x376   : > { %2969 = vmatprep.mubr.bf16.mxu0 %v10842_v0  ;;  %2826 = vmatprep.mubr.bf16.mxu1 %v6068_v58 }
 0x37d   : > { %2970 = vmatmul.mubr.bf16.gmra.mrb[28].mxu0 %v6067_v2  ;;  %2827 = vmatmul.mubr.bf16.gmra.mrb[32].mxu1 %v6070_v44 }
 0x37e   : > { %2979 = vmatprep.mubr.bf16.mxu0 %v10842_v0  ;;  %2836 = vmatprep.mubr.bf16.mxu1 %v6072_v56 }
 0x385   : > { %2980 = vmatmul.mubr.bf16.gmra.mrb[32].mxu0 %v6071_v27  ;;  %2837 = vmatmul.mubr.bf16.gmra.mrb[36].mxu1 %v6074_v35 }
 0x386   : > { %2989 = vmatprep.mubr.bf16.mxu0 %v10842_v0  ;;  %2846 = vmatprep.mubr.bf16.mxu1 %v6076_v5 }
 0x38d   : > { %2990 = vmatmul.mubr.bf16.gmra.mrb[36].mxu0 %v6075_v50  ;;  %2847 = vmatmul.mubr.bf16.gmra.mrb[40].mxu1 %v6078_v18 }
 0x38e   : > { %2999 = vmatprep.mubr.bf16.mxu0 %v10842_v0  ;;  %2856 = vmatprep.mubr.bf16.mxu1 %v6080_v42 }
 0x395   : > { %3000 = vmatmul.mubr.bf16.gmra.mrb[40].mxu0 %v6079_v46  ;;  %2857 = vmatmul.mubr.bf16.gmra.mrb[44].mxu1 %v6082_v33 }
 0x396   : > { %3009 = vmatprep.mubr.bf16.mxu0 %v10842_v0 }
 0x39d   : > { %3010 = vmatmul.mubr.bf16.gmra.mrb[44].mxu0 %v6083_v36 }
 0x410   : > { %v2748_v49 = vpop.f32.mrb[0].mxu1 }
 0x411   : > { %v2750_v7 = vpop.f32.mrb[1].mxu1 }
 0x412   : > { %v2752_v60 = vpop.f32.mrb[2].mxu1 }
 0x413   : > { %v2754_v25 = vpop.f32.mrb[3].mxu1 }
 0x418   : > { %v2901_v39 = vpop.f32.mrb[0].mxu0  ;;  %v2758_v10 = vpop.f32.mrb[4].mxu1 }
 0x419   : > { %v8610_v54 = vadd.f32 %v2901_v39, %v2748_v49  ;;  %v2903_v32 = vpop.f32.mrb[1].mxu0  ;;  %v2760_v37 = vpop.f32.mrb[5].mxu1 }
 0x41a   : > { %v8612_v13 = vadd.f32 %v2903_v32, %v2750_v7  ;;  %v2905_v59 = vpop.f32.mrb[2].mxu0  ;;  %v2762_v40 = vpop.f32.mrb[6].mxu1 }
 0x41b   : > { %v8614_v6 = vadd.f32 %v2905_v59, %v2752_v60  ;;  %v2907_v31 = vpop.f32.mrb[3].mxu0  ;;  %v2764_v0 = vpop.f32.mrb[7].mxu1  ;;  %3024 = vst [vmem:[#allocation2] sm:$0xff] (!%p5795_p9), %v8610_v54 }
 0x41c   : > { %v8616_v52 = vadd.f32 %v2907_v31, %v2754_v25  ;;  %3025 = vst.msk [vmem:[#allocation2 + $0x8] sm:$0xff] (!%p5795_p9), %vm505_vm0, %v8612_v13 }
 0x41d   : > { %3026 = vst [vmem:[#allocation2 + $0x10] sm:$0xff] (!%p5795_p9), %v8614_v6 }
 0x41e   : > { %3027 = vst.msk [vmem:[#allocation2 + $0x18] sm:$0xff] (!%p5795_p9), %vm505_vm0, %v8616_v52 }
 0x420   : > { %v2911_v9 = vpop.f32.mrb[4].mxu0  ;;  %v2768_v22 = vpop.f32.mrb[8].mxu1 }
 0x421   : > { %v8618_v8 = vadd.f32 %v2911_v9, %v2758_v10  ;;  %v2913_v30 = vpop.f32.mrb[5].mxu0  ;;  %v2770_v20 = vpop.f32.mrb[9].mxu1 }
 0x422   : > { %v8620_v45 = vadd.f32 %v2913_v30, %v2760_v37  ;;  %v2915_v1 = vpop.f32.mrb[6].mxu0  ;;  %v2772_v12 = vpop.f32.mrb[10].mxu1 }
 0x423   : > { %v8622_v63 = vadd.f32 %v2915_v1, %v2762_v40  ;;  %v2917_v51 = vpop.f32.mrb[7].mxu0  ;;  %v2774_v14 = vpop.f32.mrb[11].mxu1  ;;  %3028 = vst [vmem:[#allocation2 + $0x20] sm:$0xff] (!%p5795_p9), %v8618_v8 }
 0x424   : > { %v8624_v23 = vadd.f32 %v2917_v51, %v2764_v0  ;;  %3029 = vst.msk [vmem:[#allocation2 + $0x28] sm:$0xff] (!%p5795_p9), %vm505_vm0, %v8620_v45 }
 0x425   : > { %3030 = vst [vmem:[#allocation2 + $0x30] sm:$0xff] (!%p5795_p9), %v8622_v63 }
 0x426   : > { %3031 = vst.msk [vmem:[#allocation2 + $0x38] sm:$0xff] (!%p5795_p9), %vm505_vm0, %v8624_v23 }
 0x428   : > { %v2921_v26 = vpop.f32.mrb[8].mxu0  ;;  %v2778_v15 = vpop.f32.mrb[12].mxu1 }
 0x429   : > { %v8626_v61 = vadd.f32 %v2921_v26, %v2768_v22  ;;  %v2923_v47 = vpop.f32.mrb[9].mxu0  ;;  %v2780_v3 = vpop.f32.mrb[13].mxu1 }
 0x42a   : > { %v8628_v29 = vadd.f32 %v2923_v47, %v2770_v20  ;;  %v2925_v17 = vpop.f32.mrb[10].mxu0  ;;  %v2782_v24 = vpop.f32.mrb[14].mxu1 }
 0x42b   : > { %v8630_v41 = vadd.f32 %v2925_v17, %v2772_v12  ;;  %v2927_v38 = vpop.f32.mrb[11].mxu0  ;;  %v2784_v19 = vpop.f32.mrb[15].mxu1  ;;  %3032 = vst [vmem:[#allocation2 + $0x40] sm:$0xff] (!%p5795_p9), %v8626_v61 }
 0x42c   : > { %v8632_v4 = vadd.f32 %v2927_v38, %v2774_v14  ;;  %3033 = vst.msk [vmem:[#allocation2 + $0x48] sm:$0xff] (!%p5795_p9), %vm505_vm0, %v8628_v29 }
 0x42d   : > { %3034 = vst [vmem:[#allocation2 + $0x50] sm:$0xff] (!%p5795_p9), %v8630_v41 }
 0x42e   : > { %3035 = vst.msk [vmem:[#allocation2 + $0x58] sm:$0xff] (!%p5795_p9), %vm505_vm0, %v8632_v4 }
 0x430   : > { %v2931_v16 = vpop.f32.mrb[12].mxu0  ;;  %v2788_v21 = vpop.f32.mrb[16].mxu1 }
 0x431   : > { %v8634_v43 = vadd.f32 %v2931_v16, %v2778_v15  ;;  %v2933_v28 = vpop.f32.mrb[13].mxu0  ;;  %v2790_v48 = vpop.f32.mrb[17].mxu1 }
 0x432   : > { %v8636_v62 = vadd.f32 %v2933_v28, %v2780_v3  ;;  %v2935_v11 = vpop.f32.mrb[14].mxu0  ;;  %v2792_v55 = vpop.f32.mrb[18].mxu1 }
 0x433   : > { %v8638_v57 = vadd.f32 %v2935_v11, %v2782_v24  ;;  %v2937_v53 = vpop.f32.mrb[15].mxu0  ;;  %v2794_v34 = vpop.f32.mrb[19].mxu1  ;;  %3036 = vst [vmem:[#allocation2 + $0x60] sm:$0xff] (!%p5795_p9), %v8634_v43 }
 0x434   : > { %v8640_v58 = vadd.f32 %v2937_v53, %v2784_v19  ;;  %3037 = vst.msk [vmem:[#allocation2 + $0x68] sm:$0xff] (!%p5795_p9), %vm505_vm0, %v8636_v62 }
 0x435   : > { %3038 = vst [vmem:[#allocation2 + $0x70] sm:$0xff] (!%p5795_p9), %v8638_v57 }
 0x436   : > { %3039 = vst.msk [vmem:[#allocation2 + $0x78] sm:$0xff] (!%p5795_p9), %vm505_vm0, %v8640_v58 }
 0x438   : > { %v2941_v2 = vpop.f32.mrb[16].mxu0  ;;  %v2798_v44 = vpop.f32.mrb[20].mxu1 }
 0x439   : > { %v8642_v56 = vadd.f32 %v2941_v2, %v2788_v21  ;;  %v2943_v27 = vpop.f32.mrb[17].mxu0  ;;  %v2800_v35 = vpop.f32.mrb[21].mxu1 }
 0x43a   : > { %v8644_v5 = vadd.f32 %v2943_v27, %v2790_v48  ;;  %v2945_v50 = vpop.f32.mrb[18].mxu0  ;;  %v2802_v18 = vpop.f32.mrb[22].mxu1 }
 0x43b   : > { %v8646_v42 = vadd.f32 %v2945_v50, %v2792_v55  ;;  %v2947_v46 = vpop.f32.mrb[19].mxu0  ;;  %v2804_v33 = vpop.f32.mrb[23].mxu1  ;;  %3040 = vst [vmem:[#allocation2 + $0x80] sm:$0xff] (!%p5795_p9), %v8642_v56 }
 0x43c   : > { %v8648_v36 = vadd.f32 %v2947_v46, %v2794_v34  ;;  %3041 = vst.msk [vmem:[#allocation2 + $0x88] sm:$0xff] (!%p5795_p9), %vm505_vm0, %v8644_v5 }
 0x43d   : > { %3042 = vst [vmem:[#allocation2 + $0x90] sm:$0xff] (!%p5795_p9), %v8646_v42 }
 0x43e   : > { %3043 = vst.msk [vmem:[#allocation2 + $0x98] sm:$0xff] (!%p5795_p9), %vm505_vm0, %v8648_v36 }
 0x440   : > { %v2951_v49 = vpop.f32.mrb[20].mxu0  ;;  %v2808_v7 = vpop.f32.mrb[24].mxu1 }
 0x441   : > { %v8650_v60 = vadd.f32 %v2951_v49, %v2798_v44  ;;  %v2953_v25 = vpop.f32.mrb[21].mxu0  ;;  %v2810_v39 = vpop.f32.mrb[25].mxu1 }
 0x442   : > { %v8652_v10 = vadd.f32 %v2953_v25, %v2800_v35  ;;  %v2955_v32 = vpop.f32.mrb[22].mxu0  ;;  %v2812_v37 = vpop.f32.mrb[26].mxu1 }
 0x443   : > { %v8654_v59 = vadd.f32 %v2955_v32, %v2802_v18  ;;  %v2957_v40 = vpop.f32.mrb[23].mxu0  ;;  %v2814_v31 = vpop.f32.mrb[27].mxu1  ;;  %3044 = vst [vmem:[#allocation2 + $0xa0] sm:$0xff] (!%p5795_p9), %v8650_v60 }
 0x444   : > { %v8656_v0 = vadd.f32 %v2957_v40, %v2804_v33  ;;  %3045 = vst.msk [vmem:[#allocation2 + $0xa8] sm:$0xff] (!%p5795_p9), %vm505_vm0, %v8652_v10 }
 0x445   : > { %3046 = vst [vmem:[#allocation2 + $0xb0] sm:$0xff] (!%p5795_p9), %v8654_v59 }
 0x446   : > { %3047 = vst.msk [vmem:[#allocation2 + $0xb8] sm:$0xff] (!%p5795_p9), %vm505_vm0, %v8656_v0 }
 0x448   : > { %v2961_v9 = vpop.f32.mrb[24].mxu0  ;;  %v2818_v22 = vpop.f32.mrb[28].mxu1 }
 0x449   : > { %v8658_v30 = vadd.f32 %v2961_v9, %v2808_v7  ;;  %v2963_v20 = vpop.f32.mrb[25].mxu0  ;;  %v2820_v1 = vpop.f32.mrb[29].mxu1 }
 0x44a   : > { %v8660_v12 = vadd.f32 %v2963_v20, %v2810_v39  ;;  %v2965_v51 = vpop.f32.mrb[26].mxu0  ;;  %v2822_v14 = vpop.f32.mrb[30].mxu1 }
 0x44b   : > { %v8662_v26 = vadd.f32 %v2965_v51, %v2812_v37  ;;  %v2967_v15 = vpop.f32.mrb[27].mxu0  ;;  %v2824_v47 = vpop.f32.mrb[31].mxu1  ;;  %3048 = vst [vmem:[#allocation2 + $0xc0] sm:$0xff] (!%p5795_p9), %v8658_v30 }
 0x44c   : > { %v8664_v3 = vadd.f32 %v2967_v15, %v2814_v31  ;;  %3049 = vst.msk [vmem:[#allocation2 + $0xc8] sm:$0xff] (!%p5795_p9), %vm505_vm0, %v8660_v12 }
 0x44d   : > { %3050 = vst [vmem:[#allocation2 + $0xd0] sm:$0xff] (!%p5795_p9), %v8662_v26 }
 0x44e   : > { %3051 = vst.msk [vmem:[#allocation2 + $0xd8] sm:$0xff] (!%p5795_p9), %vm505_vm0, %v8664_v3 }
 0x450   : > { %v2971_v17 = vpop.f32.mrb[28].mxu0  ;;  %v2828_v24 = vpop.f32.mrb[32].mxu1 }
 0x451   : > { %v8666_v38 = vadd.f32 %v2971_v17, %v2818_v22  ;;  %v2973_v19 = vpop.f32.mrb[29].mxu0  ;;  %v2830_v16 = vpop.f32.mrb[33].mxu1 }
 0x452   : > { %v8668_v21 = vadd.f32 %v2973_v19, %v2820_v1  ;;  %v2975_v28 = vpop.f32.mrb[30].mxu0  ;;  %v2832_v48 = vpop.f32.mrb[34].mxu1 }
 0x453   : > { %v8670_v11 = vadd.f32 %v2975_v28, %v2822_v14  ;;  %v2977_v55 = vpop.f32.mrb[31].mxu0  ;;  %v2834_v53 = vpop.f32.mrb[35].mxu1  ;;  %3052 = vst [vmem:[#allocation2 + $0xe0] sm:$0xff] (!%p5795_p9), %v8666_v38 }
 0x454   : > { %v8672_v34 = vadd.f32 %v2977_v55, %v2824_v47  ;;  %3053 = vst.msk [vmem:[#allocation2 + $0xe8] sm:$0xff] (!%p5795_p9), %vm505_vm0, %v8668_v21 }
 0x455   : > { %3054 = vst [vmem:[#allocation2 + $0xf0] sm:$0xff] (!%p5795_p9), %v8670_v11 }
 0x456   : > { %3055 = vst.msk [vmem:[#allocation2 + $0xf8] sm:$0xff] (!%p5795_p9), %vm505_vm0, %v8672_v34 }
 0x458   : > { %v2981_v2 = vpop.f32.mrb[32].mxu0  ;;  %v2838_v44 = vpop.f32.mrb[36].mxu1 }
 0x459   : > { %v8674_v27 = vadd.f32 %v2981_v2, %v2828_v24  ;;  %v2983_v35 = vpop.f32.mrb[33].mxu0  ;;  %v2840_v50 = vpop.f32.mrb[37].mxu1 }
 0x45a   : > { %v8676_v18 = vadd.f32 %v2983_v35, %v2830_v16  ;;  %v2985_v46 = vpop.f32.mrb[34].mxu0  ;;  %v2842_v33 = vpop.f32.mrb[38].mxu1 }
 0x45b   : > { %v8678_v49 = vadd.f32 %v2985_v46, %v2832_v48  ;;  %v2987_v7 = vpop.f32.mrb[35].mxu0  ;;  %v2844_v25 = vpop.f32.mrb[39].mxu1  ;;  %3056 = vst [vmem:[#allocation2 + $0x100] sm:$0xff] (!%p5795_p9), %v8674_v27 }
 0x45c   : > { %v8680_v39 = vadd.f32 %v2987_v7, %v2834_v53  ;;  %3057 = vst.msk [vmem:[#allocation2 + $0x108] sm:$0xff] (!%p5795_p9), %vm505_vm0, %v8676_v18 }
 0x45d   : > { %3058 = vst [vmem:[#allocation2 + $0x110] sm:$0xff] (!%p5795_p9), %v8678_v49 }
 0x45e   : > { %3059 = vst.msk [vmem:[#allocation2 + $0x118] sm:$0xff] (!%p5795_p9), %vm505_vm0, %v8680_v39 }
 0x460   : > { %v2991_v32 = vpop.f32.mrb[36].mxu0  ;;  %v2848_v37 = vpop.f32.mrb[40].mxu1 }
 0x461   : > { %v8682_v40 = vadd.f32 %v2991_v32, %v2838_v44  ;;  %v2993_v31 = vpop.f32.mrb[37].mxu0  ;;  %v2850_v9 = vpop.f32.mrb[41].mxu1 }
 0x462   : > { %v8684_v22 = vadd.f32 %v2993_v31, %v2840_v50  ;;  %v2995_v20 = vpop.f32.mrb[38].mxu0  ;;  %v2852_v1 = vpop.f32.mrb[42].mxu1 }
 0x463   : > { %v8686_v51 = vadd.f32 %v2995_v20, %v2842_v33  ;;  %v2997_v14 = vpop.f32.mrb[39].mxu0  ;;  %v2854_v15 = vpop.f32.mrb[43].mxu1  ;;  %3060 = vst [vmem:[#allocation2 + $0x120] sm:$0xff] (!%p5795_p9), %v8682_v40 }
 0x464   : > { %v8688_v47 = vadd.f32 %v2997_v14, %v2844_v25  ;;  %3061 = vst.msk [vmem:[#allocation2 + $0x128] sm:$0xff] (!%p5795_p9), %vm505_vm0, %v8684_v22 }
 0x465   : > { %3062 = vst [vmem:[#allocation2 + $0x130] sm:$0xff] (!%p5795_p9), %v8686_v51 }
 0x466   : > { %3063 = vst.msk [vmem:[#allocation2 + $0x138] sm:$0xff] (!%p5795_p9), %vm505_vm0, %v8688_v47 }
 0x468   : > { %v3001_v17 = vpop.f32.mrb[40].mxu0  ;;  %v2858_v24 = vpop.f32.mrb[44].mxu1 }
 0x469   : > { %v8690_v19 = vadd.f32 %v3001_v17, %v2848_v37  ;;  %v3003_v16 = vpop.f32.mrb[41].mxu0  ;;  %v2860_v28 = vpop.f32.mrb[45].mxu1 }
 0x46a   : > { %v8692_v48 = vadd.f32 %v3003_v16, %v2850_v9  ;;  %v3005_v55 = vpop.f32.mrb[42].mxu0  ;;  %v2862_v53 = vpop.f32.mrb[46].mxu1 }
 0x46b   : > { %v8694_v2 = vadd.f32 %v3005_v55, %v2852_v1  ;;  %v3007_v44 = vpop.f32.mrb[43].mxu0  ;;  %v2864_v35 = vpop.f32.mrb[47].mxu1  ;;  %3064 = vst [vmem:[#allocation2 + $0x140] sm:$0xff] (!%p5795_p9), %v8690_v19 }
 0x46c   : > { %v8696_v50 = vadd.f32 %v3007_v44, %v2854_v15  ;;  %3065 = vst.msk [vmem:[#allocation2 + $0x148] sm:$0xff] (!%p5795_p9), %vm505_vm0, %v8692_v48 }
 0x46d   : > { %3066 = vst [vmem:[#allocation2 + $0x150] sm:$0xff] (!%p5795_p9), %v8694_v2 }
 0x46e   : > { %3023 = sbr.rel (%p5795_p9) target bundleno = 1143 (0x477), region = 74  ;;  %3067 = vst.msk [vmem:[#allocation2 + $0x158] sm:$0xff] (!%p5795_p9), %vm505_vm0, %v8696_v50 }
 0x470   : > { %v3011_v46 = vpop.f32.mrb[44].mxu0 }
 0x471   : > { %v8698_v33 = vadd.f32 %v3011_v46, %v2858_v24  ;;  %v3013_v7 = vpop.f32.mrb[45].mxu0 }
 0x472   : > { %v8700_v25 = vadd.f32 %v3013_v7, %v2860_v28  ;;  %v3015_v32 = vpop.f32.mrb[46].mxu0 }
 0x473   : > { %v8702_v37 = vadd.f32 %v3015_v32, %v2862_v53  ;;  %v3017_v31 = vpop.f32.mrb[47].mxu0  ;;  %3068 = vst [vmem:[#allocation2 + $0x160] sm:$0xff] (!%p5795_p9), %v8698_v33 }
 0x474   : > { %v8704_v9 = vadd.f32 %v3017_v31, %v2864_v35  ;;  %3069 = vst.msk [vmem:[#allocation2 + $0x168] sm:$0xff] (!%p5795_p9), %vm505_vm0, %v8700_v25 }
 0x475   : > { %3070 = vst [vmem:[#allocation2 + $0x170] sm:$0xff] %v8702_v37 }
 0x476   : > { %3071 = vst.msk [vmem:[#allocation2 + $0x178] sm:$0xff] %vm505_vm0, %v8704_v9 }
 0x477 PF: > { %p5796_p10 = scmp.le.s32.totalorder %s6553_s24, 0 }
 0x478   : > { %v3076_v20 = vld [vmem:[#allocation2] sm:$0xff] (!%p5796_p10)  ;;  %v3077_v1 = vld [vmem:[#allocation2 + $0x8] sm:$0xff] (!%p5796_p10)  ;;  %v3078_v14 = vld [vmem:[#allocation2 + $0x10] sm:$0xff] (!%p5796_p10) }
 0x479   : > { %3075 = sbr.rel (%p5796_p10) target bundleno = 1171 (0x493), region = 78  ;;  %v3124_v15 = vadd.f32 (!%p5796_p10), %v3076_v20, %v8610_v54  ;;  %v3125_v17 = vadd.f32 (!%p5796_p10), %v3077_v1, %v8612_v13  ;;  %v3126_v24 = vadd.f32 (!%p5796_p10), %v3078_v14, %v8614_v6  ;;  %v3079_v16 = vld [vmem:[#allocation2 + $0x18] sm:$0xff] (!%p5796_p10)  ;;  %v3080_v28 = vld [vmem:[#allocation2 + $0x20] sm:$0xff] (!%p5796_p10)  ;;  %v3081_v55 = vld [vmem:[#allocation2 + $0x28] sm:$0xff] (!%p5796_p10) }
 0x47a   : > { %v3127_v53 = vadd.f32 (!%p5796_p10), %v3079_v16, %v8616_v52  ;;  %v3128_v44 = vadd.f32 (!%p5796_p10), %v3080_v28, %v8618_v8  ;;  %v3129_v35 = vadd.f32 (!%p5796_p10), %v3081_v55, %v8620_v45  ;;  %v3082_v46 = vld [vmem:[#allocation2 + $0x30] sm:$0xff] (!%p5796_p10)  ;;  %v3083_v7 = vld [vmem:[#allocation2 + $0x38] sm:$0xff] (!%p5796_p10)  ;;  %v3084_v32 = vld [vmem:[#allocation2 + $0x40] sm:$0xff] (!%p5796_p10) }
 0x47b   : > { %3172 = vst [vmem:[#allocation2] sm:$0xff] (!%p5796_p10), %v3124_v15  ;;  %3173 = vst.msk [vmem:[#allocation2 + $0x8] sm:$0xff] (!%p5796_p10), %vm505_vm0, %v3125_v17  ;;  %v3130_v54 = vadd.f32 (!%p5796_p10), %v3082_v46, %v8622_v63  ;;  %v3131_v13 = vadd.f32 (!%p5796_p10), %v3083_v7, %v8624_v23  ;;  %v3132_v6 = vadd.f32 (!%p5796_p10), %v3084_v32, %v8626_v61  ;;  %v3085_v31 = vld [vmem:[#allocation2 + $0x48] sm:$0xff] (!%p5796_p10)  ;;  %v3086_v20 = vld [vmem:[#allocation2 + $0x50] sm:$0xff] (!%p5796_p10) }
 0x47c   : > { %3174 = vst [vmem:[#allocation2 + $0x10] sm:$0xff] (!%p5796_p10), %v3126_v24  ;;  %v3087_v52 = vld [vmem:[#allocation2 + $0x58] sm:$0xff] (!%p5796_p10)  ;;  %3175 = vst.msk [vmem:[#allocation2 + $0x18] sm:$0xff] (!%p5796_p10), %vm505_vm0, %v3127_v53  ;;  %v3133_v8 = vadd.f32 (!%p5796_p10), %v3085_v31, %v8628_v29  ;;  %v3134_v45 = vadd.f32 (!%p5796_p10), %v3086_v20, %v8630_v41  ;;  %v3088_v14 = vld [vmem:[#allocation2 + $0x60] sm:$0xff] (!%p5796_p10) }
 0x47d   : > { %3176 = vst [vmem:[#allocation2 + $0x20] sm:$0xff] (!%p5796_p10), %v3128_v44  ;;  %3177 = vst.msk [vmem:[#allocation2 + $0x28] sm:$0xff] (!%p5796_p10), %vm505_vm0, %v3129_v35  ;;  %v3135_v1 = vadd.f32 (!%p5796_p10), %v3087_v52, %v8632_v4  ;;  %v3089_v63 = vld [vmem:[#allocation2 + $0x68] sm:$0xff] (!%p5796_p10)  ;;  %v3090_v15 = vld [vmem:[#allocation2 + $0x70] sm:$0xff] (!%p5796_p10)  ;;  %v3136_v23 = vadd.f32 (!%p5796_p10), %v3088_v14, %v8634_v43 }
 0x47e   : > { %3178 = vst [vmem:[#allocation2 + $0x30] sm:$0xff] (!%p5796_p10), %v3130_v54  ;;  %3179 = vst.msk [vmem:[#allocation2 + $0x38] sm:$0xff] (!%p5796_p10), %vm505_vm0, %v3131_v13  ;;  %v3137_v61 = vadd.f32 (!%p5796_p10), %v3089_v63, %v8636_v62  ;;  %v3138_v17 = vadd.f32 (!%p5796_p10), %v3090_v15, %v8638_v57  ;;  %v3091_v24 = vld [vmem:[#allocation2 + $0x78] sm:$0xff] (!%p5796_p10)  ;;  %v3092_v16 = vld [vmem:[#allocation2 + $0x80] sm:$0xff] (!%p5796_p10) }
 0x47f   : > { %3180 = vst [vmem:[#allocation2 + $0x40] sm:$0xff] (!%p5796_p10), %v3132_v6  ;;  %v3093_v29 = vld [vmem:[#allocation2 + $0x88] sm:$0xff] (!%p5796_p10)  ;;  %3181 = vst.msk [vmem:[#allocation2 + $0x48] sm:$0xff] (!%p5796_p10), %vm505_vm0, %v3133_v8  ;;  %v3139_v41 = vadd.f32 (!%p5796_p10), %v3091_v24, %v8640_v58  ;;  %v3140_v4 = vadd.f32 (!%p5796_p10), %v3092_v16, %v8642_v56  ;;  %v3094_v55 = vld [vmem:[#allocation2 + $0x90] sm:$0xff] (!%p5796_p10) }
 0x480   : > { %3182 = vst [vmem:[#allocation2 + $0x50] sm:$0xff] %v3134_v45  ;;  %3183 = vst.msk [vmem:[#allocation2 + $0x58] sm:$0xff] %vm505_vm0, %v3135_v1  ;;  %v3141_v28 = vadd.f32 %v3093_v29, %v8644_v5  ;;  %v3095_v43 = vld [vmem:[#allocation2 + $0x98] sm:$0xff]  ;;  %v3096_v53 = vld [vmem:[#allocation2 + $0xa0] sm:$0xff]  ;;  %v3142_v62 = vadd.f32 %v3094_v55, %v8646_v42 }
 0x481   : > { %3184 = vst [vmem:[#allocation2 + $0x60] sm:$0xff] %v3136_v23  ;;  %3185 = vst.msk [vmem:[#allocation2 + $0x68] sm:$0xff] %vm505_vm0, %v3137_v61  ;;  %v3143_v57 = vadd.f32 %v3095_v43, %v8648_v36  ;;  %v3144_v44 = vadd.f32 %v3096_v53, %v8650_v60  ;;  %v3097_v35 = vld [vmem:[#allocation2 + $0xa8] sm:$0xff]  ;;  %v3098_v46 = vld [vmem:[#allocation2 + $0xb0] sm:$0xff] }
 0x482   : > { %3186 = vst [vmem:[#allocation2 + $0x70] sm:$0xff] %v3138_v17  ;;  %v3099_v58 = vld [vmem:[#allocation2 + $0xb8] sm:$0xff]  ;;  %3187 = vst.msk [vmem:[#allocation2 + $0x78] sm:$0xff] %vm505_vm0, %v3139_v41  ;;  %v3145_v56 = vadd.f32 %v3097_v35, %v8652_v10  ;;  %v3146_v5 = vadd.f32 %v3098_v46, %v8654_v59  ;;  %v3100_v32 = vld [vmem:[#allocation2 + $0xc0] sm:$0xff] }
 0x483   : > { %3188 = vst [vmem:[#allocation2 + $0x80] sm:$0xff] %v3140_v4  ;;  %3189 = vst.msk [vmem:[#allocation2 + $0x88] sm:$0xff] %vm505_vm0, %v3141_v28  ;;  %v3147_v7 = vadd.f32 %v3099_v58, %v8656_v0  ;;  %v3101_v42 = vld [vmem:[#allocation2 + $0xc8] sm:$0xff]  ;;  %v3102_v54 = vld [vmem:[#allocation2 + $0xd0] sm:$0xff]  ;;  %v3148_v36 = vadd.f32 %v3100_v32, %v8658_v30 }
 0x484   : > { %3190 = vst [vmem:[#allocation2 + $0x90] sm:$0xff] %v3142_v62  ;;  %3191 = vst.msk [vmem:[#allocation2 + $0x98] sm:$0xff] %vm505_vm0, %v3143_v57  ;;  %v3149_v60 = vadd.f32 %v3101_v42, %v8660_v12  ;;  %v3150_v13 = vadd.f32 %v3102_v54, %v8662_v26  ;;  %v3103_v6 = vld [vmem:[#allocation2 + $0xd8] sm:$0xff]  ;;  %v3104_v31 = vld [vmem:[#allocation2 + $0xe0] sm:$0xff] }
 0x485   : > { %3192 = vst [vmem:[#allocation2 + $0xa0] sm:$0xff] %v3144_v44  ;;  %v3105_v10 = vld [vmem:[#allocation2 + $0xe8] sm:$0xff]  ;;  %3193 = vst.msk [vmem:[#allocation2 + $0xa8] sm:$0xff] %vm505_vm0, %v3145_v56  ;;  %v3151_v59 = vadd.f32 %v3103_v6, %v8664_v3  ;;  %v3152_v0 = vadd.f32 %v3104_v31, %v8666_v38  ;;  %v3106_v52 = vld [vmem:[#allocation2 + $0xf0] sm:$0xff] }
 0x486   : > { %3194 = vst [vmem:[#allocation2 + $0xb0] sm:$0xff] %v3146_v5  ;;  %3195 = vst.msk [vmem:[#allocation2 + $0xb8] sm:$0xff] %vm505_vm0, %v3147_v7  ;;  %v3153_v20 = vadd.f32 %v3105_v10, %v8668_v21  ;;  %v3107_v30 = vld [vmem:[#allocation2 + $0xf8] sm:$0xff]  ;;  %v3108_v8 = vld [vmem:[#allocation2 + $0x100] sm:$0xff]  ;;  %v3154_v12 = vadd.f32 %v3106_v52, %v8670_v11 }
 0x487   : > { %3196 = vst [vmem:[#allocation2 + $0xc0] sm:$0xff] %v3148_v36  ;;  %3197 = vst.msk [vmem:[#allocation2 + $0xc8] sm:$0xff] %vm505_vm0, %v3149_v60  ;;  %v3155_v26 = vadd.f32 %v3107_v30, %v8672_v34  ;;  %v3156_v45 = vadd.f32 %v3108_v8, %v8674_v27  ;;  %v3109_v1 = vld [vmem:[#allocation2 + $0x108] sm:$0xff]  ;;  %v3110_v14 = vld [vmem:[#allocation2 + $0x110] sm:$0xff] }
 0x488   : > { %3198 = vst [vmem:[#allocation2 + $0xd0] sm:$0xff] %v3150_v13  ;;  %v3111_v3 = vld [vmem:[#allocation2 + $0x118] sm:$0xff]  ;;  %3199 = vst.msk [vmem:[#allocation2 + $0xd8] sm:$0xff] %vm505_vm0, %v3151_v59  ;;  %v3157_v38 = vadd.f32 %v3109_v1, %v8676_v18  ;;  %v3158_v21 = vadd.f32 %v3110_v14, %v8678_v49  ;;  %v3112_v15 = vld [vmem:[#allocation2 + $0x120] sm:$0xff] }
 0x489   : > { %3200 = vst [vmem:[#allocation2 + $0xe0] sm:$0xff] %v3152_v0  ;;  %3201 = vst.msk [vmem:[#allocation2 + $0xe8] sm:$0xff] %vm505_vm0, %v3153_v20  ;;  %v3159_v63 = vadd.f32 %v3111_v3, %v8680_v39  ;;  %v3113_v11 = vld [vmem:[#allocation2 + $0x128] sm:$0xff]  ;;  %v3114_v23 = vld [vmem:[#allocation2 + $0x130] sm:$0xff]  ;;  %v3160_v34 = vadd.f32 %v3112_v15, %v8682_v40 }
 0x48a   : > { %3202 = vst [vmem:[#allocation2 + $0xf0] sm:$0xff] %v3154_v12  ;;  %3203 = vst.msk [vmem:[#allocation2 + $0xf8] sm:$0xff] %vm505_vm0, %v3155_v26  ;;  %v3161_v27 = vadd.f32 %v3113_v11, %v8684_v22  ;;  %v3162_v61 = vadd.f32 %v3114_v23, %v8686_v51  ;;  %v3115_v17 = vld [vmem:[#allocation2 + $0x138] sm:$0xff]  ;;  %v3116_v24 = vld [vmem:[#allocation2 + $0x140] sm:$0xff] }
 0x48b   : > { %3204 = vst [vmem:[#allocation2 + $0x100] sm:$0xff] %v3156_v45  ;;  %v3117_v18 = vld [vmem:[#allocation2 + $0x148] sm:$0xff]  ;;  %3205 = vst.msk [vmem:[#allocation2 + $0x108] sm:$0xff] %vm505_vm0, %v3157_v38  ;;  %v3163_v49 = vadd.f32 %v3115_v17, %v8688_v47  ;;  %v3164_v39 = vadd.f32 %v3116_v24, %v8690_v19  ;;  %v3118_v29 = vld [vmem:[#allocation2 + $0x150] sm:$0xff] }
 0x48c   : > { %3206 = vst [vmem:[#allocation2 + $0x110] sm:$0xff] %v3158_v21  ;;  %3207 = vst.msk [vmem:[#allocation2 + $0x118] sm:$0xff] %vm505_vm0, %v3159_v63  ;;  %v3165_v16 = vadd.f32 %v3117_v18, %v8692_v48  ;;  %v3119_v40 = vld [vmem:[#allocation2 + $0x158] sm:$0xff]  ;;  %v3120_v41 = vld [vmem:[#allocation2 + $0x160] sm:$0xff]  ;;  %v3166_v22 = vadd.f32 %v3118_v29, %v8694_v2 }
 0x48d   : > { %3208 = vst [vmem:[#allocation2 + $0x120] sm:$0xff] %v3160_v34  ;;  %3209 = vst.msk [vmem:[#allocation2 + $0x128] sm:$0xff] %vm505_vm0, %v3161_v27  ;;  %v3167_v51 = vadd.f32 %v3119_v40, %v8696_v50  ;;  %v3168_v4 = vadd.f32 %v3120_v41, %v8698_v33  ;;  %v3121_v28 = vld [vmem:[#allocation2 + $0x168] sm:$0xff]  ;;  %v3122_v55 = vld [vmem:[#allocation2 + $0x170] sm:$0xff] }
 0x48e   : > { %3210 = vst [vmem:[#allocation2 + $0x130] sm:$0xff] %v3162_v61  ;;  %v3123_v47 = vld [vmem:[#allocation2 + $0x178] sm:$0xff]  ;;  %3211 = vst.msk [vmem:[#allocation2 + $0x138] sm:$0xff] %vm505_vm0, %v3163_v49  ;;  %v3169_v19 = vadd.f32 %v3121_v28, %v8700_v25  ;;  %v3170_v48 = vadd.f32 %v3122_v55, %v8702_v37 }
 0x48f   : > { %3212 = vst [vmem:[#allocation2 + $0x140] sm:$0xff] %v3164_v39  ;;  %3213 = vst.msk [vmem:[#allocation2 + $0x148] sm:$0xff] %vm505_vm0, %v3165_v16  ;;  %v3171_v43 = vadd.f32 %v3123_v47, %v8704_v9 }
 0x490   : > { %3214 = vst [vmem:[#allocation2 + $0x150] sm:$0xff] %v3166_v22  ;;  %3215 = vst.msk [vmem:[#allocation2 + $0x158] sm:$0xff] %vm505_vm0, %v3167_v51 }
 0x491   : > { %3216 = vst [vmem:[#allocation2 + $0x160] sm:$0xff] %v3168_v4  ;;  %3217 = vst.msk [vmem:[#allocation2 + $0x168] sm:$0xff] %vm505_vm0, %v3169_v19 }
 0x492   : > { %3218 = vst [vmem:[#allocation2 + $0x170] sm:$0xff] %v3170_v48  ;;  %3219 = vst.msk [vmem:[#allocation2 + $0x178] sm:$0xff] %vm505_vm0, %v3171_v43 }
 0x493 PF: > { %p5797_p11 = scmp.ne.s32.totalorder %s6553_s24, 3 }
 0x495   : > { %3223 = sbr.rel (%p5797_p11) target bundleno = 2228 (0x8b4), region = 82 }
 0x49c   : > { %v3224_v2 = vld [vmem:[#allocation2] sm:$0xff]  ;;  %v3225_v50 = vld [vmem:[#allocation2 + $0x8] sm:$0xff]  ;;  %v3226_v33 = vld [vmem:[#allocation2 + $0x10] sm:$0xff]  ;;  %s6493_s8 = smov 1   ;;  %vm4614_vm1 = vcmask 523264   ;;  %vm4280_vm2 = vcmask 1048096  }
 0x49d   : > { %v3272_v25 = vsel %vm505_vm0, %v3225_v50, 0.0  ;;  %v3368_v37 = vmul.f32 %v3224_v2, %v3224_v2  ;;  %v3369_v9 = vmul.f32 %v3225_v50, %v3225_v50  ;;  %v3227_v53 = vld [vmem:[#allocation2 + $0x18] sm:$0xff]  ;;  %v3370_v44 = vmul.f32 %v3226_v33, %v3226_v33  ;;  %v3229_v46 = vld [vmem:[#allocation2 + $0x28] sm:$0xff]  ;;  %v3228_v42 = vld [vmem:[#allocation2 + $0x20] sm:$0xff]  ;;  %s6495_s23 = smov 15   ;;  %s6496_s26 = smov 127  }
 0x49e   : > { %v3273_v62 = vadd.f32 %v3272_v25, %v3224_v2  ;;  %v3276_v57 = vsel %vm505_vm0, %v3227_v53, 0.0  ;;  %v3371_v35 = vmul.f32 %v3227_v53, %v3227_v53  ;;  %v3231_v32 = vld [vmem:[#allocation2 + $0x38] sm:$0xff]  ;;  %v3280_v54 = vsel %vm505_vm0, %v3229_v46, 0.0  ;;  %v3230_v13 = vld [vmem:[#allocation2 + $0x30] sm:$0xff]  ;;  %v3233_v30 = vld [vmem:[#allocation2 + $0x48] sm:$0xff]  ;;  %s6497_s27 = smov 14  }
 0x49f   : > { %v3416_v58 = vsel %vm505_vm0, %v3369_v9, 0.0  ;;  %v3277_v5 = vadd.f32 %v3276_v57, %v3226_v33  ;;  %v3373_v36 = vmul.f32 %v3229_v46, %v3229_v46  ;;  %v3284_v6 = vsel %vm505_vm0, %v3231_v32, 0.0  ;;  %v3235_v26 = vld [vmem:[#allocation2 + $0x58] sm:$0xff]  ;;  %v3232_v45 = vld [vmem:[#allocation2 + $0x40] sm:$0xff]  ;;  %v3234_v38 = vld [vmem:[#allocation2 + $0x50] sm:$0xff]  ;;  %s6498_s29 = smov 115  }
 0x4a0   : > { %3274 = vadd.xlane.f32.xlu0 %v3273_v62  ;;  %v3417_v56 = vadd.f32 %v3416_v58, %v3368_v37  ;;  %v3420_v7 = vsel %vm505_vm0, %v3371_v35, 0.0  ;;  %v3375_v31 = vmul.f32 %v3231_v32, %v3231_v32  ;;  %v3281_v10 = vadd.f32 %v3280_v54, %v3228_v42  ;;  %v3237_v23 = vld [vmem:[#allocation2 + $0x68] sm:$0xff]  ;;  %v3239_v17 = vld [vmem:[#allocation2 + $0x78] sm:$0xff]  ;;  %v3236_v18 = vld [vmem:[#allocation2 + $0x60] sm:$0xff]  ;;  %s6499_s21 = smov 13   ;;  %s6500_s24 = smov 114  }
 0x4a1   : > { %v3421_v60 = vadd.f32 %v3420_v7, %v3370_v44  ;;  %v3372_v59 = vmul.f32 %v3228_v42, %v3228_v42  ;;  %v3424_v0 = vsel %vm505_vm0, %v3373_v36, 0.0  ;;  %v3285_v20 = vadd.f32 %v3284_v6, %v3230_v13  ;;  %v3238_v16 = vld [vmem:[#allocation2 + $0x70] sm:$0xff]  ;;  %v3241_v28 = vld [vmem:[#allocation2 + $0x88] sm:$0xff]  ;;  %v3243_v48 = vld [vmem:[#allocation2 + $0x98] sm:$0xff]  ;;  %s6501_s9 = smov 113  }
 0x4a2   : > { %3418 = vadd.xlane.f32.xlu1 %v3417_v56  ;;  %v3374_v52 = vmul.f32 %v3230_v13, %v3230_v13  ;;  %v3428_v8 = vsel %vm505_vm0, %v3375_v31, 0.0  ;;  %v3288_v1 = vsel %vm505_vm0, %v3233_v30, 0.0  ;;  %v3377_v14 = vmul.f32 %v3233_v30, %v3233_v30  ;;  %v3240_v2 = vld [vmem:[#allocation2 + $0x80] sm:$0xff]  ;;  %v3242_v25 = vld [vmem:[#allocation2 + $0x90] sm:$0xff]  ;;  %v3245_v56 = vld [vmem:[#allocation2 + $0xa8] sm:$0xff] }
 0x4a3   : > { %v3425_v12 = vadd.f32 %v3424_v0, %v3372_v59  ;;  %v3292_v21 = vsel %vm505_vm0, %v3235_v26, 0.0  ;;  %v3379_v63 = vmul.f32 %v3235_v26, %v3235_v26  ;;  %v3289_v15 = vadd.f32 %v3288_v1, %v3232_v45  ;;  %v3247_v32 = vld [vmem:[#allocation2 + $0xb8] sm:$0xff]  ;;  %v3244_v42 = vld [vmem:[#allocation2 + $0xa0] sm:$0xff]  ;;  %v3246_v6 = vld [vmem:[#allocation2 + $0xb0] sm:$0xff] }
 0x4a4   : > { %3278 = vadd.xlane.f32.xlu0 %v3277_v5  ;;  %v3429_v3 = vadd.f32 %v3428_v8, %v3374_v52  ;;  %v3376_v11 = vmul.f32 %v3232_v45, %v3232_v45  ;;  %v3432_v34 = vsel %vm505_vm0, %v3377_v14, 0.0  ;;  %v3293_v27 = vadd.f32 %v3292_v21, %v3234_v38  ;;  %v3249_v8 = vld [vmem:[#allocation2 + $0xc8] sm:$0xff]  ;;  %v3251_v45 = vld [vmem:[#allocation2 + $0xd8] sm:$0xff]  ;;  %v3248_v1 = vld [vmem:[#allocation2 + $0xc0] sm:$0xff] }
 0x4a5   : > { %v3378_v61 = vmul.f32 %v3234_v38, %v3234_v38  ;;  %v3436_v24 = vsel %vm505_vm0, %v3379_v63, 0.0  ;;  %v3296_v39 = vsel %vm505_vm0, %v3237_v23, 0.0  ;;  %v3381_v29 = vmul.f32 %v3237_v23, %v3237_v23  ;;  %v3250_v21 = vld [vmem:[#allocation2 + $0xd0] sm:$0xff] }
 0x4a6   : > { %3422 = vadd.xlane.f32.xlu1 %v3421_v60  ;;  %v3433_v49 = vadd.f32 %v3432_v34, %v3376_v11  ;;  %v3300_v41 = vsel %vm505_vm0, %v3239_v17, 0.0  ;;  %v3383_v22 = vmul.f32 %v3239_v17, %v3239_v17  ;;  %v3297_v51 = vadd.f32 %v3296_v39, %v3236_v18  ;;  %v3253_v17 = vld [vmem:[#allocation2 + $0xe8] sm:$0xff]  ;;  %v3252_v39 = vld [vmem:[#allocation2 + $0xe0] sm:$0xff] }
 0x4a7   : > { %v3437_v40 = vadd.f32 %v3436_v24, %v3378_v61  ;;  %v3380_v4 = vmul.f32 %v3236_v18, %v3236_v18  ;;  %v3440_v55 = vsel %vm505_vm0, %v3381_v29, 0.0  ;;  %v3301_v47 = vadd.f32 %v3300_v41, %v3238_v16  ;;  %v3254_v41 = vld [vmem:[#allocation2 + $0xf0] sm:$0xff] }
 0x4a8   : > { %3282 = vadd.xlane.f32.xlu0 %v3281_v10  ;;  %v3382_v19 = vmul.f32 %v3238_v16, %v3238_v16  ;;  %v3444_v43 = vsel %vm505_vm0, %v3383_v22, 0.0  ;;  %v3304_v33 = vsel %vm505_vm0, %v3241_v28, 0.0  ;;  %v3385_v37 = vmul.f32 %v3241_v28, %v3241_v28 }
 0x4a9   : > { %v3441_v50 = vadd.f32 %v3440_v55, %v3380_v4  ;;  %v3308_v53 = vsel %vm505_vm0, %v3243_v48, 0.0  ;;  %v3387_v62 = vmul.f32 %v3243_v48, %v3243_v48  ;;  %v3305_v57 = vadd.f32 %v3304_v33, %v3240_v2  ;;  %v3257_v48 = vld [vmem:[#allocation2 + $0x108] sm:$0xff]  ;;  %v3256_v33 = vld [vmem:[#allocation2 + $0x100] sm:$0xff] }
 0x4aa   : > { %3286 = vadd.xlane.f32.xlu1 %v3285_v20  ;;  %v3445_v9 = vadd.f32 %v3444_v43, %v3382_v19  ;;  %v3384_v44 = vmul.f32 %v3240_v2, %v3240_v2  ;;  %v3448_v35 = vsel %vm505_vm0, %v3385_v37, 0.0  ;;  %v3309_v46 = vadd.f32 %v3308_v53, %v3242_v25  ;;  %v3258_v53 = vld [vmem:[#allocation2 + $0x110] sm:$0xff] }
 0x4ab   : > { %v3386_v58 = vmul.f32 %v3242_v25, %v3242_v25  ;;  %v3452_v5 = vsel %vm505_vm0, %v3387_v62, 0.0  ;;  %v3312_v54 = vsel %vm505_vm0, %v3245_v56, 0.0  ;;  %v3389_v36 = vmul.f32 %v3245_v56, %v3245_v56 }
 0x4ac   : > { %3426 = vadd.xlane.f32.xlu0 %v3425_v12  ;;  %v3449_v7 = vadd.f32 %v3448_v35, %v3384_v44  ;;  %v6492_v13 = vmov 0   ;;  %v3316_v31 = vsel %vm505_vm0, %v3247_v32, 0.0  ;;  %v3391_v10 = vmul.f32 %v3247_v32, %v3247_v32 }
 0x4ad   : > { %v3453_v60 = vadd.f32 %v3452_v5, %v3386_v58  ;;  %6284 = vset.pattern.permute.xlu0 %v6492_v13  ;;  %6285 = vset.pattern.permute.xlu1 %v6492_v13  ;;  %v3313_v59 = vadd.f32 %v3312_v54, %v3244_v42  ;;  %v3388_v0 = vmul.f32 %v3244_v42, %v3244_v42  ;;  %v3456_v20 = vsel %vm505_vm0, %v3389_v36, 0.0  ;;  %v3261_v5 = vld [vmem:[#allocation2 + $0x128] sm:$0xff]  ;;  %v3263_v42 = vld [vmem:[#allocation2 + $0x138] sm:$0xff]  ;;  %v3260_v54 = vld [vmem:[#allocation2 + $0x120] sm:$0xff] }
 0x4ae   : > { %3430 = vadd.xlane.f32.xlu1 %v3429_v3  ;;  %v3317_v52 = vadd.f32 %v3316_v31, %v3246_v6  ;;  %v3390_v30 = vmul.f32 %v3246_v6, %v3246_v6  ;;  %v3460_v12 = vsel %vm505_vm0, %v3391_v10, 0.0  ;;  %v3320_v14 = vsel %vm505_vm0, %v3249_v8, 0.0  ;;  %v3262_v31 = vld [vmem:[#allocation2 + $0x130] sm:$0xff] }
 0x4af   : > { %v3457_v26 = vadd.f32 %v3456_v20, %v3388_v0  ;;  %v3393_v3 = vmul.f32 %v3249_v8, %v3249_v8  ;;  %v3324_v63 = vsel %vm505_vm0, %v3251_v45, 0.0  ;;  %v3321_v11 = vadd.f32 %v3320_v14, %v3248_v1  ;;  %v3264_v14 = vld [vmem:[#allocation2 + $0x140] sm:$0xff] }
 0x4b0   : > { %3290 = vadd.xlane.f32.xlu0 %v3289_v15  ;;  %v3461_v38 = vadd.f32 %v3460_v12, %v3390_v30  ;;  %v3395_v15 = vmul.f32 %v3251_v45, %v3251_v45  ;;  %v3392_v23 = vmul.f32 %v3248_v1, %v3248_v1  ;;  %v3394_v61 = vmul.f32 %v3250_v21, %v3250_v21  ;;  %v3265_v12 = vld [vmem:[#allocation2 + $0x148] sm:$0xff]  ;;  %v3267_v1 = vld [vmem:[#allocation2 + $0x158] sm:$0xff] }
 0x4b1   : > { %v3464_v34 = vsel %vm505_vm0, %v3393_v3, 0.0  ;;  %v3328_v16 = vsel %vm505_vm0, %v3253_v17, 0.0  ;;  %v3397_v29 = vmul.f32 %v3253_v17, %v3253_v17  ;;  %v3396_v28 = vmul.f32 %v3252_v39, %v3252_v39 }
 0x4b2   : > { %3294 = vadd.xlane.f32.xlu1 %v3293_v27  ;;  %v3325_v27 = vadd.f32 %v3324_v63, %v3250_v21  ;;  %v3468_v24 = vsel %vm505_vm0, %v3395_v15, 0.0  ;;  %v3465_v18 = vadd.f32 %v3464_v34, %v3392_v23  ;;  %v3329_v4 = vadd.f32 %v3328_v16, %v3252_v39  ;;  %v3266_v63 = vld [vmem:[#allocation2 + $0x150] sm:$0xff]  ;;  %v3271_v39 = vld [vmem:[#allocation2 + $0x178] sm:$0xff]  ;;  %v3268_v16 = vld [vmem:[#allocation2 + $0x160] sm:$0xff] }
 0x4b3   : > { %v3472_v55 = vsel %vm505_vm0, %v3397_v29, 0.0  ;;  %v3398_v19 = vmul.f32 %v3254_v41, %v3254_v41  ;;  %v3336_v25 = vsel %vm505_vm0, %v3257_v48, 0.0  ;;  %v3401_v37 = vmul.f32 %v3257_v48, %v3257_v48 }
 0x4b4   : > { %3434 = vadd.xlane.f32.xlu0 %v3433_v49  ;;  %v3255_v49 = vld [vmem:[#allocation2 + $0xf8] sm:$0xff]  ;;  %v3473_v2 = vadd.f32 %v3472_v55, %v3396_v28  ;;  %v3337_v44 = vadd.f32 %v3336_v25, %v3256_v33  ;;  %v3400_v35 = vmul.f32 %v3256_v33, %v3256_v33  ;;  %v3402_v56 = vmul.f32 %v3258_v53, %v3258_v53 }
 0x4b5   : > { %v3332_v22 = vsel %vm505_vm0, %v3255_v49, 0.0  ;;  %v3344_v36 = vsel %vm505_vm0, %v3261_v5, 0.0  ;;  %v3348_v10 = vsel %vm505_vm0, %v3263_v42, 0.0  ;;  %v3404_v20 = vmul.f32 %v3260_v54, %v3260_v54 }
 0x4b6   : > { %3438 = vadd.xlane.f32.xlu1 %v3437_v40  ;;  %v3469_v40 = vadd.f32 %v3468_v24, %v3394_v61  ;;  %v3345_v0 = vadd.f32 %v3344_v36, %v3260_v54  ;;  %v3349_v30 = vadd.f32 %v3348_v10, %v3262_v31  ;;  %v3406_v8 = vmul.f32 %v3262_v31, %v3262_v31  ;;  %v3269_v24 = vld [vmem:[#allocation2 + $0x168] sm:$0xff] }
 0x4b7   : > { %v3352_v3 = vsel %vm505_vm0, %v3265_v12, 0.0  ;;  %v3356_v15 = vsel %vm505_vm0, %v3267_v1, 0.0  ;;  %v3408_v34 = vmul.f32 %v3264_v14, %v3264_v14  ;;  %v3410_v17 = vmul.f32 %v3266_v63, %v3266_v63 }
 0x4b8   : > { %3298 = vadd.xlane.f32.xlu0 %v3297_v51  ;;  %v3399_v51 = vmul.f32 %v3255_v49, %v3255_v49  ;;  %v3353_v23 = vadd.f32 %v3352_v3, %v3264_v14  ;;  %v3357_v61 = vadd.f32 %v3356_v15, %v3266_v63  ;;  %v3360_v29 = vsel %vm505_vm0, %v3269_v24, 0.0 }
 0x4b9   : > { %v3361_v28 = vadd.f32 %v3360_v29, %v3268_v16  ;;  %v3412_v55 = vmul.f32 %v3268_v16, %v3268_v16 }
 0x4ba   : > { %3302 = vadd.xlane.f32.xlu1 %v3301_v47  ;;  %v3333_v47 = vadd.f32 %v3332_v22, %v3254_v41  ;;  %v3476_v43 = vsel %vm505_vm0, %v3399_v51, 0.0  ;;  %v3270_v22 = vld [vmem:[#allocation2 + $0x170] sm:$0xff]  ;;  %v3364_v51 = vsel %vm505_vm0, %v3271_v39, 0.0 }
 0x4bb   : > { %v3414_v48 = vmul.f32 %v3270_v22, %v3270_v22 }
 0x4bc   : > { %3442 = vadd.xlane.f32.xlu0 %v3441_v50  ;;  %v3259_v50 = vld [vmem:[#allocation2 + $0x118] sm:$0xff] }
 0x4bd   : > { %v3340_v62 = vsel %vm505_vm0, %v3259_v50, 0.0 }
 0x4be   : > { %3446 = vadd.xlane.f32.xlu1 %v3445_v9  ;;  %v3477_v9 = vadd.f32 %v3476_v43, %v3398_v19  ;;  %v3341_v58 = vadd.f32 %v3340_v62, %v3258_v53  ;;  %v3365_v19 = vadd.f32 %v3364_v51, %v3270_v22  ;;  %v8945_v51 = vld [vmem:[%s10626_s3 + $0x10] sm:$0xff] }
 0x4c0   : > { %3306 = vadd.xlane.f32.xlu0 %v3305_v57  ;;  %v3403_v57 = vmul.f32 %v3259_v50, %v3259_v50 }
 0x4c2   : > { %3310 = vadd.xlane.f32.xlu1 %v3309_v46  ;;  %v3480_v46 = vsel %vm505_vm0, %v3401_v37, 0.0 }
 0x4c3   : > { %v3481_v32 = vadd.f32 %v3480_v46, %v3400_v35 }
 0x4c4   : > { %3450 = vadd.xlane.f32.xlu0 %v3449_v7  ;;  %v3484_v7 = vsel %vm505_vm0, %v3403_v57, 0.0 }
 0x4c5   : > { %v3485_v6 = vadd.f32 %v3484_v7, %v3402_v56 }
 0x4c6   : > { %3454 = vadd.xlane.f32.xlu1 %v3453_v60  ;;  %v3405_v60 = vmul.f32 %v3261_v5, %v3261_v5 }
 0x4c8   : > { %3314 = vadd.xlane.f32.xlu0 %v3313_v59  ;;  %v3407_v59 = vmul.f32 %v3263_v42, %v3263_v42 }
 0x4ca   : > { %3318 = vadd.xlane.f32.xlu1 %v3317_v52  ;;  %v3488_v52 = vsel %vm505_vm0, %v3405_v60, 0.0 }
 0x4cb   : > { %v3489_v45 = vadd.f32 %v3488_v52, %v3404_v20 }
 0x4cc   : > { %3458 = vadd.xlane.f32.xlu0 %v3457_v26  ;;  %v3492_v26 = vsel %vm505_vm0, %v3407_v59, 0.0 }
 0x4cd   : > { %v3493_v21 = vadd.f32 %v3492_v26, %v3406_v8  ;;  %v8920_v26 = vld [vmem:[%s10626_s3] sm:$0xff] }
 0x4ce   : > { %3462 = vadd.xlane.f32.xlu1 %v3461_v38  ;;  %v3409_v38 = vmul.f32 %v3265_v12, %v3265_v12 }
 0x4d0   : > { %3322 = vadd.xlane.f32.xlu0 %v3321_v11  ;;  %v3411_v11 = vmul.f32 %v3267_v1, %v3267_v1 }
 0x4d2   : > { %3326 = vadd.xlane.f32.xlu1 %v3325_v27  ;;  %v3496_v27 = vsel %vm505_vm0, %v3409_v38, 0.0 }
 0x4d3   : > { %v3497_v49 = vadd.f32 %v3496_v27, %v3408_v34 }
 0x4d4   : > { %3466 = vadd.xlane.f32.xlu0 %v3465_v18  ;;  %v3500_v18 = vsel %vm505_vm0, %v3411_v11, 0.0  ;;  %v8930_v11 = vld [vmem:[%s10626_s3 + $0x8] sm:$0xff] }
 0x4d5   : > { %v3501_v41 = vadd.f32 %v3500_v18, %v3410_v17 }
 0x4d6   : > { %3470 = vadd.xlane.f32.xlu1 %v3469_v40  ;;  %v3413_v40 = vmul.f32 %v3269_v24, %v3269_v24 }
 0x4d8   : > { %3330 = vadd.xlane.f32.xlu0 %v3329_v4  ;;  %v3415_v4 = vmul.f32 %v3271_v39, %v3271_v39 }
 0x4da   : > { %3334 = vadd.xlane.f32.xlu1 %v3333_v47  ;;  %v3504_v47 = vsel %vm505_vm0, %v3413_v40, 0.0  ;;  %v3508_v43 = vsel %vm505_vm0, %v3415_v4, 0.0 }
 0x4db   : > { %v3509_v50 = vadd.f32 %v3508_v43, %v3414_v48 }
 0x4dc   : > { %3474 = vadd.xlane.f32.xlu0 %v3473_v2  ;;  %v3505_v2 = vadd.f32 %v3504_v47, %v3412_v55 }
 0x4de   : > { %3478 = vadd.xlane.f32.xlu1 %v3477_v9 }
 0x4e0   : > { %3338 = vadd.xlane.f32.xlu0 %v3337_v44 }
 0x4e2   : > { %3342 = vadd.xlane.f32.xlu1 %v3341_v58 }
 0x4e4   : > { %3482 = vadd.xlane.f32.xlu0 %v3481_v32 }
 0x4e6   : > { %3486 = vadd.xlane.f32.xlu1 %v3485_v6 }
 0x4e8   : > { %3346 = vadd.xlane.f32.xlu0 %v3345_v0 }
 0x4ea   : > { %3350 = vadd.xlane.f32.xlu1 %v3349_v30 }
 0x4ec   : > { %3490 = vadd.xlane.f32.xlu0 %v3489_v45 }
 0x4ee   : > { %3494 = vadd.xlane.f32.xlu1 %v3493_v21 }
 0x4f0   : > { %3354 = vadd.xlane.f32.xlu0 %v3353_v23 }
 0x4f2   : > { %3358 = vadd.xlane.f32.xlu1 %v3357_v61 }
 0x4f4   : > { %3498 = vadd.xlane.f32.xlu0 %v3497_v49 }
 0x4f6   : > { %3502 = vadd.xlane.f32.xlu1 %v3501_v41 }
 0x4f8   : > { %3362 = vadd.xlane.f32.xlu0 %v3361_v28 }
 0x4fa   : > { %3366 = vadd.xlane.f32.xlu1 %v3365_v19 }
 0x4fc   : > { %3506 = vadd.xlane.f32.xlu0 %v3505_v2 }
 0x4fe   : > { %3510 = vadd.xlane.f32.xlu1 %v3509_v50 }
 0x52d   : > { %v3275_v33 = vpop.xlane.xlu0 %3274 }
 0x52e   : > { %v3512_v25 = vmul.f32 0.0051020407, %v3275_v33 }
 0x52f   : > { %v3419_v37 = vpop.xlane.xlu1 %3418 }
 0x530   : > { %v3560_v9 = vmul.f32 %v3512_v25, %v3512_v25  ;;  %v3536_v53 = vmul.f32 0.0051020407, %v3419_v37 }
 0x531   : > { %v3279_v62 = vpop.xlane.xlu0 %3278 }
 0x532   : > { %v3584_v57 = vsub.f32 %v3536_v53, %v3560_v9  ;;  %v8903_v44 = vmul.f32 0.0051020407, %v3279_v62 }
 0x533   : > { %v3423_v35 = vpop.xlane.xlu1 %3422 }
 0x534   : > { %v3632_v46 = vadd.f32 1e-05, %v3584_v57  ;;  %v3561_v58 = vmul.f32 %v8903_v44, %v8903_v44  ;;  %v3537_v56 = vmul.f32 0.0051020407, %v3423_v35 }
 0x535   : > { %v3283_v5 = vpop.xlane.xlu0 %3282 }
 0x536   : > { %6369 = vrsqrt.f32 %v3632_v46  ;;  %v3585_v7 = vsub.f32 %v3537_v56, %v3561_v58  ;;  %v8907_v32 = vmul.f32 0.0051020407, %v3283_v5  ;;  %v8965_v5 = vld [vmem:[%s10626_s3 + $0x20] sm:$0xff] }
 0x537   : > { %v3287_v42 = vpop.xlane.xlu1 %3286 }
 0x538   : > { %v3633_v54 = vadd.f32 1e-05, %v3585_v7  ;;  %v3562_v36 = vmul.f32 %v8907_v32, %v8907_v32  ;;  %v8911_v60 = vmul.f32 0.0051020407, %v3287_v42 }
 0x539   : > { %v3427_v6 = vpop.xlane.xlu0 %3426 }
 0x53a   : > { %6371 = vrsqrt.f32 %v3633_v54  ;;  %v3538_v31 = vmul.f32 0.0051020407, %v3427_v6  ;;  %v3563_v59 = vmul.f32 %v8911_v60, %v8911_v60 }
 0x53b   : > { %v3431_v10 = vpop.xlane.xlu1 %3430 }
 0x53c   : > { %v3586_v0 = vsub.f32 %v3538_v31, %v3562_v36  ;;  %v3539_v20 = vmul.f32 0.0051020407, %v3431_v10 }
 0x53d   : > { %v3291_v52 = vpop.xlane.xlu0 %3290 }
 0x53e   : > { %v3634_v30 = vadd.f32 1e-05, %v3586_v0  ;;  %v3587_v8 = vsub.f32 %v3539_v20, %v3563_v59  ;;  %v8915_v12 = vmul.f32 0.0051020407, %v3291_v52 }
 0x53f   : > { %v3295_v45 = vpop.xlane.xlu1 %3294 }
 0x540   : > { %v6370_v1 = vpop.eup %6369  ;;  %6373 = vrsqrt.f32 %v3634_v30  ;;  %v3635_v14 = vadd.f32 1e-05, %v3587_v8  ;;  %v3564_v3 = vmul.f32 %v8915_v12, %v8915_v12  ;;  %v8924_v38 = vmul.f32 0.0051020407, %v3295_v45 }
 0x541   : > { %v3435_v21 = vpop.xlane.xlu0 %3434  ;;  %v3680_v63 = vmul.f32 %v6370_v1, %v8920_v26 }
 0x542   : > { %6375 = vrsqrt.f32 %v3635_v14  ;;  %v3540_v15 = vmul.f32 0.0051020407, %v3435_v21  ;;  %v3565_v27 = vmul.f32 %v8924_v38, %v8924_v38 }
 0x543   : > { %v3439_v23 = vpop.xlane.xlu1 %3438  ;;  %3850 = vperm.xlu0 %6284, %v3680_v63   ;;  %v3704_v18 = vmul.f32 %v3680_v63, %v3512_v25  ;;  %v8953_v25 = vld [vmem:[%s10626_s3 + $0x18] sm:$0xff] }
 0x544   : > { %v6372_v34 = vpop.eup %6371  ;;  %v3588_v61 = vsub.f32 %v3540_v15, %v3564_v3  ;;  %v3541_v17 = vmul.f32 0.0051020407, %v3439_v23  ;;  %v8992_v15 = vld [vmem:[%s10626_s3 + $0x28] sm:$0xff] }
 0x545   : > { %v3299_v24 = vpop.xlane.xlu0 %3298  ;;  %v3681_v49 = vmul.f32 %v6372_v34, %v8930_v11 }
 0x546   : > { %v3636_v39 = vadd.f32 1e-05, %v3588_v61  ;;  %v3589_v16 = vsub.f32 %v3541_v17, %v3565_v27  ;;  %v8935_v29 = vmul.f32 0.0051020407, %v3299_v24 }
 0x547   : > { %v3303_v40 = vpop.xlane.xlu1 %3302  ;;  %3752 = vrot.lane.b32.xlu0 %v3704_v18, %s6493_s8  ;;  %3855 = vperm.xlu1 %6285, %v3681_v49   ;;  %v3705_v6 = vmul.f32 %v3681_v49, %v8903_v44 }
 0x548   : > { %6377 = vrsqrt.f32 %v3636_v39  ;;  %v3566_v41 = vmul.f32 %v8935_v29, %v8935_v29  ;;  %v8940_v22 = vmul.f32 0.0051020407, %v3303_v40  ;;  %v3637_v55 = vadd.f32 1e-05, %v3589_v16  ;;  %v9007_v40 = vld [vmem:[%s10626_s3 + $0x38] sm:$0xff] }
 0x549   : > { %v3443_v4 = vpop.xlane.xlu0 %3442 }
 0x54a   : > { %v6374_v28 = vpop.eup %6373  ;;  %v3542_v47 = vmul.f32 0.0051020407, %v3443_v4  ;;  %v3567_v2 = vmul.f32 %v8940_v22, %v8940_v22  ;;  %6379 = vrsqrt.f32 %v3637_v55 }
 0x54b   : > { %v3447_v19 = vpop.xlane.xlu1 %3446  ;;  %v3682_v48 = vmul.f32 %v6374_v28, %v8945_v51 }
 0x54c   : > { %v6376_v43 = vpop.eup %6375  ;;  %v3590_v50 = vsub.f32 %v3542_v47, %v3566_v41  ;;  %v3543_v33 = vmul.f32 0.0051020407, %v3447_v19 }
 0x54d   : > { %3860 = vperm.xlu1 %6285, %v3682_v48   ;;  %v3307_v37 = vpop.xlane.xlu0 %3306  ;;  %v3683_v35 = vmul.f32 %v6376_v43, %v8953_v25  ;;  %v3706_v44 = vmul.f32 %v3682_v48, %v8907_v32 }
 0x54e   : > { %v3638_v9 = vadd.f32 1e-05, %v3590_v50  ;;  %v3591_v53 = vsub.f32 %v3543_v33, %v3567_v2  ;;  %v8955_v62 = vmul.f32 0.0051020407, %v3307_v37 }
 0x54f   : > { %v3311_v57 = vpop.xlane.xlu1 %3310  ;;  %v3707_v61 = vmul.f32 %v3683_v35, %v8911_v60 }
 0x550   : > { %6381 = vrsqrt.f32 %v3638_v9  ;;  %v3639_v46 = vadd.f32 1e-05, %v3591_v53  ;;  %v3568_v58 = vmul.f32 %v8955_v62, %v8955_v62  ;;  %v8960_v56 = vmul.f32 0.0051020407, %v3311_v57  ;;  %v9033_v9 = vld [vmem:[%s10626_s3 + $0x48] sm:$0xff] }
 0x551   : > { %3865 = vperm.xlu1 %6285, %v3683_v35   ;;  %v3451_v7 = vpop.xlane.xlu0 %3450 }
 0x552   : > { %v6378_v42 = vpop.eup %6377  ;;  %6383 = vrsqrt.f32 %v3639_v46  ;;  %v3544_v54 = vmul.f32 0.0051020407, %v3451_v7  ;;  %v3569_v10 = vmul.f32 %v8960_v56, %v8960_v56 }
 0x553   : > { %v3455_v36 = vpop.xlane.xlu1 %3454  ;;  %v8969_v31 = vmul.f32 %v6378_v42, %v8965_v5 }
 0x554   : > { %v3592_v59 = vsub.f32 %v3544_v54, %v3568_v58  ;;  %v3545_v0 = vmul.f32 0.0051020407, %v3455_v36  ;;  %v6380_v14 = vpop.eup %6379 }
 0x555   : > { %3754 = vrot.lane.b32.xlu1 %v3705_v6, %s6493_s8  ;;  %v3315_v20 = vpop.xlane.xlu0 %3314  ;;  %v3708_v52 = vmul.f32 %v8969_v31, %v8915_v12  ;;  %v8987_v12 = vld [vmem:[%s10626_s3 + $0x30] sm:$0xff]  ;;  %v9000_v24 = vmul.f32 %v6380_v14, %v8992_v15 }
 0x556   : > { %v3640_v30 = vadd.f32 1e-05, %v3592_v59  ;;  %v3593_v8 = vsub.f32 %v3545_v0, %v3569_v10  ;;  %v8976_v45 = vmul.f32 0.0051020407, %v3315_v20 }
 0x557   : > { %v3319_v1 = vpop.xlane.xlu1 %3318  ;;  %3760 = vrot.lane.b32.xlu0 %v3708_v52, %s6493_s8  ;;  %v3709_v19 = vmul.f32 %v9000_v24, %v8924_v38 }
 0x558   : > { %6385 = vrsqrt.f32 %v3640_v30  ;;  %v3641_v3 = vadd.f32 1e-05, %v3593_v8  ;;  %v3570_v21 = vmul.f32 %v8976_v45, %v8976_v45  ;;  %v8982_v63 = vmul.f32 0.0051020407, %v3319_v1 }
 0x559   : > { %3756 = vrot.lane.b32.xlu1 %v3706_v44, %s6493_s8  ;;  %v3459_v32 = vpop.xlane.xlu0 %3458 }
 0x55a   : > { %v6382_v23 = vpop.eup %6381  ;;  %6387 = vrsqrt.f32 %v3641_v3  ;;  %v3546_v34 = vmul.f32 0.0051020407, %v3459_v32  ;;  %v3571_v49 = vmul.f32 %v8982_v63, %v8982_v63 }
 0x55b   : > { %v3463_v27 = vpop.xlane.xlu1 %3462  ;;  %v8997_v17 = vmul.f32 %v6382_v23, %v8987_v12 }
 0x55c   : > { %v6384_v18 = vpop.eup %6383  ;;  %v3594_v39 = vsub.f32 %v3546_v34, %v3570_v21  ;;  %v3547_v16 = vmul.f32 0.0051020407, %v3463_v27 }
 0x55d   : > { %3758 = vrot.lane.b32.xlu1 %v3707_v61, %s6493_s8  ;;  %v3323_v60 = vpop.xlane.xlu0 %3322  ;;  %v3710_v41 = vmul.f32 %v8997_v17, %v8935_v29  ;;  %v9018_v48 = vmul.f32 %v6384_v18, %v9007_v40  ;;  %v9027_v29 = vld [vmem:[%s10626_s3 + $0x40] sm:$0xff] }
 0x55e   : > { %v3642_v4 = vadd.f32 1e-05, %v3594_v39  ;;  %v3595_v28 = vsub.f32 %v3547_v16, %v3571_v49  ;;  %v9012_v55 = vmul.f32 0.0051020407, %v3323_v60 }
 0x55f   : > { %v3327_v47 = vpop.xlane.xlu1 %3326  ;;  %3764 = vrot.lane.b32.xlu0 %v3710_v41, %s6493_s8  ;;  %v3711_v57 = vmul.f32 %v9018_v48, %v8940_v22 }
 0x560   : > { %6389 = vrsqrt.f32 %v3642_v4  ;;  %v3643_v43 = vadd.f32 1e-05, %v3595_v28  ;;  %v3572_v2 = vmul.f32 %v9012_v55, %v9012_v55  ;;  %v9022_v50 = vmul.f32 0.0051020407, %v3327_v47 }
 0x561   : > { %3762 = vrot.lane.b32.xlu1 %v3709_v19, %s6493_s8  ;;  %v3467_v33 = vpop.xlane.xlu0 %3466 }
 0x562   : > { %v6386_v37 = vpop.eup %6385  ;;  %6391 = vrsqrt.f32 %v3643_v43  ;;  %v3548_v38 = vmul.f32 0.0051020407, %v3467_v33  ;;  %v3573_v58 = vmul.f32 %v9022_v50, %v9022_v50 }
 0x563   : > { %v3471_v53 = vpop.xlane.xlu1 %3470  ;;  %v9038_v35 = vmul.f32 %v6386_v37, %v9027_v29 }
 0x564   : > { %v6388_v46 = vpop.eup %6387  ;;  %v3596_v7 = vsub.f32 %v3548_v38, %v3572_v2  ;;  %v3549_v42 = vmul.f32 0.0051020407, %v3471_v53 }
 0x565   : > { %3766 = vrot.lane.b32.xlu1 %v3711_v57, %s6493_s8  ;;  %v3331_v54 = vpop.xlane.xlu0 %3330  ;;  %v3712_v36 = vmul.f32 %v9038_v35, %v8955_v62  ;;  %v9046_v6 = vmul.f32 %v6388_v46, %v9033_v9  ;;  %v9060_v62 = vld [vmem:[%s10626_s3 + $0x50] sm:$0xff] }
 0x566   : > { %v3644_v10 = vadd.f32 1e-05, %v3596_v7  ;;  %v3597_v22 = vsub.f32 %v3549_v42, %v3573_v58  ;;  %v9048_v59 = vmul.f32 0.0051020407, %v3331_v54 }
 0x567   : > { %v3335_v0 = vpop.xlane.xlu1 %3334  ;;  %3768 = vrot.lane.b32.xlu0 %v3712_v36, %s6493_s8  ;;  %v3713_v20 = vmul.f32 %v9046_v6, %v8960_v56  ;;  %v9066_v56 = vld [vmem:[%s10626_s3 + $0x58] sm:$0xff] }
 0x568   : > { %6393 = vrsqrt.f32 %v3644_v10  ;;  %v3645_v52 = vadd.f32 1e-05, %v3597_v22  ;;  %v3574_v30 = vmul.f32 %v9048_v59, %v9048_v59  ;;  %v9055_v8 = vmul.f32 0.0051020407, %v3335_v0 }
 0x569   : > { %3770 = vrot.lane.b32.xlu1 %v3713_v20, %s6493_s8  ;;  %v3475_v1 = vpop.xlane.xlu0 %3474 }
 0x56a   : > { %v6390_v44 = vpop.eup %6389  ;;  %6395 = vrsqrt.f32 %v3645_v52  ;;  %v3550_v14 = vmul.f32 0.0051020407, %v3475_v1  ;;  %v3575_v23 = vmul.f32 %v9055_v8, %v9055_v8 }
 0x56b   : > { %v3479_v3 = vpop.xlane.xlu1 %3478  ;;  %v9069_v21 = vmul.f32 %v6390_v44, %v9060_v62 }
 0x56c   : > { %v6392_v32 = vpop.eup %6391  ;;  %v3598_v34 = vsub.f32 %v3550_v14, %v3574_v30  ;;  %v3551_v27 = vmul.f32 0.0051020407, %v3479_v3 }
 0x56d   : > { %v3339_v61 = vpop.xlane.xlu0 %3338  ;;  %v3714_v18 = vmul.f32 %v9069_v21, %v8976_v45  ;;  %v9076_v49 = vmul.f32 %v6392_v32, %v9066_v56  ;;  %v9090_v45 = vld [vmem:[%s10626_s3 + $0x60] sm:$0xff] }
 0x56e   : > { %v3646_v39 = vadd.f32 1e-05, %v3598_v34  ;;  %v3599_v16 = vsub.f32 %v3551_v27, %v3575_v23  ;;  %v9078_v60 = vmul.f32 0.0051020407, %v3339_v61 }
 0x56f   : > { %v3343_v41 = vpop.xlane.xlu1 %3342  ;;  %3772 = vrot.lane.b32.xlu0 %v3714_v18, %s6493_s8  ;;  %v3715_v4 = vmul.f32 %v9076_v49, %v8982_v63  ;;  %v9096_v63 = vld [vmem:[%s10626_s3 + $0x68] sm:$0xff] }
 0x570   : > { %6397 = vrsqrt.f32 %v3646_v39  ;;  %v3647_v28 = vadd.f32 1e-05, %v3599_v16  ;;  %v3576_v47 = vmul.f32 %v9078_v60, %v9078_v60  ;;  %v9085_v19 = vmul.f32 0.0051020407, %v3343_v41 }
 0x571   : > { %3774 = vrot.lane.b32.xlu1 %v3715_v4, %s6493_s8  ;;  %v3483_v43 = vpop.xlane.xlu0 %3482 }
 0x572   : > { %v6394_v2 = vpop.eup %6393  ;;  %6399 = vrsqrt.f32 %v3647_v28  ;;  %v3552_v33 = vmul.f32 0.0051020407, %v3483_v43  ;;  %v3577_v57 = vmul.f32 %v9085_v19, %v9085_v19 }
 0x573   : > { %v3487_v37 = vpop.xlane.xlu1 %3486  ;;  %v9099_v38 = vmul.f32 %v6394_v2, %v9090_v45 }
 0x574   : > { %v6396_v53 = vpop.eup %6395  ;;  %v3600_v46 = vsub.f32 %v3552_v33, %v3576_v47  ;;  %v3553_v58 = vmul.f32 0.0051020407, %v3487_v37 }
 0x575   : > { %v3347_v7 = vpop.xlane.xlu0 %3346  ;;  %v3716_v42 = vmul.f32 %v9099_v38, %v9012_v55  ;;  %v9106_v54 = vmul.f32 %v6396_v53, %v9096_v63  ;;  %v9120_v55 = vld [vmem:[%s10626_s3 + $0x70] sm:$0xff] }
 0x576   : > { %v3648_v36 = vadd.f32 1e-05, %v3600_v46  ;;  %v3601_v10 = vsub.f32 %v3553_v58, %v3577_v57  ;;  %v9108_v22 = vmul.f32 0.0051020407, %v3347_v7  ;;  %v9150_v7 = vld [vmem:[%s10626_s3 + $0x88] sm:$0xff] }
 0x577   : > { %v3351_v0 = vpop.xlane.xlu1 %3350  ;;  %3776 = vrot.lane.b32.xlu0 %v3716_v42, %s6493_s8  ;;  %v3717_v20 = vmul.f32 %v9106_v54, %v9022_v50  ;;  %v9126_v50 = vld [vmem:[%s10626_s3 + $0x78] sm:$0xff] }
 0x578   : > { %6401 = vrsqrt.f32 %v3648_v36  ;;  %v3649_v52 = vadd.f32 1e-05, %v3601_v10  ;;  %v3578_v30 = vmul.f32 %v9108_v22, %v9108_v22  ;;  %v9115_v1 = vmul.f32 0.0051020407, %v3351_v0 }
 0x579   : > { %3778 = vrot.lane.b32.xlu1 %v3717_v20, %s6493_s8  ;;  %v3491_v44 = vpop.xlane.xlu0 %3490 }
 0x57a   : > { %v6398_v14 = vpop.eup %6397  ;;  %6403 = vrsqrt.f32 %v3649_v52  ;;  %v3554_v3 = vmul.f32 0.0051020407, %v3491_v44  ;;  %v3579_v27 = vmul.f32 %v9115_v1, %v9115_v1 }
 0x57b   : > { %v3495_v32 = vpop.xlane.xlu1 %3494  ;;  %v9129_v23 = vmul.f32 %v6398_v14, %v9120_v55 }
 0x57c   : > { %v6400_v34 = vpop.eup %6399  ;;  %v3602_v61 = vsub.f32 %v3554_v3, %v3578_v30  ;;  %v3555_v18 = vmul.f32 0.0051020407, %v3495_v32 }
 0x57d   : > { %v3355_v39 = vpop.xlane.xlu0 %3354  ;;  %v3718_v16 = vmul.f32 %v9129_v23, %v9048_v59  ;;  %v9136_v41 = vmul.f32 %v6400_v34, %v9126_v50  ;;  %v9144_v59 = vld [vmem:[%s10626_s3 + $0x80] sm:$0xff] }
 0x57e   : > { %v3650_v4 = vadd.f32 1e-05, %v3602_v61  ;;  %v3603_v28 = vsub.f32 %v3555_v18, %v3579_v27  ;;  %v3532_v47 = vmul.f32 0.0051020407, %v3355_v39 }
 0x57f   : > { %v3359_v43 = vpop.xlane.xlu1 %3358  ;;  %3780 = vrot.lane.b32.xlu0 %v3718_v16, %s6493_s8  ;;  %v3719_v2 = vmul.f32 %v9136_v41, %v9055_v8 }
 0x580   : > { %6405 = vrsqrt.f32 %v3650_v4  ;;  %v3651_v33 = vadd.f32 1e-05, %v3603_v28  ;;  %v3580_v37 = vmul.f32 %v3532_v47, %v3532_v47  ;;  %v3533_v53 = vmul.f32 0.0051020407, %v3359_v43  ;;  %v9172_v43 = vld [vmem:[%s10626_s3 + $0x98] sm:$0xff] }
 0x581   : > { %3782 = vrot.lane.b32.xlu1 %v3719_v2, %s6493_s8  ;;  %v3499_v57 = vpop.xlane.xlu0 %3498 }
 0x582   : > { %v6402_v46 = vpop.eup %6401  ;;  %6407 = vrsqrt.f32 %v3651_v33  ;;  %v3556_v58 = vmul.f32 0.0051020407, %v3499_v57  ;;  %v3581_v10 = vmul.f32 %v3533_v53, %v3533_v53 }
 0x583   : > { %v3503_v8 = vpop.xlane.xlu1 %3502  ;;  %v9153_v42 = vmul.f32 %v6402_v46, %v9144_v59 }
 0x584   : > { %v6404_v36 = vpop.eup %6403  ;;  %v3604_v0 = vsub.f32 %v3556_v58, %v3580_v37  ;;  %v3557_v20 = vmul.f32 0.0051020407, %v3503_v8 }
 0x585   : > { %v3363_v52 = vpop.xlane.xlu0 %3362  ;;  %v3720_v30 = vmul.f32 %v9153_v42, %v9078_v60  ;;  %v9158_v44 = vmul.f32 %v6404_v36, %v9150_v7  ;;  %v9166_v60 = vld [vmem:[%s10626_s3 + $0x90] sm:$0xff] }
 0x586   : > { %v3652_v14 = vadd.f32 1e-05, %v3604_v0  ;;  %v3605_v3 = vsub.f32 %v3557_v20, %v3581_v10  ;;  %v3534_v32 = vmul.f32 0.0051020407, %v3363_v52  ;;  %v9182_v52 = vld [vmem:[%s10626_s3 + $0xa0] sm:$0xff] }
 0x587   : > { %v3367_v34 = vpop.xlane.xlu1 %3366  ;;  %3784 = vrot.lane.b32.xlu0 %v3720_v30, %s6493_s8  ;;  %v3721_v27 = vmul.f32 %v9158_v44, %v9085_v19 }
 0x588   : > { %6409 = vrsqrt.f32 %v3652_v14  ;;  %v3653_v61 = vadd.f32 1e-05, %v3605_v3  ;;  %v3582_v18 = vmul.f32 %v3534_v32, %v3534_v32  ;;  %v3535_v39 = vmul.f32 0.0051020407, %v3367_v34 }
 0x589   : > { %3786 = vrot.lane.b32.xlu1 %v3721_v27, %s6493_s8  ;;  %v3507_v16 = vpop.xlane.xlu0 %3506 }
 0x58a   : > { %v6406_v4 = vpop.eup %6405  ;;  %6411 = vrsqrt.f32 %v3653_v61  ;;  %v3558_v28 = vmul.f32 0.0051020407, %v3507_v16  ;;  %v3583_v37 = vmul.f32 %v3535_v39, %v3535_v39  ;;  %v9196_v61 = vld [vmem:[%s10626_s3 + $0xb0] sm:$0xff]  ;;  %v9202_v16 = vld [vmem:[%s10626_s3 + $0xb8] sm:$0xff] }
 0x58b   : > { %v3511_v19 = vpop.xlane.xlu1 %3510  ;;  %v3698_v2 = vmul.f32 %v6406_v4, %v9166_v60 }
 0x58c   : > { %v6408_v33 = vpop.eup %6407  ;;  %v3606_v57 = vsub.f32 %v3558_v28, %v3582_v18  ;;  %v3559_v46 = vmul.f32 0.0051020407, %v3511_v19 }
 0x58d   : > { %v3722_v58 = vmul.f32 %v3698_v2, %v9108_v22  ;;  %v3699_v8 = vmul.f32 %v6408_v33, %v9172_v43  ;;  %v9188_v22 = vld [vmem:[%s10626_s3 + $0xa8] sm:$0xff] }
 0x58e   : > { %v3654_v36 = vadd.f32 1e-05, %v3606_v57  ;;  %v3607_v10 = vsub.f32 %v3559_v46, %v3583_v37 }
 0x58f   : > { %3788 = vrot.lane.b32.xlu0 %v3722_v58, %s6493_s8  ;;  %v3723_v0 = vmul.f32 %v3699_v8, %v9115_v1 }
 0x590   : > { %6413 = vrsqrt.f32 %v3654_v36  ;;  %v3655_v20 = vadd.f32 1e-05, %v3607_v10 }
 0x591   : > { %3790 = vrot.lane.b32.xlu1 %v3723_v0, %s6493_s8 }
 0x592   : > { %v6410_v30 = vpop.eup %6409  ;;  %6415 = vrsqrt.f32 %v3655_v20 }
 0x593   : > { %v3700_v14 = vmul.f32 %v6410_v30, %v9182_v52 }
 0x594   : > { %v6412_v3 = vpop.eup %6411 }
 0x595   : > { %v3724_v1 = vmul.f32 %v3700_v14, %v3532_v47  ;;  %v3701_v34 = vmul.f32 %v6412_v3, %v9188_v22 }
 0x597   : > { %3792 = vrot.lane.b32.xlu0 %v3724_v1, %s6493_s8  ;;  %v3725_v27 = vmul.f32 %v3701_v34, %v3533_v53 }
 0x599   : > { %3794 = vrot.lane.b32.xlu1 %v3725_v27, %s6493_s8 }
 0x59a   : > { %v6414_v18 = vpop.eup %6413 }
 0x59b   : > { %v3702_v47 = vmul.f32 %v6414_v18, %v9196_v61 }
 0x59c   : > { %v6416_v4 = vpop.eup %6415 }
 0x59d   : > { %v3726_v28 = vmul.f32 %v3702_v47, %v3534_v32  ;;  %v3703_v19 = vmul.f32 %v6416_v4, %v9202_v16  ;;  %v6494_v32 = vmov 1  }
 0x59f   : > { %3796 = vrot.lane.b32.xlu0 %v3726_v28, %s6493_s8  ;;  %v3727_v53 = vmul.f32 %v3703_v19, %v3535_v39 }
 0x5a1   : > { %3798 = vrot.lane.b32.xlu1 %v3727_v53, %s6493_s8 }
 0x5a3   : > { %3870 = vperm.xlu0 %6284, %v8969_v31  }
 0x5a5   : > { %3875 = vperm.xlu1 %6285, %v9000_v24  }
 0x5a7   : > { %3890 = vperm.xlu0 %6284, %v9038_v35  }
 0x5a9   : > { %3880 = vperm.xlu1 %6285, %v8997_v17  }
 0x5ab   : > { %3910 = vperm.xlu0 %6284, %v9099_v38  }
 0x5ad   : > { %3885 = vperm.xlu1 %6285, %v9018_v48  }
 0x5af   : > { %3930 = vperm.xlu0 %6284, %v9153_v42  }
 0x5b1   : > { %3895 = vperm.xlu1 %6285, %v9046_v6  }
 0x5b3   : > { %3950 = vperm.xlu0 %6284, %v3700_v14  }
 0x5b5   : > { %3900 = vperm.xlu1 %6285, %v9069_v21  }
 0x5b7   : > { %6287 = vset.pattern.permute.xlu0 %v6494_v32 }
 0x5b9   : > { %3905 = vperm.xlu1 %6285, %v9076_v49  }
 0x5bd   : > { %3915 = vperm.xlu1 %6285, %v9106_v54  }
 0x5c1   : > { %3920 = vperm.xlu1 %6285, %v9129_v23  }
 0x5c2   : > { %v9228_v48 = vpop.permute.xlu0 %3850 }
 0x5c5   : > { %3925 = vperm.xlu1 %6285, %v9136_v41  }
 0x5c6   : > { %v9221_v31 = vpop.permute.xlu1 %3855  ;;  %v3753_v21 = vpop.permute.xlu0 %3752 }
 0x5c7   : > { %v3824_v41 = vsub.f32 %v8920_v26, %v3753_v21 }
 0x5c9   : > { %3935 = vperm.xlu1 %6285, %v9158_v44  }
 0x5ca   : > { %v3761_v23 = vpop.permute.xlu0 %3760 }
 0x5cb   : > { %v3828_v37 = vsub.f32 %v8965_v5, %v3761_v23 }
 0x5cc   : > { %v9224_v17 = vpop.permute.xlu1 %3860 }
 0x5cd   : > { %3940 = vperm.xlu1 %6285, %v3698_v2  }
 0x5d0   : > { %v9226_v24 = vpop.permute.xlu1 %3865 }
 0x5d1   : > { %3945 = vperm.xlu1 %6285, %v3699_v8   ;;  %v3765_v39 = vpop.permute.xlu0 %3764 }
 0x5d2   : > { %v3830_v33 = vsub.f32 %v8987_v12, %v3765_v39 }
 0x5d4   : > { %v3755_v35 = vpop.permute.xlu1 %3754 }
 0x5d5   : > { %v3825_v6 = vsub.f32 %v8930_v11, %v3755_v35  ;;  %3955 = vperm.xlu1 %6285, %v3701_v34  }
 0x5d7   : > { %4023 = vperm.xlu0 %6287, %v3825_v6  }
 0x5d8   : > { %v3757_v49 = vpop.permute.xlu1 %3756 }
 0x5d9   : > { %v3826_v38 = vsub.f32 %v8945_v51, %v3757_v49  ;;  %3960 = vperm.xlu1 %6285, %v3702_v47   ;;  %v3769_v51 = vpop.permute.xlu0 %3768 }
 0x5da   : > { %v3832_v12 = vsub.f32 %v9027_v29, %v3769_v51  ;;  %v6418_v51 = vld [vmem:[#allocation2 + $0x18] sm:$0xff] }
 0x5db   : > { %4028 = vperm.xlu0 %6287, %v3826_v38  }
 0x5dc   : > { %v3759_v54 = vpop.permute.xlu1 %3758 }
 0x5dd   : > { %3965 = vperm.xlu1 %6285, %v3703_v19   ;;  %v3827_v11 = vsub.f32 %v8953_v25, %v3759_v54 }
 0x5e0   : > { %v3763_v42 = vpop.permute.xlu1 %3762 }
 0x5e1   : > { %v3829_v44 = vsub.f32 %v8992_v15, %v3763_v42  ;;  %6286 = vset.pattern.permute.xlu1 %v6494_v32  ;;  %v3773_v46 = vpop.permute.xlu0 %3772 }
 0x5e2   : > { %4018 = vperm.xlu1 %6286, %v3824_v41   ;;  %v3834_v8 = vsub.f32 %v9060_v62, %v3773_v46 }
 0x5e3   : > { %4043 = vperm.xlu0 %6287, %v3829_v44  }
 0x5e4   : > { %v3767_v2 = vpop.permute.xlu1 %3766 }
 0x5e5   : > { %v3831_v15 = vsub.f32 %v9007_v40, %v3767_v2  ;;  %v6417_v2 = vld [vmem:[#allocation2 + $0x10] sm:$0xff] }
 0x5e6   : > { %4033 = vperm.xlu1 %6286, %v3827_v11  }
 0x5e7   : > { %4048 = vperm.xlu0 %6287, %v3830_v33   ;;  %v3970_v33 = vmul.f32 %v6417_v2, %v9221_v31 }
 0x5e8   : > { %v3771_v57 = vpop.permute.xlu1 %3770 }
 0x5e9   : > { %v3833_v26 = vsub.f32 %v9033_v9, %v3771_v57  ;;  %v3777_v25 = vpop.permute.xlu0 %3776 }
 0x5ea   : > { %4038 = vperm.xlu1 %6286, %v3828_v37   ;;  %v3836_v62 = vsub.f32 %v9090_v45, %v3777_v25  ;;  %v3971_v37 = vmul.f32 %v6418_v51, %v9221_v31  ;;  %v6423_v31 = vld [vmem:[#allocation2 + $0x30] sm:$0xff] }
 0x5eb   : > { %4063 = vperm.xlu0 %6287, %v3833_v26   ;;  %v6419_v26 = vld [vmem:[#allocation2] sm:$0xff] }
 0x5ec   : > { %v3775_v58 = vpop.permute.xlu1 %3774  ;;  %v3968_v46 = vmul.f32 %v6419_v26, %v9228_v48  ;;  %v6429_v26 = vld [vmem:[#allocation2 + $0x60] sm:$0xff] }
 0x5ed   : > { %v3835_v9 = vsub.f32 %v9066_v56, %v3775_v58 }
 0x5ee   : > { %4053 = vperm.xlu1 %6286, %v3831_v15   ;;  %v6420_v15 = vld [vmem:[#allocation2 + $0x8] sm:$0xff] }
 0x5ef   : > { %4068 = vperm.xlu0 %6287, %v3834_v8   ;;  %v3969_v58 = vmul.f32 %v6420_v15, %v9228_v48  ;;  %v6430_v15 = vld [vmem:[#allocation2 + $0x68] sm:$0xff] }
 0x5f0   : > { %v3779_v36 = vpop.permute.xlu1 %3778 }
 0x5f1   : > { %v3837_v10 = vsub.f32 %v9096_v63, %v3779_v36  ;;  %v3781_v5 = vpop.permute.xlu0 %3780 }
 0x5f2   : > { %4058 = vperm.xlu1 %6286, %v3832_v12   ;;  %v3838_v0 = vsub.f32 %v9120_v55, %v3781_v5  ;;  %v6421_v12 = vld [vmem:[#allocation2 + $0x20] sm:$0xff] }
 0x5f3   : > { %4083 = vperm.xlu0 %6287, %v3837_v10   ;;  %v3972_v36 = vmul.f32 %v6421_v12, %v9224_v17  ;;  %v6422_v10 = vld [vmem:[#allocation2 + $0x28] sm:$0xff] }
 0x5f4   : > { %v3783_v40 = vpop.permute.xlu1 %3782  ;;  %v3973_v5 = vmul.f32 %v6422_v10, %v9224_v17 }
 0x5f5   : > { %v3839_v30 = vsub.f32 %v9126_v50, %v3783_v40 }
 0x5f6   : > { %4073 = vperm.xlu1 %6286, %v3835_v9  }
 0x5f7   : > { %4088 = vperm.xlu0 %6287, %v3838_v0  }
 0x5f9   : > { %v3785_v14 = vpop.permute.xlu0 %3784 }
 0x5fa   : > { %4078 = vperm.xlu1 %6286, %v3836_v62   ;;  %v3840_v63 = vsub.f32 %v9144_v59, %v3785_v14 }
 0x5fb   : > { %v3787_v20 = vpop.permute.xlu1 %3786 }
 0x5fc   : > { %v3841_v29 = vsub.f32 %v9150_v7, %v3787_v20  ;;  %v3974_v20 = vmul.f32 %v6423_v31, %v9226_v24 }
 0x5fe   : > { %4093 = vperm.xlu1 %6286, %v3839_v30   ;;  %4103 = vperm.xlu0 %6287, %v3841_v29   ;;  %v6424_v30 = vld [vmem:[#allocation2 + $0x38] sm:$0xff] }
 0x5ff   : > { %v3975_v29 = vmul.f32 %v6424_v30, %v9226_v24 }
 0x601   : > { %v3789_v3 = vpop.permute.xlu0 %3788 }
 0x602   : > { %v3842_v56 = vsub.f32 %v9166_v60, %v3789_v3  ;;  %4098 = vperm.xlu1 %6286, %v3840_v63  }
 0x603   : > { %v3791_v55 = vpop.permute.xlu1 %3790 }
 0x604   : > { %v3843_v1 = vsub.f32 %v9172_v43, %v3791_v55  ;;  %4108 = vperm.xlu0 %6287, %v3842_v56   ;;  %v6290_v43 = vld [vmem:[%s10627_s4 + $0x4] ss:$8 sps:$4 sm:$0xff]  }
 0x605   : > { %5852 = vmatprep.mubr.msk.bf16.mxu0 %vm4614_vm1, %v6290_v43  ;;  %v6427_v43 = vld [vmem:[#allocation2 + $0x40] sm:$0xff] }
 0x606   : > { %4113 = vperm.xlu1 %6286, %v3843_v1   ;;  %v6425_v1 = vld [vmem:[#allocation2 + $0x50] sm:$0xff] }
 0x609   : > { %v3793_v45 = vpop.permute.xlu0 %3792 }
 0x60a   : > { %v3844_v34 = vsub.f32 %v9182_v52, %v3793_v45 }
 0x60b   : > { %v3795_v50 = vpop.permute.xlu1 %3794 }
 0x60c   : > { %v3845_v7 = vsub.f32 %v9188_v22, %v3795_v50  ;;  %4118 = vperm.xlu1 %6286, %v3844_v34   ;;  %v6293_v22 = vld [vmem:[%s10627_s4 + $0xe4] ss:$8 sps:$4 sm:$0xff]   ;;  %v6426_v34 = vld [vmem:[#allocation2 + $0x58] sm:$0xff] }
 0x60d   : > { %5866 = vmatprep.mubr.msk.bf16.mxu1 %vm4614_vm1, %v6293_v22  ;;  %v6428_v22 = vld [vmem:[#allocation2 + $0x48] sm:$0xff] }
 0x60e   : > { %4123 = vperm.xlu0 %6287, %v3845_v7  }
 0x611   : > { %v3797_v27 = vpop.permute.xlu0 %3796 }
 0x612   : > { %v3846_v59 = vsub.f32 %v9196_v61, %v3797_v27 }
 0x613   : > { %v3799_v18 = vpop.permute.xlu1 %3798 }
 0x614   : > { %v3847_v60 = vsub.f32 %v9202_v16, %v3799_v18  ;;  %4128 = vperm.xlu0 %6287, %v3846_v59  }
 0x616   : > { %4133 = vperm.xlu1 %6286, %v3847_v60  }
 0x622   : > { %v3871_v19 = vpop.permute.xlu0 %3870 }
 0x623   : > { %v3976_v24 = vmul.f32 %v6427_v43, %v3871_v19 }
 0x624   : > { %v3876_v47 = vpop.permute.xlu1 %3875 }
 0x625   : > { %v3978_v45 = vmul.f32 %v6425_v1, %v3876_v47  ;;  %v3979_v17 = vmul.f32 %v6426_v34, %v3876_v47 }
 0x626   : > { %v9276_v35 = vpop.permute.xlu0 %3890 }
 0x628   : > { %v9257_v52 = vpop.permute.xlu1 %3880 }
 0x62a   : > { %v9280_v21 = vpop.permute.xlu0 %3910 }
 0x62c   : > { %v9264_v61 = vpop.permute.xlu1 %3885 }
 0x62e   : > { %v9286_v54 = vpop.permute.xlu0 %3930 }
 0x630   : > { %v9266_v16 = vpop.permute.xlu1 %3895 }
 0x632   : > { %v9290_v41 = vpop.permute.xlu0 %3950 }
 0x634   : > { %v9268_v4 = vpop.permute.xlu1 %3900 }
 0x638   : > { %v9270_v28 = vpop.permute.xlu1 %3905 }
 0x63c   : > { %v9272_v53 = vpop.permute.xlu1 %3915 }
 0x640   : > { %v9274_v32 = vpop.permute.xlu1 %3920 }
 0x644   : > { %v9278_v6 = vpop.permute.xlu1 %3925 }
 0x648   : > { %v9282_v49 = vpop.permute.xlu1 %3935 }
 0x64c   : > { %v9284_v38 = vpop.permute.xlu1 %3940 }
 0x650   : > { %v9288_v23 = vpop.permute.xlu1 %3945 }
 0x654   : > { %v9292_v42 = vpop.permute.xlu1 %3955 }
 0x656   : > { %v4024_v44 = vpop.permute.xlu0 %4023 }
 0x657   : > { %v4138_v8 = vadd.f32 %v4024_v44, %v3970_v33  ;;  %v4139_v25 = vadd.f32 %v4024_v44, %v3971_v37  ;;  %v3977_v44 = vmul.f32 %v6428_v22, %v3871_v19 }
 0x658   : > { %v9294_v39 = vpop.permute.xlu1 %3960 }
 0x659   : > { %v4186_v63 = vmax.f32 %v4138_v8, 0.0  ;;  %v4187_v3 = vmax.f32 %v4139_v25, 0.0 }
 0x65a   : > { %v4029_v57 = vpop.permute.xlu0 %4028 }
 0x65b   : > { %v4140_v14 = vadd.f32 %v4029_v57, %v3972_v36  ;;  %v4141_v48 = vadd.f32 %v4029_v57, %v3973_v5  ;;  %v6431_v5 = vld [vmem:[#allocation2 + $0x70] sm:$0xff] }
 0x65c   : > { %v9296_v11 = vpop.permute.xlu1 %3965 }
 0x65d   : > { %v4188_v2 = vmax.f32 %v4140_v14, 0.0  ;;  %v4189_v33 = vmax.f32 %v4141_v48, 0.0  ;;  %v6433_v14 = vld [vmem:[#allocation2 + $0x90] sm:$0xff] }
 0x65e   : > { %v3986_v48 = vmul.f32 %v6433_v14, %v9266_v16 }
 0x661   : > { %v4019_v9 = vpop.permute.xlu1 %4018 }
 0x662   : > { %v4136_v0 = vadd.f32 %v4019_v9, %v3968_v46  ;;  %v4137_v40 = vadd.f32 %v4019_v9, %v3969_v58  ;;  %v4044_v62 = vpop.permute.xlu0 %4043  ;;  %v3980_v46 = vmul.f32 %v6429_v26, %v9257_v52  ;;  %v3981_v58 = vmul.f32 %v6430_v15, %v9257_v52 }
 0x663   : > { %v4146_v51 = vadd.f32 %v4044_v62, %v3978_v45  ;;  %v4147_v37 = vadd.f32 %v4044_v62, %v3979_v17  ;;  %v3982_v9 = vmul.f32 %v6431_v5, %v9264_v61  ;;  %v6435_v17 = vld [vmem:[#allocation2 + $0x80] sm:$0xff] }
 0x664   : > { %v4184_v56 = vmax.f32 %v4136_v0, 0.0  ;;  %v4185_v55 = vmax.f32 %v4137_v40, 0.0  ;;  %v6432_v0 = vld [vmem:[#allocation2 + $0x78] sm:$0xff] }
 0x665   : > { %v4034_v50 = vpop.permute.xlu1 %4033  ;;  %v3983_v40 = vmul.f32 %v6432_v0, %v9264_v61  ;;  %v4195_v52 = vmax.f32 %v4147_v37, 0.0 }
 0x666   : > { %v9306_v7 = vpack.c.bf16 %v4186_v63, %v4184_v56  ;;  %v4233_v27 = vpack.c.bf16 %v4187_v3, %v4185_v55  ;;  %v4142_v59 = vadd.f32 %v4034_v50, %v3974_v20  ;;  %v4143_v18 = vadd.f32 %v4034_v50, %v3975_v29  ;;  %v4049_v60 = vpop.permute.xlu0 %4048  ;;  %v6434_v63 = vld [vmem:[#allocation2 + $0x98] sm:$0xff] }
 0x667   : > { %v4148_v62 = vadd.f32 %v4049_v60, %v3980_v46  ;;  %v4149_v31 = vadd.f32 %v4049_v60, %v3981_v58  ;;  %v4194_v20 = vmax.f32 %v4146_v51, 0.0  ;;  %v3987_v3 = vmul.f32 %v6434_v63, %v9266_v16  ;;  %v6438_v51 = vld [vmem:[#allocation2 + $0xa8] sm:$0xff]  ;;  %v6439_v58 = vld [vmem:[#allocation2 + $0xb0] sm:$0xff] }
 0x668   : > { %4257 = vst.msk [vmem:[#allocation3 + $0x8] sm:$0xff] %vm505_vm0, %v4233_v27  ;;  %v4190_v57 = vmax.f32 %v4142_v59, 0.0  ;;  %v4191_v47 = vmax.f32 %v4143_v18, 0.0  ;;  %v3984_v50 = vmul.f32 %v6435_v17, %v9276_v35  ;;  %v6436_v27 = vld [vmem:[#allocation2 + $0x88] sm:$0xff]  ;;  %v3989_v37 = vmul.f32 %v6438_v51, %v9268_v4 }
 0x669   : > { %4281 = vst.msk [vmem:[#allocation3 + $0x8] sm:$0xff] %vm4280_vm2, %v6492_v13  ;;  %v4039_v8 = vpop.permute.xlu1 %4038  ;;  %v3985_v59 = vmul.f32 %v6436_v27, %v9276_v35  ;;  %v4196_v18 = vmax.f32 %v4148_v62, 0.0  ;;  %v4197_v60 = vmax.f32 %v4149_v31, 0.0  ;;  %v6441_v62 = vld [vmem:[#allocation2 + $0xd0] sm:$0xff] }
 0x66a   : > { %v9313_v25 = vpack.c.bf16 %v4190_v57, %v4188_v2  ;;  %v4235_v19 = vpack.c.bf16 %v4191_v47, %v4189_v33  ;;  %v4144_v12 = vadd.f32 %v4039_v8, %v3976_v24  ;;  %v4145_v36 = vadd.f32 %v4039_v8, %v3977_v44  ;;  %v4064_v10 = vpop.permute.xlu0 %4063  ;;  %v6437_v2 = vld [vmem:[#allocation2 + $0xa0] sm:$0xff] }
 0x66b   : > { %v4154_v16 = vadd.f32 %v4064_v10, %v3986_v48  ;;  %v4155_v43 = vadd.f32 %v4064_v10, %v3987_v3  ;;  %v3988_v33 = vmul.f32 %v6437_v2, %v9268_v4  ;;  %v3990_v8 = vmul.f32 %v6439_v58, %v9270_v28  ;;  %v6443_v48 = vld [vmem:[#allocation2 + $0xc0] sm:$0xff]  ;;  %v6444_v3 = vld [vmem:[#allocation2 + $0xc8] sm:$0xff]  ;;  %v6449_v58 = vld [vmem:[#allocation2 + $0x110] sm:$0xff] }
 0x66c   : > { %4259 = vst.msk [vmem:[#allocation3 + $0x18] sm:$0xff] %vm505_vm0, %v4235_v19  ;;  %v4192_v30 = vmax.f32 %v4144_v12, 0.0  ;;  %v4193_v29 = vmax.f32 %v4145_v36, 0.0  ;;  %v6440_v19 = vld [vmem:[#allocation2 + $0xb8] sm:$0xff]  ;;  %v3994_v31 = vmul.f32 %v6441_v62, %v9272_v53  ;;  %v3992_v63 = vmul.f32 %v6443_v48, %v9280_v21 }
 0x66d   : > { %4282 = vst.msk [vmem:[#allocation3 + $0x18] sm:$0xff] %vm4280_vm2, %v6492_v13  ;;  %v4054_v56 = vpop.permute.xlu1 %4053  ;;  %v3991_v4 = vmul.f32 %v6440_v19, %v9270_v28  ;;  %v4202_v10 = vmax.f32 %v4154_v16, 0.0  ;;  %v4203_v5 = vmax.f32 %v4155_v43, 0.0  ;;  %v6450_v19 = vld [vmem:[#allocation2 + $0x118] sm:$0xff] }
 0x66e   : > { %v9322_v55 = vpack.c.bf16 %v4194_v20, %v4192_v30  ;;  %v4237_v61 = vpack.c.bf16 %v4195_v52, %v4193_v29  ;;  %v4150_v1 = vadd.f32 %v4054_v56, %v3982_v9  ;;  %v4151_v45 = vadd.f32 %v4054_v56, %v3983_v40  ;;  %v4069_v34 = vpop.permute.xlu0 %4068  ;;  %v6442_v20 = vld [vmem:[#allocation2 + $0xd8] sm:$0xff] }
 0x66f   : > { %v4156_v12 = vadd.f32 %v4069_v34, %v3988_v33  ;;  %v4157_v36 = vadd.f32 %v4069_v34, %v3989_v37  ;;  %v3995_v52 = vmul.f32 %v6442_v20, %v9272_v53  ;;  %v3993_v56 = vmul.f32 %v6444_v3, %v9280_v21  ;;  %v6448_v33 = vld [vmem:[#allocation2 + $0xf8] sm:$0xff] }
 0x670   : > { %4261 = vst.msk [vmem:[#allocation3 + $0x28] sm:$0xff] %vm505_vm0, %v4237_v61  ;;  %v4198_v24 = vmax.f32 %v4150_v1, 0.0  ;;  %v4199_v22 = vmax.f32 %v4151_v45, 0.0  ;;  %v4348_v44 = vld [vmem:[#allocation3 + $0x8] sm:$0xff]  ;;  %v3999_v51 = vmul.f32 %v6448_v33, %v9278_v6 }
 0x671   : > { %4283 = vst.msk [vmem:[#allocation3 + $0x28] sm:$0xff] %vm4280_vm2, %v6492_v13  ;;  %v4059_v57 = vpop.permute.xlu1 %4058  ;;  %4696 = vmatprep.subr.bf16.mxu0 %v4348_v44  ;;  %5939 = vmatprep.subr.bf16.mxu1 %v4348_v44  ;;  %v4204_v53 = vmax.f32 %v4156_v12, 0.0  ;;  %v4205_v61 = vmax.f32 %v4157_v36, 0.0  ;;  %v6447_v44 = vld [vmem:[#allocation2 + $0xf0] sm:$0xff] }
 0x672   : > { %v9331_v35 = vpack.c.bf16 %v4198_v24, %v4196_v18  ;;  %v4239_v47 = vpack.c.bf16 %v4199_v22, %v4197_v60  ;;  %v4152_v26 = vadd.f32 %v4059_v57, %v3984_v50  ;;  %v4153_v46 = vadd.f32 %v4059_v57, %v3985_v59  ;;  %4697 = vmatpush1.bf16.msra.mxu0 %v9306_v7  ;;  %v4084_v15 = vpop.permute.xlu0 %4083  ;;  %v6445_v59 = vld [vmem:[#allocation2 + $0xe0] sm:$0xff]  ;;  %v6446_v60 = vld [vmem:[#allocation2 + $0xe8] sm:$0xff] }
 0x673   : > { %5951 = vmatpush1.bf16.msra.mxu1 %v9306_v7  ;;  %v4162_v1 = vadd.f32 %v4084_v15, %v3994_v31  ;;  %v4163_v45 = vadd.f32 %v4084_v15, %v3995_v52  ;;  %v3996_v18 = vmul.f32 %v6445_v59, %v9274_v32  ;;  %v3997_v16 = vmul.f32 %v6446_v60, %v9274_v32  ;;  %v6456_v60 = vld [vmem:[#allocation2 + $0x138] sm:$0xff] }
 0x674   : > { %4263 = vst.msk [vmem:[#allocation3 + $0x38] sm:$0xff] %vm505_vm0, %v4239_v47  ;;  %v4200_v9 = vmax.f32 %v4152_v26, 0.0  ;;  %v4201_v0 = vmax.f32 %v4153_v46, 0.0  ;;  %v4350_v40 = vld [vmem:[#allocation3 + $0x18] sm:$0xff]  ;;  %v3998_v2 = vmul.f32 %v6447_v44, %v9278_v6 }
 0x675   : > { %4284 = vst.msk [vmem:[#allocation3 + $0x38] sm:$0xff] %vm4280_vm2, %v6492_v13  ;;  %v4074_v28 = vpop.permute.xlu1 %4073  ;;  %4698 = vmatprep.subr.bf16.mxu0 %v4350_v40  ;;  %5940 = vmatprep.subr.bf16.mxu1 %v4350_v40  ;;  %v4210_v57 = vmax.f32 %v4162_v1, 0.0  ;;  %v4211_v47 = vmax.f32 %v4163_v45, 0.0  ;;  %v6452_v40 = vld [vmem:[#allocation2 + $0x108] sm:$0xff]  ;;  %v6455_v1 = vld [vmem:[#allocation2 + $0x130] sm:$0xff] }
 0x676   : > { %v9342_v7 = vpack.c.bf16 %v4202_v10, %v4200_v9  ;;  %v4241_v30 = vpack.c.bf16 %v4203_v5, %v4201_v0  ;;  %v4158_v29 = vadd.f32 %v4074_v28, %v3990_v8  ;;  %v4159_v14 = vadd.f32 %v4074_v28, %v3991_v4  ;;  %4699 = vmatpush1.bf16.msra.mxu0 %v9313_v25  ;;  %v4089_v50 = vpop.permute.xlu0 %4088  ;;  %v6451_v9 = vld [vmem:[#allocation2 + $0x100] sm:$0xff] }
 0x677   : > { %5952 = vmatpush1.bf16.msra.mxu1 %v9313_v25  ;;  %v4164_v32 = vadd.f32 %v4089_v50, %v3996_v18  ;;  %v4165_v37 = vadd.f32 %v4089_v50, %v3997_v16  ;;  %v4002_v8 = vmul.f32 %v6449_v58, %v9282_v49  ;;  %v4003_v4 = vmul.f32 %v6450_v19, %v9282_v49  ;;  %v6459_v58 = vld [vmem:[#allocation2 + $0x150] sm:$0xff]  ;;  %v6460_v19 = vld [vmem:[#allocation2 + $0x158] sm:$0xff] }
 0x678   : > { %4265 = vst.msk [vmem:[#allocation3 + $0x48] sm:$0xff] %vm505_vm0, %v4241_v30  ;;  %v4206_v34 = vmax.f32 %v4158_v29, 0.0  ;;  %v4207_v17 = vmax.f32 %v4159_v14, 0.0  ;;  %v4352_v27 = vld [vmem:[#allocation3 + $0x28] sm:$0xff]  ;;  %v4000_v0 = vmul.f32 %v6451_v9, %v9286_v54  ;;  %v4001_v49 = vmul.f32 %v6452_v40, %v9286_v54 }
 0x679   : > { %4285 = vst.msk [vmem:[#allocation3 + $0x48] sm:$0xff] %vm4280_vm2, %v6492_v13  ;;  %v4079_v21 = vpop.permute.xlu1 %4078  ;;  %4700 = vmatprep.subr.bf16.mxu0 %v4352_v27  ;;  %5941 = vmatprep.subr.bf16.mxu1 %v4352_v27  ;;  %v4212_v62 = vmax.f32 %v4164_v32, 0.0  ;;  %v4213_v31 = vmax.f32 %v4165_v37, 0.0  ;;  %v4006_v45 = vmul.f32 %v6455_v1, %v9288_v23  ;;  %v4007_v16 = vmul.f32 %v6456_v60, %v9288_v23  ;;  %v6457_v37 = vld [vmem:[#allocation2 + $0x140] sm:$0xff]  ;;  %v6297_v60 = vld [vmem:[%s10627_s4 + $0xf4] ss:$8 sps:$4 sm:$0xff]  }
 0x67a   : > { %v9353_v25 = vpack.c.bf16 %v4206_v34, %v4204_v53  ;;  %v4243_v43 = vpack.c.bf16 %v4207_v17, %v4205_v61  ;;  %v4160_v24 = vadd.f32 %v4079_v21, %v3992_v63  ;;  %v4161_v22 = vadd.f32 %v4079_v21, %v3993_v56  ;;  %4701 = vmatpush1.bf16.msra.mxu0 %v9322_v55  ;;  %v6454_v53 = vld [vmem:[#allocation2 + $0x128] sm:$0xff] }
 0x67b   : > { %5953 = vmatpush1.bf16.msra.mxu1 %v9322_v55  ;;  %v4005_v61 = vmul.f32 %v6454_v53, %v9284_v38 }
 0x67c   : > { %4267 = vst.msk [vmem:[#allocation3 + $0x58] sm:$0xff] %vm505_vm0, %v4243_v43  ;;  %v4208_v26 = vmax.f32 %v4160_v24, 0.0  ;;  %v4209_v46 = vmax.f32 %v4161_v22, 0.0  ;;  %v4354_v15 = vld [vmem:[#allocation3 + $0x38] sm:$0xff] }
 0x67d   : > { %4286 = vst.msk [vmem:[#allocation3 + $0x58] sm:$0xff] %vm4280_vm2, %v6492_v13  ;;  %v4094_v6 = vpop.permute.xlu1 %4093  ;;  %4702 = vmatprep.subr.bf16.mxu0 %v4354_v15  ;;  %5942 = vmatprep.subr.bf16.mxu1 %v4354_v15  ;;  %v4104_v55 = vpop.permute.xlu0 %4103 }
 0x67e   : > { %v9364_v12 = vpack.c.bf16 %v4210_v57, %v4208_v26  ;;  %v4245_v36 = vpack.c.bf16 %v4211_v47, %v4209_v46  ;;  %v4166_v10 = vadd.f32 %v4094_v6, %v3998_v2  ;;  %v4167_v5 = vadd.f32 %v4094_v6, %v3999_v51  ;;  %4703 = vmatpush1.bf16.msra.mxu0 %v9331_v35  ;;  %v6458_v47 = vld [vmem:[#allocation2 + $0x148] sm:$0xff] }
 0x67f   : > { %5954 = vmatpush1.bf16.msra.mxu1 %v9331_v35  ;;  %v4170_v28 = vadd.f32 %v4104_v55, %v4002_v8  ;;  %v4171_v30 = vadd.f32 %v4104_v55, %v4003_v4  ;;  %v6453_v35 = vld [vmem:[#allocation2 + $0x120] sm:$0xff]  ;;  %v4008_v57 = vmul.f32 %v6457_v37, %v9290_v41  ;;  %v4009_v26 = vmul.f32 %v6458_v47, %v9290_v41  ;;  %v6321_v47 = vld [vmem:[%s10627_s4 + $0x134] ss:$8 sps:$4 sm:$0xff]  }
 0x680   : > { %4269 = vst.msk [vmem:[#allocation3 + $0x68] sm:$0xff] %vm505_vm0, %v4245_v36  ;;  %v4214_v20 = vmax.f32 %v4166_v10, 0.0  ;;  %v4215_v52 = vmax.f32 %v4167_v5, 0.0  ;;  %v4356_v29 = vld [vmem:[#allocation3 + $0x48] sm:$0xff]  ;;  %v4004_v56 = vmul.f32 %v6453_v35, %v9284_v38  ;;  %v4010_v8 = vmul.f32 %v6459_v58, %v9292_v42 }
 0x681   : > { %4287 = vst.msk [vmem:[#allocation3 + $0x68] sm:$0xff] %vm4280_vm2, %v6492_v13  ;;  %v4099_v14 = vpop.permute.xlu1 %4098  ;;  %4704 = vmatprep.subr.bf16.mxu0 %v4356_v29  ;;  %5943 = vmatprep.subr.bf16.mxu1 %v4356_v29  ;;  %v4218_v17 = vmax.f32 %v4170_v28, 0.0  ;;  %v4219_v50 = vmax.f32 %v4171_v30, 0.0  ;;  %v4011_v4 = vmul.f32 %v6460_v19, %v9292_v42  ;;  %v6463_v29 = vld [vmem:[#allocation2 + $0x170] sm:$0xff]  ;;  %v6317_v37 = vld [vmem:[%s10627_s4 + $0x120] ss:$8 sps:$4 sm:$0xff]  }
 0x682   : > { %v9373_v48 = vpack.c.bf16 %v4214_v20, %v4212_v62  ;;  %v4247_v54 = vpack.c.bf16 %v4215_v52, %v4213_v31  ;;  %v4168_v63 = vadd.f32 %v4099_v14, %v4000_v0  ;;  %v4169_v3 = vadd.f32 %v4099_v14, %v4001_v49  ;;  %4705 = vmatpush1.bf16.msra.mxu0 %v9342_v7  ;;  %v6461_v49 = vld [vmem:[#allocation2 + $0x160] sm:$0xff]  ;;  %v6462_v31 = vld [vmem:[#allocation2 + $0x168] sm:$0xff]  ;;  %v6330_v19 = vld [vmem:[%s10627_s4 + $0x74] ss:$8 sps:$4 sm:$0xff]  }
 0x683   : > { %5955 = vmatpush1.bf16.msra.mxu1 %v9342_v7  ;;  %v4109_v34 = vpop.permute.xlu0 %4108  ;;  %v4012_v62 = vmul.f32 %v6461_v49, %v9294_v39  ;;  %v4013_v20 = vmul.f32 %v6462_v31, %v9294_v39  ;;  %v4014_v14 = vmul.f32 %v6463_v29, %v9296_v11  ;;  %v6326_v58 = vld [vmem:[%s10627_s4 + $0x60] ss:$8 sps:$4 sm:$0xff]   ;;  %v6351_v49 = vld [vmem:[%s10627_s4 + $0x184] ss:$8 sps:$4 sm:$0xff]  }
 0x684   : > { %4271 = vst.msk [vmem:[#allocation3 + $0x78] sm:$0xff] %vm505_vm0, %v4247_v54  ;;  %v4216_v27 = vmax.f32 %v4168_v63, 0.0  ;;  %v4217_v59 = vmax.f32 %v4169_v3, 0.0  ;;  %v4358_v18 = vld [vmem:[#allocation3 + $0x58] sm:$0xff]  ;;  %v4172_v38 = vadd.f32 %v4109_v34, %v4004_v56  ;;  %v4173_v21 = vadd.f32 %v4109_v34, %v4005_v61  ;;  %v6353_v31 = vld [vmem:[%s10627_s4 + $0x180] ss:$8 sps:$4 sm:$0xff]  }
 0x685   : > { %4288 = vst.msk [vmem:[#allocation3 + $0x78] sm:$0xff] %vm4280_vm2, %v6492_v13  ;;  %v4114_v43 = vpop.permute.xlu1 %4113  ;;  %4706 = vmatprep.subr.bf16.mxu0 %v4358_v18  ;;  %5944 = vmatprep.subr.bf16.mxu1 %v4358_v18  ;;  %v6291_v18 = vld [vmem:[%s10627_s4 + $0xe0] ss:$8 sps:$4 sm:$0xff]   ;;  %v6360_v29 = vld [vmem:[%s10627_s4 + $0x1a4] ss:$8 sps:$4 sm:$0xff]  }
 0x686   : > { %v4248_v7 = vpack.c.bf16 %v4218_v17, %v4216_v27  ;;  %v4249_v24 = vpack.c.bf16 %v4219_v50, %v4217_v59  ;;  %4707 = vmatpush1.bf16.msra.mxu0 %v9353_v25  ;;  %v4174_v22 = vadd.f32 %v4114_v43, %v4006_v45  ;;  %v4175_v44 = vadd.f32 %v4114_v43, %v4007_v16  ;;  %v6288_v59 = vld [vmem:[%s10627_s4] ss:$8 sps:$4 sm:$0xff]   ;;  %v6296_v16 = vld [vmem:[%s10627_s4 + $0x10] ss:$8 sps:$4 sm:$0xff]   ;;  %v6303_v43 = vld [vmem:[%s10627_s4 + $0x104] ss:$8 sps:$4 sm:$0xff]  }
 0x687   : > { %5956 = vmatpush1.bf16.msra.mxu1 %v9353_v25  ;;  %v4220_v23 = vmax.f32 %v4172_v38, 0.0  ;;  %v4221_v33 = vmax.f32 %v4173_v21, 0.0  ;;  %v6299_v38 = vld [vmem:[%s10627_s4 + $0xf0] ss:$8 sps:$4 sm:$0xff]   ;;  %v6300_v21 = vld [vmem:[%s10627_s4 + $0x24] ss:$8 sps:$4 sm:$0xff]  }
 0x688   : > { %4273 = vst.msk [vmem:[#allocation3 + $0x88] sm:$0xff] %vm505_vm0, %v4249_v24  ;;  %v4360_v2 = vld [vmem:[#allocation3 + $0x68] sm:$0xff]  ;;  %v4222_v51 = vmax.f32 %v4174_v22, 0.0  ;;  %v4223_v32 = vmax.f32 %v4175_v44, 0.0  ;;  %v6306_v22 = vld [vmem:[%s10627_s4 + $0x34] ss:$8 sps:$4 sm:$0xff]  }
 0x689   : > { %4289 = vst.msk [vmem:[#allocation3 + $0x88] sm:$0xff] %vm4280_vm2, %v6492_v13  ;;  %4708 = vmatprep.subr.bf16.mxu0 %v4360_v2  ;;  %5945 = vmatprep.subr.bf16.mxu1 %v4360_v2  ;;  %v6305_v24 = vld [vmem:[%s10627_s4 + $0x100] ss:$8 sps:$4 sm:$0xff]   ;;  %v6309_v44 = vld [vmem:[%s10627_s4 + $0x114] ss:$8 sps:$4 sm:$0xff]  }
 0x68a   : > { %4709 = vmatpush1.bf16.msra.mxu0 %v9364_v12  ;;  %v4250_v25 = vpack.c.bf16 %v4222_v51, %v4220_v23  ;;  %v4251_v46 = vpack.c.bf16 %v4223_v32, %v4221_v33  ;;  %v6308_v2 = vld [vmem:[%s10627_s4 + $0x30] ss:$8 sps:$4 sm:$0xff]   ;;  %v6312_v33 = vld [vmem:[%s10627_s4 + $0x44] ss:$8 sps:$4 sm:$0xff]   ;;  %v6314_v32 = vld [vmem:[%s10627_s4 + $0x40] ss:$8 sps:$4 sm:$0xff]  }
 0x68b   : > { %5957 = vmatpush1.bf16.msra.mxu1 %v9364_v12  ;;  %v4119_v15 = vpop.permute.xlu1 %4118  ;;  %v6311_v23 = vld [vmem:[%s10627_s4 + $0x110] ss:$8 sps:$4 sm:$0xff]   ;;  %v6315_v51 = vld [vmem:[%s10627_s4 + $0x124] ss:$8 sps:$4 sm:$0xff]  }
 0x68c   : > { %v4176_v6 = vadd.f32 %v4119_v15, %v4008_v57  ;;  %v4177_v55 = vadd.f32 %v4119_v15, %v4009_v26  ;;  %v4362_v36 = vld [vmem:[#allocation3 + $0x78] sm:$0xff]  ;;  %4275 = vst.msk [vmem:[#allocation3 + $0x98] sm:$0xff] %vm505_vm0, %v4251_v46  ;;  %v6324_v46 = vld [vmem:[%s10627_s4 + $0x64] ss:$8 sps:$4 sm:$0xff]  }
 0x68d   : > { %4710 = vmatprep.subr.bf16.mxu0 %v4362_v36  ;;  %5946 = vmatprep.subr.bf16.mxu1 %v4362_v36  ;;  %v4124_v41 = vpop.permute.xlu0 %4123  ;;  %4290 = vst.msk [vmem:[#allocation3 + $0x98] sm:$0xff] %vm4280_vm2, %v6492_v13  ;;  %v6318_v57 = vld [vmem:[%s10627_s4 + $0x54] ss:$8 sps:$4 sm:$0xff]   ;;  %v6320_v26 = vld [vmem:[%s10627_s4 + $0x50] ss:$8 sps:$4 sm:$0xff]  }
 0x68e   : > { %v4178_v10 = vadd.f32 %v4124_v41, %v4010_v8  ;;  %v4179_v12 = vadd.f32 %v4124_v41, %v4011_v4  ;;  %4711 = vmatpush1.bf16.msra.mxu0 %v9373_v48  ;;  %v4224_v5 = vmax.f32 %v4176_v6, 0.0  ;;  %v4225_v9 = vmax.f32 %v4177_v55, 0.0  ;;  %v6327_v15 = vld [vmem:[%s10627_s4 + $0x144] ss:$8 sps:$4 sm:$0xff]   ;;  %v6329_v8 = vld [vmem:[%s10627_s4 + $0x140] ss:$8 sps:$4 sm:$0xff]  }
 0x68f   : > { %5958 = vmatpush1.bf16.msra.mxu1 %v9373_v48  ;;  %v6464_v48 = vld [vmem:[#allocation2 + $0x178] sm:$0xff]  ;;  %v6336_v36 = vld [vmem:[%s10627_s4 + $0x84] ss:$8 sps:$4 sm:$0xff]  }
 0x690   : > { %v4226_v42 = vmax.f32 %v4178_v10, 0.0  ;;  %v4227_v0 = vmax.f32 %v4179_v12, 0.0  ;;  %v4364_v40 = vld [vmem:[#allocation3 + $0x88] sm:$0xff]  ;;  %v4015_v54 = vmul.f32 %v6464_v48, %v9296_v11  ;;  %v6333_v4 = vld [vmem:[%s10627_s4 + $0x154] ss:$8 sps:$4 sm:$0xff]  }
 0x691   : > { %4712 = vmatprep.subr.bf16.mxu0 %v4364_v40  ;;  %5947 = vmatprep.subr.bf16.mxu1 %v4364_v40  ;;  %v6332_v6 = vld [vmem:[%s10627_s4 + $0x70] ss:$8 sps:$4 sm:$0xff]   ;;  %v6339_v41 = vld [vmem:[%s10627_s4 + $0x164] ss:$8 sps:$4 sm:$0xff]   ;;  %v6338_v10 = vld [vmem:[%s10627_s4 + $0x80] ss:$8 sps:$4 sm:$0xff]  }
 0x692   : > { %v4252_v52 = vpack.c.bf16 %v4226_v42, %v4224_v5  ;;  %v4253_v28 = vpack.c.bf16 %v4227_v0, %v4225_v9  ;;  %4713 = vmatpush1.bf16.msra.mxu0 %v4248_v7  ;;  %v6335_v55 = vld [vmem:[%s10627_s4 + $0x150] ss:$8 sps:$4 sm:$0xff]   ;;  %v6341_v12 = vld [vmem:[%s10627_s4 + $0x160] ss:$8 sps:$4 sm:$0xff]   ;;  %v6342_v5 = vld [vmem:[%s10627_s4 + $0x94] ss:$8 sps:$4 sm:$0xff]  }
 0x693   : > { %5959 = vmatpush1.bf16.msra.mxu1 %v4248_v7  ;;  %v4129_v30 = vpop.permute.xlu0 %4128  ;;  %v6302_v7 = vld [vmem:[%s10627_s4 + $0x20] ss:$8 sps:$4 sm:$0xff]   ;;  %v6345_v9 = vld [vmem:[%s10627_s4 + $0x174] ss:$8 sps:$4 sm:$0xff]   ;;  %v6344_v42 = vld [vmem:[%s10627_s4 + $0x90] ss:$8 sps:$4 sm:$0xff]  }
 0x694   : > { %4277 = vst.msk [vmem:[#allocation3 + $0xa8] sm:$0xff] %vm505_vm0, %v4253_v28  ;;  %v4180_v63 = vadd.f32 %v4129_v30, %v4012_v62  ;;  %v4181_v3 = vadd.f32 %v4129_v30, %v4013_v20  ;;  %v4366_v39 = vld [vmem:[#allocation3 + $0x98] sm:$0xff]  ;;  %v6348_v40 = vld [vmem:[%s10627_s4 + $0xa4] ss:$8 sps:$4 sm:$0xff]   ;;  %v6350_v62 = vld [vmem:[%s10627_s4 + $0xa0] ss:$8 sps:$4 sm:$0xff]  }
 0x695   : > { %4291 = vst.msk [vmem:[#allocation3 + $0xa8] sm:$0xff] %vm4280_vm2, %v6492_v13  ;;  %v4134_v35 = vpop.permute.xlu1 %4133  ;;  %4714 = vmatprep.subr.bf16.mxu0 %v4366_v39  ;;  %5948 = vmatprep.subr.bf16.mxu1 %v4366_v39  ;;  %v6347_v0 = vld [vmem:[%s10627_s4 + $0x170] ss:$8 sps:$4 sm:$0xff]   ;;  %v6354_v20 = vld [vmem:[%s10627_s4 + $0xb4] ss:$8 sps:$4 sm:$0xff]  }
 0x696   : > { %v4182_v56 = vadd.f32 %v4134_v35, %v4014_v14  ;;  %v4183_v53 = vadd.f32 %v4134_v35, %v4015_v54  ;;  %4715 = vmatpush1.bf16.msra.mxu0 %v4250_v25  ;;  %v4228_v61 = vmax.f32 %v4180_v63, 0.0  ;;  %v4229_v1 = vmax.f32 %v4181_v3, 0.0  ;;  %v6356_v28 = vld [vmem:[%s10627_s4 + $0xb0] ss:$8 sps:$4 sm:$0xff]   ;;  %v6362_v14 = vld [vmem:[%s10627_s4 + $0x1a0] ss:$8 sps:$4 sm:$0xff]  }
 0x697   : > { %5960 = vmatpush1.bf16.msra.mxu1 %v4250_v25  ;;  %v6323_v25 = vld [vmem:[%s10627_s4 + $0x130] ss:$8 sps:$4 sm:$0xff]   ;;  %v6363_v48 = vld [vmem:[%s10627_s4 + $0xc4] ss:$8 sps:$4 sm:$0xff]   ;;  %v6365_v54 = vld [vmem:[%s10627_s4 + $0xc0] ss:$8 sps:$4 sm:$0xff]  }
 0x698   : > { %v4230_v45 = vmax.f32 %v4182_v56, 0.0  ;;  %v4231_v34 = vmax.f32 %v4183_v53, 0.0  ;;  %v6359_v30 = vld [vmem:[%s10627_s4 + $0x190] ss:$8 sps:$4 sm:$0xff]   ;;  %v6366_v63 = vld [vmem:[%s10627_s4 + $0xd4] ss:$8 sps:$4 sm:$0xff]  }
 0x699   : > { %v6368_v3 = vld [vmem:[%s10627_s4 + $0xd0] ss:$8 sps:$4 sm:$0xff]  }
 0x69a   : > { %v4254_v11 = vpack.c.bf16 %v4230_v45, %v4228_v61  ;;  %v4255_v17 = vpack.c.bf16 %v4231_v34, %v4229_v1 }
 0x69c   : > { %4279 = vst.msk [vmem:[#allocation3 + $0xb8] sm:$0xff] %vm505_vm0, %v4255_v17  ;;  %v4368_v50 = vld [vmem:[#allocation3 + $0xa8] sm:$0xff] }
 0x69d   : > { %4292 = vst.msk [vmem:[#allocation3 + $0xb8] sm:$0xff] %vm4280_vm2, %v6492_v13  ;;  %4716 = vmatprep.subr.bf16.mxu0 %v4368_v50  ;;  %5949 = vmatprep.subr.bf16.mxu1 %v4368_v50  ;;  %v6294_v13 = vld [vmem:[%s10627_s4 + $0x14] ss:$8 sps:$4 sm:$0xff]  }
 0x69e   : > { %4717 = vmatpush1.bf16.msra.mxu0 %v4252_v52  ;;  %5961 = vmatpush1.bf16.msra.mxu1 %v4252_v52  ;;  %v6357_v52 = vld [vmem:[%s10627_s4 + $0x194] ss:$8 sps:$4 sm:$0xff]  }
 0x6a4   : > { %v4370_v27 = vld [vmem:[#allocation3 + $0xb8] sm:$0xff] }
 0x6a5   : > { %4718 = vmatprep.subr.bf16.mxu0 %v4370_v27  ;;  %5950 = vmatprep.subr.bf16.mxu1 %v4370_v27 }
 0x6a6   : > { %4719 = vmatpush1.bf16.msra.mxu0 %v4254_v11  ;;  %5962 = vmatpush1.bf16.msra.mxu1 %v4254_v11 }
 0x6a9   : > { %4729 = vmatmul.mubr.bf16.vlgmr.msra.gmra.mrb[0].mxu0 %v6288_v59  ;;  %4869 = vmatmul.mubr.bf16.vlgmr.msra.gmra.mrb[0].mxu1 %v6291_v18 }
 0x6aa   : > { %5853 = vmatprep.mubr.msk.bf16.mxu0 %vm4614_vm1, %v6294_v13  ;;  %5867 = vmatprep.mubr.msk.bf16.mxu1 %vm4614_vm1, %v6297_v60 }
 0x6b1   : > { %4739 = vmatmul.mubr.bf16.gmra.mrb[4].mxu0 %v6296_v16  ;;  %4879 = vmatmul.mubr.bf16.gmra.mrb[4].mxu1 %v6299_v38 }
 0x6b2   : > { %5854 = vmatprep.mubr.msk.bf16.mxu0 %vm4614_vm1, %v6300_v21  ;;  %5868 = vmatprep.mubr.msk.bf16.mxu1 %vm4614_vm1, %v6303_v43 }
 0x6b9   : > { %4749 = vmatmul.mubr.bf16.gmra.mrb[8].mxu0 %v6302_v7  ;;  %4889 = vmatmul.mubr.bf16.gmra.mrb[8].mxu1 %v6305_v24 }
 0x6ba   : > { %5855 = vmatprep.mubr.msk.bf16.mxu0 %vm4614_vm1, %v6306_v22  ;;  %5869 = vmatprep.mubr.msk.bf16.mxu1 %vm4614_vm1, %v6309_v44 }
 0x6c1   : > { %4759 = vmatmul.mubr.bf16.gmra.mrb[12].mxu0 %v6308_v2  ;;  %4899 = vmatmul.mubr.bf16.gmra.mrb[12].mxu1 %v6311_v23 }
 0x6c2   : > { %5856 = vmatprep.mubr.msk.bf16.mxu0 %vm4614_vm1, %v6312_v33  ;;  %5870 = vmatprep.mubr.msk.bf16.mxu1 %vm4614_vm1, %v6315_v51 }
 0x6c9   : > { %4769 = vmatmul.mubr.bf16.gmra.mrb[16].mxu0 %v6314_v32  ;;  %4909 = vmatmul.mubr.bf16.gmra.mrb[16].mxu1 %v6317_v37 }
 0x6ca   : > { %5857 = vmatprep.mubr.msk.bf16.mxu0 %vm4614_vm1, %v6318_v57  ;;  %5871 = vmatprep.mubr.msk.bf16.mxu1 %vm4614_vm1, %v6321_v47 }
 0x6d1   : > { %4779 = vmatmul.mubr.bf16.gmra.mrb[20].mxu0 %v6320_v26  ;;  %4919 = vmatmul.mubr.bf16.gmra.mrb[20].mxu1 %v6323_v25 }
 0x6d2   : > { %5858 = vmatprep.mubr.msk.bf16.mxu0 %vm4614_vm1, %v6324_v46  ;;  %5872 = vmatprep.mubr.msk.bf16.mxu1 %vm4614_vm1, %v6327_v15 }
 0x6d9   : > { %4789 = vmatmul.mubr.bf16.gmra.mrb[24].mxu0 %v6326_v58  ;;  %4929 = vmatmul.mubr.bf16.gmra.mrb[24].mxu1 %v6329_v8 }
 0x6da   : > { %5859 = vmatprep.mubr.msk.bf16.mxu0 %vm4614_vm1, %v6330_v19  ;;  %5873 = vmatprep.mubr.msk.bf16.mxu1 %vm4614_vm1, %v6333_v4 }
 0x6e1   : > { %4799 = vmatmul.mubr.bf16.gmra.mrb[28].mxu0 %v6332_v6  ;;  %4939 = vmatmul.mubr.bf16.gmra.mrb[28].mxu1 %v6335_v55 }
 0x6e2   : > { %5860 = vmatprep.mubr.msk.bf16.mxu0 %vm4614_vm1, %v6336_v36  ;;  %5874 = vmatprep.mubr.msk.bf16.mxu1 %vm4614_vm1, %v6339_v41 }
 0x6e9   : > { %4809 = vmatmul.mubr.bf16.gmra.mrb[32].mxu0 %v6338_v10  ;;  %4949 = vmatmul.mubr.bf16.gmra.mrb[32].mxu1 %v6341_v12 }
 0x6ea   : > { %5861 = vmatprep.mubr.msk.bf16.mxu0 %vm4614_vm1, %v6342_v5  ;;  %5875 = vmatprep.mubr.msk.bf16.mxu1 %vm4614_vm1, %v6345_v9 }
 0x6f1   : > { %4819 = vmatmul.mubr.bf16.gmra.mrb[36].mxu0 %v6344_v42  ;;  %4959 = vmatmul.mubr.bf16.gmra.mrb[36].mxu1 %v6347_v0 }
 0x6f2   : > { %5862 = vmatprep.mubr.msk.bf16.mxu0 %vm4614_vm1, %v6348_v40  ;;  %5876 = vmatprep.mubr.msk.bf16.mxu1 %vm4614_vm1, %v6351_v49 }
 0x6f9   : > { %4829 = vmatmul.mubr.bf16.gmra.mrb[40].mxu0 %v6350_v62  ;;  %4969 = vmatmul.mubr.bf16.gmra.mrb[40].mxu1 %v6353_v31 }
 0x6fa   : > { %5863 = vmatprep.mubr.msk.bf16.mxu0 %vm4614_vm1, %v6354_v20  ;;  %5877 = vmatprep.mubr.msk.bf16.mxu1 %vm4614_vm1, %v6357_v52 }
 0x701   : > { %4839 = vmatmul.mubr.bf16.gmra.mrb[44].mxu0 %v6356_v28  ;;  %4979 = vmatmul.mubr.bf16.gmra.mrb[44].mxu1 %v6359_v30 }
 0x702   : > { %5878 = vmatprep.mubr.msk.bf16.mxu1 %vm4614_vm1, %v6360_v29  ;;  %5864 = vmatprep.mubr.msk.bf16.mxu0 %vm4614_vm1, %v6363_v48 }
 0x709   : > { %4989 = vmatmul.mubr.bf16.gmra.mrb[48].mxu1 %v6362_v14  ;;  %4849 = vmatmul.mubr.bf16.gmra.mrb[48].mxu0 %v6365_v54 }
 0x70a   : > { %5865 = vmatprep.mubr.msk.bf16.mxu0 %vm4614_vm1, %v6366_v63 }
 0x711   : > { %4859 = vmatmul.mubr.bf16.gmra.mrb[52].mxu0 %v6368_v3 }
 0x77c   : > { %v4730_v35 = vpop.f32.mrb[0].mxu0  ;;  %v9591_v39 = vpop.f32.mrb[0].mxu1 }
 0x77d   : > { %4999 = vrot.lane.b32.xlu0 %v4730_v35, %s6495_s23  ;;  %v4732_v56 = vpop.f32.mrb[1].mxu0  ;;  %v9594_v53 = vpop.f32.mrb[1].mxu1 }
 0x77e   : > { %v4734_v61 = vpop.f32.mrb[2].mxu0  ;;  %v9596_v1 = vpop.f32.mrb[2].mxu1 }
 0x77f   : > { %5001 = vrot.lane.b32.xlu1 %v4734_v61, %s6495_s23  ;;  %v4736_v45 = vpop.f32.mrb[3].mxu0  ;;  %v9599_v34 = vpop.f32.mrb[3].mxu1 }
 0x781   : > { %5011 = vrot.lane.b32.xlu0 %v4732_v56, %s6495_s23 }
 0x783   : > { %5013 = vrot.lane.b32.xlu1 %v4736_v45, %s6495_s23 }
 0x784   : > { %v4740_v11 = vpop.f32.mrb[4].mxu0  ;;  %v4880_v17 = vpop.f32.mrb[4].mxu1 }
 0x785   : > { %5003 = vrot.lane.b32.xlu0 %v4740_v11, %s6495_s23  ;;  %v4742_v50 = vpop.f32.mrb[5].mxu0  ;;  %v4882_v27 = vpop.f32.mrb[5].mxu1 }
 0x786   : > { %v4744_v59 = vpop.f32.mrb[6].mxu0  ;;  %v4884_v18 = vpop.f32.mrb[6].mxu1 }
 0x787   : > { %5005 = vrot.lane.b32.xlu1 %v4744_v59, %s6495_s23  ;;  %v4746_v13 = vpop.f32.mrb[7].mxu0  ;;  %v4886_v60 = vpop.f32.mrb[7].mxu1 }
 0x789   : > { %5333 = vrot.lane.b32.xlu0 %v4880_v17, %s6496_s26 }
 0x78b   : > { %5335 = vrot.lane.b32.xlu1 %v4884_v18, %s6496_s26 }
 0x78c   : > { %v4750_v16 = vpop.f32.mrb[8].mxu0  ;;  %v4890_v38 = vpop.f32.mrb[8].mxu1 }
 0x78d   : > { %5015 = vrot.lane.b32.xlu0 %v4742_v50, %s6495_s23  ;;  %v4752_v21 = vpop.f32.mrb[9].mxu0  ;;  %v4892_v43 = vpop.f32.mrb[9].mxu1 }
 0x78e   : > { %v4754_v7 = vpop.f32.mrb[10].mxu0  ;;  %v4894_v24 = vpop.f32.mrb[10].mxu1 }
 0x78f   : > { %5017 = vrot.lane.b32.xlu1 %v4746_v13, %s6495_s23  ;;  %v4756_v22 = vpop.f32.mrb[11].mxu0  ;;  %v4896_v44 = vpop.f32.mrb[11].mxu1 }
 0x791   : > { %5345 = vrot.lane.b32.xlu0 %v4882_v27, %s6496_s26 }
 0x793   : > { %5347 = vrot.lane.b32.xlu1 %v4886_v60, %s6496_s26 }
 0x794   : > { %v4760_v2 = vpop.f32.mrb[12].mxu0  ;;  %v4900_v23 = vpop.f32.mrb[12].mxu1 }
 0x795   : > { %5007 = vrot.lane.b32.xlu0 %v4750_v16, %s6495_s23  ;;  %v4762_v33 = vpop.f32.mrb[13].mxu0  ;;  %v4902_v51 = vpop.f32.mrb[13].mxu1 }
 0x796   : > { %v4764_v32 = vpop.f32.mrb[14].mxu0  ;;  %v4904_v37 = vpop.f32.mrb[14].mxu1 }
 0x797   : > { %5009 = vrot.lane.b32.xlu1 %v4754_v7, %s6495_s23  ;;  %v4766_v57 = vpop.f32.mrb[15].mxu0  ;;  %v4906_v47 = vpop.f32.mrb[15].mxu1 }
 0x799   : > { %5337 = vrot.lane.b32.xlu0 %v4890_v38, %s6496_s26 }
 0x79b   : > { %5339 = vrot.lane.b32.xlu1 %v4894_v24, %s6496_s26 }
 0x79c   : > { %v4770_v26 = vpop.f32.mrb[16].mxu0  ;;  %v4910_v25 = vpop.f32.mrb[16].mxu1 }
 0x79d   : > { %5019 = vrot.lane.b32.xlu0 %v4752_v21, %s6495_s23  ;;  %v4772_v46 = vpop.f32.mrb[17].mxu0  ;;  %v4912_v15 = vpop.f32.mrb[17].mxu1 }
 0x79e   : > { %v4774_v58 = vpop.f32.mrb[18].mxu0  ;;  %v4914_v8 = vpop.f32.mrb[18].mxu1 }
 0x79f   : > { %5021 = vrot.lane.b32.xlu1 %v4756_v22, %s6495_s23  ;;  %v4776_v19 = vpop.f32.mrb[19].mxu0  ;;  %v4916_v4 = vpop.f32.mrb[19].mxu1 }
 0x7a1   : > { %5349 = vrot.lane.b32.xlu0 %v4892_v43, %s6496_s26 }
 0x7a3   : > { %5351 = vrot.lane.b32.xlu1 %v4896_v44, %s6496_s26 }
 0x7a4   : > { %v4780_v6 = vpop.f32.mrb[20].mxu0  ;;  %v4920_v55 = vpop.f32.mrb[20].mxu1 }
 0x7a5   : > { %5074 = vrot.lane.b32.xlu0 %v4760_v2, %s6497_s27  ;;  %v4782_v36 = vpop.f32.mrb[21].mxu0  ;;  %v9620_v41 = vpop.f32.mrb[21].mxu1 }
 0x7a6   : > { %v4784_v10 = vpop.f32.mrb[22].mxu0  ;;  %v4924_v12 = vpop.f32.mrb[22].mxu1 }
 0x7a7   : > { %5076 = vrot.lane.b32.xlu1 %v4764_v32, %s6497_s27  ;;  %v4786_v5 = vpop.f32.mrb[23].mxu0  ;;  %v4926_v9 = vpop.f32.mrb[23].mxu1 }
 0x7a9   : > { %5341 = vrot.lane.b32.xlu0 %v4900_v23, %s6496_s26 }
 0x7ab   : > { %5343 = vrot.lane.b32.xlu1 %v4904_v37, %s6496_s26 }
 0x7ac   : > { %v9625_v42 = vpop.f32.mrb[24].mxu0  ;;  %v9627_v0 = vpop.f32.mrb[24].mxu1 }
 0x7ad   : > { %5086 = vrot.lane.b32.xlu0 %v4762_v33, %s6497_s27  ;;  %v9630_v40 = vpop.f32.mrb[25].mxu0  ;;  %v9632_v49 = vpop.f32.mrb[25].mxu1 }
 0x7ae   : > { %v9634_v62 = vpop.f32.mrb[26].mxu0  ;;  %v9636_v31 = vpop.f32.mrb[26].mxu1 }
 0x7af   : > { %5088 = vrot.lane.b32.xlu1 %v4766_v57, %s6497_s27  ;;  %v9639_v20 = vpop.f32.mrb[27].mxu0  ;;  %v9641_v52 = vpop.f32.mrb[27].mxu1 }
 0x7b1   : > { %5353 = vrot.lane.b32.xlu0 %v4902_v51, %s6496_s26 }
 0x7b3   : > { %5355 = vrot.lane.b32.xlu1 %v4906_v47, %s6496_s26 }
 0x7b4   : > { %v9645_v28 = vpop.f32.mrb[28].mxu0  ;;  %v9647_v30 = vpop.f32.mrb[28].mxu1 }
 0x7b5   : > { %5078 = vrot.lane.b32.xlu0 %v4770_v26, %s6497_s27  ;;  %v9650_v29 = vpop.f32.mrb[29].mxu0  ;;  %v9652_v14 = vpop.f32.mrb[29].mxu1 }
 0x7b6   : > { %v9654_v48 = vpop.f32.mrb[30].mxu0  ;;  %v9656_v54 = vpop.f32.mrb[30].mxu1 }
 0x7b7   : > { %5080 = vrot.lane.b32.xlu1 %v4774_v58, %s6497_s27  ;;  %v9659_v63 = vpop.f32.mrb[31].mxu0  ;;  %v9661_v3 = vpop.f32.mrb[31].mxu1 }
 0x7b9   : > { %5407 = vrot.lane.b32.xlu0 %v4910_v25, %s6498_s29 }
 0x7bb   : > { %5409 = vrot.lane.b32.xlu1 %v4914_v8, %s6498_s29 }
 0x7bc   : > { %v9665_v35 = vpop.f32.mrb[32].mxu0  ;;  %v9667_v56 = vpop.f32.mrb[32].mxu1 }
 0x7bd   : > { %5090 = vrot.lane.b32.xlu0 %v4772_v46, %s6497_s27  ;;  %v9670_v61 = vpop.f32.mrb[33].mxu0  ;;  %v9672_v45 = vpop.f32.mrb[33].mxu1 }
 0x7be   : > { %v9674_v11 = vpop.f32.mrb[34].mxu0  ;;  %v9676_v17 = vpop.f32.mrb[34].mxu1 }
 0x7bf   : > { %5092 = vrot.lane.b32.xlu1 %v4776_v19, %s6497_s27  ;;  %v9679_v50 = vpop.f32.mrb[35].mxu0  ;;  %v9681_v27 = vpop.f32.mrb[35].mxu1 }
 0x7c1   : > { %5419 = vrot.lane.b32.xlu0 %v4912_v15, %s6498_s29 }
 0x7c3   : > { %5421 = vrot.lane.b32.xlu1 %v4916_v4, %s6498_s29 }
 0x7c4   : > { %v9685_v59 = vpop.f32.mrb[36].mxu0  ;;  %v9687_v18 = vpop.f32.mrb[36].mxu1 }
 0x7c5   : > { %5082 = vrot.lane.b32.xlu0 %v4780_v6, %s6497_s27  ;;  %v9690_v13 = vpop.f32.mrb[37].mxu0  ;;  %v9692_v60 = vpop.f32.mrb[37].mxu1  ;;  %v5023_v6 = vlaneseq }
 0x7c6   : > { %v9694_v16 = vpop.f32.mrb[38].mxu0  ;;  %v9696_v38 = vpop.f32.mrb[38].mxu1 }
 0x7c7   : > { %5084 = vrot.lane.b32.xlu1 %v4784_v10, %s6497_s27  ;;  %v9699_v21 = vpop.f32.mrb[39].mxu0  ;;  %v9701_v43 = vpop.f32.mrb[39].mxu1 }
 0x7c9   : > { %5411 = vrot.lane.b32.xlu0 %v4920_v55, %s6498_s29  ;;  %v9775_v55 = vand.u32 127, %v5023_v6 }
 0x7cb   : > { %5413 = vrot.lane.b32.xlu1 %v4924_v12, %s6498_s29  ;;  %vm5025_vm3 = vcmp.lt.s32.totalorder %v9775_v55, 15  ;;  %vm5357_vm4 = vcmp.lt.s32.totalorder %v9775_v55, 127  ;;  %vm5098_vm5 = vcmp.lt.s32.totalorder %v9775_v55, 14  ;;  %vm5431_vm6 = vcmp.lt.s32.totalorder %v9775_v55, 115 }
 0x7cc   : > { %v9705_v7 = vpop.f32.mrb[40].mxu0  ;;  %v9707_v24 = vpop.f32.mrb[40].mxu1  ;;  %vm5172_vm7 = vcmp.lt.s32.totalorder %v9775_v55, 13  ;;  %vm5246_vm8 = vcmp.lt.s32.totalorder %v9775_v55, 1  ;;  %vm5505_vm9 = vcmp.lt.s32.totalorder %v9775_v55, 114  ;;  %vm5579_vm10 = vcmp.lt.s32.totalorder %v9775_v55, 113 }
 0x7cd   : > { %5094 = vrot.lane.b32.xlu0 %v4782_v36, %s6497_s27  ;;  %v9710_v22 = vpop.f32.mrb[41].mxu0  ;;  %v9712_v44 = vpop.f32.mrb[41].mxu1 }
 0x7ce   : > { %v9714_v2 = vpop.f32.mrb[42].mxu0  ;;  %v9716_v23 = vpop.f32.mrb[42].mxu1 }
 0x7cf   : > { %5096 = vrot.lane.b32.xlu1 %v4786_v5, %s6497_s27  ;;  %v9719_v33 = vpop.f32.mrb[43].mxu0  ;;  %v9721_v51 = vpop.f32.mrb[43].mxu1 }
 0x7d1   : > { %5423 = vrot.lane.b32.xlu0 %v9620_v41, %s6498_s29 }
 0x7d3   : > { %5425 = vrot.lane.b32.xlu1 %v4926_v9, %s6498_s29 }
 0x7d4   : > { %v9726_v32 = vpop.f32.mrb[44].mxu0  ;;  %v9728_v37 = vpop.f32.mrb[44].mxu1 }
 0x7d5   : > { %5148 = vrot.lane.b32.xlu0 %v9625_v42, %s6499_s21  ;;  %v9732_v57 = vpop.f32.mrb[45].mxu0  ;;  %v9734_v47 = vpop.f32.mrb[45].mxu1 }
 0x7d6   : > { %v9736_v26 = vpop.f32.mrb[46].mxu0  ;;  %v9738_v25 = vpop.f32.mrb[46].mxu1 }
 0x7d7   : > { %5150 = vrot.lane.b32.xlu1 %v9634_v62, %s6499_s21  ;;  %v9742_v46 = vpop.f32.mrb[47].mxu0  ;;  %v9744_v15 = vpop.f32.mrb[47].mxu1 }
 0x7d9   : > { %5415 = vrot.lane.b32.xlu0 %v9627_v0, %s6498_s29 }
 0x7db   : > { %5417 = vrot.lane.b32.xlu1 %v9636_v31, %s6498_s29 }
 0x7dc   : > { %v9750_v58 = vpop.f32.mrb[48].mxu1 }
 0x7dd   : > { %5160 = vrot.lane.b32.xlu0 %v9630_v40, %s6499_s21  ;;  %v9754_v8 = vpop.f32.mrb[49].mxu1 }
 0x7de   : > { %v9756_v19 = vpop.f32.mrb[50].mxu1 }
 0x7df   : > { %5162 = vrot.lane.b32.xlu1 %v9639_v20, %s6499_s21  ;;  %v9760_v4 = vpop.f32.mrb[51].mxu1 }
 0x7e1   : > { %5427 = vrot.lane.b32.xlu0 %v9632_v49, %s6498_s29 }
 0x7e3   : > { %5429 = vrot.lane.b32.xlu1 %v9641_v52, %s6498_s29 }
 0x7e5   : > { %5152 = vrot.lane.b32.xlu0 %v9645_v28, %s6499_s21 }
 0x7e7   : > { %5154 = vrot.lane.b32.xlu1 %v9654_v48, %s6499_s21  ;;  %v9833_v48 = vpop.f32.mrb[48].mxu0 }
 0x7e9   : > { %5481 = vrot.lane.b32.xlu0 %v9647_v30, %s6500_s24 }
 0x7eb   : > { %5483 = vrot.lane.b32.xlu1 %v9656_v54, %s6500_s24 }
 0x7ed   : > { %5164 = vrot.lane.b32.xlu0 %v9650_v29, %s6499_s21 }
 0x7ef   : > { %v5000_v36 = vpop.permute.xlu0 %4999  ;;  %5166 = vrot.lane.b32.xlu1 %v9659_v63, %s6499_s21  ;;  %v9837_v63 = vpop.f32.mrb[49].mxu0 }
 0x7f1   : > { %v5002_v41 = vpop.permute.xlu1 %5001  ;;  %5493 = vrot.lane.b32.xlu0 %v9652_v14, %s6500_s24 }
 0x7f3   : > { %v5012_v10 = vpop.permute.xlu0 %5011  ;;  %5495 = vrot.lane.b32.xlu1 %v9661_v3, %s6500_s24 }
 0x7f4   : > { %v9788_v12 = vsel %vm5025_vm3, %v5000_v36, %v5012_v10  ;;  %v9792_v5 = vsel %vm5025_vm3, %v5012_v10, %v5000_v36 }
 0x7f5   : > { %v5014_v9 = vpop.permute.xlu1 %5013  ;;  %5156 = vrot.lane.b32.xlu0 %v9665_v35, %s6499_s21 }
 0x7f6   : > { %v9798_v42 = vsel %vm5025_vm3, %v5002_v41, %v5014_v9  ;;  %v9802_v0 = vsel %vm5025_vm3, %v5014_v9, %v5002_v41 }
 0x7f7   : > { %v5004_v40 = vpop.permute.xlu0 %5003  ;;  %5158 = vrot.lane.b32.xlu1 %v9674_v11, %s6499_s21 }
 0x7f9   : > { %v5006_v49 = vpop.permute.xlu1 %5005  ;;  %5485 = vrot.lane.b32.xlu0 %v9667_v56, %s6500_s24  ;;  %v9847_v56 = vpop.f32.mrb[50].mxu0 }
 0x7fb   : > { %v5334_v62 = vpop.permute.xlu0 %5333  ;;  %5487 = vrot.lane.b32.xlu1 %v9676_v17, %s6500_s24 }
 0x7fd   : > { %v5336_v31 = vpop.permute.xlu1 %5335  ;;  %5168 = vrot.lane.b32.xlu0 %v9670_v61, %s6499_s21 }
 0x7ff   : > { %v5016_v20 = vpop.permute.xlu0 %5015  ;;  %5170 = vrot.lane.b32.xlu1 %v9679_v50, %s6499_s21 }
 0x800   : > { %v9816_v52 = vsel %vm5025_vm3, %v5004_v40, %v5016_v20  ;;  %v9820_v28 = vsel %vm5025_vm3, %v5016_v20, %v5004_v40 }
 0x801   : > { %v5018_v30 = vpop.permute.xlu1 %5017  ;;  %5497 = vrot.lane.b32.xlu0 %v9672_v45, %s6500_s24  ;;  %v9851_v45 = vpop.f32.mrb[51].mxu0 }
 0x802   : > { %v9827_v29 = vsel %vm5025_vm3, %v5006_v49, %v5018_v30  ;;  %v9831_v14 = vsel %vm5025_vm3, %v5018_v30, %v5006_v49 }
 0x803   : > { %v5346_v54 = vpop.permute.xlu0 %5345  ;;  %5499 = vrot.lane.b32.xlu1 %v9681_v27, %s6500_s24 }
 0x804   : > { %v9841_v3 = vsel %vm5357_vm4, %v5334_v62, %v5346_v54  ;;  %v9845_v35 = vsel %vm5357_vm4, %v5346_v54, %v5334_v62 }
 0x805   : > { %v5348_v61 = vpop.permute.xlu1 %5347  ;;  %5222 = vrot.lane.b32.xlu0 %v9685_v59, %s6493_s8 }
 0x806   : > { %v9855_v11 = vsel %vm5357_vm4, %v5336_v31, %v5348_v61  ;;  %v9859_v17 = vsel %vm5357_vm4, %v5348_v61, %v5336_v31 }
 0x807   : > { %v5008_v50 = vpop.permute.xlu0 %5007  ;;  %5224 = vrot.lane.b32.xlu1 %v9694_v16, %s6493_s8 }
 0x809   : > { %v5010_v27 = vpop.permute.xlu1 %5009  ;;  %5489 = vrot.lane.b32.xlu0 %v9687_v18, %s6500_s24 }
 0x80b   : > { %v5338_v36 = vpop.permute.xlu0 %5337  ;;  %5491 = vrot.lane.b32.xlu1 %v9696_v38, %s6500_s24 }
 0x80d   : > { %v5340_v59 = vpop.permute.xlu1 %5339  ;;  %5234 = vrot.lane.b32.xlu0 %v9690_v13, %s6493_s8 }
 0x80f   : > { %v5020_v41 = vpop.permute.xlu0 %5019  ;;  %5236 = vrot.lane.b32.xlu1 %v9699_v21, %s6493_s8  ;;  %v9889_v21 = vpop.f32.mrb[52].mxu0 }
 0x810   : > { %v9873_v10 = vsel %vm5025_vm3, %v5008_v50, %v5020_v41  ;;  %v9877_v16 = vsel %vm5025_vm3, %v5020_v41, %v5008_v50  ;;  %v9893_v40 = vpop.f32.mrb[53].mxu0 }
 0x811   : > { %v5022_v18 = vpop.permute.xlu1 %5021  ;;  %5501 = vrot.lane.b32.xlu0 %v9692_v60, %s6500_s24  ;;  %v9903_v62 = vpop.f32.mrb[54].mxu0 }
 0x812   : > { %v9883_v38 = vsel %vm5025_vm3, %v5010_v27, %v5022_v18  ;;  %v9887_v13 = vsel %vm5025_vm3, %v5022_v18, %v5010_v27  ;;  %v9907_v20 = vpop.f32.mrb[55].mxu0  ;;  %v5879_v27 = vld [vmem:[%s10628_s5 + $0x2] sm:$0x3] }
 0x813   : > { %v5350_v9 = vpop.permute.xlu0 %5349  ;;  %5503 = vrot.lane.b32.xlu1 %v9701_v43, %s6500_s24  ;;  %10904 = vst [vmem:[#allocation42_spill] sm:$0xff] %v9907_v20  ;;  %v5041_v43 = vshrl.u32 %v5023_v6, 7 }
 0x814   : > { %v9897_v49 = vsel %vm5357_vm4, %v5338_v36, %v5350_v9  ;;  %v9901_v60 = vsel %vm5357_vm4, %v5350_v9, %v5338_v36 }
 0x815   : > { %v5352_v31 = vpop.permute.xlu1 %5351  ;;  %5226 = vrot.lane.b32.xlu0 %v9705_v7, %s6493_s8  ;;  %v5038_v7 = vld [vmem:[%s10628_s5] sm:$0x3]  ;;  %v9925_v6 = vsub.s32 0, %v5041_v43  ;;  %v9930_v36 = vsub.s32 1, %v5041_v43 }
 0x816   : > { %v9912_v30 = vsel %vm5357_vm4, %v5340_v59, %v5352_v31  ;;  %v9916_v54 = vsel %vm5357_vm4, %v5352_v31, %v5340_v59 }
 0x817   : > { %10905 = vst [vmem:[#allocation43_spill] sm:$0xff] %v9912_v30  ;;  %10906 = vst [vmem:[#allocation44_spill] sm:$0xff] %v9916_v54  ;;  %v5075_v61 = vpop.permute.xlu0 %5074  ;;  %5228 = vrot.lane.b32.xlu1 %v9714_v2, %s6493_s8  ;;  %v9935_v2 = vrot.slane %v5038_v7, %v9925_v6  ;;  %v9938_v41 = vrot.slane %v5038_v7, %v9930_v36  ;;  %v9947_v9 = vrot.slane %v5879_v27, %v9930_v36 }
 0x819   : > { %v5077_v50 = vpop.permute.xlu1 %5076  ;;  %5555 = vrot.lane.b32.xlu0 %v9707_v24, %s6501_s9  ;;  %v9944_v24 = vrot.slane %v5879_v27, %v9925_v6  ;;  %v5051_v7 = vmul.f32 %v9938_v41, %v9788_v12 }
 0x81b   : > { %v5342_v59 = vpop.permute.xlu0 %5341  ;;  %5557 = vrot.lane.b32.xlu1 %v9716_v23, %s6501_s9 }
 0x81d   : > { %v5344_v18 = vpop.permute.xlu1 %5343  ;;  %5238 = vrot.lane.b32.xlu0 %v9710_v22, %s6493_s8  ;;  %v5050_v22 = vmul.f32 %v9935_v2, %v9792_v5 }
 0x81f   : > { %v5087_v31 = vpop.permute.xlu0 %5086  ;;  %5240 = vrot.lane.b32.xlu1 %v9719_v33, %s6493_s8  ;;  %v5052_v33 = vmul.f32 %v9935_v2, %v9802_v0 }
 0x820   : > { %v5099_v23 = vsel %vm5098_vm5, %v5075_v61, %v5087_v31  ;;  %v5105_v43 = vsel %vm5098_vm5, %v5087_v31, %v5075_v61  ;;  %v5053_v61 = vmul.f32 %v9938_v41, %v9798_v42 }
 0x821   : > { %v5124_v54 = vmul.f32 %v9944_v24, %v5105_v43  ;;  %v5125_v27 = vmul.f32 %v9947_v9, %v5099_v23  ;;  %v5089_v30 = vpop.permute.xlu1 %5088  ;;  %5567 = vrot.lane.b32.xlu0 %v9712_v44, %s6501_s9 }
 0x822   : > { %v5100_v5 = vsel %vm5098_vm5, %v5077_v50, %v5089_v30  ;;  %v5106_v12 = vsel %vm5098_vm5, %v5089_v30, %v5077_v50 }
 0x823   : > { %v9971_v31 = vadd.f32 %v5124_v54, %v5050_v22  ;;  %v9973_v43 = vadd.f32 %v5125_v27, %v5051_v7  ;;  %v5126_v23 = vmul.f32 %v9944_v24, %v5106_v12  ;;  %v5127_v44 = vmul.f32 %v9947_v9, %v5100_v5  ;;  %v5354_v20 = vpop.permute.xlu0 %5353  ;;  %5569 = vrot.lane.b32.xlu1 %v9721_v51, %s6501_s9 }
 0x824   : > { %v9981_v42 = vsel %vm5357_vm4, %v5342_v59, %v5354_v20  ;;  %v9985_v0 = vsel %vm5357_vm4, %v5354_v20, %v5342_v59  ;;  %v5057_v5 = vmul.f32 %v9938_v41, %v9827_v29 }
 0x825   : > { %v9987_v30 = vadd.f32 %v5126_v23, %v5052_v33  ;;  %v9989_v54 = vadd.f32 %v5127_v44, %v5053_v61  ;;  %v5356_v50 = vpop.permute.xlu1 %5355  ;;  %5230 = vrot.lane.b32.xlu0 %v9726_v32, %s6493_s8 }
 0x826   : > { %v9995_v22 = vsel %vm5357_vm4, %v5344_v18, %v5356_v50  ;;  %v9999_v51 = vsel %vm5357_vm4, %v5356_v50, %v5344_v18 }
 0x827   : > { %10907 = vst [vmem:[#allocation45_spill] sm:$0xff] %v9995_v22  ;;  %10908 = vst [vmem:[#allocation46_spill] sm:$0xff] %v9999_v51  ;;  %v5079_v7 = vpop.permute.xlu0 %5078  ;;  %5232 = vrot.lane.b32.xlu1 %v9736_v26, %s6493_s8 }
 0x829   : > { %v5081_v20 = vpop.permute.xlu1 %5080  ;;  %5559 = vrot.lane.b32.xlu0 %v9728_v37, %s6501_s9  ;;  %v5054_v37 = vmul.f32 %v9935_v2, %v9820_v28 }
 0x82b   : > { %v5408_v59 = vpop.permute.xlu0 %5407  ;;  %5561 = vrot.lane.b32.xlu1 %v9738_v25, %s6501_s9  ;;  %v5055_v25 = vmul.f32 %v9938_v41, %v9816_v52 }
 0x82d   : > { %v5410_v32 = vpop.permute.xlu1 %5409  ;;  %5242 = vrot.lane.b32.xlu0 %v9732_v57, %s6493_s8 }
 0x82f   : > { %v5091_v27 = vpop.permute.xlu0 %5090  ;;  %5244 = vrot.lane.b32.xlu1 %v9742_v46, %s6493_s8  ;;  %v5056_v46 = vmul.f32 %v9935_v2, %v9831_v14 }
 0x830   : > { %v5101_v18 = vsel %vm5098_vm5, %v5079_v7, %v5091_v27  ;;  %v5107_v26 = vsel %vm5098_vm5, %v5091_v27, %v5079_v7 }
 0x831   : > { %v5128_v57 = vmul.f32 %v9944_v24, %v5107_v26  ;;  %v5129_v33 = vmul.f32 %v9947_v9, %v5101_v18  ;;  %v5093_v61 = vpop.permute.xlu1 %5092  ;;  %5571 = vrot.lane.b32.xlu0 %v9734_v47, %s6501_s9 }
 0x832   : > { %v5102_v28 = vsel %vm5098_vm5, %v5081_v20, %v5093_v61  ;;  %v5108_v52 = vsel %vm5098_vm5, %v5093_v61, %v5081_v20 }
 0x833   : > { %v10032_v12 = vadd.f32 %v5128_v57, %v5054_v37  ;;  %v10034_v23 = vadd.f32 %v5129_v33, %v5055_v25  ;;  %v5130_v44 = vmul.f32 %v9944_v24, %v5108_v52  ;;  %v5131_v47 = vmul.f32 %v9947_v9, %v5102_v28  ;;  %v5420_v50 = vpop.permute.xlu0 %5419  ;;  %5573 = vrot.lane.b32.xlu1 %v9744_v15, %s6501_s9 }
 0x834   : > { %v10042_v29 = vsel %vm5431_vm6, %v5408_v59, %v5420_v50  ;;  %v10046_v14 = vsel %vm5431_vm6, %v5420_v50, %v5408_v59  ;;  %v5058_v33 = vmul.f32 %v9935_v2, %v9877_v16 }
 0x835   : > { %v10048_v7 = vadd.f32 %v5130_v44, %v5056_v46  ;;  %v10050_v20 = vadd.f32 %v5131_v47, %v5057_v5  ;;  %v5422_v27 = vpop.permute.xlu1 %5421  ;;  %5563 = vrot.lane.b32.xlu0 %v9750_v58, %s6501_s9  ;;  %v5061_v5 = vmul.f32 %v9938_v41, %v9883_v38 }
 0x836   : > { %v10056_v18 = vsel %vm5431_vm6, %v5410_v32, %v5422_v27  ;;  %v10060_v15 = vsel %vm5431_vm6, %v5422_v27, %v5410_v32 }
 0x837   : > { %v5083_v26 = vpop.permute.xlu0 %5082  ;;  %5565 = vrot.lane.b32.xlu1 %v9756_v19, %s6501_s9  ;;  %v5059_v19 = vmul.f32 %v9938_v41, %v9873_v10 }
 0x839   : > { %v5085_v59 = vpop.permute.xlu1 %5084  ;;  %5575 = vrot.lane.b32.xlu0 %v9754_v8, %s6501_s9 }
 0x83b   : > { %v5412_v37 = vpop.permute.xlu0 %5411  ;;  %5577 = vrot.lane.b32.xlu1 %v9760_v4, %s6501_s9  ;;  %v5060_v4 = vmul.f32 %v9935_v2, %v9887_v13 }
 0x83d   : > { %v5414_v58 = vpop.permute.xlu1 %5413 }
 0x83f   : > { %v5095_v25 = vpop.permute.xlu0 %5094 }
 0x840   : > { %v5103_v57 = vsel %vm5098_vm5, %v5083_v26, %v5095_v25  ;;  %v5109_v32 = vsel %vm5098_vm5, %v5095_v25, %v5083_v26 }
 0x841   : > { %v5132_v8 = vmul.f32 %v9944_v24, %v5109_v32  ;;  %v5133_v61 = vmul.f32 %v9947_v9, %v5103_v57  ;;  %v5097_v46 = vpop.permute.xlu1 %5096 }
 0x842   : > { %v5104_v28 = vsel %vm5098_vm5, %v5085_v59, %v5097_v46  ;;  %v5110_v16 = vsel %vm5098_vm5, %v5097_v46, %v5085_v59 }
 0x843   : > { %v10086_v52 = vadd.f32 %v5132_v8, %v5058_v33  ;;  %v10088_v10 = vadd.f32 %v5133_v61, %v5059_v19  ;;  %v5134_v44 = vmul.f32 %v9944_v24, %v5110_v16  ;;  %v5135_v47 = vmul.f32 %v9947_v9, %v5104_v28  ;;  %v5424_v50 = vpop.permute.xlu0 %5423 }
 0x844   : > { %v10094_v13 = vsel %vm5431_vm6, %v5412_v37, %v5424_v50  ;;  %v10098_v38 = vsel %vm5431_vm6, %v5424_v50, %v5412_v37  ;;  %v5880_v37 = vld [vmem:[%s10628_s5 + $0x4] sm:$0x3] }
 0x845   : > { %10909 = vst [vmem:[#allocation47_spill] sm:$0xff] %v10086_v52  ;;  %10910 = vst [vmem:[#allocation48_spill] sm:$0xff] %v10088_v10  ;;  %v10100_v2 = vadd.f32 %v5134_v44, %v5060_v4  ;;  %v10102_v41 = vadd.f32 %v5135_v47, %v5061_v5  ;;  %v5426_v27 = vpop.permute.xlu1 %5425  ;;  %v10117_v32 = vrot.slane %v5880_v37, %v9925_v6  ;;  %v5881_v52 = vld [vmem:[%s10628_s5 + $0x6] sm:$0x3] }
 0x846   : > { %v10106_v26 = vsel %vm5431_vm6, %v5414_v58, %v5426_v27  ;;  %v10110_v24 = vsel %vm5431_vm6, %v5426_v27, %v5414_v58  ;;  %v10120_v33 = vrot.slane %v5880_v37, %v9930_v36 }
 0x847   : > { %10911 = vst [vmem:[#allocation49_spill] sm:$0xff] %v10100_v2  ;;  %10912 = vst [vmem:[#allocation50_spill] sm:$0xff] %v10102_v41  ;;  %v5149_v9 = vpop.permute.xlu0 %5148 }
 0x849   : > { %v5151_v59 = vpop.permute.xlu1 %5150 }
 0x84b   : > { %v5416_v25 = vpop.permute.xlu0 %5415 }
 0x84d   : > { %v5418_v57 = vpop.permute.xlu1 %5417 }
 0x84f   : > { %v5161_v19 = vpop.permute.xlu0 %5160 }
 0x850   : > { %v5173_v58 = vsel %vm5172_vm7, %v5149_v9, %v5161_v19  ;;  %v5179_v8 = vsel %vm5172_vm7, %v5161_v19, %v5149_v9 }
 0x851   : > { %v5198_v61 = vmul.f32 %v10117_v32, %v5179_v8  ;;  %v5199_v46 = vmul.f32 %v10120_v33, %v5173_v58  ;;  %v5163_v4 = vpop.permute.xlu1 %5162 }
 0x852   : > { %v5174_v5 = vsel %vm5172_vm7, %v5151_v59, %v5163_v4  ;;  %v5180_v28 = vsel %vm5172_vm7, %v5163_v4, %v5151_v59 }
 0x853   : > { %v10133_v16 = vadd.f32 %v5198_v61, %v9971_v31  ;;  %v10136_v44 = vadd.f32 %v5199_v46, %v9973_v43  ;;  %v5200_v47 = vmul.f32 %v10117_v32, %v5180_v28  ;;  %v5201_v50 = vmul.f32 %v10120_v33, %v5174_v5  ;;  %v5428_v27 = vpop.permute.xlu0 %5427 }
 0x854   : > { %v10142_v9 = vsel %vm5431_vm6, %v5416_v25, %v5428_v27  ;;  %v10146_v37 = vsel %vm5431_vm6, %v5428_v27, %v5416_v25 }
 0x855   : > { %10913 = vst [vmem:[#allocation51_spill] sm:$0xff] %v10142_v9  ;;  %10914 = vst [vmem:[#allocation52_spill] sm:$0xff] %v10146_v37  ;;  %v10149_v59 = vadd.f32 %v5200_v47, %v9987_v30  ;;  %v10152_v31 = vadd.f32 %v5201_v50, %v9989_v54  ;;  %v5430_v43 = vpop.permute.xlu1 %5429  ;;  %v5884_v37 = vld [vmem:[%s10628_s5 + $0xc] sm:$0x3]  ;;  %v5885_v9 = vld [vmem:[%s10628_s5 + $0xe] sm:$0x3] }
 0x856   : > { %v10156_v19 = vsel %vm5431_vm6, %v5418_v57, %v5430_v43  ;;  %v10160_v58 = vsel %vm5431_vm6, %v5430_v43, %v5418_v57 }
 0x857   : > { %10915 = vst [vmem:[#allocation53_spill] sm:$0xff] %v10156_v19  ;;  %10916 = vst [vmem:[#allocation54_spill] sm:$0xff] %v10160_v58  ;;  %v5153_v8 = vpop.permute.xlu0 %5152  ;;  %v5883_v58 = vld [vmem:[%s10628_s5 + $0xa] sm:$0x3] }
 0x859   : > { %v5155_v61 = vpop.permute.xlu1 %5154 }
 0x85b   : > { %v10162_v46 = vpop.permute.xlu0 %5481 }
 0x85d   : > { %v10164_v25 = vpop.permute.xlu1 %5483 }
 0x85f   : > { %v5165_v30 = vpop.permute.xlu0 %5164 }
 0x860   : > { %v5175_v54 = vsel %vm5172_vm7, %v5153_v8, %v5165_v30  ;;  %v5181_v4 = vsel %vm5172_vm7, %v5165_v30, %v5153_v8 }
 0x861   : > { %v5202_v5 = vmul.f32 %v10117_v32, %v5181_v4  ;;  %v5203_v28 = vmul.f32 %v10120_v33, %v5175_v54  ;;  %v5167_v47 = vpop.permute.xlu1 %5166 }
 0x862   : > { %v5176_v57 = vsel %vm5172_vm7, %v5155_v61, %v5167_v47  ;;  %v5182_v50 = vsel %vm5172_vm7, %v5167_v47, %v5155_v61 }
 0x863   : > { %v10177_v27 = vadd.f32 %v5202_v5, %v10032_v12  ;;  %v10180_v43 = vadd.f32 %v5203_v28, %v10034_v23  ;;  %v5204_v41 = vmul.f32 %v10117_v32, %v5182_v50  ;;  %v5205_v8 = vmul.f32 %v10120_v33, %v5176_v57  ;;  %v10184_v30 = vpop.permute.xlu0 %5493 }
 0x865   : > { %10917 = vst [vmem:[#allocation55_spill] sm:$0xff] %v10177_v27  ;;  %10918 = vst [vmem:[#allocation56_spill] sm:$0xff] %v10180_v43  ;;  %v10187_v54 = vadd.f32 %v5204_v41, %v10048_v7  ;;  %v10190_v4 = vadd.f32 %v5205_v8, %v10050_v20  ;;  %v10192_v2 = vpop.permute.xlu1 %5495  ;;  %v5882_v20 = vld [vmem:[%s10628_s5 + $0x8] sm:$0x3] }
 0x866   : > { %v10214_v8 = vrot.slane %v5882_v20, %v9925_v6  ;;  %v10217_v10 = vrot.slane %v5882_v20, %v9930_v36 }
 0x867   : > { %10919 = vst [vmem:[#allocation57_spill] sm:$0xff] %v10187_v54  ;;  %10920 = vst [vmem:[#allocation58_spill] sm:$0xff] %v10190_v4  ;;  %v10194_v61 = vpop.permute.xlu0 %5156 }
 0x868   : > { %v10258_v51 = vmul.f32 %v10214_v8, %v9596_v1  ;;  %v5309_v22 = vmul.f32 %v10214_v8, %v9833_v48  ;;  %v5310_v4 = vmul.f32 %v10217_v10, %v9837_v63  ;;  %v5311_v27 = vmul.f32 %v10214_v8, %v9847_v56 }
 0x869   : > { %v10196_v12 = vpop.permute.xlu1 %5158 }
 0x86a   : > { %10929 = vst [vmem:[#allocation67_spill] sm:$0xff] %v10258_v51 }
 0x86b   : > { %v10198_v23 = vpop.permute.xlu0 %5485 }
 0x86c   : > { %10921 = vst [vmem:[#allocation59_spill] sm:$0xff] %v10198_v23  ;;  %v10248_v23 = vmul.f32 %v10217_v10, %v9594_v53  ;;  %v10268_v53 = vrot.slane %v5884_v37, %v9930_v36 }
 0x86d   : > { %v10200_v5 = vpop.permute.xlu1 %5487 }
 0x86e   : > { %10922 = vst [vmem:[#allocation60_spill] sm:$0xff] %v10200_v5  ;;  %v10237_v5 = vrot.slane %v5881_v52, %v9925_v6  ;;  %10928 = vst [vmem:[#allocation66_spill] sm:$0xff] %v10248_v23 }
 0x86f   : > { %v10202_v28 = vpop.permute.xlu0 %5168 }
 0x871   : > { %v10204_v47 = vpop.permute.xlu1 %5170 }
 0x873   : > { %v10206_v57 = vpop.permute.xlu0 %5497 }
 0x874   : > { %10923 = vst [vmem:[#allocation61_spill] sm:$0xff] %v10206_v57  ;;  %v10251_v57 = vrot.slane %v5883_v58, %v9925_v6 }
 0x875   : > { %v10208_v7 = vpop.permute.xlu1 %5499 }
 0x876   : > { %10924 = vst [vmem:[#allocation62_spill] sm:$0xff] %v10208_v7  ;;  %v10240_v7 = vrot.slane %v5881_v52, %v9930_v36  ;;  %v10262_v52 = vmul.f32 %v10217_v10, %v9599_v34  ;;  %v10324_v56 = vmul.f32 %v10251_v57, %v9897_v49 }
 0x877   : > { %v5223_v41 = vpop.permute.xlu0 %5222 }
 0x878   : > { %10930 = vst [vmem:[#allocation68_spill] sm:$0xff] %v10262_v52 }
 0x879   : > { %v5225_v50 = vpop.permute.xlu1 %5224 }
 0x87b   : > { %v10225_v19 = vpop.permute.xlu0 %5489 }
 0x87c   : > { %10925 = vst [vmem:[#allocation63_spill] sm:$0xff] %v10225_v19  ;;  %v10244_v19 = vmul.f32 %v10214_v8, %v9591_v39  ;;  %v10265_v39 = vrot.slane %v5884_v37, %v9925_v6 }
 0x87d   : > { %v10233_v20 = vpop.permute.xlu1 %5491 }
 0x87e   : > { %10926 = vst [vmem:[#allocation64_spill] sm:$0xff] %v10233_v20  ;;  %10927 = vst [vmem:[#allocation65_spill] sm:$0xff] %v10244_v19  ;;  %v10254_v20 = vrot.slane %v5883_v58, %v9930_v36  ;;  %v10272_v58 = vrot.slane %v5885_v9, %v9925_v6  ;;  %v10275_v19 = vrot.slane %v5885_v9, %v9930_v36 }
 0x87f   : > { %v5235_v23 = vpop.permute.xlu0 %5234  ;;  %v5383_v9 = vmul.f32 %v10251_v57, %v9841_v3  ;;  %v5385_v3 = vmul.f32 %v10251_v57, %v9855_v11  ;;  %v10317_v11 = vmul.f32 %v10217_v10, %v9893_v40  ;;  %v5457_v40 = vmul.f32 %v10265_v39, %v10042_v29 }
 0x880   : > { %v5247_v1 = vsel %vm5246_vm8, %v5223_v41, %v5235_v23  ;;  %v5253_v34 = vsel %vm5246_vm8, %v5235_v23, %v5223_v41  ;;  %v5384_v54 = vmul.f32 %v10254_v20, %v9845_v35  ;;  %v5386_v35 = vmul.f32 %v10254_v20, %v9859_v17  ;;  %v5886_v17 = vld [vmem:[%s10628_s5 + $0x10] sm:$0x3] }
 0x881   : > { %v5272_v52 = vmul.f32 %v10237_v5, %v5253_v34  ;;  %v5273_v37 = vmul.f32 %v10240_v7, %v5247_v1  ;;  %v5237_v51 = vpop.permute.xlu1 %5236  ;;  %v10345_v29 = vmul.f32 %v10214_v8, %v9903_v62 }
 0x882   : > { %v5248_v23 = vsel %vm5246_vm8, %v5225_v50, %v5237_v51  ;;  %v5254_v41 = vsel %vm5246_vm8, %v5237_v51, %v5225_v50  ;;  %v5312_v51 = vmul.f32 %v10217_v10, %v9851_v45  ;;  %v10328_v45 = vmul.f32 %v10254_v20, %v9901_v60 }
 0x883   : > { %v5274_v1 = vmul.f32 %v10237_v5, %v5254_v41  ;;  %v5275_v34 = vmul.f32 %v10240_v7, %v5248_v23  ;;  %v5284_v48 = vadd.f32 %v5272_v52, %v10133_v16  ;;  %v5285_v63 = vadd.f32 %v5273_v37, %v10136_v44  ;;  %v10299_v43 = vpop.permute.xlu0 %5501 }
 0x884   : > { %v10313_v16 = vmul.f32 %v10214_v8, %v9889_v21  ;;  %v5458_v44 = vmul.f32 %v10268_v53, %v10046_v14  ;;  %v10340_v60 = vrot.slane %v5886_v17, %v9930_v36  ;;  %v10931_v14 = vld [vmem:[#allocation42_spill] sm:$0xff]  ;;  %v5460_v36 = vmul.f32 %v10268_v53, %v10060_v15 }
 0x885   : > { %v5321_v50 = vadd.f32 %v5309_v22, %v5284_v48  ;;  %v5322_v23 = vadd.f32 %v5310_v4, %v5285_v63  ;;  %v10309_v41 = vpop.permute.xlu1 %5503  ;;  %v5286_v22 = vadd.f32 %v5274_v1, %v10149_v59  ;;  %v5287_v21 = vadd.f32 %v5275_v34, %v10152_v31  ;;  %v10932_v34 = vld [vmem:[#allocation43_spill] sm:$0xff] }
 0x886   : > { %v10337_v63 = vrot.slane %v5886_v17, %v9925_v6  ;;  %v5459_v6 = vmul.f32 %v10265_v39, %v10056_v18  ;;  %v5512_v18 = vsel %vm5505_vm9, %v10184_v30, %v10162_v46  ;;  %v5507_v8 = vsel %vm5505_vm9, %v10164_v25, %v10192_v2 }
 0x887   : > { %v5395_v4 = vadd.f32 %v5383_v9, %v5321_v50  ;;  %v5396_v52 = vadd.f32 %v5384_v54, %v5322_v23  ;;  %v5227_v37 = vpop.permute.xlu0 %5226  ;;  %v5323_v48 = vadd.f32 %v5311_v27, %v5286_v22  ;;  %v5324_v49 = vadd.f32 %v5312_v51, %v5287_v21  ;;  %v10933_v50 = vld [vmem:[#allocation44_spill] sm:$0xff] }
 0x888   : > { %v10349_v54 = vmul.f32 %v10217_v10, %v10931_v14  ;;  %v10357_v51 = vmul.f32 %v10251_v57, %v10932_v34  ;;  %v10361_v62 = vmul.f32 %v10254_v20, %v10933_v50  ;;  %v5506_v10 = vsel %vm5505_vm9, %v10162_v46, %v10184_v30 }
 0x889   : > { %v5469_v59 = vadd.f32 %v5457_v40, %v5395_v4  ;;  %v5470_v1 = vadd.f32 %v5458_v44, %v5396_v52  ;;  %v5229_v31 = vpop.permute.xlu1 %5228  ;;  %v5397_v27 = vadd.f32 %v5385_v3, %v5323_v48  ;;  %v5398_v9 = vadd.f32 %v5386_v35, %v5324_v49 }
 0x88a   : > { %v5513_v3 = vsel %vm5505_vm9, %v10192_v2, %v10164_v25  ;;  %v10381_v17 = vmul.f32 %v10251_v57, %v9981_v42  ;;  %v10385_v46 = vmul.f32 %v10254_v20, %v9985_v0  ;;  %v5177_v30 = vsel %vm5172_vm7, %v10194_v61, %v10202_v28 }
 0x88b   : > { %v5556_v15 = vpop.permute.xlu0 %5555  ;;  %v5471_v35 = vadd.f32 %v5459_v6, %v5397_v27  ;;  %v5472_v23 = vadd.f32 %v5460_v36, %v5398_v9  ;;  %v5183_v2 = vsel %vm5172_vm7, %v10202_v28, %v10194_v61  ;;  %v5461_v22 = vmul.f32 %v10265_v39, %v10094_v13 }
 0x88c   : > { %v5462_v42 = vmul.f32 %v10268_v53, %v10098_v38  ;;  %v10401_v0 = vmul.f32 %v10265_v39, %v10106_v26  ;;  %v10405_v21 = vmul.f32 %v10268_v53, %v10110_v24  ;;  %v5531_v40 = vmul.f32 %v10272_v58, %v5506_v10  ;;  %v10934_v10 = vld [vmem:[#allocation55_spill] sm:$0xff] }
 0x88d   : > { %v5558_v25 = vpop.permute.xlu1 %5557  ;;  %v5532_v44 = vmul.f32 %v10275_v19, %v5512_v18  ;;  %v5533_v61 = vmul.f32 %v10272_v58, %v5507_v8  ;;  %v5534_v28 = vmul.f32 %v10275_v19, %v5513_v3  ;;  %v10412_v4 = vmul.f32 %v10117_v32, %v5183_v2 }
 0x88e   : > { %v10415_v38 = vmul.f32 %v10120_v33, %v5177_v30  ;;  %v5178_v52 = vsel %vm5172_vm7, %v10196_v12, %v10204_v47  ;;  %v5184_v48 = vsel %vm5172_vm7, %v10204_v47, %v10196_v12  ;;  %v5543_v27 = vadd.f32 %v5531_v40, %v5469_v59  ;;  %v10935_v12 = vld [vmem:[#allocation56_spill] sm:$0xff] }
 0x88f   : > { %v5239_v13 = vpop.permute.xlu0 %5238  ;;  %v5544_v9 = vadd.f32 %v5532_v44, %v5470_v1  ;;  %v5545_v2 = vadd.f32 %v5533_v61, %v5471_v35 }
 0x890   : > { %v5249_v26 = vsel %vm5246_vm8, %v5227_v37, %v5239_v13  ;;  %v5255_v24 = vsel %vm5246_vm8, %v5239_v13, %v5227_v37  ;;  %v5546_v13 = vadd.f32 %v5534_v28, %v5472_v23 }
 0x891   : > { %v5276_v49 = vmul.f32 %v10237_v5, %v5255_v24  ;;  %v5277_v14 = vmul.f32 %v10240_v7, %v5249_v26  ;;  %v5241_v6 = vpop.permute.xlu1 %5240  ;;  %v10936_v26 = vld [vmem:[#allocation57_spill] sm:$0xff] }
 0x892   : > { %v5250_v36 = vsel %vm5246_vm8, %v5229_v31, %v5241_v6  ;;  %v5256_v37 = vsel %vm5246_vm8, %v5241_v6, %v5229_v31 }
 0x893   : > { %v5278_v34 = vmul.f32 %v10237_v5, %v5256_v37  ;;  %v5279_v50 = vmul.f32 %v10240_v7, %v5250_v36  ;;  %v5288_v18 = vadd.f32 %v5276_v49, %v10934_v10  ;;  %v5289_v47 = vadd.f32 %v5277_v14, %v10935_v12  ;;  %v5568_v8 = vpop.permute.xlu0 %5567  ;;  %v10937_v49 = vld [vmem:[#allocation58_spill] sm:$0xff] }
 0x894   : > { %v5580_v3 = vsel %vm5579_vm10, %v5556_v15, %v5568_v8  ;;  %v5586_v30 = vsel %vm5579_vm10, %v5568_v8, %v5556_v15  ;;  %v5209_v10 = vmul.f32 %v10120_v33, %v5178_v52  ;;  %v10940_v52 = vld [vmem:[#allocation61_spill] sm:$0xff]  ;;  %v10942_v12 = vld [vmem:[#allocation62_spill] sm:$0xff] }
 0x895   : > { %v5325_v59 = vadd.f32 %v10313_v16, %v5288_v18  ;;  %v5326_v1 = vadd.f32 %v10317_v11, %v5289_v47  ;;  %v5605_v31 = vmul.f32 %v10337_v63, %v5580_v3  ;;  %v5606_v40 = vmul.f32 %v10340_v60, %v5586_v30  ;;  %v5570_v44 = vpop.permute.xlu1 %5569  ;;  %v10943_v47 = vld [vmem:[#allocation60_spill] sm:$0xff]  ;;  %v10944_v30 = vld [vmem:[#allocation51_spill] sm:$0xff] }
 0x896   : > { %v5290_v24 = vadd.f32 %v5278_v34, %v10936_v26  ;;  %v5291_v14 = vadd.f32 %v5279_v50, %v10937_v49  ;;  %v5581_v6 = vsel %vm5579_vm10, %v5558_v25, %v5570_v44  ;;  %v5587_v15 = vsel %vm5579_vm10, %v5570_v44, %v5558_v25  ;;  %v10948_v44 = vld [vmem:[#allocation47_spill] sm:$0xff] }
 0x897   : > { %v5399_v35 = vadd.f32 %v10324_v56, %v5325_v59  ;;  %v5400_v16 = vadd.f32 %v10328_v45, %v5326_v1  ;;  %v5617_v11 = vadd.f32 %v5605_v31, %v5543_v27  ;;  %v5618_v23 = vadd.f32 %v5606_v40, %v5544_v9  ;;  %v5231_v61 = vpop.permute.xlu0 %5230  ;;  %v10946_v1 = vld [vmem:[#allocation53_spill] sm:$0xff] }
 0x898   : > { %v5327_v28 = vadd.f32 %v10345_v29, %v5290_v24  ;;  %v5328_v36 = vadd.f32 %v10349_v54, %v5291_v14  ;;  %v5607_v37 = vmul.f32 %v10337_v63, %v5581_v6  ;;  %v5608_v34 = vmul.f32 %v10340_v60, %v5587_v15  ;;  %v10949_v24 = vld [vmem:[#allocation48_spill] sm:$0xff]  ;;  %v10950_v14 = vld [vmem:[#allocation49_spill] sm:$0xff]  ;;  %v10951_v15 = vld [vmem:[#allocation50_spill] sm:$0xff] }
 0x899   : > { %v5208_v50 = vmul.f32 %v10117_v32, %v5184_v48  ;;  %v5473_v25 = vadd.f32 %v5461_v22, %v5399_v35  ;;  %v5474_v18 = vadd.f32 %v5462_v42, %v5400_v16  ;;  %5629 = vst [vmem:[%s10629_s6] sm:$0xff] %v5617_v11  ;;  %5630 = vst [vmem:[%s10629_s6 + $0x8] sm:$0xff] %v5618_v23  ;;  %v5233_v56 = vpop.permute.xlu1 %5232  ;;  %v10938_v32 = vld [vmem:[#allocation45_spill] sm:$0xff]  ;;  %v10939_v22 = vld [vmem:[#allocation46_spill] sm:$0xff] }
 0x89a   : > { %v5401_v45 = vadd.f32 %v10357_v51, %v5327_v28  ;;  %v5402_v29 = vadd.f32 %v10361_v62, %v5328_v36  ;;  %v5619_v54 = vadd.f32 %v5607_v37, %v5545_v2  ;;  %v5620_v27 = vadd.f32 %v5608_v34, %v5546_v13  ;;  %v10941_v48 = vld [vmem:[#allocation59_spill] sm:$0xff]  ;;  %v10945_v13 = vld [vmem:[#allocation52_spill] sm:$0xff] }
 0x89b   : > { %v10471_v33 = vmul.f32 %v10251_v57, %v10938_v32  ;;  %v10475_v42 = vmul.f32 %v10254_v20, %v10939_v22  ;;  %v5508_v9 = vsel %vm5505_vm9, %v10941_v48, %v10940_v52  ;;  %v5514_v51 = vsel %vm5505_vm9, %v10940_v52, %v10941_v48  ;;  %v5560_v62 = vpop.permute.xlu0 %5559  ;;  %v10952_v28 = vld [vmem:[#allocation63_spill] sm:$0xff]  ;;  %v10953_v34 = vld [vmem:[#allocation64_spill] sm:$0xff] }
 0x89c   : > { %v5509_v57 = vsel %vm5505_vm9, %v10943_v47, %v10942_v12  ;;  %v5515_v20 = vsel %vm5505_vm9, %v10942_v12, %v10943_v47  ;;  %v5475_v8 = vadd.f32 %v10401_v0, %v5401_v45  ;;  %v5476_v3 = vadd.f32 %v10405_v21, %v5402_v29  ;;  %5631 = vst [vmem:[%s10629_s6 + $0x10] sm:$0xff] %v5619_v54  ;;  %v10947_v0 = vld [vmem:[#allocation54_spill] sm:$0xff] }
 0x89d   : > { %5632 = vst [vmem:[%s10629_s6 + $0x18] sm:$0xff] %v5620_v27  ;;  %v5465_v2 = vmul.f32 %v10265_v39, %v10944_v30  ;;  %v5466_v59 = vmul.f32 %v10268_v53, %v10945_v13  ;;  %v10507_v31 = vmul.f32 %v10265_v39, %v10946_v1  ;;  %v10511_v21 = vmul.f32 %v10268_v53, %v10947_v0  ;;  %v5562_v40 = vpop.permute.xlu1 %5561 }
 0x89e   : > { %v5218_v26 = vadd.f32 %v10412_v4, %v10948_v44  ;;  %v5219_v49 = vadd.f32 %v10415_v38, %v10949_v24  ;;  %v5220_v6 = vadd.f32 %v5208_v50, %v10950_v14  ;;  %v5221_v35 = vadd.f32 %v5209_v10, %v10951_v15  ;;  %v10957_v24 = vld [vmem:[#allocation68_spill] sm:$0xff] }
 0x89f   : > { %v5535_v16 = vmul.f32 %v10272_v58, %v5508_v9  ;;  %v5536_v39 = vmul.f32 %v10275_v19, %v5514_v51  ;;  %v5537_v11 = vmul.f32 %v10272_v58, %v5509_v57  ;;  %v5538_v53 = vmul.f32 %v10275_v19, %v5515_v20  ;;  %v5243_v23 = vpop.permute.xlu0 %5242  ;;  %v10954_v20 = vld [vmem:[#allocation65_spill] sm:$0xff] }
 0x8a0   : > { %v5510_v4 = vsel %vm5505_vm9, %v10952_v28, %v10299_v43  ;;  %v5516_v38 = vsel %vm5505_vm9, %v10299_v43, %v10952_v28  ;;  %v5251_v36 = vsel %vm5246_vm8, %v5231_v61, %v5243_v23  ;;  %v5257_v37 = vsel %vm5246_vm8, %v5243_v23, %v5231_v61 }
 0x8a1   : > { %v5511_v50 = vsel %vm5505_vm9, %v10953_v34, %v10309_v41  ;;  %v5517_v10 = vsel %vm5505_vm9, %v10309_v41, %v10953_v34  ;;  %v5280_v45 = vmul.f32 %v10237_v5, %v5257_v37  ;;  %v5281_v43 = vmul.f32 %v10240_v7, %v5251_v36  ;;  %v5245_v29 = vpop.permute.xlu1 %5244 }
 0x8a2   : > { %v5252_v54 = vsel %vm5246_vm8, %v5233_v56, %v5245_v29  ;;  %v5258_v61 = vsel %vm5246_vm8, %v5245_v29, %v5233_v56  ;;  %v5547_v27 = vadd.f32 %v5535_v16, %v5473_v25  ;;  %v5548_v32 = vadd.f32 %v5536_v39, %v5474_v18  ;;  %v10955_v56 = vld [vmem:[#allocation66_spill] sm:$0xff] }
 0x8a3   : > { %v5292_v22 = vadd.f32 %v5280_v45, %v5218_v26  ;;  %v5293_v52 = vadd.f32 %v5281_v43, %v5219_v49  ;;  %v5282_v48 = vmul.f32 %v10237_v5, %v5258_v61  ;;  %v5283_v9 = vmul.f32 %v10240_v7, %v5252_v54  ;;  %v5572_v41 = vpop.permute.xlu0 %5571 }
 0x8a4   : > { %v5582_v51 = vsel %vm5579_vm10, %v5560_v62, %v5572_v41  ;;  %v5588_v12 = vsel %vm5579_vm10, %v5572_v41, %v5560_v62  ;;  %v5549_v47 = vadd.f32 %v5537_v11, %v5475_v8  ;;  %v5550_v57 = vadd.f32 %v5538_v53, %v5476_v3  ;;  %v10956_v3 = vld [vmem:[#allocation67_spill] sm:$0xff] }
 0x8a5   : > { %v5329_v30 = vadd.f32 %v10954_v20, %v5292_v22  ;;  %v5330_v25 = vadd.f32 %v10955_v56, %v5293_v52  ;;  %v5294_v18 = vadd.f32 %v5282_v48, %v5220_v6  ;;  %v5295_v13 = vadd.f32 %v5283_v9, %v5221_v35  ;;  %v5574_v1 = vpop.permute.xlu1 %5573 }
 0x8a6   : > { %v5609_v5 = vmul.f32 %v10337_v63, %v5582_v51  ;;  %v5610_v7 = vmul.f32 %v10340_v60, %v5588_v12  ;;  %v5583_v0 = vsel %vm5579_vm10, %v5562_v40, %v5574_v1  ;;  %v5589_v44 = vsel %vm5579_vm10, %v5574_v1, %v5562_v40 }
 0x8a7   : > { %v5403_v62 = vadd.f32 %v10381_v17, %v5329_v30  ;;  %v5404_v8 = vadd.f32 %v10385_v46, %v5330_v25  ;;  %v5331_v26 = vadd.f32 %v10956_v3, %v5294_v18  ;;  %v5332_v49 = vadd.f32 %v10957_v24, %v5295_v13  ;;  %v5564_v14 = vpop.permute.xlu0 %5563 }
 0x8a8   : > { %v5621_v6 = vadd.f32 %v5609_v5, %v5547_v27  ;;  %v5622_v15 = vadd.f32 %v5610_v7, %v5548_v32  ;;  %v5611_v35 = vmul.f32 %v10337_v63, %v5583_v0  ;;  %v5612_v16 = vmul.f32 %v10340_v60, %v5589_v44 }
 0x8a9   : > { %v5405_v39 = vadd.f32 %v10471_v33, %v5331_v26  ;;  %v5406_v11 = vadd.f32 %v10475_v42, %v5332_v49  ;;  %v5566_v40 = vpop.permute.xlu1 %5565  ;;  %v5477_v53 = vadd.f32 %v5465_v2, %v5403_v62  ;;  %v5478_v17 = vadd.f32 %v5466_v59, %v5404_v8 }
 0x8aa   : > { %5633 = vst [vmem:[%s10629_s6 + $0x20] sm:$0xff] %v5621_v6  ;;  %5634 = vst [vmem:[%s10629_s6 + $0x28] sm:$0xff] %v5622_v15  ;;  %v5623_v46 = vadd.f32 %v5611_v35, %v5549_v47  ;;  %v5624_v23 = vadd.f32 %v5612_v16, %v5550_v57  ;;  %v5539_v28 = vmul.f32 %v10272_v58, %v5510_v4 }
 0x8ab   : > { %v5540_v36 = vmul.f32 %v10275_v19, %v5516_v38  ;;  %v5576_v33 = vpop.permute.xlu0 %5575  ;;  %v5479_v42 = vadd.f32 %v10507_v31, %v5405_v39  ;;  %v5480_v2 = vadd.f32 %v10511_v21, %v5406_v11  ;;  %v5541_v59 = vmul.f32 %v10272_v58, %v5511_v50 }
 0x8ac   : > { %v5542_v37 = vmul.f32 %v10275_v19, %v5517_v10  ;;  %5635 = vst [vmem:[%s10629_s6 + $0x30] sm:$0xff] %v5623_v46  ;;  %5636 = vst [vmem:[%s10629_s6 + $0x38] sm:$0xff] %v5624_v23  ;;  %v5584_v4 = vsel %vm5579_vm10, %v5564_v14, %v5576_v33  ;;  %v5590_v31 = vsel %vm5579_vm10, %v5576_v33, %v5564_v14 }
 0x8ad   : > { %v5551_v38 = vadd.f32 %v5539_v28, %v5477_v53  ;;  %v5552_v21 = vadd.f32 %v5540_v36, %v5478_v17  ;;  %v5613_v58 = vmul.f32 %v10337_v63, %v5584_v4  ;;  %v5614_v19 = vmul.f32 %v10340_v60, %v5590_v31  ;;  %v5578_v34 = vpop.permute.xlu1 %5577 }
 0x8ae   : > { %v5553_v50 = vadd.f32 %v5541_v59, %v5479_v42  ;;  %v5554_v10 = vadd.f32 %v5542_v37, %v5480_v2  ;;  %v5585_v45 = vsel %vm5579_vm10, %v5566_v40, %v5578_v34  ;;  %v5591_v43 = vsel %vm5579_vm10, %v5578_v34, %v5566_v40 }
 0x8af   : > { %v5625_v29 = vadd.f32 %v5613_v58, %v5551_v38  ;;  %v5626_v54 = vadd.f32 %v5614_v19, %v5552_v21  ;;  %v5615_v61 = vmul.f32 %v10337_v63, %v5585_v45  ;;  %v5616_v27 = vmul.f32 %v10340_v60, %v5591_v43 }
 0x8b1   : > { %5637 = vst [vmem:[%s10629_s6 + $0x40] sm:$0xff] %v5625_v29  ;;  %5638 = vst [vmem:[%s10629_s6 + $0x48] sm:$0xff] %v5626_v54  ;;  %v5627_v32 = vadd.f32 %v5615_v61, %v5553_v50  ;;  %v5628_v22 = vadd.f32 %v5616_v27, %v5554_v10 }
 0x8b3   : > { %5639 = vst [vmem:[%s10629_s6 + $0x50] sm:$0xff] %v5627_v32  ;;  %5640 = vst [vmem:[%s10629_s6 + $0x58] sm:$0xff] %v5628_v22 }
 0x8b4 PF: > { %p13_p12 = scmp.ge.s32.totalorder %s6556_s25, 6   ;;  %s10958_s21 = smov %s6483_s22 }
 0x8b5   : > { %s10959_s22 = smov %s6565_s28  ;;  %s10960_s23 = smov %s6556_s25 }
 0x8b6   :  { %15 = sbr.rel (!%p13_p12) target bundleno = 2 (0x2), region = 133 }

</bundles_post_ra>
